<compile_context>
chip_gen: v7x
topology: tpu7x:2x2x1
jax: 0.10.0
libtpu: 0.0.40
codegen_flags: <defaults>
</compile_context>

<pallas_src>
import functools

import numpy as np
import jax
import jax.numpy as jnp
from jax import lax
from jax.experimental import pallas as pl
from jax.experimental.pallas import tpu as pltpu

LANE = 128
_MXU_DTYPE = jnp.bfloat16   # MXU operands; accumulation stays f32.


def _round_up(x, m):
    return ((x + m - 1) // m) * m


@functools.lru_cache(maxsize=None)
def _vmem_limit_bytes():
    # Re-derive the scoped-VMEM budget per generation (v7x: 64 MiB physical).
    try:
        cap = int(getattr(pltpu.get_tpu_info(), "vmem_capacity_bytes",
                          64 * 1024 * 1024))
    except Exception:
        cap = 64 * 1024 * 1024
    return max(32 * 1024 * 1024, min(cap * 5 // 8, 64 * 1024 * 1024))


def _pick_batch_tile(n, lrows):
    """Largest divisor of n keeping the LHS row-slab <= ~256 MXU rows."""
    best = 1
    for b in range(1, n + 1):
        if n % b == 0 and b * lrows <= 256:
            best = b
    return best


# -----------------------------------------------------------------------------
# Pallas kernel: fused BN-affine + ReLU + halo-mask + KxK conv
#                (+ fused 1x1 projection shortcut, + fused residual add)
# One grid step = B_TILE images x one output-channel tile.
# -----------------------------------------------------------------------------
def _preact_conv_kernel(*refs, ksize, stride, hpp, wpp, ho, bt, cinp, ctile,
                        has_shortcut, has_residual):
    a_ref, m_ref, sc_ref, sh_ref, w_ref = refs[:5]
    idx = 5
    wsc_ref = None
    res_ref = None
    if has_shortcut:
        wsc_ref = refs[idx]
        idx += 1
    if has_residual:
        res_ref = refs[idx]
        idx += 1
    out_ref = refs[idx]
    outsc_ref = refs[idx + 1] if has_shortcut else None

    lrows = ho * wpp          # interleaved output rows per image
    rows = bt * lrows         # MXU M dimension

    # BN affine + ReLU (f32 epilogue, friendly to v5e), halo zeroed by the tiny
    # per-row validity vector, then ONE cast to bf16 for the MXU.
    act = jnp.maximum(a_ref[...] * sc_ref[...] + sh_ref[...], 0.0)
    act = (act * m_ref[...]).astype(_MXU_DTYPE)

    acc = jnp.zeros((rows, ctile), jnp.float32)
    # K*K taps: each is a contiguous row-slab of the phase-folded activation
    # (no per-tap relayout), fed to the MXU with f32 accumulation.
    for kh in range(ksize):
        for kw in range(ksize):
            p = (kh % stride) * stride + (kw % stride)
            start = (p * hpp + kh // stride) * wpp + (kw // stride)
            win = act[:, start:start + lrows, :].reshape(rows, cinp)
            acc = acc + jnp.dot(win, w_ref[kh * ksize + kw],
                                preferred_element_type=jnp.float32)

    out = acc.reshape(bt, lrows, ctile)
    if has_residual:
        out = out + res_ref[...]
    out_ref[...] = out.astype(out_ref.dtype)

    if has_shortcut:
        # 1x1 stride-s projection of the activated map == the centre tap.
        pad = ksize // 2
        p = (pad % stride) * stride + (pad % stride)
        start = (p * hpp + pad // stride) * wpp + (pad // stride)
        win = act[:, start:start + lrows, :].reshape(rows, cinp)
        sc = jnp.dot(win, wsc_ref[...], preferred_element_type=jnp.float32)
        outsc_ref[...] = sc.reshape(bt, lrows, ctile).astype(outsc_ref.dtype)


def fused_preact_conv(a_fold, mask, scale, shift, w_kk, *, ksize, stride,
                      hpp, wpp, ho, wsc=None, residual=None):
    """conv(relu(BN(x))) on a phase-folded NHWC(C lane-padded) activation.

    a_fold:   (N, R, Cp)   phase-folded, zero-padded input, Cp % 128 == 0
    mask:     (R, 1)       1.0 on valid (non-halo) rows, 0.0 on halo rows
    scale/shift: (1, Cp)   BN affine folded to per-channel scale/shift
    w_kk:     (K*K, Cp, Coutp) bf16 conv weights, Coutp % 128 == 0
    wsc:      (Cp, Coutp)  optional fused 1x1 projection shortcut weights
    residual: (N, ho*wpp, Coutp) optional residual, already in interleaved rows
    returns   (N, ho*wpp, Coutp) f32 [, shortcut of same shape]
    """
    n, r, cinp = a_fold.shape
    kk, _, coutp = w_kk.shape
    assert kk == ksize * ksize and cinp % LANE == 0 and coutp % LANE == 0
    lrows = ho * wpp
    bt = _pick_batch_tile(n, lrows)
    nb = n // bt
    ctile = 256 if coutp % 256 == 0 else LANE
    nj = coutp // ctile
    has_sc = wsc is not None
    has_res = residual is not None

    in_specs = [
        pl.BlockSpec((bt, r, cinp), lambda b, j: (b, 0, 0)),       # activation
        pl.BlockSpec((r, 1), lambda b, j: (0, 0)),                 # halo validity
        pl.BlockSpec((1, cinp), lambda b, j: (0, 0)),              # BN scale
        pl.BlockSpec((1, cinp), lambda b, j: (0, 0)),              # BN shift
        pl.BlockSpec((kk, cinp, ctile), lambda b, j: (0, 0, j)),   # conv weights
    ]
    args = [a_fold, mask, scale, shift, w_kk]
    if has_sc:
        in_specs.append(pl.BlockSpec((cinp, ctile), lambda b, j: (0, j)))
        args.append(wsc)
    if has_res:
        in_specs.append(pl.BlockSpec((bt, lrows, ctile), lambda b, j: (b, 0, j)))
        args.append(residual)

    out_block = pl.BlockSpec((bt, lrows, ctile), lambda b, j: (b, 0, j))
    if has_sc:
        out_shape = (jax.ShapeDtypeStruct((n, lrows, coutp), jnp.float32),
                     jax.ShapeDtypeStruct((n, lrows, coutp), jnp.float32))
        out_specs = (out_block, out_block)
    else:
        out_shape = jax.ShapeDtypeStruct((n, lrows, coutp), jnp.float32)
        out_specs = out_block

    kernel = functools.partial(
        _preact_conv_kernel, ksize=ksize, stride=stride, hpp=hpp, wpp=wpp,
        ho=ho, bt=bt, cinp=cinp, ctile=ctile,
        has_shortcut=has_sc, has_residual=has_res)

    return pl.pallas_call(
        kernel,
        grid=(nb, nj),
        in_specs=in_specs,
        out_specs=out_specs,
        out_shape=out_shape,
        compiler_params=pltpu.CompilerParams(
            dimension_semantics=("parallel", "parallel"),
            vmem_limit_bytes=_vmem_limit_bytes(),
        ),
    )(*args)


# -----------------------------------------------------------------------------
# Glue: zero-pad + stride phase-fold (space-to-depth), BN stat folding,
# block assembly.  All heavy per-element work stays inside the Pallas kernels.
# -----------------------------------------------------------------------------
def _pad_and_fold(x, k, s):
    """Zero-pad for a 'same' KxK/stride-s conv and phase-fold by `s` so every
    conv tap is one contiguous row-slab.  x: (N,H,W,Cp) -> (N, R, Cp)."""
    n, h, w, c = x.shape
    pad = k // 2
    ho = (h + 2 * pad - k) // s + 1
    wo = (w + 2 * pad - k) // s + 1
    dmax = (k - 1) // s
    hp_need = max(s * (ho - 1) + k, h + pad)
    wp_need = max(s * (wo - 1) + k, w + pad)
    hpp = max(-(-hp_need // s), ho + dmax + (1 if dmax > 0 else 0))  # +1 row slack
    wpp = max(-(-wp_need // s), wo + dmax)
    hp, wp = hpp * s, wpp * s
    xp = jnp.pad(x, ((0, 0), (pad, hp - h - pad), (pad, wp - w - pad), (0, 0)))
    xf = xp.reshape(n, hpp, s, wpp, s, c).transpose(0, 2, 4, 1, 3, 5)
    folded = xf.reshape(n, s * s * hpp * wpp, c)

    # Tiny (R, 1) halo-validity vector (static, shared across batch/channels).
    ph = np.arange(s).reshape(s, 1, 1, 1)
    pw = np.arange(s).reshape(1, s, 1, 1)
    hq = np.arange(hpp).reshape(1, 1, hpp, 1)
    wq = np.arange(wpp).reshape(1, 1, 1, wpp)
    rr = hq * s + ph
    cc = wq * s + pw
    valid = (rr >= pad) & (rr < pad + h) & (cc >= pad) & (cc < pad + w)
    mask = jnp.asarray(valid.reshape(s * s * hpp * wpp, 1), jnp.float32)
    return folded, mask, hpp, wpp, ho, wo


def _bn_affine(v, gamma, beta, eps=1e-5):
    # Training-mode BatchNorm folded to per-channel scale/shift.
    mean = jnp.mean(v, axis=(0, 1, 2))
    var = jnp.var(v, axis=(0, 1, 2))        # biased, like PyTorch normalization
    scale = gamma * lax.rsqrt(var + eps)
    return scale, beta - mean * scale


def _pad_vec(v, cp):
    return jnp.pad(v, (0, cp - v.shape[0]))


def preact_basic_block(x_img, p, stride, ksize):
    # x_img: (N, H, W, Cp_in) NHWC, lane-padded; first p["cin"] channels real.
    n, h, w, cp_in = x_img.shape
    cin, cout = p["cin"], p["cout"]
    coutp = p["w1"].shape[-1]

    # ---- conv1 (+ fused 1x1 projection shortcut), preceded by fused BN1+ReLU
    s1, b1 = _bn_affine(x_img[..., :cin], p["g1"], p["b1"])
    s1 = _pad_vec(s1, cp_in)[None, :]
    b1 = _pad_vec(b1, cp_in)[None, :]
    a1, mask1, hpp1, wpp1, ho, wo = _pad_and_fold(x_img, ksize, stride)

    if p["wsc"] is not None:
        y1_rows, sc_rows = fused_preact_conv(
            a1, mask1, s1, b1, p["w1"], ksize=ksize, stride=stride,
            hpp=hpp1, wpp=wpp1, ho=ho, wsc=p["wsc"])
        shortcut = sc_rows.reshape(n, ho, wpp1, coutp)[:, :, :wo, :]
    else:
        y1_rows = fused_preact_conv(
            a1, mask1, s1, b1, p["w1"], ksize=ksize, stride=stride,
            hpp=hpp1, wpp=wpp1, ho=ho)
        shortcut = x_img                      # identity: stride 1, Cin == Cout
    y1_img = y1_rows.reshape(n, ho, wpp1, coutp)[:, :, :wo, :]

    # ---- conv2 (+ fused residual add), preceded by fused BN2+ReLU
    s2, b2 = _bn_affine(y1_img[..., :cout], p["g2"], p["b2"])
    s2 = _pad_vec(s2, coutp)[None, :]
    b2 = _pad_vec(b2, coutp)[None, :]
    a2, mask2, hpp2, wpp2, ho2, wo2 = _pad_and_fold(y1_img, ksize, 1)
    res_rows = jnp.pad(shortcut, ((0, 0), (0, 0), (0, wpp2 - wo), (0, 0)))
    res_rows = res_rows.reshape(n, ho * wpp2, coutp)
    out_rows = fused_preact_conv(
        a2, mask2, s2, b2, p["w2"], ksize=ksize, stride=1,
        hpp=hpp2, wpp=wpp2, ho=ho, residual=res_rows)
    return out_rows.reshape(n, ho, wpp2, coutp)[:, :, :wo, :]


def network_block_forward(x_nchw, net_params, stride, ksize):
    x = jnp.transpose(x_nchw, (0, 2, 3, 1)).astype(jnp.float32)   # NCHW -> NHWC
    cin0 = net_params[0]["cin"]
    x = jnp.pad(x, ((0, 0), (0, 0), (0, 0), (0, _round_up(cin0, LANE) - cin0)))
    for i, p in enumerate(net_params):
        x = preact_basic_block(x, p, stride if i == 0 else 1, ksize)
    cout = net_params[-1]["cout"]
    return jnp.transpose(x[..., :cout], (0, 3, 1, 2))   # strip lane pad, NCHW


# -----------------------------------------------------------------------------
# Parameter init (matches nn.Module shapes) + lane-dense bf16 packing
# -----------------------------------------------------------------------------
def init_params(key, nb_layers, in_planes, out_planes, stride, ksize):
    params = []
    for i in range(nb_layers):
        cin = in_planes if i == 0 else out_planes
        s = stride if i == 0 else 1
        key, k1, k2, k3 = jax.random.split(key, 4)
        std1 = (2.0 / (cin * ksize * ksize)) ** 0.5
        std2 = (2.0 / (out_planes * ksize * ksize)) ** 0.5
        params.append({
            "cin": cin, "cout": out_planes,
            "g1": jnp.ones((cin,), jnp.float32),
            "b1": jnp.zeros((cin,), jnp.float32),
            "w1": std1 * jax.random.normal(k1, (ksize, ksize, cin, out_planes), jnp.float32),
            "g2": jnp.ones((out_planes,), jnp.float32),
            "b2": jnp.zeros((out_planes,), jnp.float32),
            "w2": std2 * jax.random.normal(k2, (ksize, ksize, out_planes, out_planes), jnp.float32),
            "wsc": ((2.0 / cin) ** 0.5
                    * jax.random.normal(k3, (1, 1, cin, out_planes), jnp.float32)
                    if (s != 1 or cin != out_planes) else None),
        })
    return params


def prepare_params(raw_params, in_planes):
    """Weights -> (K*K, Cin_p, Cout_p) bf16, channels padded to multiples of 128."""
    prepared = []
    cp_in = _round_up(in_planes, LANE)
    for p in raw_params:
        cin, cout = p["cin"], p["cout"]
        k = p["w1"].shape[0]
        coutp = _round_up(cout, LANE)
        w1 = p["w1"].reshape(k * k, cin, cout)
        w1 = jnp.pad(w1, ((0, 0), (0, cp_in - cin), (0, coutp - cout))).astype(_MXU_DTYPE)
        w2 = p["w2"].reshape(k * k, cout, cout)
        w2 = jnp.pad(w2, ((0, 0), (0, coutp - cout), (0, coutp - cout))).astype(_MXU_DTYPE)
        wsc = None
        if p["wsc"] is not None:
            wsc = p["wsc"].reshape(cin, cout)
            wsc = jnp.pad(wsc, ((0, cp_in - cin), (0, coutp - cout))).astype(_MXU_DTYPE)
        prepared.append({"cin": cin, "cout": cout,
                         "g1": p["g1"], "b1": p["b1"],
                         "g2": p["g2"], "b2": p["b2"],
                         "w1": w1, "w2": w2, "wsc": wsc})
        cp_in = coutp
    return prepared


# -----------------------------------------------------------------------------
# Pure-JAX reference (lax.conv, same bf16-operand / f32-accumulate contract)
# -----------------------------------------------------------------------------
def _ref_forward(x_nchw, raw_params, stride, ksize):
    dn = ("NHWC", "HWIO", "NHWC")
    pad = ksize // 2

    def bn_relu(v, g, b):
        m = jnp.mean(v, axis=(0, 1, 2))
        var = jnp.var(v, axis=(0, 1, 2))
        return jnp.maximum((v - m) * lax.rsqrt(var + 1e-5) * g + b, 0.0)

    def conv(a, wgt, s, p):
        return lax.conv_general_dilated(
            a.astype(jnp.bfloat16), wgt.astype(jnp.bfloat16), (s, s),
            [(p, p)] * 2, dimension_numbers=dn,
            preferred_element_type=jnp.float32)

    x = jnp.transpose(x_nchw, (0, 2, 3, 1)).astype(jnp.float32)
    for i, p in enumerate(raw_params):
        s = stride if i == 0 else 1
        act1 = bn_relu(x, p["g1"], p["b1"])
        y1 = conv(act1, p["w1"], s, pad)
        sc = conv(act1, p["wsc"], s, 0) if p["wsc"] is not None else x
        act2 = bn_relu(y1, p["g2"], p["b2"])
        x = conv(act2, p["w2"], 1, pad) + sc
    return jnp.transpose(x, (0, 3, 1, 2))


# -----------------------------------------------------------------------------
if __name__ == "__main__":
    # NetworkBlock(nb_layers=2, in_planes=4, out_planes=8, stride=2)
    nb_layers, in_planes, out_planes, stride, ksize = 2, 4, 8, 2, 3

    key = jax.random.PRNGKey(0)
    kx, kp = jax.random.split(key)
    x = jax.random.normal(kx, (2, in_planes, 16, 16), jnp.float32)  # NCHW
    raw_params = init_params(kp, nb_layers, in_planes, out_planes, stride, ksize)
    net_params = prepare_params(raw_params, in_planes)

    fwd = jax.jit(lambda xx: network_block_forward(xx, net_params, stride, ksize))
    out = fwd(x)
    jax.block_until_ready(out)

    ref = _ref_forward(x, raw_params, stride, ksize)
    assert out.shape == (2, out_planes, 8, 8), out.shape
    err = float(jnp.max(jnp.abs(out - ref)))
    assert err < 1e-2, err

    # TODO(synk): BatchNorm running-stat buffer updates (training bookkeeping
    # only) are not modeled; they do not affect the forward output in train mode.
    print("KERNEL_OK")
</pallas_src>

<mosaic_0001>
module attributes {stable_mosaic.version = 11 : i64} {
  func.func @_preact_conv_kernel(%arg0: i32, %arg1: i32, %arg2: memref<2x360x128xf32, #tpu.memory_space<vmem>>, %arg3: memref<360x1xf32, #tpu.memory_space<vmem>>, %arg4: memref<1x128xf32, #tpu.memory_space<vmem>>, %arg5: memref<1x128xf32, #tpu.memory_space<vmem>>, %arg6: memref<9x128x128xbf16, #tpu.memory_space<vmem>>, %arg7: memref<128x128xbf16, #tpu.memory_space<vmem>>, %arg8: memref<2x72x128xf32, #tpu.memory_space<vmem>>, %arg9: memref<2x72x128xf32, #tpu.memory_space<vmem>>) attributes {dimension_semantics = [#tpu.dimension_semantics<parallel>, #tpu.dimension_semantics<parallel>], iteration_bounds = array<i64: 1, 1>, scalar_prefetch = 0 : i64, scratch_operands = 0 : i64, tpu.core_type = #tpu.core_type<tc>, window_params = [{transform_indices = @transform_0, window_bounds = array<i64: 2, 360, 128>}, {pipeline_mode = #tpu.pipeline_mode<synchronous>, transform_indices = @transform_1, window_bounds = array<i64: 360, 1>}, {pipeline_mode = #tpu.pipeline_mode<synchronous>, transform_indices = @transform_2, window_bounds = array<i64: 1, 128>}, {pipeline_mode = #tpu.pipeline_mode<synchronous>, transform_indices = @transform_3, window_bounds = array<i64: 1, 128>}, {transform_indices = @transform_4, window_bounds = array<i64: 9, 128, 128>}, {transform_indices = @transform_5, window_bounds = array<i64: 128, 128>}, {transform_indices = @transform_6, window_bounds = array<i64: 2, 72, 128>}, {transform_indices = @transform_7, window_bounds = array<i64: 2, 72, 128>}]} {
    %c0 = arith.constant 0 : index
    %c0_0 = arith.constant 0 : index
    %c0_1 = arith.constant 0 : index
    %0 = vector.load %arg2[%c0, %c0_0, %c0_1] : memref<2x360x128xf32, #tpu.memory_space<vmem>>, vector<2x360x128xf32>
    %c0_2 = arith.constant 0 : index
    %c0_3 = arith.constant 0 : index
    %1 = vector.load %arg4[%c0_2, %c0_3] : memref<1x128xf32, #tpu.memory_space<vmem>>, vector<1x128xf32>
    %2 = vector.shape_cast %1 : vector<1x128xf32> to vector<1x1x128xf32>
    %3 = vector.broadcast %2 : vector<1x1x128xf32> to vector<2x360x128xf32>
    %4 = arith.mulf %0, %3 : vector<2x360x128xf32>
    %c0_4 = arith.constant 0 : index
    %c0_5 = arith.constant 0 : index
    %5 = vector.load %arg5[%c0_4, %c0_5] : memref<1x128xf32, #tpu.memory_space<vmem>>, vector<1x128xf32>
    %6 = vector.shape_cast %5 : vector<1x128xf32> to vector<1x1x128xf32>
    %7 = vector.broadcast %6 : vector<1x1x128xf32> to vector<2x360x128xf32>
    %8 = arith.addf %4, %7 : vector<2x360x128xf32>
    %cst = arith.constant 0.000000e+00 : f32
    %9 = vector.broadcast %cst : f32 to vector<2x360x128xf32>
    %10 = arith.maximumf %8, %9 : vector<2x360x128xf32>
    %c0_6 = arith.constant 0 : index
    %c0_7 = arith.constant 0 : index
    %11 = vector.load %arg3[%c0_6, %c0_7] : memref<360x1xf32, #tpu.memory_space<vmem>>, vector<360x1xf32>
    %12 = vector.shape_cast %11 : vector<360x1xf32> to vector<1x360x1xf32>
    %13 = vector.broadcast %12 : vector<1x360x1xf32> to vector<2x360x128xf32>
    %14 = arith.mulf %10, %13 : vector<2x360x128xf32>
    %15 = arith.truncf %14 : vector<2x360x128xf32> to vector<2x360x128xbf16>
    %cst_8 = arith.constant 0.000000e+00 : f32
    %16 = vector.broadcast %cst_8 : f32 to vector<144x128xf32>
    %17 = vector.extract_strided_slice %15 {offsets = [0, 0, 0], sizes = [2, 72, 128], strides = [1, 1, 1]} : vector<2x360x128xbf16> to vector<2x72x128xbf16>
    %18 = vector.shape_cast %17 : vector<2x72x128xbf16> to vector<144x128xbf16>
    %c0_9 = arith.constant 0 : index
    %c0_10 = arith.constant 0 : index
    %c0_11 = arith.constant 0 : index
    %19 = vector.load %arg6[%c0_9, %c0_10, %c0_11] : memref<9x128x128xbf16, #tpu.memory_space<vmem>>, vector<1x128x128xbf16>
    %20 = vector.shape_cast %19 : vector<1x128x128xbf16> to vector<128x128xbf16>
    %cst_12 = arith.constant dense<0.000000e+00> : vector<144x128xf32>
    %21 = tpu.matmul %18, %20, %cst_12 {dimension_numbers = #tpu.dot_dimension_numbers<[1], [0], [0], [1], [0, 0, 1, 1], [], []>} : vector<144x128xbf16>, vector<128x128xbf16>, vector<144x128xf32> -> vector<144x128xf32>
    %22 = arith.addf %16, %21 : vector<144x128xf32>
    %23 = vector.extract_strided_slice %15 {offsets = [0, 90, 0], sizes = [2, 72, 128], strides = [1, 1, 1]} : vector<2x360x128xbf16> to vector<2x72x128xbf16>
    %24 = vector.shape_cast %23 : vector<2x72x128xbf16> to vector<144x128xbf16>
    %c1 = arith.constant 1 : index
    %c0_13 = arith.constant 0 : index
    %c0_14 = arith.constant 0 : index
    %25 = vector.load %arg6[%c1, %c0_13, %c0_14] : memref<9x128x128xbf16, #tpu.memory_space<vmem>>, vector<1x128x128xbf16>
    %26 = vector.shape_cast %25 : vector<1x128x128xbf16> to vector<128x128xbf16>
    %cst_15 = arith.constant dense<0.000000e+00> : vector<144x128xf32>
    %27 = tpu.matmul %24, %26, %cst_15 {dimension_numbers = #tpu.dot_dimension_numbers<[1], [0], [0], [1], [0, 0, 1, 1], [], []>} : vector<144x128xbf16>, vector<128x128xbf16>, vector<144x128xf32> -> vector<144x128xf32>
    %28 = arith.addf %22, %27 : vector<144x128xf32>
    %29 = vector.extract_strided_slice %15 {offsets = [0, 1, 0], sizes = [2, 72, 128], strides = [1, 1, 1]} : vector<2x360x128xbf16> to vector<2x72x128xbf16>
    %30 = vector.shape_cast %29 : vector<2x72x128xbf16> to vector<144x128xbf16>
    %c2 = arith.constant 2 : index
    %c0_16 = arith.constant 0 : index
    %c0_17 = arith.constant 0 : index
    %31 = vector.load %arg6[%c2, %c0_16, %c0_17] : memref<9x128x128xbf16, #tpu.memory_space<vmem>>, vector<1x128x128xbf16>
    %32 = vector.shape_cast %31 : vector<1x128x128xbf16> to vector<128x128xbf16>
    %cst_18 = arith.constant dense<0.000000e+00> : vector<144x128xf32>
    %33 = tpu.matmul %30, %32, %cst_18 {dimension_numbers = #tpu.dot_dimension_numbers<[1], [0], [0], [1], [0, 0, 1, 1], [], []>} : vector<144x128xbf16>, vector<128x128xbf16>, vector<144x128xf32> -> vector<144x128xf32>
    %34 = arith.addf %28, %33 : vector<144x128xf32>
    %35 = vector.extract_strided_slice %15 {offsets = [0, 180, 0], sizes = [2, 72, 128], strides = [1, 1, 1]} : vector<2x360x128xbf16> to vector<2x72x128xbf16>
    %36 = vector.shape_cast %35 : vector<2x72x128xbf16> to vector<144x128xbf16>
    %c3 = arith.constant 3 : index
    %c0_19 = arith.constant 0 : index
    %c0_20 = arith.constant 0 : index
    %37 = vector.load %arg6[%c3, %c0_19, %c0_20] : memref<9x128x128xbf16, #tpu.memory_space<vmem>>, vector<1x128x128xbf16>
    %38 = vector.shape_cast %37 : vector<1x128x128xbf16> to vector<128x128xbf16>
    %cst_21 = arith.constant dense<0.000000e+00> : vector<144x128xf32>
    %39 = tpu.matmul %36, %38, %cst_21 {dimension_numbers = #tpu.dot_dimension_numbers<[1], [0], [0], [1], [0, 0, 1, 1], [], []>} : vector<144x128xbf16>, vector<128x128xbf16>, vector<144x128xf32> -> vector<144x128xf32>
    %40 = arith.addf %34, %39 : vector<144x128xf32>
    %41 = vector.extract_strided_slice %15 {offsets = [0, 270, 0], sizes = [2, 72, 128], strides = [1, 1, 1]} : vector<2x360x128xbf16> to vector<2x72x128xbf16>
    %42 = vector.shape_cast %41 : vector<2x72x128xbf16> to vector<144x128xbf16>
    %c4 = arith.constant 4 : index
    %c0_22 = arith.constant 0 : index
    %c0_23 = arith.constant 0 : index
    %43 = vector.load %arg6[%c4, %c0_22, %c0_23] : memref<9x128x128xbf16, #tpu.memory_space<vmem>>, vector<1x128x128xbf16>
    %44 = vector.shape_cast %43 : vector<1x128x128xbf16> to vector<128x128xbf16>
    %cst_24 = arith.constant dense<0.000000e+00> : vector<144x128xf32>
    %45 = tpu.matmul %42, %44, %cst_24 {dimension_numbers = #tpu.dot_dimension_numbers<[1], [0], [0], [1], [0, 0, 1, 1], [], []>} : vector<144x128xbf16>, vector<128x128xbf16>, vector<144x128xf32> -> vector<144x128xf32>
    %46 = arith.addf %40, %45 : vector<144x128xf32>
    %47 = vector.extract_strided_slice %15 {offsets = [0, 181, 0], sizes = [2, 72, 128], strides = [1, 1, 1]} : vector<2x360x128xbf16> to vector<2x72x128xbf16>
    %48 = vector.shape_cast %47 : vector<2x72x128xbf16> to vector<144x128xbf16>
    %c5 = arith.constant 5 : index
    %c0_25 = arith.constant 0 : index
    %c0_26 = arith.constant 0 : index
    %49 = vector.load %arg6[%c5, %c0_25, %c0_26] : memref<9x128x128xbf16, #tpu.memory_space<vmem>>, vector<1x128x128xbf16>
    %50 = vector.shape_cast %49 : vector<1x128x128xbf16> to vector<128x128xbf16>
    %cst_27 = arith.constant dense<0.000000e+00> : vector<144x128xf32>
    %51 = tpu.matmul %48, %50, %cst_27 {dimension_numbers = #tpu.dot_dimension_numbers<[1], [0], [0], [1], [0, 0, 1, 1], [], []>} : vector<144x128xbf16>, vector<128x128xbf16>, vector<144x128xf32> -> vector<144x128xf32>
    %52 = arith.addf %46, %51 : vector<144x128xf32>
    %53 = vector.extract_strided_slice %15 {offsets = [0, 9, 0], sizes = [2, 72, 128], strides = [1, 1, 1]} : vector<2x360x128xbf16> to vector<2x72x128xbf16>
    %54 = vector.shape_cast %53 : vector<2x72x128xbf16> to vector<144x128xbf16>
    %c6 = arith.constant 6 : index
    %c0_28 = arith.constant 0 : index
    %c0_29 = arith.constant 0 : index
    %55 = vector.load %arg6[%c6, %c0_28, %c0_29] : memref<9x128x128xbf16, #tpu.memory_space<vmem>>, vector<1x128x128xbf16>
    %56 = vector.shape_cast %55 : vector<1x128x128xbf16> to vector<128x128xbf16>
    %cst_30 = arith.constant dense<0.000000e+00> : vector<144x128xf32>
    %57 = tpu.matmul %54, %56, %cst_30 {dimension_numbers = #tpu.dot_dimension_numbers<[1], [0], [0], [1], [0, 0, 1, 1], [], []>} : vector<144x128xbf16>, vector<128x128xbf16>, vector<144x128xf32> -> vector<144x128xf32>
    %58 = arith.addf %52, %57 : vector<144x128xf32>
    %59 = vector.extract_strided_slice %15 {offsets = [0, 99, 0], sizes = [2, 72, 128], strides = [1, 1, 1]} : vector<2x360x128xbf16> to vector<2x72x128xbf16>
    %60 = vector.shape_cast %59 : vector<2x72x128xbf16> to vector<144x128xbf16>
    %c7 = arith.constant 7 : index
    %c0_31 = arith.constant 0 : index
    %c0_32 = arith.constant 0 : index
    %61 = vector.load %arg6[%c7, %c0_31, %c0_32] : memref<9x128x128xbf16, #tpu.memory_space<vmem>>, vector<1x128x128xbf16>
    %62 = vector.shape_cast %61 : vector<1x128x128xbf16> to vector<128x128xbf16>
    %cst_33 = arith.constant dense<0.000000e+00> : vector<144x128xf32>
    %63 = tpu.matmul %60, %62, %cst_33 {dimension_numbers = #tpu.dot_dimension_numbers<[1], [0], [0], [1], [0, 0, 1, 1], [], []>} : vector<144x128xbf16>, vector<128x128xbf16>, vector<144x128xf32> -> vector<144x128xf32>
    %64 = arith.addf %58, %63 : vector<144x128xf32>
    %65 = vector.extract_strided_slice %15 {offsets = [0, 10, 0], sizes = [2, 72, 128], strides = [1, 1, 1]} : vector<2x360x128xbf16> to vector<2x72x128xbf16>
    %66 = vector.shape_cast %65 : vector<2x72x128xbf16> to vector<144x128xbf16>
    %c8 = arith.constant 8 : index
    %c0_34 = arith.constant 0 : index
    %c0_35 = arith.constant 0 : index
    %67 = vector.load %arg6[%c8, %c0_34, %c0_35] : memref<9x128x128xbf16, #tpu.memory_space<vmem>>, vector<1x128x128xbf16>
    %68 = vector.shape_cast %67 : vector<1x128x128xbf16> to vector<128x128xbf16>
    %cst_36 = arith.constant dense<0.000000e+00> : vector<144x128xf32>
    %69 = tpu.matmul %66, %68, %cst_36 {dimension_numbers = #tpu.dot_dimension_numbers<[1], [0], [0], [1], [0, 0, 1, 1], [], []>} : vector<144x128xbf16>, vector<128x128xbf16>, vector<144x128xf32> -> vector<144x128xf32>
    %70 = arith.addf %64, %69 : vector<144x128xf32>
    %71 = vector.shape_cast %70 : vector<144x128xf32> to vector<2x72x128xf32>
    %c0_37 = arith.constant 0 : index
    %c0_38 = arith.constant 0 : index
    %c0_39 = arith.constant 0 : index
    %72 = vector.load %arg8[%c0_37, %c0_38, %c0_39] : memref<2x72x128xf32, #tpu.memory_space<vmem>>, vector<2x72x128xf32>
    tpu.vector_store %arg8[%c0_37, %c0_38, %c0_39], %71 {strides = array<i32>} : memref<2x72x128xf32, #tpu.memory_space<vmem>>, vector<2x72x128xf32>,
    %73 = vector.extract_strided_slice %15 {offsets = [0, 270, 0], sizes = [2, 72, 128], strides = [1, 1, 1]} : vector<2x360x128xbf16> to vector<2x72x128xbf16>
    %74 = vector.shape_cast %73 : vector<2x72x128xbf16> to vector<144x128xbf16>
    %c0_40 = arith.constant 0 : index
    %c0_41 = arith.constant 0 : index
    %75 = vector.load %arg7[%c0_40, %c0_41] : memref<128x128xbf16, #tpu.memory_space<vmem>>, vector<128x128xbf16>
    %cst_42 = arith.constant dense<0.000000e+00> : vector<144x128xf32>
    %76 = tpu.matmul %74, %75, %cst_42 {dimension_numbers = #tpu.dot_dimension_numbers<[1], [0], [0], [1], [0, 0, 1, 1], [], []>} : vector<144x128xbf16>, vector<128x128xbf16>, vector<144x128xf32> -> vector<144x128xf32>
    %77 = vector.shape_cast %76 : vector<144x128xf32> to vector<2x72x128xf32>
    %c0_43 = arith.constant 0 : index
    %c0_44 = arith.constant 0 : index
    %c0_45 = arith.constant 0 : index
    %78 = vector.load %arg9[%c0_43, %c0_44, %c0_45] : memref<2x72x128xf32, #tpu.memory_space<vmem>>, vector<2x72x128xf32>
    tpu.vector_store %arg9[%c0_43, %c0_44, %c0_45], %77 {strides = array<i32>} : memref<2x72x128xf32, #tpu.memory_space<vmem>>, vector<2x72x128xf32>,
    return
  }
  func.func @transform_0(%arg0: i32, %arg1: i32) -> (i32, i32, i32) {
    %c0_i32 = arith.constant 0 : i32
    %c0_i32_0 = arith.constant 0 : i32
    %c0_i32_1 = arith.constant 0 : i32
    return %arg0, %c0_i32, %c0_i32_0 : i32, i32, i32
  }
  func.func @transform_1(%arg0: i32, %arg1: i32) -> (i32, i32) {
    %c0_i32 = arith.constant 0 : i32
    %c0_i32_0 = arith.constant 0 : i32
    %c0_i32_1 = arith.constant 0 : i32
    return %c0_i32, %c0_i32_0 : i32, i32
  }
  func.func @transform_2(%arg0: i32, %arg1: i32) -> (i32, i32) {
    %c0_i32 = arith.constant 0 : i32
    %c0_i32_0 = arith.constant 0 : i32
    %c0_i32_1 = arith.constant 0 : i32
    return %c0_i32, %c0_i32_0 : i32, i32
  }
  func.func @transform_3(%arg0: i32, %arg1: i32) -> (i32, i32) {
    %c0_i32 = arith.constant 0 : i32
    %c0_i32_0 = arith.constant 0 : i32
    %c0_i32_1 = arith.constant 0 : i32
    return %c0_i32, %c0_i32_0 : i32, i32
  }
  func.func @transform_4(%arg0: i32, %arg1: i32) -> (i32, i32, i32) {
    %c0_i32 = arith.constant 0 : i32
    %c0_i32_0 = arith.constant 0 : i32
    %c0_i32_1 = arith.constant 0 : i32
    return %c0_i32, %c0_i32_0, %arg1 : i32, i32, i32
  }
  func.func @transform_5(%arg0: i32, %arg1: i32) -> (i32, i32) {
    %c0_i32 = arith.constant 0 : i32
    %c0_i32_0 = arith.constant 0 : i32
    return %c0_i32, %arg1 : i32, i32
  }
  func.func @transform_6(%arg0: i32, %arg1: i32) -> (i32, i32, i32) {
    %c0_i32 = arith.constant 0 : i32
    %c0_i32_0 = arith.constant 0 : i32
    return %arg0, %c0_i32, %arg1 : i32, i32, i32
  }
  func.func @transform_7(%arg0: i32, %arg1: i32) -> (i32, i32, i32) {
    %c0_i32 = arith.constant 0 : i32
    %c0_i32_0 = arith.constant 0 : i32
    return %arg0, %c0_i32, %arg1 : i32, i32, i32
  }
}

module attributes {stable_mosaic.version = 11 : i64} {
  func.func @_preact_conv_kernel(%arg0: i32, %arg1: i32, %arg2: memref<2x110x128xf32, #tpu.memory_space<vmem>>, %arg3: memref<110x1xf32, #tpu.memory_space<vmem>>, %arg4: memref<1x128xf32, #tpu.memory_space<vmem>>, %arg5: memref<1x128xf32, #tpu.memory_space<vmem>>, %arg6: memref<9x128x128xbf16, #tpu.memory_space<vmem>>, %arg7: memref<2x80x128xf32, #tpu.memory_space<vmem>>, %arg8: memref<2x80x128xf32, #tpu.memory_space<vmem>>) attributes {dimension_semantics = [#tpu.dimension_semantics<parallel>, #tpu.dimension_semantics<parallel>], iteration_bounds = array<i64: 1, 1>, scalar_prefetch = 0 : i64, scratch_operands = 0 : i64, tpu.core_type = #tpu.core_type<tc>, window_params = [{transform_indices = @transform_0, window_bounds = array<i64: 2, 110, 128>}, {pipeline_mode = #tpu.pipeline_mode<synchronous>, transform_indices = @transform_1, window_bounds = array<i64: 110, 1>}, {pipeline_mode = #tpu.pipeline_mode<synchronous>, transform_indices = @transform_2, window_bounds = array<i64: 1, 128>}, {pipeline_mode = #tpu.pipeline_mode<synchronous>, transform_indices = @transform_3, window_bounds = array<i64: 1, 128>}, {transform_indices = @transform_4, window_bounds = array<i64: 9, 128, 128>}, {transform_indices = @transform_5, window_bounds = array<i64: 2, 80, 128>}, {transform_indices = @transform_6, window_bounds = array<i64: 2, 80, 128>}]} {
    %c0 = arith.constant 0 : index
    %c0_0 = arith.constant 0 : index
    %c0_1 = arith.constant 0 : index
    %0 = vector.load %arg2[%c0, %c0_0, %c0_1] : memref<2x110x128xf32, #tpu.memory_space<vmem>>, vector<2x110x128xf32>
    %c0_2 = arith.constant 0 : index
    %c0_3 = arith.constant 0 : index
    %1 = vector.load %arg4[%c0_2, %c0_3] : memref<1x128xf32, #tpu.memory_space<vmem>>, vector<1x128xf32>
    %2 = vector.shape_cast %1 : vector<1x128xf32> to vector<1x1x128xf32>
    %3 = vector.broadcast %2 : vector<1x1x128xf32> to vector<2x110x128xf32>
    %4 = arith.mulf %0, %3 : vector<2x110x128xf32>
    %c0_4 = arith.constant 0 : index
    %c0_5 = arith.constant 0 : index
    %5 = vector.load %arg5[%c0_4, %c0_5] : memref<1x128xf32, #tpu.memory_space<vmem>>, vector<1x128xf32>
    %6 = vector.shape_cast %5 : vector<1x128xf32> to vector<1x1x128xf32>
    %7 = vector.broadcast %6 : vector<1x1x128xf32> to vector<2x110x128xf32>
    %8 = arith.addf %4, %7 : vector<2x110x128xf32>
    %cst = arith.constant 0.000000e+00 : f32
    %9 = vector.broadcast %cst : f32 to vector<2x110x128xf32>
    %10 = arith.maximumf %8, %9 : vector<2x110x128xf32>
    %c0_6 = arith.constant 0 : index
    %c0_7 = arith.constant 0 : index
    %11 = vector.load %arg3[%c0_6, %c0_7] : memref<110x1xf32, #tpu.memory_space<vmem>>, vector<110x1xf32>
    %12 = vector.shape_cast %11 : vector<110x1xf32> to vector<1x110x1xf32>
    %13 = vector.broadcast %12 : vector<1x110x1xf32> to vector<2x110x128xf32>
    %14 = arith.mulf %10, %13 : vector<2x110x128xf32>
    %15 = arith.truncf %14 : vector<2x110x128xf32> to vector<2x110x128xbf16>
    %cst_8 = arith.constant 0.000000e+00 : f32
    %16 = vector.broadcast %cst_8 : f32 to vector<160x128xf32>
    %17 = vector.extract_strided_slice %15 {offsets = [0, 0, 0], sizes = [2, 80, 128], strides = [1, 1, 1]} : vector<2x110x128xbf16> to vector<2x80x128xbf16>
    %18 = vector.shape_cast %17 : vector<2x80x128xbf16> to vector<160x128xbf16>
    %c0_9 = arith.constant 0 : index
    %c0_10 = arith.constant 0 : index
    %c0_11 = arith.constant 0 : index
    %19 = vector.load %arg6[%c0_9, %c0_10, %c0_11] : memref<9x128x128xbf16, #tpu.memory_space<vmem>>, vector<1x128x128xbf16>
    %20 = vector.shape_cast %19 : vector<1x128x128xbf16> to vector<128x128xbf16>
    %cst_12 = arith.constant dense<0.000000e+00> : vector<160x128xf32>
    %21 = tpu.matmul %18, %20, %cst_12 {dimension_numbers = #tpu.dot_dimension_numbers<[1], [0], [0], [1], [0, 0, 1, 1], [], []>} : vector<160x128xbf16>, vector<128x128xbf16>, vector<160x128xf32> -> vector<160x128xf32>
    %22 = arith.addf %16, %21 : vector<160x128xf32>
    %23 = vector.extract_strided_slice %15 {offsets = [0, 1, 0], sizes = [2, 80, 128], strides = [1, 1, 1]} : vector<2x110x128xbf16> to vector<2x80x128xbf16>
    %24 = vector.shape_cast %23 : vector<2x80x128xbf16> to vector<160x128xbf16>
    %c1 = arith.constant 1 : index
    %c0_13 = arith.constant 0 : index
    %c0_14 = arith.constant 0 : index
    %25 = vector.load %arg6[%c1, %c0_13, %c0_14] : memref<9x128x128xbf16, #tpu.memory_space<vmem>>, vector<1x128x128xbf16>
    %26 = vector.shape_cast %25 : vector<1x128x128xbf16> to vector<128x128xbf16>
    %cst_15 = arith.constant dense<0.000000e+00> : vector<160x128xf32>
    %27 = tpu.matmul %24, %26, %cst_15 {dimension_numbers = #tpu.dot_dimension_numbers<[1], [0], [0], [1], [0, 0, 1, 1], [], []>} : vector<160x128xbf16>, vector<128x128xbf16>, vector<160x128xf32> -> vector<160x128xf32>
    %28 = arith.addf %22, %27 : vector<160x128xf32>
    %29 = vector.extract_strided_slice %15 {offsets = [0, 2, 0], sizes = [2, 80, 128], strides = [1, 1, 1]} : vector<2x110x128xbf16> to vector<2x80x128xbf16>
    %30 = vector.shape_cast %29 : vector<2x80x128xbf16> to vector<160x128xbf16>
    %c2 = arith.constant 2 : index
    %c0_16 = arith.constant 0 : index
    %c0_17 = arith.constant 0 : index
    %31 = vector.load %arg6[%c2, %c0_16, %c0_17] : memref<9x128x128xbf16, #tpu.memory_space<vmem>>, vector<1x128x128xbf16>
    %32 = vector.shape_cast %31 : vector<1x128x128xbf16> to vector<128x128xbf16>
    %cst_18 = arith.constant dense<0.000000e+00> : vector<160x128xf32>
    %33 = tpu.matmul %30, %32, %cst_18 {dimension_numbers = #tpu.dot_dimension_numbers<[1], [0], [0], [1], [0, 0, 1, 1], [], []>} : vector<160x128xbf16>, vector<128x128xbf16>, vector<160x128xf32> -> vector<160x128xf32>
    %34 = arith.addf %28, %33 : vector<160x128xf32>
    %35 = vector.extract_strided_slice %15 {offsets = [0, 10, 0], sizes = [2, 80, 128], strides = [1, 1, 1]} : vector<2x110x128xbf16> to vector<2x80x128xbf16>
    %36 = vector.shape_cast %35 : vector<2x80x128xbf16> to vector<160x128xbf16>
    %c3 = arith.constant 3 : index
    %c0_19 = arith.constant 0 : index
    %c0_20 = arith.constant 0 : index
    %37 = vector.load %arg6[%c3, %c0_19, %c0_20] : memref<9x128x128xbf16, #tpu.memory_space<vmem>>, vector<1x128x128xbf16>
    %38 = vector.shape_cast %37 : vector<1x128x128xbf16> to vector<128x128xbf16>
    %cst_21 = arith.constant dense<0.000000e+00> : vector<160x128xf32>
    %39 = tpu.matmul %36, %38, %cst_21 {dimension_numbers = #tpu.dot_dimension_numbers<[1], [0], [0], [1], [0, 0, 1, 1], [], []>} : vector<160x128xbf16>, vector<128x128xbf16>, vector<160x128xf32> -> vector<160x128xf32>
    %40 = arith.addf %34, %39 : vector<160x128xf32>
    %41 = vector.extract_strided_slice %15 {offsets = [0, 11, 0], sizes = [2, 80, 128], strides = [1, 1, 1]} : vector<2x110x128xbf16> to vector<2x80x128xbf16>
    %42 = vector.shape_cast %41 : vector<2x80x128xbf16> to vector<160x128xbf16>
    %c4 = arith.constant 4 : index
    %c0_22 = arith.constant 0 : index
    %c0_23 = arith.constant 0 : index
    %43 = vector.load %arg6[%c4, %c0_22, %c0_23] : memref<9x128x128xbf16, #tpu.memory_space<vmem>>, vector<1x128x128xbf16>
    %44 = vector.shape_cast %43 : vector<1x128x128xbf16> to vector<128x128xbf16>
    %cst_24 = arith.constant dense<0.000000e+00> : vector<160x128xf32>
    %45 = tpu.matmul %42, %44, %cst_24 {dimension_numbers = #tpu.dot_dimension_numbers<[1], [0], [0], [1], [0, 0, 1, 1], [], []>} : vector<160x128xbf16>, vector<128x128xbf16>, vector<160x128xf32> -> vector<160x128xf32>
    %46 = arith.addf %40, %45 : vector<160x128xf32>
    %47 = vector.extract_strided_slice %15 {offsets = [0, 12, 0], sizes = [2, 80, 128], strides = [1, 1, 1]} : vector<2x110x128xbf16> to vector<2x80x128xbf16>
    %48 = vector.shape_cast %47 : vector<2x80x128xbf16> to vector<160x128xbf16>
    %c5 = arith.constant 5 : index
    %c0_25 = arith.constant 0 : index
    %c0_26 = arith.constant 0 : index
    %49 = vector.load %arg6[%c5, %c0_25, %c0_26] : memref<9x128x128xbf16, #tpu.memory_space<vmem>>, vector<1x128x128xbf16>
    %50 = vector.shape_cast %49 : vector<1x128x128xbf16> to vector<128x128xbf16>
    %cst_27 = arith.constant dense<0.000000e+00> : vector<160x128xf32>
    %51 = tpu.matmul %48, %50, %cst_27 {dimension_numbers = #tpu.dot_dimension_numbers<[1], [0], [0], [1], [0, 0, 1, 1], [], []>} : vector<160x128xbf16>, vector<128x128xbf16>, vector<160x128xf32> -> vector<160x128xf32>
    %52 = arith.addf %46, %51 : vector<160x128xf32>
    %53 = vector.extract_strided_slice %15 {offsets = [0, 20, 0], sizes = [2, 80, 128], strides = [1, 1, 1]} : vector<2x110x128xbf16> to vector<2x80x128xbf16>
    %54 = vector.shape_cast %53 : vector<2x80x128xbf16> to vector<160x128xbf16>
    %c6 = arith.constant 6 : index
    %c0_28 = arith.constant 0 : index
    %c0_29 = arith.constant 0 : index
    %55 = vector.load %arg6[%c6, %c0_28, %c0_29] : memref<9x128x128xbf16, #tpu.memory_space<vmem>>, vector<1x128x128xbf16>
    %56 = vector.shape_cast %55 : vector<1x128x128xbf16> to vector<128x128xbf16>
    %cst_30 = arith.constant dense<0.000000e+00> : vector<160x128xf32>
    %57 = tpu.matmul %54, %56, %cst_30 {dimension_numbers = #tpu.dot_dimension_numbers<[1], [0], [0], [1], [0, 0, 1, 1], [], []>} : vector<160x128xbf16>, vector<128x128xbf16>, vector<160x128xf32> -> vector<160x128xf32>
    %58 = arith.addf %52, %57 : vector<160x128xf32>
    %59 = vector.extract_strided_slice %15 {offsets = [0, 21, 0], sizes = [2, 80, 128], strides = [1, 1, 1]} : vector<2x110x128xbf16> to vector<2x80x128xbf16>
    %60 = vector.shape_cast %59 : vector<2x80x128xbf16> to vector<160x128xbf16>
    %c7 = arith.constant 7 : index
    %c0_31 = arith.constant 0 : index
    %c0_32 = arith.constant 0 : index
    %61 = vector.load %arg6[%c7, %c0_31, %c0_32] : memref<9x128x128xbf16, #tpu.memory_space<vmem>>, vector<1x128x128xbf16>
    %62 = vector.shape_cast %61 : vector<1x128x128xbf16> to vector<128x128xbf16>
    %cst_33 = arith.constant dense<0.000000e+00> : vector<160x128xf32>
    %63 = tpu.matmul %60, %62, %cst_33 {dimension_numbers = #tpu.dot_dimension_numbers<[1], [0], [0], [1], [0, 0, 1, 1], [], []>} : vector<160x128xbf16>, vector<128x128xbf16>, vector<160x128xf32> -> vector<160x128xf32>
    %64 = arith.addf %58, %63 : vector<160x128xf32>
    %65 = vector.extract_strided_slice %15 {offsets = [0, 22, 0], sizes = [2, 80, 128], strides = [1, 1, 1]} : vector<2x110x128xbf16> to vector<2x80x128xbf16>
    %66 = vector.shape_cast %65 : vector<2x80x128xbf16> to vector<160x128xbf16>
    %c8 = arith.constant 8 : index
    %c0_34 = arith.constant 0 : index
    %c0_35 = arith.constant 0 : index
    %67 = vector.load %arg6[%c8, %c0_34, %c0_35] : memref<9x128x128xbf16, #tpu.memory_space<vmem>>, vector<1x128x128xbf16>
    %68 = vector.shape_cast %67 : vector<1x128x128xbf16> to vector<128x128xbf16>
    %cst_36 = arith.constant dense<0.000000e+00> : vector<160x128xf32>
    %69 = tpu.matmul %66, %68, %cst_36 {dimension_numbers = #tpu.dot_dimension_numbers<[1], [0], [0], [1], [0, 0, 1, 1], [], []>} : vector<160x128xbf16>, vector<128x128xbf16>, vector<160x128xf32> -> vector<160x128xf32>
    %70 = arith.addf %64, %69 : vector<160x128xf32>
    %71 = vector.shape_cast %70 : vector<160x128xf32> to vector<2x80x128xf32>
    %c0_37 = arith.constant 0 : index
    %c0_38 = arith.constant 0 : index
    %c0_39 = arith.constant 0 : index
    %72 = vector.load %arg7[%c0_37, %c0_38, %c0_39] : memref<2x80x128xf32, #tpu.memory_space<vmem>>, vector<2x80x128xf32>
    %73 = arith.addf %71, %72 : vector<2x80x128xf32>
    %c0_40 = arith.constant 0 : index
    %c0_41 = arith.constant 0 : index
    %c0_42 = arith.constant 0 : index
    %74 = vector.load %arg8[%c0_40, %c0_41, %c0_42] : memref<2x80x128xf32, #tpu.memory_space<vmem>>, vector<2x80x128xf32>
    tpu.vector_store %arg8[%c0_40, %c0_41, %c0_42], %73 {strides = array<i32>} : memref<2x80x128xf32, #tpu.memory_space<vmem>>, vector<2x80x128xf32>,
    return
  }
  func.func @transform_0(%arg0: i32, %arg1: i32) -> (i32, i32, i32) {
    %c0_i32 = arith.constant 0 : i32
    %c0_i32_0 = arith.constant 0 : i32
    %c0_i32_1 = arith.constant 0 : i32
    return %arg0, %c0_i32, %c0_i32_0 : i32, i32, i32
  }
  func.func @transform_1(%arg0: i32, %arg1: i32) -> (i32, i32) {
    %c0_i32 = arith.constant 0 : i32
    %c0_i32_0 = arith.constant 0 : i32
    %c0_i32_1 = arith.constant 0 : i32
    return %c0_i32, %c0_i32_0 : i32, i32
  }
  func.func @transform_2(%arg0: i32, %arg1: i32) -> (i32, i32) {
    %c0_i32 = arith.constant 0 : i32
    %c0_i32_0 = arith.constant 0 : i32
    %c0_i32_1 = arith.constant 0 : i32
    return %c0_i32, %c0_i32_0 : i32, i32
  }
  func.func @transform_3(%arg0: i32, %arg1: i32) -> (i32, i32) {
    %c0_i32 = arith.constant 0 : i32
    %c0_i32_0 = arith.constant 0 : i32
    %c0_i32_1 = arith.constant 0 : i32
    return %c0_i32, %c0_i32_0 : i32, i32
  }
  func.func @transform_4(%arg0: i32, %arg1: i32) -> (i32, i32, i32) {
    %c0_i32 = arith.constant 0 : i32
    %c0_i32_0 = arith.constant 0 : i32
    %c0_i32_1 = arith.constant 0 : i32
    return %c0_i32, %c0_i32_0, %arg1 : i32, i32, i32
  }
  func.func @transform_5(%arg0: i32, %arg1: i32) -> (i32, i32, i32) {
    %c0_i32 = arith.constant 0 : i32
    %c0_i32_0 = arith.constant 0 : i32
    return %arg0, %c0_i32, %arg1 : i32, i32, i32
  }
  func.func @transform_6(%arg0: i32, %arg1: i32) -> (i32, i32, i32) {
    %c0_i32 = arith.constant 0 : i32
    %c0_i32_0 = arith.constant 0 : i32
    return %arg0, %c0_i32, %arg1 : i32, i32, i32
  }
}

module attributes {stable_mosaic.version = 11 : i64} {
  func.func @_preact_conv_kernel(%arg0: i32, %arg1: i32, %arg2: memref<2x110x128xf32, #tpu.memory_space<vmem>>, %arg3: memref<110x1xf32, #tpu.memory_space<vmem>>, %arg4: memref<1x128xf32, #tpu.memory_space<vmem>>, %arg5: memref<1x128xf32, #tpu.memory_space<vmem>>, %arg6: memref<9x128x128xbf16, #tpu.memory_space<vmem>>, %arg7: memref<2x80x128xf32, #tpu.memory_space<vmem>>) attributes {dimension_semantics = [#tpu.dimension_semantics<parallel>, #tpu.dimension_semantics<parallel>], iteration_bounds = array<i64: 1, 1>, scalar_prefetch = 0 : i64, scratch_operands = 0 : i64, tpu.core_type = #tpu.core_type<tc>, window_params = [{transform_indices = @transform_0, window_bounds = array<i64: 2, 110, 128>}, {pipeline_mode = #tpu.pipeline_mode<synchronous>, transform_indices = @transform_1, window_bounds = array<i64: 110, 1>}, {pipeline_mode = #tpu.pipeline_mode<synchronous>, transform_indices = @transform_2, window_bounds = array<i64: 1, 128>}, {pipeline_mode = #tpu.pipeline_mode<synchronous>, transform_indices = @transform_3, window_bounds = array<i64: 1, 128>}, {transform_indices = @transform_4, window_bounds = array<i64: 9, 128, 128>}, {transform_indices = @transform_5, window_bounds = array<i64: 2, 80, 128>}]} {
    %c0 = arith.constant 0 : index
    %c0_0 = arith.constant 0 : index
    %c0_1 = arith.constant 0 : index
    %0 = vector.load %arg2[%c0, %c0_0, %c0_1] : memref<2x110x128xf32, #tpu.memory_space<vmem>>, vector<2x110x128xf32>
    %c0_2 = arith.constant 0 : index
    %c0_3 = arith.constant 0 : index
    %1 = vector.load %arg4[%c0_2, %c0_3] : memref<1x128xf32, #tpu.memory_space<vmem>>, vector<1x128xf32>
    %2 = vector.shape_cast %1 : vector<1x128xf32> to vector<1x1x128xf32>
    %3 = vector.broadcast %2 : vector<1x1x128xf32> to vector<2x110x128xf32>
    %4 = arith.mulf %0, %3 : vector<2x110x128xf32>
    %c0_4 = arith.constant 0 : index
    %c0_5 = arith.constant 0 : index
    %5 = vector.load %arg5[%c0_4, %c0_5] : memref<1x128xf32, #tpu.memory_space<vmem>>, vector<1x128xf32>
    %6 = vector.shape_cast %5 : vector<1x128xf32> to vector<1x1x128xf32>
    %7 = vector.broadcast %6 : vector<1x1x128xf32> to vector<2x110x128xf32>
    %8 = arith.addf %4, %7 : vector<2x110x128xf32>
    %cst = arith.constant 0.000000e+00 : f32
    %9 = vector.broadcast %cst : f32 to vector<2x110x128xf32>
    %10 = arith.maximumf %8, %9 : vector<2x110x128xf32>
    %c0_6 = arith.constant 0 : index
    %c0_7 = arith.constant 0 : index
    %11 = vector.load %arg3[%c0_6, %c0_7] : memref<110x1xf32, #tpu.memory_space<vmem>>, vector<110x1xf32>
    %12 = vector.shape_cast %11 : vector<110x1xf32> to vector<1x110x1xf32>
    %13 = vector.broadcast %12 : vector<1x110x1xf32> to vector<2x110x128xf32>
    %14 = arith.mulf %10, %13 : vector<2x110x128xf32>
    %15 = arith.truncf %14 : vector<2x110x128xf32> to vector<2x110x128xbf16>
    %cst_8 = arith.constant 0.000000e+00 : f32
    %16 = vector.broadcast %cst_8 : f32 to vector<160x128xf32>
    %17 = vector.extract_strided_slice %15 {offsets = [0, 0, 0], sizes = [2, 80, 128], strides = [1, 1, 1]} : vector<2x110x128xbf16> to vector<2x80x128xbf16>
    %18 = vector.shape_cast %17 : vector<2x80x128xbf16> to vector<160x128xbf16>
    %c0_9 = arith.constant 0 : index
    %c0_10 = arith.constant 0 : index
    %c0_11 = arith.constant 0 : index
    %19 = vector.load %arg6[%c0_9, %c0_10, %c0_11] : memref<9x128x128xbf16, #tpu.memory_space<vmem>>, vector<1x128x128xbf16>
    %20 = vector.shape_cast %19 : vector<1x128x128xbf16> to vector<128x128xbf16>
    %cst_12 = arith.constant dense<0.000000e+00> : vector<160x128xf32>
    %21 = tpu.matmul %18, %20, %cst_12 {dimension_numbers = #tpu.dot_dimension_numbers<[1], [0], [0], [1], [0, 0, 1, 1], [], []>} : vector<160x128xbf16>, vector<128x128xbf16>, vector<160x128xf32> -> vector<160x128xf32>
    %22 = arith.addf %16, %21 : vector<160x128xf32>
    %23 = vector.extract_strided_slice %15 {offsets = [0, 1, 0], sizes = [2, 80, 128], strides = [1, 1, 1]} : vector<2x110x128xbf16> to vector<2x80x128xbf16>
    %24 = vector.shape_cast %23 : vector<2x80x128xbf16> to vector<160x128xbf16>
    %c1 = arith.constant 1 : index
    %c0_13 = arith.constant 0 : index
    %c0_14 = arith.constant 0 : index
    %25 = vector.load %arg6[%c1, %c0_13, %c0_14] : memref<9x128x128xbf16, #tpu.memory_space<vmem>>, vector<1x128x128xbf16>
    %26 = vector.shape_cast %25 : vector<1x128x128xbf16> to vector<128x128xbf16>
    %cst_15 = arith.constant dense<0.000000e+00> : vector<160x128xf32>
    %27 = tpu.matmul %24, %26, %cst_15 {dimension_numbers = #tpu.dot_dimension_numbers<[1], [0], [0], [1], [0, 0, 1, 1], [], []>} : vector<160x128xbf16>, vector<128x128xbf16>, vector<160x128xf32> -> vector<160x128xf32>
    %28 = arith.addf %22, %27 : vector<160x128xf32>
    %29 = vector.extract_strided_slice %15 {offsets = [0, 2, 0], sizes = [2, 80, 128], strides = [1, 1, 1]} : vector<2x110x128xbf16> to vector<2x80x128xbf16>
    %30 = vector.shape_cast %29 : vector<2x80x128xbf16> to vector<160x128xbf16>
    %c2 = arith.constant 2 : index
    %c0_16 = arith.constant 0 : index
    %c0_17 = arith.constant 0 : index
    %31 = vector.load %arg6[%c2, %c0_16, %c0_17] : memref<9x128x128xbf16, #tpu.memory_space<vmem>>, vector<1x128x128xbf16>
    %32 = vector.shape_cast %31 : vector<1x128x128xbf16> to vector<128x128xbf16>
    %cst_18 = arith.constant dense<0.000000e+00> : vector<160x128xf32>
    %33 = tpu.matmul %30, %32, %cst_18 {dimension_numbers = #tpu.dot_dimension_numbers<[1], [0], [0], [1], [0, 0, 1, 1], [], []>} : vector<160x128xbf16>, vector<128x128xbf16>, vector<160x128xf32> -> vector<160x128xf32>
    %34 = arith.addf %28, %33 : vector<160x128xf32>
    %35 = vector.extract_strided_slice %15 {offsets = [0, 10, 0], sizes = [2, 80, 128], strides = [1, 1, 1]} : vector<2x110x128xbf16> to vector<2x80x128xbf16>
    %36 = vector.shape_cast %35 : vector<2x80x128xbf16> to vector<160x128xbf16>
    %c3 = arith.constant 3 : index
    %c0_19 = arith.constant 0 : index
    %c0_20 = arith.constant 0 : index
    %37 = vector.load %arg6[%c3, %c0_19, %c0_20] : memref<9x128x128xbf16, #tpu.memory_space<vmem>>, vector<1x128x128xbf16>
    %38 = vector.shape_cast %37 : vector<1x128x128xbf16> to vector<128x128xbf16>
    %cst_21 = arith.constant dense<0.000000e+00> : vector<160x128xf32>
    %39 = tpu.matmul %36, %38, %cst_21 {dimension_numbers = #tpu.dot_dimension_numbers<[1], [0], [0], [1], [0, 0, 1, 1], [], []>} : vector<160x128xbf16>, vector<128x128xbf16>, vector<160x128xf32> -> vector<160x128xf32>
    %40 = arith.addf %34, %39 : vector<160x128xf32>
    %41 = vector.extract_strided_slice %15 {offsets = [0, 11, 0], sizes = [2, 80, 128], strides = [1, 1, 1]} : vector<2x110x128xbf16> to vector<2x80x128xbf16>
    %42 = vector.shape_cast %41 : vector<2x80x128xbf16> to vector<160x128xbf16>
    %c4 = arith.constant 4 : index
    %c0_22 = arith.constant 0 : index
    %c0_23 = arith.constant 0 : index
    %43 = vector.load %arg6[%c4, %c0_22, %c0_23] : memref<9x128x128xbf16, #tpu.memory_space<vmem>>, vector<1x128x128xbf16>
    %44 = vector.shape_cast %43 : vector<1x128x128xbf16> to vector<128x128xbf16>
    %cst_24 = arith.constant dense<0.000000e+00> : vector<160x128xf32>
    %45 = tpu.matmul %42, %44, %cst_24 {dimension_numbers = #tpu.dot_dimension_numbers<[1], [0], [0], [1], [0, 0, 1, 1], [], []>} : vector<160x128xbf16>, vector<128x128xbf16>, vector<160x128xf32> -> vector<160x128xf32>
    %46 = arith.addf %40, %45 : vector<160x128xf32>
    %47 = vector.extract_strided_slice %15 {offsets = [0, 12, 0], sizes = [2, 80, 128], strides = [1, 1, 1]} : vector<2x110x128xbf16> to vector<2x80x128xbf16>
    %48 = vector.shape_cast %47 : vector<2x80x128xbf16> to vector<160x128xbf16>
    %c5 = arith.constant 5 : index
    %c0_25 = arith.constant 0 : index
    %c0_26 = arith.constant 0 : index
    %49 = vector.load %arg6[%c5, %c0_25, %c0_26] : memref<9x128x128xbf16, #tpu.memory_space<vmem>>, vector<1x128x128xbf16>
    %50 = vector.shape_cast %49 : vector<1x128x128xbf16> to vector<128x128xbf16>
    %cst_27 = arith.constant dense<0.000000e+00> : vector<160x128xf32>
    %51 = tpu.matmul %48, %50, %cst_27 {dimension_numbers = #tpu.dot_dimension_numbers<[1], [0], [0], [1], [0, 0, 1, 1], [], []>} : vector<160x128xbf16>, vector<128x128xbf16>, vector<160x128xf32> -> vector<160x128xf32>
    %52 = arith.addf %46, %51 : vector<160x128xf32>
    %53 = vector.extract_strided_slice %15 {offsets = [0, 20, 0], sizes = [2, 80, 128], strides = [1, 1, 1]} : vector<2x110x128xbf16> to vector<2x80x128xbf16>
    %54 = vector.shape_cast %53 : vector<2x80x128xbf16> to vector<160x128xbf16>
    %c6 = arith.constant 6 : index
    %c0_28 = arith.constant 0 : index
    %c0_29 = arith.constant 0 : index
    %55 = vector.load %arg6[%c6, %c0_28, %c0_29] : memref<9x128x128xbf16, #tpu.memory_space<vmem>>, vector<1x128x128xbf16>
    %56 = vector.shape_cast %55 : vector<1x128x128xbf16> to vector<128x128xbf16>
    %cst_30 = arith.constant dense<0.000000e+00> : vector<160x128xf32>
    %57 = tpu.matmul %54, %56, %cst_30 {dimension_numbers = #tpu.dot_dimension_numbers<[1], [0], [0], [1], [0, 0, 1, 1], [], []>} : vector<160x128xbf16>, vector<128x128xbf16>, vector<160x128xf32> -> vector<160x128xf32>
    %58 = arith.addf %52, %57 : vector<160x128xf32>
    %59 = vector.extract_strided_slice %15 {offsets = [0, 21, 0], sizes = [2, 80, 128], strides = [1, 1, 1]} : vector<2x110x128xbf16> to vector<2x80x128xbf16>
    %60 = vector.shape_cast %59 : vector<2x80x128xbf16> to vector<160x128xbf16>
    %c7 = arith.constant 7 : index
    %c0_31 = arith.constant 0 : index
    %c0_32 = arith.constant 0 : index
    %61 = vector.load %arg6[%c7, %c0_31, %c0_32] : memref<9x128x128xbf16, #tpu.memory_space<vmem>>, vector<1x128x128xbf16>
    %62 = vector.shape_cast %61 : vector<1x128x128xbf16> to vector<128x128xbf16>
    %cst_33 = arith.constant dense<0.000000e+00> : vector<160x128xf32>
    %63 = tpu.matmul %60, %62, %cst_33 {dimension_numbers = #tpu.dot_dimension_numbers<[1], [0], [0], [1], [0, 0, 1, 1], [], []>} : vector<160x128xbf16>, vector<128x128xbf16>, vector<160x128xf32> -> vector<160x128xf32>
    %64 = arith.addf %58, %63 : vector<160x128xf32>
    %65 = vector.extract_strided_slice %15 {offsets = [0, 22, 0], sizes = [2, 80, 128], strides = [1, 1, 1]} : vector<2x110x128xbf16> to vector<2x80x128xbf16>
    %66 = vector.shape_cast %65 : vector<2x80x128xbf16> to vector<160x128xbf16>
    %c8 = arith.constant 8 : index
    %c0_34 = arith.constant 0 : index
    %c0_35 = arith.constant 0 : index
    %67 = vector.load %arg6[%c8, %c0_34, %c0_35] : memref<9x128x128xbf16, #tpu.memory_space<vmem>>, vector<1x128x128xbf16>
    %68 = vector.shape_cast %67 : vector<1x128x128xbf16> to vector<128x128xbf16>
    %cst_36 = arith.constant dense<0.000000e+00> : vector<160x128xf32>
    %69 = tpu.matmul %66, %68, %cst_36 {dimension_numbers = #tpu.dot_dimension_numbers<[1], [0], [0], [1], [0, 0, 1, 1], [], []>} : vector<160x128xbf16>, vector<128x128xbf16>, vector<160x128xf32> -> vector<160x128xf32>
    %70 = arith.addf %64, %69 : vector<160x128xf32>
    %71 = vector.shape_cast %70 : vector<160x128xf32> to vector<2x80x128xf32>
    %c0_37 = arith.constant 0 : index
    %c0_38 = arith.constant 0 : index
    %c0_39 = arith.constant 0 : index
    %72 = vector.load %arg7[%c0_37, %c0_38, %c0_39] : memref<2x80x128xf32, #tpu.memory_space<vmem>>, vector<2x80x128xf32>
    tpu.vector_store %arg7[%c0_37, %c0_38, %c0_39], %71 {strides = array<i32>} : memref<2x80x128xf32, #tpu.memory_space<vmem>>, vector<2x80x128xf32>,
    return
  }
  func.func @transform_0(%arg0: i32, %arg1: i32) -> (i32, i32, i32) {
    %c0_i32 = arith.constant 0 : i32
    %c0_i32_0 = arith.constant 0 : i32
    %c0_i32_1 = arith.constant 0 : i32
    return %arg0, %c0_i32, %c0_i32_0 : i32, i32, i32
  }
  func.func @transform_1(%arg0: i32, %arg1: i32) -> (i32, i32) {
    %c0_i32 = arith.constant 0 : i32
    %c0_i32_0 = arith.constant 0 : i32
    %c0_i32_1 = arith.constant 0 : i32
    return %c0_i32, %c0_i32_0 : i32, i32
  }
  func.func @transform_2(%arg0: i32, %arg1: i32) -> (i32, i32) {
    %c0_i32 = arith.constant 0 : i32
    %c0_i32_0 = arith.constant 0 : i32
    %c0_i32_1 = arith.constant 0 : i32
    return %c0_i32, %c0_i32_0 : i32, i32
  }
  func.func @transform_3(%arg0: i32, %arg1: i32) -> (i32, i32) {
    %c0_i32 = arith.constant 0 : i32
    %c0_i32_0 = arith.constant 0 : i32
    %c0_i32_1 = arith.constant 0 : i32
    return %c0_i32, %c0_i32_0 : i32, i32
  }
  func.func @transform_4(%arg0: i32, %arg1: i32) -> (i32, i32, i32) {
    %c0_i32 = arith.constant 0 : i32
    %c0_i32_0 = arith.constant 0 : i32
    %c0_i32_1 = arith.constant 0 : i32
    return %c0_i32, %c0_i32_0, %arg1 : i32, i32, i32
  }
  func.func @transform_5(%arg0: i32, %arg1: i32) -> (i32, i32, i32) {
    %c0_i32 = arith.constant 0 : i32
    %c0_i32_0 = arith.constant 0 : i32
    return %arg0, %c0_i32, %arg1 : i32, i32, i32
  }
}

</mosaic_0001>

<bundles_post_ra>
// kernel: _lambda_.5
= control target key start
LH: loop header
LB: loop body
LE: loop exit
PB: predicated region body
PF: predicated region fallthrough
CT: control target
= control target key end

     0   :  { %v3426_v0 = vmov 0   ;;  %vm292_vm0 = vsmask.f32 7424  ;;  %vm1204_vm1 = vsmask.f32 2304  ;;  %vm1463_vm2 = vcmask 1041408   ;;  %s4624_s1 = inlined_call_operand.vmem [shape: f32[110,1], index: 1, kind: input, shape index: {}]   ;;  %s4625_s4 = inlined_call_operand.vmem [shape: bf16[9,128,128], index: 4, kind: input, shape index: {}]   ;;  %s4626_s2 = inlined_call_operand.vmem [shape: f32[1,128], index: 2, kind: input, shape index: {}]   ;;  %s4627_s0 = inlined_call_operand.vmem [shape: f32[2,110,128], index: 0, kind: input, shape index: {}]   ;;  %s4628_s3 = inlined_call_operand.vmem [shape: f32[1,128], index: 3, kind: input, shape index: {}]   ;;  %s4629_s5 = inlined_call_operand.vmem [shape: f32[2,80,128], index: 5, kind: input, shape index: {}]   ;;  %s4630_s6 = inlined_call_operand.vmem [shape: f32[2,80,128], index: 6, kind: output, shape index: {}]  }
   0x1   :  { %3353 = vset.pattern.permute.xlu1 %v3426_v0  ;;  %3352 = vset.pattern.permute.xlu0 %v3426_v0  ;;  %v152_v1 = vld [vmem:[%s4624_s1 + $0x10] sm:$0xff]  ;;  %v150_v2 = vld [vmem:[%s4624_s1] sm:$0xff]  ;;  %v153_v3 = vld [vmem:[%s4624_s1 + $0x18] sm:$0xff]  ;;  %vm742_vm3 = vcmask 1046528   ;;  %vm1696_vm4 = vcmask 1045504   ;;  %vm973_vm6 = vcmask 1042432  }
   0x2   :  { %176 = vperm.xlu1 %3353, %v152_v1   ;;  %166 = vperm.xlu0 %3352, %v150_v2   ;;  %v151_v4 = vld [vmem:[%s4624_s1 + $0x8] sm:$0xff]  ;;  %v154_v6 = vld [vmem:[%s4624_s1 + $0x20] sm:$0xff]  ;;  %v157_v10 = vld [vmem:[%s4624_s1 + $0x38] sm:$0xff]  ;;  %vm1927_vm5 = vsmask.f32 5376  ;;  %vm2192_vm7 = vcmask 1044480  }
   0x3   :  { %v155_v5 = vld [vmem:[%s4624_s1 + $0x28] sm:$0xff]  ;;  %v3354_v7 = vld [vmem:[%s4625_s4 + $0x40] sm:$0xff]   ;;  %v156_v12 = vld [vmem:[%s4624_s1 + $0x30] sm:$0xff] }
   0x4   :  { %v3355_v8 = vld [vmem:[%s4625_s4 + $0x100] sm:$0xff]   ;;  %2851 = vmatprep.subr.bf16.mxu1 %v3354_v7  ;;  %v3356_v9 = vld [vmem:[%s4625_s4 + $0x48] sm:$0xff]   ;;  %v3358_v13 = vld [vmem:[%s4625_s4 + $0x50] sm:$0xff]  }
   0x5   :  { %2852 = vmatpush3.bf16.msra.mxu1 %v3354_v7  ;;  %2995 = vmatprep.subr.bf16.mxu0 %v3355_v8  ;;  %v3357_v11 = vld [vmem:[%s4625_s4 + $0x108] sm:$0xff]   ;;  %v3359_v14 = vld [vmem:[%s4625_s4 + $0x110] sm:$0xff]   ;;  %v158_v16 = vld [vmem:[%s4624_s1 + $0x40] sm:$0xff] }
   0x6   :  { %181 = vperm.xlu1 %3353, %v153_v3   ;;  %171 = vperm.xlu0 %3352, %v151_v4   ;;  %v159_v15 = vld [vmem:[%s4624_s1 + $0x48] sm:$0xff]  ;;  %v3360_v17 = vld [vmem:[%s4625_s4 + $0x58] sm:$0xff]   ;;  %v160_v20 = vld [vmem:[%s4624_s1 + $0x50] sm:$0xff] }
   0x7   :  { %2996 = vmatpush3.bf16.msra.mxu0 %v3355_v8  ;;  %2853 = vmatprep.subr.bf16.mxu1 %v3356_v9  ;;  %v3361_v18 = vld [vmem:[%s4625_s4 + $0x118] sm:$0xff]   ;;  %v3362_v21 = vld [vmem:[%s4625_s4 + $0x60] sm:$0xff]   ;;  %v163_v23 = vld [vmem:[%s4624_s1 + $0x68] sm:$0x3f] }
   0x8   :  { %2997 = vmatprep.subr.bf16.mxu0 %v3357_v11  ;;  %v161_v19 = vld [vmem:[%s4624_s1 + $0x58] sm:$0xff]  ;;  %v3363_v22 = vld [vmem:[%s4625_s4 + $0x120] sm:$0xff]   ;;  %v3364_v25 = vld [vmem:[%s4625_s4 + $0x68] sm:$0xff]  }
   0x9   :  { %2854 = vmatpush3.bf16.msra.mxu1 %v3356_v9  ;;  %v162_v24 = vld [vmem:[%s4624_s1 + $0x60] sm:$0xff]  ;;  %v3365_v26 = vld [vmem:[%s4625_s4 + $0x128] sm:$0xff]   ;;  %v3366_v27 = vld [vmem:[%s4625_s4 + $0x70] sm:$0xff]  }
   0xa   :  { %191 = vperm.xlu1 %3353, %v155_v5   ;;  %186 = vperm.xlu0 %3352, %v154_v6   ;;  %v3367_v28 = vld [vmem:[%s4625_s4 + $0x130] sm:$0xff]   ;;  %v3368_v29 = vld [vmem:[%s4625_s4 + $0x78] sm:$0xff]   ;;  %v37_v31 = vld [vmem:[%s4627_s0 + $0x68] sm:$0x3f] }
   0xb   :  { %2998 = vmatpush3.bf16.msra.mxu0 %v3357_v11  ;;  %2855 = vmatprep.subr.bf16.mxu1 %v3358_v13  ;;  %v3369_v30 = vld [vmem:[%s4625_s4 + $0x138] sm:$0xff]   ;;  %v36_v33 = vld [vmem:[%s4627_s0 + $0x60] sm:$0xff]  ;;  %v50_v34 = vld [vmem:[%s4627_s0 + $0xd0] sm:$0xff] }
   0xc   :  { %2999 = vmatprep.subr.bf16.mxu0 %v3359_v14  ;;  %v51_v32 = vld [vmem:[%s4627_s0 + $0xd8] sm:$0x3f]  ;;  %v3567_v35 = vld [vmem:[%s4626_s2] ss:$0 sm:$0xff]  ;;  %v26_v47 = vld [vmem:[%s4627_s0 + $0x10] sm:$0xff] }
   0xd   :  { %2856 = vmatpush3.bf16.msra.mxu1 %v3358_v13  ;;  %v72_v36 = vmul.f32 %v3567_v35, %v37_v31  ;;  %v86_v37 = vmul.f32 %v3567_v35, %v51_v32  ;;  %v3574_v38 = vld [vmem:[%s4625_s4] sm:$0xff]   ;;  %v71_v41 = vmul.f32 %v3567_v35, %v36_v33  ;;  %v85_v42 = vmul.f32 %v3567_v35, %v50_v34  ;;  %v38_v50 = vld [vmem:[%s4627_s0 + $0x70] sm:$0xff]  ;;  %v27_v51 = vld [vmem:[%s4627_s0 + $0x18] sm:$0xff] }
   0xe   :  { %201 = vperm.xlu1 %3353, %v157_v10   ;;  %196 = vperm.xlu0 %3352, %v156_v12   ;;  %v3579_v39 = vld [vmem:[%s4628_s3] ss:$0 sm:$0xff]  ;;  %v61_v52 = vmul.f32 %v3567_v35, %v26_v47  ;;  %v41_v53 = vld [vmem:[%s4627_s0 + $0x88] sm:$0xff]  ;;  %v39_v55 = vld [vmem:[%s4627_s0 + $0x78] sm:$0xff]  ;;  %v73_v58 = vmul.f32 %v3567_v35, %v38_v50  ;;  %v62_v59 = vmul.f32 %v3567_v35, %v27_v51 }
   0xf   :  { %3000 = vmatpush3.bf16.msra.mxu0 %v3359_v14  ;;  %2857 = vmatprep.subr.bf16.mxu1 %v3360_v17  ;;  %v3584_v40 = vld [vmem:[%s4625_s4 + $0x140] sm:$0xff]   ;;  %v3589_v43 = vadd.f32 %v3579_v39, %v72_v36  ;;  %v3592_v44 = vadd.f32 %v3579_v39, %v86_v37  ;;  %v3595_v45 = vadd.f32 %v3579_v39, %v71_v41  ;;  %v25_v54 = vld [vmem:[%s4627_s0 + $0x8] sm:$0xff]  ;;  %v43_v8 = vld [vmem:[%s4627_s0 + $0x98] sm:$0xff] }
  0x10   :  { %3001 = vmatprep.subr.bf16.mxu0 %v3361_v18  ;;  %v3598_v46 = vadd.f32 %v3579_v39, %v85_v42  ;;  %v40_v48 = vld [vmem:[%s4627_s0 + $0x80] sm:$0xff]  ;;  %v76_v60 = vmul.f32 %v3567_v35, %v41_v53  ;;  %v60_v61 = vmul.f32 %v3567_v35, %v25_v54  ;;  %v74_v62 = vmul.f32 %v3567_v35, %v39_v55  ;;  %v29_v3 = vld [vmem:[%s4627_s0 + $0x28] sm:$0xff]  ;;  %v42_v10 = vld [vmem:[%s4627_s0 + $0x90] sm:$0xff] }
  0x11   :  { %2858 = vmatpush3.bf16.msra.mxu1 %v3360_v17  ;;  %v24_v49 = vld [vmem:[%s4627_s0] sm:$0xff]  ;;  %v75_v56 = vmul.f32 %v3567_v35, %v40_v48  ;;  %v3635_v63 = vadd.f32 %v3579_v39, %v61_v52  ;;  %v3644_v2 = vadd.f32 %v3579_v39, %v73_v58  ;;  %v3650_v4 = vadd.f32 %v3579_v39, %v62_v59  ;;  %v31_v12 = vld [vmem:[%s4627_s0 + $0x38] sm:$0xff]  ;;  %v45_v13 = vld [vmem:[%s4627_s0 + $0xa8] sm:$0xff] }
  0x12   :  { %211 = vperm.xlu1 %3353, %v159_v15   ;;  %206 = vperm.xlu0 %3352, %v158_v16   ;;  %v59_v57 = vmul.f32 %v3567_v35, %v24_v49  ;;  %v3653_v5 = vadd.f32 %v3579_v39, %v76_v60  ;;  %v3656_v6 = vadd.f32 %v3579_v39, %v60_v61  ;;  %v28_v9 = vld [vmem:[%s4627_s0 + $0x20] sm:$0xff]  ;;  %v30_v17 = vld [vmem:[%s4627_s0 + $0x30] sm:$0xff]  ;;  %v35_v31 = vld [vmem:[%s4627_s0 + $0x58] sm:$0xff] }
  0x13   :  { %3002 = vmatpush3.bf16.msra.mxu0 %v3361_v18  ;;  %2859 = vmatprep.subr.bf16.mxu1 %v3362_v21  ;;  %v3638_v0 = vadd.f32 %v3579_v39, %v75_v56  ;;  %v3659_v7 = vadd.f32 %v3579_v39, %v74_v62  ;;  %v124_v11 = vmax.f32 %v3635_v63, 0.0  ;;  %v136_v16 = vmax.f32 %v3644_v2, 0.0  ;;  %v44_v18 = vld [vmem:[%s4627_s0 + $0xa0] sm:$0xff]  ;;  %v49_v37 = vld [vmem:[%s4627_s0 + $0xc8] sm:$0xff]  ;;  %v34_v41 = vld [vmem:[%s4627_s0 + $0x50] sm:$0xff] }
  0x14   :  { %3003 = vmatprep.subr.bf16.mxu0 %v3363_v22  ;;  %v3641_v1 = vadd.f32 %v3579_v39, %v59_v57  ;;  %v66_v32 = vmul.f32 %v3567_v35, %v31_v12  ;;  %v80_v33 = vmul.f32 %v3567_v35, %v45_v13  ;;  %v65_v34 = vmul.f32 %v3567_v35, %v30_v17  ;;  %v48_v42 = vld [vmem:[%s4627_s0 + $0xc0] sm:$0xff] }
  0x15   :  { %2860 = vmatpush3.bf16.msra.mxu1 %v3362_v21  ;;  %v138_v14 = vmax.f32 %v3638_v0, 0.0  ;;  %v78_v21 = vmul.f32 %v3567_v35, %v43_v8  ;;  %v79_v36 = vmul.f32 %v3567_v35, %v44_v18  ;;  %v70_v55 = vmul.f32 %v3567_v35, %v35_v31 }
  0x16   :  { %221 = vperm.xlu1 %3353, %v161_v19   ;;  %216 = vperm.xlu0 %3352, %v160_v20   ;;  %v122_v15 = vmax.f32 %v3641_v1, 0.0  ;;  %v33_v19 = vld [vmem:[%s4627_s0 + $0x48] sm:$0xff]  ;;  %v64_v20 = vmul.f32 %v3567_v35, %v29_v3  ;;  %v84_v56 = vmul.f32 %v3567_v35, %v49_v37  ;;  %v69_v57 = vmul.f32 %v3567_v35, %v34_v41 }
  0x17   :  { %3004 = vmatpush3.bf16.msra.mxu0 %v3363_v22  ;;  %2861 = vmatprep.subr.bf16.mxu1 %v3364_v25  ;;  %v63_v22 = vmul.f32 %v3567_v35, %v28_v9  ;;  %v68_v47 = vmul.f32 %v3567_v35, %v33_v19  ;;  %v113_v52 = vadd.f32 %v3579_v39, %v78_v21  ;;  %v135_v63 = vmax.f32 %v3589_v43, 0.0 }
  0x18   :  { %3005 = vmatprep.subr.bf16.mxu0 %v3365_v26  ;;  %v99_v51 = vadd.f32 %v3579_v39, %v64_v20  ;;  %v83_v58 = vmul.f32 %v3567_v35, %v48_v42  ;;  %v3735_v59 = vadd.f32 %v3579_v39, %v66_v32  ;;  %v3738_v60 = vadd.f32 %v3579_v39, %v80_v33 }
  0x19   :  { %2862 = vmatpush3.bf16.msra.mxu1 %v3364_v25  ;;  %v32_v25 = vld [vmem:[%s4627_s0 + $0x40] sm:$0xff]  ;;  %v98_v53 = vadd.f32 %v3579_v39, %v63_v22  ;;  %v3741_v61 = vadd.f32 %v3579_v39, %v65_v34  ;;  %v3744_v62 = vadd.f32 %v3579_v39, %v79_v36  ;;  %v3759_v17 = vadd.f32 %v3579_v39, %v70_v55 }
  0x1a   :  { %231 = vperm.xlu1 %3353, %v163_v23   ;;  %226 = vperm.xlu0 %3352, %v162_v24   ;;  %v77_v23 = vmul.f32 %v3567_v35, %v42_v10  ;;  %v47_v24 = vld [vmem:[%s4627_s0 + $0xb8] sm:$0xff]  ;;  %v67_v49 = vmul.f32 %v3567_v35, %v32_v25  ;;  %v127_v9 = vmax.f32 %v99_v51, 0.0  ;;  %v141_v10 = vmax.f32 %v113_v52, 0.0 }
  0x1b   :  { %2863 = vmatprep.subr.bf16.mxu1 %v3366_v27  ;;  %3006 = vmatpush3.bf16.msra.mxu0 %v3365_v26  ;;  %v46_v26 = vld [vmem:[%s4627_s0 + $0xb0] sm:$0xff]  ;;  %v82_v48 = vmul.f32 %v3567_v35, %v47_v24  ;;  %v126_v12 = vmax.f32 %v98_v53, 0.0  ;;  %v3762_v18 = vadd.f32 %v3579_v39, %v84_v56  ;;  %v3765_v19 = vadd.f32 %v3579_v39, %v69_v57 }
  0x1c   :  { %3007 = vmatprep.subr.bf16.mxu0 %v3367_v28  ;;  %v81_v50 = vmul.f32 %v3567_v35, %v46_v26  ;;  %v112_v54 = vadd.f32 %v3579_v39, %v77_v23  ;;  %v3753_v35 = vadd.f32 %v3579_v39, %v67_v49  ;;  %v3768_v20 = vadd.f32 %v3579_v39, %v83_v58 }
  0x1d   :  { %2864 = vmatpush3.bf16.msra.mxu1 %v3366_v27  ;;  %v125_v27 = vmax.f32 %v3650_v4, 0.0  ;;  %v129_v21 = vmax.f32 %v3735_v59, 0.0  ;;  %v143_v22 = vmax.f32 %v3738_v60, 0.0  ;;  %v128_v23 = vmax.f32 %v3741_v61, 0.0 }
  0x1e   :  { %2865 = vmatprep.subr.bf16.mxu1 %v3368_v29  ;;  %v3756_v8 = vadd.f32 %v3579_v39, %v81_v50  ;;  %v140_v13 = vmax.f32 %v112_v54, 0.0  ;;  %v142_v24 = vmax.f32 %v3744_v62, 0.0  ;;  %v130_v33 = vmax.f32 %v3753_v35, 0.0 }
  0x1f   :  { %3008 = vmatpush3.bf16.msra.mxu0 %v3367_v28  ;;  %v139_v28 = vmax.f32 %v3653_v5, 0.0  ;;  %v133_v42 = vmax.f32 %v3759_v17, 0.0  ;;  %v146_v49 = vmax.f32 %v3768_v20, 0.0  ;;  %v149_v53 = vmax.f32 %v3592_v44, 0.0  ;;  %v3371_v17 = vld [vmem:[%s4625_s4 + $0x148] sm:$0xff]   ;;  %v3379_v20 = vld [vmem:[%s4625_s4 + $0x20] sm:$0xff]  }
  0x20   :  { %3009 = vmatprep.subr.bf16.mxu0 %v3369_v30  ;;  %v144_v34 = vmax.f32 %v3756_v8, 0.0 }
  0x21   :  { %2866 = vmatpush3.bf16.msra.mxu1 %v3368_v29  ;;  %v123_v29 = vmax.f32 %v3656_v6, 0.0  ;;  %v3747_v6 = vadd.f32 %v3579_v39, %v68_v47  ;;  %v147_v47 = vmax.f32 %v3762_v18, 0.0  ;;  %v3376_v18 = vld [vmem:[%s4625_s4 + $0x158] sm:$0xff]  }
  0x22   :  { %2887 = vmatprep.subr.bf16.mxu1 %v3574_v38 }
  0x23   :  { %3010 = vmatpush3.bf16.msra.mxu0 %v3369_v30  ;;  %v137_v30 = vmax.f32 %v3659_v7, 0.0  ;;  %v3750_v7 = vadd.f32 %v3579_v39, %v82_v48  ;;  %v131_v31 = vmax.f32 %v3747_v6, 0.0  ;;  %v132_v48 = vmax.f32 %v3765_v19, 0.0 }
  0x24   :  { %3031 = vmatprep.subr.bf16.mxu0 %v3584_v40 }
  0x25   :  { %v145_v32 = vmax.f32 %v3750_v7, 0.0 }
  0x81   :  { %v177_v3 = vpop.permute.xlu1 %176  ;;  %v167_v4 = vpop.permute.xlu0 %166 }
  0x82   :  { %v236_v39 = vmul.f32 %v177_v3, %v124_v11  ;;  %v234_v36 = vmul.f32 %v167_v4, %v122_v15  ;;  %v250_v1 = vmul.f32 %v177_v3, %v138_v14  ;;  %v248_v11 = vmul.f32 %v167_v4, %v136_v16 }
  0x83   :  { %v134_v16 = vmax.f32 %v3595_v45, 0.0 }
  0x85   :  { %v182_v25 = vpop.permute.xlu1 %181  ;;  %v172_v26 = vpop.permute.xlu0 %171 }
  0x86   :  { %v237_v37 = vmul.f32 %v182_v25, %v125_v27  ;;  %v235_v41 = vmul.f32 %v172_v26, %v123_v29  ;;  %v249_v51 = vmul.f32 %v172_v26, %v137_v30  ;;  %v251_v15 = vmul.f32 %v182_v25, %v139_v28 }
  0x87   :  { %v148_v28 = vmax.f32 %v3598_v46, 0.0 }
  0x88   :  { %v3786_v50 = vpack.c.bf16 %v237_v37, %v236_v39  ;;  %v3788_v52 = vpack.c.bf16 %v235_v41, %v234_v36  ;;  %v3806_v5 = vpack.c.bf16 %v249_v51, %v248_v11  ;;  %v3812_v59 = vpack.c.bf16 %v251_v15, %v250_v1 }
  0x89   :  { %v192_v27 = vpop.permute.xlu1 %191  ;;  %v187_v29 = vpop.permute.xlu0 %186 }
  0x8a   :  { %v239_v54 = vmul.f32 %v192_v27, %v127_v9  ;;  %v253_v30 = vmul.f32 %v192_v27, %v141_v10  ;;  %v238_v55 = vmul.f32 %v187_v29, %v126_v12  ;;  %v252_v56 = vmul.f32 %v187_v29, %v140_v13 }
  0x8b   :  { %v294_v57 = vshrl.u32 %v3788_v52, 16  ;;  %v296_v58 = vshll.u32 %v3788_v52, 16  ;;  %v3801_v0 = vshll.u32 %v3786_v50, 16  ;;  %v3804_v2 = vshrl.u32 %v3786_v50, 16 }
  0x8c   :  { %v3808_v14 = vpack.c.bf16 %v239_v54, %v238_v55  ;;  %v3814_v6 = vpack.c.bf16 %v253_v30, %v252_v56  ;;  %v340_v37 = vshll.u32 %v3806_v5, 16 }
  0x8d   :  { %v202_v60 = vpop.permute.xlu1 %201  ;;  %v197_v61 = vpop.permute.xlu0 %196  ;;  %v298_v62 = vrot.slane %v296_v58, 1  ;;  %v1205_v3 = vrot.slane %v294_v57, 5  ;;  %v1206_v4 = vrot.slane %v296_v58, 6  ;;  %v303_v9 = vrot.slane %v3801_v0, 1 }
  0x8e   :  { %v241_v7 = vmul.f32 %v202_v60, %v129_v21  ;;  %v240_v35 = vmul.f32 %v197_v61, %v128_v23  ;;  %v1208_v13 = vrot.slane %v3804_v2, 5  ;;  %v1209_v25 = vrot.slane %v3801_v0, 6 }
  0x8f   :  { %v299_v10 = vor.u32 %v298_v62, %v294_v57  ;;  %v1207_v12 = vor.u32 %v1206_v4, %v1205_v3  ;;  %v255_v26 = vmul.f32 %v202_v60, %v143_v22  ;;  %v3822_v36 = vshll.u32 %v3808_v14, 16 }
  0x90   :  { %v3819_v39 = vpack.c.bf16 %v241_v7, %v240_v35  ;;  %v254_v41 = vmul.f32 %v197_v61, %v142_v24  ;;  %v1210_v1 = vor.u32 %v1209_v25, %v1208_v13  ;;  %v3827_v11 = vshrl.u32 %v3808_v14, 16 }
  0x91   :  { %v212_v51 = vpop.permute.xlu1 %211  ;;  %v207_v21 = vpop.permute.xlu0 %206  ;;  %v304_v23 = vsel %vm292_vm0, %v299_v10, %v303_v9  ;;  %v307_v22 = vor.u32 %v3804_v2, %v303_v9  ;;  %v311_v30 = vrot.slane %v3822_v36, 1  ;;  %v1213_v55 = vrot.slane %v3822_v36, 6 }
  0x92   :  { %v243_v15 = vmul.f32 %v212_v51, %v131_v31  ;;  %v257_v27 = vmul.f32 %v212_v51, %v145_v32  ;;  %v242_v29 = vmul.f32 %v207_v21, %v130_v33  ;;  %2867 = vmatprep.mubr.bf16.mxu1 %v304_v23  ;;  %v1211_v54 = vsel %vm1204_vm1, %v1207_v12, %v1210_v1  ;;  %v3374_v33 = vld [vmem:[%s4625_s4 + $0x8] sm:$0xff]  }
  0x93   :  { %v1212_v24 = vrot.slane %v3827_v11, 5  ;;  %v256_v56 = vmul.f32 %v207_v21, %v144_v34  ;;  %3011 = vmatprep.mubr.bf16.mxu0 %v1211_v54  ;;  %v3839_v31 = vshll.u32 %v3819_v39, 16  ;;  %v3842_v32 = vshrl.u32 %v3819_v39, 16 }
  0x94   :  { %v3836_v57 = vpack.c.bf16 %v243_v15, %v242_v29  ;;  %v3847_v58 = vpack.c.bf16 %v255_v26, %v254_v41  ;;  %v312_v60 = vsel %vm292_vm0, %v307_v22, %v311_v30  ;;  %v338_v62 = vshrl.u32 %v3806_v5, 16  ;;  %v3375_v26 = vld [vmem:[%s4625_s4 + $0x10] sm:$0xff]  }
  0x95   :  { %v222_v61 = vpop.permute.xlu1 %221  ;;  %v217_v8 = vpop.permute.xlu0 %216  ;;  %v1214_v34 = vor.u32 %v1213_v55, %v1212_v24  ;;  %2868 = vmatmul.mubr.bf16.vlgmr.msra.gmra.mrb[0].mxu1 %v312_v60  ;;  %v315_v7 = vor.u32 %v3827_v11, %v311_v30  ;;  %v3858_v35 = vrot.slane %v340_v37, 1  ;;  %v319_v10 = vrot.slane %v3839_v31, 1  ;;  %v3373_v22 = vld [vmem:[%s4625_s4 + $0x150] sm:$0xff]  }
  0x96   :  { %v245_v3 = vmul.f32 %v222_v61, %v133_v42  ;;  %v244_v4 = vmul.f32 %v217_v8, %v132_v48  ;;  %v1216_v12 = vrot.slane %v3842_v32, 5  ;;  %v1217_v13 = vrot.slane %v3839_v31, 6  ;;  %2888 = vmatpush3.bf16.msra.mxu1 %v3574_v38 }
  0x97   :  { %v1215_v9 = vsel %vm1204_vm1, %v1210_v1, %v1214_v34  ;;  %v3868_v19 = vpack.c.bf16 %v257_v27, %v256_v56  ;;  %v3873_v48 = vshll.u32 %v3836_v57, 16  ;;  %v3876_v25 = vshrl.u32 %v3836_v57, 16  ;;  %2889 = vmatprep.subr.bf16.mxu1 %v3374_v33 }
  0x98   :  { %v3870_v42 = vpack.c.bf16 %v245_v3, %v244_v4  ;;  %3012 = vmatmul.mubr.bf16.vlgmr.msra.gmra.mrb[0].mxu0 %v1215_v9  ;;  %v320_v38 = vsel %vm292_vm0, %v315_v7, %v319_v10  ;;  %v1218_v21 = vor.u32 %v1217_v13, %v1216_v12  ;;  %v323_v23 = vor.u32 %v3842_v32, %v319_v10 }
  0x99   :  { %3032 = vmatpush3.bf16.msra.mxu0 %v3584_v40  ;;  %v232_v41 = vpop.permute.xlu1 %231  ;;  %v227_v51 = vpop.permute.xlu0 %226  ;;  %v3885_v1 = vshll.u32 %v3812_v59, 16  ;;  %2871 = vmatprep.mubr.bf16.mxu1 %v320_v38  ;;  %v327_v30 = vrot.slane %v3873_v48, 1  ;;  %v1220_v43 = vrot.slane %v3876_v25, 5  ;;  %v1221_v44 = vrot.slane %v3873_v48, 6 }
  0x9a   :  { %v247_v15 = vmul.f32 %v232_v41, %v135_v63  ;;  %v261_v27 = vmul.f32 %v232_v41, %v149_v53  ;;  %v246_v40 = vmul.f32 %v227_v51, %v134_v16  ;;  %v260_v29 = vmul.f32 %v227_v51, %v148_v28  ;;  %3033 = vmatprep.subr.bf16.mxu0 %v3371_v17  ;;  %v3377_v16 = vld [vmem:[%s4625_s4 + $0x18] sm:$0xff]   ;;  %v3378_v51 = vld [vmem:[%s4625_s4 + $0x160] sm:$0xff]  }
  0x9b   :  { %v1219_v54 = vsel %vm1204_vm1, %v1214_v34, %v1218_v21  ;;  %2890 = vmatpush3.bf16.msra.mxu1 %v3374_v33  ;;  %v3907_v46 = vshll.u32 %v3870_v42, 16  ;;  %v4636_v53 = vshrl.u32 %v3870_v42, 16  ;;  %v259_v28 = vmul.f32 %v222_v61, %v147_v47 }
  0x9c   :  { %v3902_v63 = vpack.c.bf16 %v247_v15, %v246_v40  ;;  %v3904_v45 = vpack.c.bf16 %v261_v27, %v260_v29  ;;  %3015 = vmatprep.mubr.bf16.mxu0 %v1219_v54  ;;  %2891 = vmatprep.subr.bf16.mxu1 %v3375_v26  ;;  %v328_v24 = vsel %vm292_vm0, %v323_v23, %v327_v30  ;;  %v3925_v47 = vshrl.u32 %v3812_v59, 16 }
  0x9d   :  { %3034 = vmatpush3.bf16.msra.mxu0 %v3371_v17  ;;  %v1222_v55 = vor.u32 %v1221_v44, %v1220_v43  ;;  %v331_v56 = vor.u32 %v3876_v25, %v327_v30  ;;  %2872 = vmatmul.mubr.bf16.gmra.mrb[4].mxu1 %v328_v24  ;;  %v335_v33 = vrot.slane %v3907_v46, 1  ;;  %v1226_v60 = vrot.slane %v4636_v53, 5 }
  0x9e   :  { %3035 = vmatprep.subr.bf16.mxu0 %v3373_v22  ;;  %v1227_v34 = vrot.slane %v3907_v46, 6  ;;  %v258_v61 = vmul.f32 %v217_v8, %v146_v49  ;;  %v3931_v4 = vshll.u32 %v3814_v6, 16  ;;  %v1230_v7 = vrot.slane %v338_v62, 5 }
  0x9f   :  { %v1223_v3 = vsel %vm1204_vm1, %v1218_v21, %v1222_v55  ;;  %2892 = vmatpush3.bf16.msra.mxu1 %v3375_v26  ;;  %v336_v9 = vsel %vm292_vm0, %v331_v56, %v335_v33  ;;  %v347_v12 = vrot.slane %v3885_v1, 1  ;;  %v1231_v13 = vrot.slane %v340_v37, 6 }
  0xa0   :  { %3016 = vmatmul.mubr.bf16.gmra.mrb[4].mxu0 %v1223_v3  ;;  %v1228_v10 = vor.u32 %v1227_v34, %v1226_v60  ;;  %2893 = vmatprep.subr.bf16.mxu1 %v3377_v16  ;;  %v343_v49 = vor.u32 %v3858_v35, %v338_v62  ;;  %v1233_v8 = vrot.slane %v3925_v47, 5  ;;  %v1234_v17 = vrot.slane %v3885_v1, 6 }
  0xa1   :  { %2875 = vmatprep.mubr.bf16.mxu1 %v336_v9  ;;  %3036 = vmatpush3.bf16.msra.mxu0 %v3373_v22  ;;  %v3948_v26 = vshrl.u32 %v3814_v6, 16  ;;  %v355_v38 = vrot.slane %v3931_v4, 1  ;;  %v1238_v41 = vrot.slane %v3931_v4, 6  ;;  %v1232_v62 = vor.u32 %v1231_v13, %v1230_v7  ;;  %v3381_v22 = vld [vmem:[%s4625_s4 + $0x28] sm:$0xff]   ;;  %v3382_v7 = vld [vmem:[%s4625_s4 + $0x170] sm:$0xff]  }
  0xa2   :  { %v1229_v37 = vsel %vm1204_vm1, %v1222_v55, %v1228_v10  ;;  %3037 = vmatprep.subr.bf16.mxu0 %v3376_v18  ;;  %v1235_v35 = vor.u32 %v1234_v17, %v1233_v8  ;;  %v3958_v23 = vshll.u32 %v3847_v58, 16  ;;  %v3960_v15 = vpack.c.bf16 %v259_v28, %v258_v61  ;;  %v3383_v61 = vld [vmem:[%s4625_s4 + $0x30] sm:$0xff]  }
  0xa3   :  { %3019 = vmatprep.mubr.bf16.mxu0 %v1229_v37  ;;  %v1237_v21 = vrot.slane %v3948_v26, 5  ;;  %2894 = vmatpush3.bf16.msra.mxu1 %v3377_v16  ;;  %v351_v27 = vor.u32 %v3925_v47, %v347_v12  ;;  %v3964_v40 = vshrl.u32 %v3847_v58, 16  ;;  %v3967_v29 = vshll.u32 %v3868_v19, 16  ;;  %v3380_v16 = vld [vmem:[%s4625_s4 + $0x168] sm:$0xff]   ;;  %v3384_v37 = vld [vmem:[%s4625_s4 + $0x38] sm:$0xff]  }
  0xa4   :  { %2895 = vmatprep.subr.bf16.mxu1 %v3379_v20  ;;  %v348_v54 = vsel %vm292_vm0, %v343_v49, %v347_v12  ;;  %v3974_v43 = vshrl.u32 %v3868_v19, 16  ;;  %v1236_v28 = vsel %vm1204_vm1, %v1232_v62, %v1235_v35  ;;  %v363_v24 = vrot.slane %v3958_v23, 1  ;;  %v3385_v62 = vld [vmem:[%s4625_s4 + $0x178] sm:$0xff]  }
  0xa5   :  { %3038 = vmatpush3.bf16.msra.mxu0 %v3376_v18  ;;  %v1239_v30 = vor.u32 %v1238_v41, %v1237_v21  ;;  %2876 = vmatmul.mubr.bf16.gmra.mrb[8].mxu1 %v348_v54  ;;  %v356_v44 = vsel %vm292_vm0, %v351_v27, %v355_v38  ;;  %v1241_v55 = vrot.slane %v3964_v40, 5  ;;  %v1242_v56 = vrot.slane %v3958_v23, 6 }
  0xa6   :  { %3039 = vmatprep.subr.bf16.mxu0 %v3378_v51  ;;  %2879 = vmatprep.mubr.bf16.mxu1 %v356_v44  ;;  %v1245_v60 = vrot.slane %v3974_v43, 5  ;;  %v1246_v34 = vrot.slane %v3967_v29, 6  ;;  %v3988_v18 = vshll.u32 %v3960_v15, 16  ;;  %v371_v3 = vrot.slane %v3967_v29, 1 }
  0xa7   :  { %2896 = vmatpush3.bf16.msra.mxu1 %v3379_v20  ;;  %v1240_v33 = vsel %vm1204_vm1, %v1235_v35, %v1239_v30  ;;  %v359_v9 = vor.u32 %v3948_v26, %v355_v38  ;;  %v367_v10 = vor.u32 %v3964_v40, %v363_v24  ;;  %v1243_v12 = vor.u32 %v1242_v56, %v1241_v55 }
  0xa8   :  { %3020 = vmatmul.mubr.bf16.gmra.mrb[8].mxu0 %v1236_v28  ;;  %2897 = vmatprep.subr.bf16.mxu1 %v3381_v22  ;;  %v4634_v13 = vshrl.u32 %v3960_v15, 16  ;;  %v4000_v20 = vor.u32 %v1246_v34, %v1245_v60  ;;  %v379_v49 = vrot.slane %v3988_v18, 1  ;;  %v1464_v8 = vrot.slane %v3788_v52, 6 }
  0xa9   :  { %3023 = vmatprep.mubr.bf16.mxu0 %v1240_v33  ;;  %3040 = vmatpush3.bf16.msra.mxu0 %v3378_v51  ;;  %v1465_v17 = vrot.slane %v3786_v50, 6  ;;  %v364_v38 = vsel %vm292_vm0, %v359_v9, %v363_v24  ;;  %v372_v41 = vsel %vm292_vm0, %v367_v10, %v371_v3  ;;  %v375_v51 = vor.u32 %v3974_v43, %v371_v3  ;;  %v4035_v33 = vld [vmem:[%s4625_s4 + $0x180] sm:$0xff]  }
  0xaa   :  { %3041 = vmatprep.subr.bf16.mxu0 %v3380_v16  ;;  %v1244_v35 = vsel %vm1204_vm1, %v1239_v30, %v1243_v12  ;;  %v1251_v21 = vrot.slane %v4634_v13, 5  ;;  %v1252_v27 = vrot.slane %v3988_v18, 6  ;;  %v1248_v54 = vsel %vm1204_vm1, %v1243_v12, %v4000_v20  ;;  %v4026_v30 = vld [vmem:[%s4625_s4 + $0x80] sm:$0xff]  }
  0xab   :  { %2898 = vmatpush3.bf16.msra.mxu1 %v3381_v22  ;;  %v1467_v22 = vrot.slane %v3808_v14, 6  ;;  %v380_v44 = vsel %vm292_vm0, %v375_v51, %v379_v49  ;;  %v1469_v28 = vrot.slane %v3819_v39, 6  ;;  %v4635_v24 = vrot.slane %v3836_v57, 6 }
  0xac   :  { %2899 = vmatprep.subr.bf16.mxu1 %v3383_v61  ;;  %v4631_v55 = vrot.slane %v3808_v14, 1  ;;  %v748_v56 = vrot.slane %v3819_v39, 1  ;;  %v4633_v60 = vrot.slane %v3808_v14, 2  ;;  %v1700_v34 = vrot.slane %v3819_v39, 2 }
  0xad   :  { %3042 = vmatpush3.bf16.msra.mxu0 %v3380_v16  ;;  %2880 = vmatmul.mubr.bf16.gmra.mrb[12].mxu1 %v364_v38  ;;  %v1466_v16 = vsel %vm1463_vm2, %v1464_v8, %v1465_v17  ;;  %v750_v3 = vrot.slane %v3836_v57, 1  ;;  %v4042_v9 = vsel %vm1463_vm2, %v1465_v17, %v1467_v22  ;;  %v752_v12 = vrot.slane %v3870_v42, 1 }
  0xae   :  { %3043 = vmatprep.subr.bf16.mxu0 %v3382_v7  ;;  %2883 = vmatprep.mubr.bf16.mxu1 %v372_v41  ;;  %v4047_v10 = vsel %vm742_vm3, %v4631_v55, %v748_v56  ;;  %v4054_v49 = vsel %vm1696_vm4, %v4633_v60, %v1700_v34  ;;  %v1706_v51 = vrot.slane %v3902_v63, 2  ;;  %v761_v55 = vrot.slane %v3868_v19, 1 }
  0xaf   :  { %2900 = vmatpush3.bf16.msra.mxu1 %v3383_v61  ;;  %v1702_v61 = vrot.slane %v3836_v57, 2  ;;  %v4060_v17 = vsel %vm742_vm3, %v748_v56, %v750_v3  ;;  %v4065_v41 = vsel %vm742_vm3, %v750_v3, %v752_v12  ;;  %v1928_v38 = vrot.slane %v3804_v2, 2 }
  0xb0   :  { %3024 = vmatmul.mubr.bf16.gmra.mrb[12].mxu0 %v1244_v35  ;;  %2901 = vmatprep.subr.bf16.mxu1 %v3384_v37  ;;  %v4632_v35 = vrot.slane %v3812_v59, 1  ;;  %v4637_v2 = vrot.slane %v3808_v14, 5 }
  0xb1   :  { %3027 = vmatprep.mubr.bf16.mxu0 %v1248_v54  ;;  %3044 = vmatpush3.bf16.msra.mxu0 %v3382_v7  ;;  %v1253_v7 = vor.u32 %v1252_v27, %v1251_v21  ;;  %v4057_v8 = vsel %vm1696_vm4, %v1700_v34, %v1702_v61  ;;  %v757_v27 = vrot.slane %v3814_v6, 1  ;;  %v1709_v54 = vrot.slane %v3814_v6, 2 }
  0xb2   :  { %3045 = vmatprep.subr.bf16.mxu0 %v3385_v62 }
  0xb3   :  { %2902 = vmatpush3.bf16.msra.mxu1 %v3384_v37  ;;  %v1704_v37 = vrot.slane %v3870_v42, 2  ;;  %v1254_v56 = vsel %vm1204_vm1, %v4000_v20, %v1253_v7  ;;  %v4087_v3 = vsel %vm742_vm3, %v4632_v35, %v757_v27  ;;  %v1713_v20 = vrot.slane %v3868_v19, 2 }
  0xb4   :  { %2923 = vmatprep.subr.bf16.mxu1 %v4026_v30  ;;  %v1470_v35 = vsel %vm1463_vm2, %v1467_v22, %v1469_v28  ;;  %v4121_v22 = vsel %vm1463_vm2, %v1469_v28, %v4635_v24  ;;  %v1935_v28 = vrot.slane %v3842_v32, 2  ;;  %v3387_v24 = vld [vmem:[%s4625_s4 + $0x188] sm:$0xff]  }
  0xb5   :  { %3046 = vmatpush3.bf16.msra.mxu0 %v3385_v62  ;;  %2884 = vmatmul.mubr.bf16.gmra.mrb[16].mxu1 %v380_v44  ;;  %v4071_v21 = vsel %vm1696_vm4, %v1702_v61, %v1704_v37  ;;  %v1708_v62 = vrot.slane %v3812_v59, 2  ;;  %v4080_v34 = vsel %vm1696_vm4, %v1704_v37, %v1706_v51  ;;  %v1711_v44 = vrot.slane %v3847_v58, 2 }
  0xb6   :  { %3067 = vmatprep.subr.bf16.mxu0 %v4035_v33  ;;  %2903 = vmatprep.mubr.bf16.mxu1 %v3788_v52  ;;  %v759_v61 = vrot.slane %v3847_v58, 1  ;;  %v1715_v51 = vrot.slane %v3960_v15, 2 }
  0xb7   :  { %v4090_v12 = vsel %vm1696_vm4, %v1708_v62, %v1709_v54  ;;  %v4095_v7 = vsel %vm1696_vm4, %v1709_v54, %v1711_v44  ;;  %v4108_v13 = vsel %vm1696_vm4, %v1711_v44, %v1713_v20  ;;  %v1717_v54 = vrot.slane %v3904_v45, 2  ;;  %v3390_v44 = vld [vmem:[%s4625_s4 + $0x88] sm:$0xff]  }
  0xb8   :  { %3028 = vmatmul.mubr.bf16.gmra.mrb[16].mxu0 %v1254_v56  ;;  %v4098_v37 = vsel %vm742_vm3, %v757_v27, %v759_v61  ;;  %v763_v56 = vrot.slane %v3960_v15, 1  ;;  %v4105_v60 = vsel %vm742_vm3, %v759_v61, %v761_v55  ;;  %v1929_v61 = vrot.slane %v3801_v0, 3 }
  0xb9   :  { %3047 = vmatprep.mubr.bf16.mxu0 %v1466_v16  ;;  %v4111_v16 = vsel %vm1696_vm4, %v1713_v20, %v1715_v51  ;;  %v1931_v20 = vrot.slane %v3827_v11, 2  ;;  %v979_v62 = vrot.slane %v3819_v39, 5  ;;  %v1936_v11 = vrot.slane %v3839_v31, 3  ;;  %v3391_v31 = vld [vmem:[%s4625_s4 + $0x90] sm:$0xff]  }
  0xba   :  { %v4114_v27 = vsel %vm742_vm3, %v761_v55, %v763_v56  ;;  %v1932_v55 = vrot.slane %v3822_v36, 3  ;;  %v4130_v56 = vsel %vm1696_vm4, %v1715_v51, %v1717_v54  ;;  %v1930_v0 = vor.u32 %v1929_v61, %v1928_v38 }
  0xbb   :  { %v1939_v36 = vrot.slane %v3876_v25, 2  ;;  %v4147_v32 = vsel %vm973_vm6, %v4637_v2, %v979_v62  ;;  %v1940_v54 = vrot.slane %v3873_v48, 3  ;;  %v981_v38 = vrot.slane %v3836_v57, 5 }
  0xbc   :  { %v1933_v53 = vor.u32 %v1932_v55, %v1931_v20  ;;  %v983_v61 = vrot.slane %v3870_v42, 5  ;;  %v4639_v20 = vshrl.u32 %v3870_v42, 16  ;;  %v1944_v2 = vrot.slane %v3907_v46, 3 }
  0xbd   :  { %2904 = vmatmul.mubr.bf16.vlgmr.msra.gmra.mrb[0].mxu1 %v3786_v50  ;;  %v1941_v48 = vor.u32 %v1940_v54, %v1939_v36  ;;  %v1948_v51 = vshrl.u32 %v3902_v63, 16  ;;  %v4638_v54 = vrot.slane %v3812_v59, 5 }
  0xbe   :  { %2907 = vmatprep.mubr.bf16.mxu1 %v3808_v14  ;;  %2924 = vmatpush3.bf16.msra.mxu1 %v4026_v30  ;;  %v4156_v25 = vsel %vm1927_vm5, %v1930_v0, %v1933_v53  ;;  %v1937_v30 = vor.u32 %v1936_v11, %v1935_v28  ;;  %v1943_v55 = vrot.slane %v4639_v20, 2  ;;  %v3389_v28 = vld [vmem:[%s4625_s4 + $0x190] sm:$0xff]   ;;  %v3393_v20 = vld [vmem:[%s4625_s4 + $0x98] sm:$0xff]   ;;  %v988_v0 = vrot.slane %v3814_v6, 5 }
  0xbf   :  { %2925 = vmatprep.subr.bf16.mxu1 %v3390_v44  ;;  %v1950_v36 = vrot.slane %v1948_v51, 2 }
  0xc0   :  { %3048 = vmatmul.mubr.bf16.vlgmr.msra.gmra.mrb[0].mxu0 %v4042_v9  ;;  %v4163_v9 = vsel %vm973_vm6, %v979_v62, %v981_v38  ;;  %v4172_v11 = vsel %vm1927_vm5, %v1933_v53, %v1937_v30  ;;  %v4179_v46 = vsel %vm1927_vm5, %v1937_v30, %v1941_v48  ;;  %v1945_v62 = vor.u32 %v1944_v2, %v1943_v55 }
  0xc1   :  { %3068 = vmatpush3.bf16.msra.mxu0 %v4035_v33  ;;  %3051 = vmatprep.mubr.bf16.mxu0 %v1470_v35  ;;  %v4175_v33 = vsel %vm973_vm6, %v981_v38, %v983_v61  ;;  %v1951_v35 = vshll.u32 %v3902_v63, 16  ;;  %v1956_v38 = vrot.slane %v3925_v47, 2  ;;  %v1957_v61 = vrot.slane %v3885_v1, 3  ;;  %v3392_v1 = vld [vmem:[%s4625_s4 + $0x198] sm:$0xff]  }
  0xc2   :  { %3069 = vmatprep.subr.bf16.mxu0 %v3387_v24  ;;  %2926 = vmatpush3.bf16.msra.mxu1 %v3390_v44  ;;  %v4640_v44 = vrot.slane %v3870_v42, 6  ;;  %v4641_v2 = vrot.slane %v3836_v57, 6  ;;  %v4194_v30 = vsel %vm1927_vm5, %v1941_v48, %v1945_v62  ;;  %v1959_v55 = vrot.slane %v3948_v26, 2 }
  0xc3   :  { %2927 = vmatprep.subr.bf16.mxu1 %v3391_v31  ;;  %v1953_v53 = vrot.slane %v1951_v35, 3  ;;  %4642 = vst [vmem:[#allocation2_spill] sm:$0xff] %v4194_v30  ;;  %v1960_v35 = vrot.slane %v3931_v4, 3  ;;  %v1963_v48 = vrot.slane %v3964_v40, 2  ;;  %v1964_v26 = vrot.slane %v3958_v23, 3 }
  0xc4   :  { %v1474_v51 = vsel %vm1463_vm2, %v4641_v2, %v4640_v44  ;;  %v1958_v44 = vor.u32 %v1957_v61, %v1956_v38  ;;  %v990_v2 = vrot.slane %v3847_v58, 5  ;;  %v992_v30 = vrot.slane %v3868_v19, 5 }
  0xc5   :  { %3070 = vmatpush3.bf16.msra.mxu0 %v3387_v24  ;;  %2908 = vmatmul.mubr.bf16.gmra.mrb[4].mxu1 %v3819_v39  ;;  %v1954_v47 = vor.u32 %v1953_v53, %v1950_v36  ;;  %v4205_v24 = vsel %vm973_vm6, %v4638_v54, %v988_v0  ;;  %v1961_v4 = vor.u32 %v1960_v35, %v1959_v55  ;;  %v3395_v36 = vld [vmem:[%s4625_s4 + $0xa0] sm:$0xff]   ;;  %v1967_v40 = vrot.slane %v3974_v43, 2 }
  0xc6   :  { %3071 = vmatprep.subr.bf16.mxu0 %v3389_v28  ;;  %2911 = vmatprep.mubr.bf16.mxu1 %v3836_v57  ;;  %v4643_v23 = vshrl.u32 %v3960_v15, 16  ;;  %v4227_v55 = vsel %vm973_vm6, %v988_v0, %v990_v2  ;;  %v1972_v35 = vrot.slane %v3988_v18, 3  ;;  %v3394_v43 = vld [vmem:[%s4625_s4 + $0x1a0] sm:$0xff]   ;;  %v2207_v18 = vrot.slane %v3847_v58, 3 }
  0xc7   :  { %2928 = vmatpush3.bf16.msra.mxu1 %v3391_v31  ;;  %v4217_v53 = vsel %vm1927_vm5, %v1945_v62, %v1954_v47  ;;  %v1968_v31 = vrot.slane %v3967_v29, 3  ;;  %v4224_v61 = vsel %vm1927_vm5, %v1958_v44, %v1961_v4  ;;  %v4234_v29 = vsel %vm973_vm6, %v990_v2, %v992_v30 }
  0xc8   :  { %3052 = vmatmul.mubr.bf16.gmra.mrb[4].mxu0 %v4121_v22  ;;  %2929 = vmatprep.subr.bf16.mxu1 %v3393_v20  ;;  %v1971_v38 = vrot.slane %v4643_v23, 2  ;;  %v1965_v22 = vor.u32 %v1964_v26, %v1963_v48  ;;  %v1976_v44 = vshrl.u32 %v3904_v45, 16  ;;  %v4644_v48 = vrot.slane %v3812_v59, 6 }
  0xc9   :  { %3055 = vmatprep.mubr.bf16.mxu0 %v1474_v51  ;;  %3072 = vmatpush3.bf16.msra.mxu0 %v3389_v28  ;;  %v1969_v62 = vor.u32 %v1968_v31, %v1967_v40  ;;  %v994_v28 = vrot.slane %v3960_v15, 5  ;;  %v2205_v51 = vrot.slane %v3814_v6, 3  ;;  %v4645_v26 = vrot.slane %v3806_v5, 6  ;;  %v3397_v40 = vld [vmem:[%s4625_s4 + $0xa8] sm:$0xff]  }
  0xca   :  { %3073 = vmatprep.subr.bf16.mxu0 %v3392_v1  ;;  %v4239_v47 = vsel %vm1927_vm5, %v1961_v4, %v1965_v22  ;;  %v1973_v0 = vor.u32 %v1972_v35, %v1971_v38  ;;  %v1979_v31 = vshll.u32 %v3904_v45, 16  ;;  %v4647_v23 = vrot.slane %v3814_v6, 6 }
  0xcb   :  { %2930 = vmatpush3.bf16.msra.mxu1 %v3393_v20  ;;  %v1477_v2 = vsel %vm1463_vm2, %v4645_v26, %v4644_v48  ;;  %v4252_v20 = vsel %vm1927_vm5, %v1965_v22, %v1969_v62  ;;  %v4255_v4 = vsel %vm973_vm6, %v992_v30, %v994_v28  ;;  %v4648_v38 = vmov %v4644_v48  ;;  %v3396_v30 = vld [vmem:[%s4625_s4 + $0x1a8] sm:$0xff]  }
  0xcc   :  { %2931 = vmatprep.subr.bf16.mxu1 %v3395_v36  ;;  %4646 = vst [vmem:[#allocation3_spill] sm:$0xff] %v4255_v4  ;;  %v1479_v35 = vsel %vm1463_vm2, %v4648_v38, %v4647_v23  ;;  %v4264_v48 = vsel %vm1927_vm5, %v1969_v62, %v1973_v0  ;;  %v4267_v26 = vsel %vm2192_vm7, %v2205_v51, %v2207_v18  ;;  %v1978_v22 = vrot.slane %v1976_v44, 2 }
  0xcd   :  { %3074 = vmatpush3.bf16.msra.mxu0 %v3392_v1  ;;  %4649 = vst [vmem:[#allocation4_spill] sm:$0xff] %v4267_v26  ;;  %2912 = vmatmul.mubr.bf16.gmra.mrb[8].mxu1 %v3806_v5  ;;  %v1981_v1 = vrot.slane %v1979_v31, 3  ;;  %v2209_v28 = vrot.slane %v3868_v19, 3  ;;  %v2211_v54 = vrot.slane %v3960_v15, 3  ;;  %v2196_v23 = vrot.slane %v3819_v39, 3  ;;  %v3399_v31 = vld [vmem:[%s4625_s4 + $0xb0] sm:$0xff]  }
  0xce   :  { %3075 = vmatprep.subr.bf16.mxu0 %v3394_v43  ;;  %2915 = vmatprep.mubr.bf16.mxu1 %v3812_v59  ;;  %v2198_v44 = vrot.slane %v3836_v57, 3  ;;  %v2213_v38 = vrot.slane %v3904_v45, 3  ;;  %v2200_v26 = vrot.slane %v3870_v42, 3  ;;  %v2202_v62 = vrot.slane %v3902_v63, 3  ;;  %v3398_v63 = vld [vmem:[%s4625_s4 + $0x1b0] sm:$0xff]  }
  0xcf   :  { %2932 = vmatpush3.bf16.msra.mxu1 %v3395_v36  ;;  %v1982_v4 = vor.u32 %v1981_v1, %v1978_v22  ;;  %v4285_v39 = vsel %vm2192_vm7, %v2207_v18, %v2209_v28  ;;  %v4288_v36 = vsel %vm2192_vm7, %v2209_v28, %v2211_v54  ;;  %v4650_v57 = vrot.slane %v3808_v14, 3 }
  0xd0   :  { %3056 = vmatmul.mubr.bf16.gmra.mrb[8].mxu0 %v1477_v2  ;;  %2933 = vmatprep.subr.bf16.mxu1 %v3397_v40  ;;  %v4297_v45 = vsel %vm2192_vm7, %v2196_v23, %v2198_v44  ;;  %v4300_v2 = vsel %vm2192_vm7, %v2211_v54, %v2213_v38  ;;  %v2204_v18 = vrot.slane %v3812_v59, 3  ;;  %v4313_v22 = vsel %vm2192_vm7, %v2200_v26, %v2202_v62 }
  0xd1   :  { %3059 = vmatprep.mubr.bf16.mxu0 %v1479_v35  ;;  %3076 = vmatpush3.bf16.msra.mxu0 %v3394_v43  ;;  %v4294_v42 = vsel %vm2192_vm7, %v4650_v57, %v2196_v23  ;;  %v4307_v43 = vsel %vm1927_vm5, %v1973_v0, %v1982_v4  ;;  %v4310_v35 = vsel %vm2192_vm7, %v2198_v44, %v2200_v26  ;;  %v1480_v1 = vrot.slane %v3847_v58, 6  ;;  %v3400_v0 = vld [vmem:[%s4625_s4 + $0xb8] sm:$0xff]  }
  0xd2   :  { %3077 = vmatprep.subr.bf16.mxu0 %v3396_v30  ;;  %v4317_v54 = vsel %vm2192_vm7, %v2204_v18, %v2205_v51  ;;  %v1482_v28 = vrot.slane %v3868_v19, 6  ;;  %v3401_v4 = vld [vmem:[%s4625_s4 + $0x1b8] sm:$0xff]   ;;  %v4651_v51 = vrot.slane %v3814_v6, 6  ;;  %v743_v23 = vrot.slane %v3788_v52, 1 }
  0xd3   :  { %2934 = vmatpush3.bf16.msra.mxu1 %v3397_v40  ;;  %v744_v62 = vrot.slane %v3786_v50, 1  ;;  %v1697_v38 = vrot.slane %v3786_v50, 2  ;;  %v4652_v57 = vrot.slane %v3808_v14, 2 }
  0xd4   :  { %2935 = vmatprep.subr.bf16.mxu1 %v3399_v31  ;;  %v1481_v40 = vsel %vm1463_vm2, %v4651_v51, %v1480_v1  ;;  %v1483_v26 = vsel %vm1463_vm2, %v1480_v1, %v1482_v28  ;;  %v3403_v1 = vld [vmem:[%s4625_s4 + $0x1c8] sm:$0xff]  }
  0xd5   :  { %3078 = vmatpush3.bf16.msra.mxu0 %v3396_v30  ;;  %2916 = vmatmul.mubr.bf16.gmra.mrb[12].mxu1 %v3814_v6  ;;  %v3404_v30 = vld [vmem:[%s4625_s4 + $0xc0] sm:$0xff]   ;;  %v745_v44 = vsel %vm742_vm3, %v743_v23, %v744_v62  ;;  %v1699_v18 = vsel %vm1696_vm4, %v1697_v38, %v4652_v57 }
  0xd6   :  { %3079 = vmatprep.subr.bf16.mxu0 %v3398_v63  ;;  %2919 = vmatprep.mubr.bf16.mxu1 %v3847_v58  ;;  %v3402_v6 = vld [vmem:[%s4625_s4 + $0x1c0] sm:$0xff]   ;;  %v1484_v58 = vrot.slane %v3960_v15, 6  ;;  %v3406_v15 = vld [vmem:[%s4625_s4 + $0xc8] sm:$0xff]  }
  0xd7   :  { %2936 = vmatpush3.bf16.msra.mxu1 %v3399_v31 }
  0xd8   :  { %3060 = vmatmul.mubr.bf16.gmra.mrb[12].mxu0 %v1481_v40  ;;  %2937 = vmatprep.subr.bf16.mxu1 %v3400_v0  ;;  %v1485_v31 = vsel %vm1463_vm2, %v1482_v28, %v1484_v58  ;;  %v3407_v28 = vld [vmem:[%s4625_s4 + $0xd0] sm:$0xff]  }
  0xd9   :  { %3063 = vmatprep.mubr.bf16.mxu0 %v1483_v26  ;;  %3080 = vmatpush3.bf16.msra.mxu0 %v3398_v63  ;;  %v3415_v40 = vld [vmem:[%s4625_s4 + $0xf0] sm:$0xff]  }
  0xda   :  { %3081 = vmatprep.subr.bf16.mxu0 %v3401_v4  ;;  %v3414_v26 = vld [vmem:[%s4625_s4 + $0x1f0] sm:$0xff]  }
  0xdb   :  { %2938 = vmatpush3.bf16.msra.mxu1 %v3400_v0  ;;  %v3405_v0 = vld [vmem:[%s4625_s4 + $0x1d0] sm:$0xff]  }
  0xdc   :  { %2959 = vmatprep.subr.bf16.mxu1 %v3404_v30 }
  0xdd   :  { %3082 = vmatpush3.bf16.msra.mxu0 %v3401_v4  ;;  %2920 = vmatmul.mubr.bf16.gmra.mrb[16].mxu1 %v3868_v19  ;;  %v4653_v19 = vrot.slane %v3808_v14, 1  ;;  %v3410_v4 = vld [vmem:[%s4625_s4 + $0x1e0] sm:$0xff]  }
  0xde   :  { %3103 = vmatprep.subr.bf16.mxu0 %v3402_v6  ;;  %2939 = vmatprep.mubr.bf16.mxu1 %v745_v44 }
  0xdf   :  { %v747_v63 = vsel %vm742_vm3, %v744_v62, %v4653_v19 }
  0xe0   :  { %3064 = vmatmul.mubr.bf16.gmra.mrb[16].mxu0 %v1485_v31 }
  0xe1   :  { %3083 = vmatprep.mubr.bf16.mxu0 %v1699_v18 }
  0xe5   :  { %2940 = vmatmul.mubr.bf16.vlgmr.msra.gmra.mrb[0].mxu1 %v747_v63 }
  0xe6   :  { %2943 = vmatprep.mubr.bf16.mxu1 %v4047_v10  ;;  %2960 = vmatpush3.bf16.msra.mxu1 %v3404_v30  ;;  %v3409_v10 = vld [vmem:[%s4625_s4 + $0xd8] sm:$0xff]   ;;  %v975_v30 = vrot.slane %v3786_v50, 5 }
  0xe7   :  { %2961 = vmatprep.subr.bf16.mxu1 %v3406_v15 }
  0xe8   :  { %3084 = vmatmul.mubr.bf16.vlgmr.msra.gmra.mrb[0].mxu0 %v4054_v49  ;;  %v3408_v49 = vld [vmem:[%s4625_s4 + $0x1d8] sm:$0xff]  }
  0xe9   :  { %3104 = vmatpush3.bf16.msra.mxu0 %v3402_v6  ;;  %3087 = vmatprep.mubr.bf16.mxu0 %v4057_v8  ;;  %v3411_v8 = vld [vmem:[%s4625_s4 + $0xe0] sm:$0xff]  }
  0xea   :  { %3105 = vmatprep.subr.bf16.mxu0 %v3403_v1  ;;  %2962 = vmatpush3.bf16.msra.mxu1 %v3406_v15 }
  0xeb   :  { %2963 = vmatprep.subr.bf16.mxu1 %v3407_v28 }
  0xed   :  { %3106 = vmatpush3.bf16.msra.mxu0 %v3403_v1  ;;  %2944 = vmatmul.mubr.bf16.gmra.mrb[4].mxu1 %v4060_v17  ;;  %v754_v17 = vrot.slane %v3806_v5, 1 }
  0xee   :  { %3107 = vmatprep.subr.bf16.mxu0 %v3405_v0  ;;  %2947 = vmatprep.mubr.bf16.mxu1 %v4065_v41  ;;  %v3413_v41 = vld [vmem:[%s4625_s4 + $0xe8] sm:$0xff]  }
  0xef   :  { %2964 = vmatpush3.bf16.msra.mxu1 %v3407_v28 }
  0xf0   :  { %3088 = vmatmul.mubr.bf16.gmra.mrb[4].mxu0 %v4071_v21  ;;  %2965 = vmatprep.subr.bf16.mxu1 %v3409_v10  ;;  %v4654_v21 = vrot.slane %v3812_v59, 1 }
  0xf1   :  { %3091 = vmatprep.mubr.bf16.mxu0 %v4080_v34  ;;  %3108 = vmatpush3.bf16.msra.mxu0 %v3405_v0  ;;  %v3412_v34 = vld [vmem:[%s4625_s4 + $0x1e8] sm:$0xff]  }
  0xf2   :  { %3109 = vmatprep.subr.bf16.mxu0 %v3408_v49  ;;  %v756_v51 = vsel %vm742_vm3, %v754_v17, %v4654_v21 }
  0xf3   :  { %2966 = vmatpush3.bf16.msra.mxu1 %v3409_v10 }
  0xf4   :  { %2967 = vmatprep.subr.bf16.mxu1 %v3411_v8 }
  0xf5   :  { %3110 = vmatpush3.bf16.msra.mxu0 %v3408_v49  ;;  %2948 = vmatmul.mubr.bf16.gmra.mrb[8].mxu1 %v756_v51 }
  0xf6   :  { %3111 = vmatprep.subr.bf16.mxu0 %v3410_v4  ;;  %2951 = vmatprep.mubr.bf16.mxu1 %v4087_v3  ;;  %v3416_v3 = vld [vmem:[%s4625_s4 + $0xf8] sm:$0xff]  }
  0xf7   :  { %2968 = vmatpush3.bf16.msra.mxu1 %v3411_v8 }
  0xf8   :  { %3092 = vmatmul.mubr.bf16.gmra.mrb[8].mxu0 %v4090_v12  ;;  %2969 = vmatprep.subr.bf16.mxu1 %v3413_v41  ;;  %v3417_v12 = vld [vmem:[%s4625_s4 + $0x1f8] sm:$0xff]  }
  0xf9   :  { %3095 = vmatprep.mubr.bf16.mxu0 %v4095_v7  ;;  %3112 = vmatpush3.bf16.msra.mxu0 %v3410_v4  ;;  %v3418_v7 = vld [vmem:[%s4625_s4 + $0x200] sm:$0xff]  }
  0xfa   :  { %3113 = vmatprep.subr.bf16.mxu0 %v3412_v34 }
  0xfb   :  { %2970 = vmatpush3.bf16.msra.mxu1 %v3413_v41 }
  0xfc   :  { %2971 = vmatprep.subr.bf16.mxu1 %v3415_v40 }
  0xfd   :  { %3114 = vmatpush3.bf16.msra.mxu0 %v3412_v34  ;;  %2952 = vmatmul.mubr.bf16.gmra.mrb[12].mxu1 %v4098_v37  ;;  %v974_v37 = vrot.slane %v3788_v52, 5  ;;  %v3419_v52 = vld [vmem:[%s4625_s4 + $0x208] sm:$0xff]   ;;  %v2437_v34 = vld [vmem:[%s4629_s5 + $0x70] sm:$0xff] }
  0xfe   :  { %3115 = vmatprep.subr.bf16.mxu0 %v3414_v26  ;;  %2955 = vmatprep.mubr.bf16.mxu1 %v4105_v60  ;;  %v4655_v60 = vrot.slane %v3808_v14, 5 }
  0xff   :  { %2972 = vmatpush3.bf16.msra.mxu1 %v3415_v40 }
 0x100   :  { %3096 = vmatmul.mubr.bf16.gmra.mrb[12].mxu0 %v4108_v13  ;;  %2973 = vmatprep.subr.bf16.mxu1 %v3416_v3  ;;  %v976_v13 = vsel %vm973_vm6, %v974_v37, %v975_v30  ;;  %v2425_v37 = vld [vmem:[%s4629_s5 + $0x10] sm:$0xff] }
 0x101   :  { %3099 = vmatprep.mubr.bf16.mxu0 %v4111_v16  ;;  %3116 = vmatpush3.bf16.msra.mxu0 %v3414_v26  ;;  %v978_v16 = vsel %vm973_vm6, %v975_v30, %v4655_v60 }
 0x102   :  { %3117 = vmatprep.subr.bf16.mxu0 %v3417_v12 }
 0x103   :  { %2974 = vmatpush3.bf16.msra.mxu1 %v3416_v3  ;;  %v2435_v3 = vld [vmem:[%s4629_s5 + $0x60] sm:$0xff] }
 0x104   :  { %3175 = vmatprep.subr.bf16.mxu1 %v3418_v7 }
 0x105   :  { %3118 = vmatpush3.bf16.msra.mxu0 %v3417_v12  ;;  %2956 = vmatmul.mubr.bf16.gmra.mrb[16].mxu1 %v4114_v27  ;;  %v3420_v27 = vld [vmem:[%s4625_s4 + $0x210] sm:$0xff]  }
 0x106   :  { %3139 = vmatprep.subr.bf16.mxu0 %v3418_v7  ;;  %2975 = vmatprep.mubr.bf16.mxu1 %v976_v13  ;;  %v2438_v13 = vld [vmem:[%s4629_s5 + $0x78] sm:$0xff] }
 0x108   :  { %3100 = vmatmul.mubr.bf16.gmra.mrb[16].mxu0 %v4130_v56  ;;  %v3421_v56 = vld [vmem:[%s4625_s4 + $0x218] sm:$0xff]  }
 0x109   :  { %3119 = vmatprep.mubr.bf16.mxu0 %v4156_v25  ;;  %v3422_v25 = vld [vmem:[%s4625_s4 + $0x220] sm:$0xff]  }
 0x10d   :  { %2976 = vmatmul.mubr.bf16.vlgmr.msra.gmra.mrb[0].mxu1 %v978_v16 }
 0x10e   :  { %2979 = vmatprep.mubr.bf16.mxu1 %v4147_v32  ;;  %3183 = vmatpush3.bf16.msra.mxu1 %v3418_v7  ;;  %v4656_v32 = vld [vmem:[#allocation2_spill] sm:$0xff] }
 0x10f   :  { %3176 = vmatprep.subr.bf16.mxu1 %v3419_v52 }
 0x110   :  { %3120 = vmatmul.mubr.bf16.vlgmr.msra.gmra.mrb[0].mxu0 %v4172_v11  ;;  %v985_v11 = vrot.slane %v3806_v5, 5  ;;  %v3424_v5 = vld [vmem:[%s4625_s4 + $0x230] sm:$0xff]  }
 0x111   :  { %3140 = vmatpush3.bf16.msra.mxu0 %v3418_v7  ;;  %3123 = vmatprep.mubr.bf16.mxu0 %v4179_v46 }
 0x112   :  { %3141 = vmatprep.subr.bf16.mxu0 %v3419_v52  ;;  %3184 = vmatpush3.bf16.msra.mxu1 %v3419_v52 }
 0x113   :  { %3177 = vmatprep.subr.bf16.mxu1 %v3420_v27 }
 0x115   :  { %3142 = vmatpush3.bf16.msra.mxu0 %v3419_v52  ;;  %2980 = vmatmul.mubr.bf16.gmra.mrb[4].mxu1 %v4163_v9  ;;  %v3423_v9 = vld [vmem:[%s4625_s4 + $0x228] sm:$0xff]  }
 0x116   :  { %3143 = vmatprep.subr.bf16.mxu0 %v3420_v27  ;;  %2983 = vmatprep.mubr.bf16.mxu1 %v4175_v33  ;;  %v4657_v33 = vrot.slane %v3812_v59, 5  ;;  %v3425_v59 = vld [vmem:[%s4625_s4 + $0x238] sm:$0xff]  }
 0x117   :  { %3185 = vmatpush3.bf16.msra.mxu1 %v3420_v27 }
 0x118   :  { %3124 = vmatmul.mubr.bf16.gmra.mrb[4].mxu0 %v4656_v32  ;;  %3178 = vmatprep.subr.bf16.mxu1 %v3421_v56  ;;  %v987_v46 = vsel %vm973_vm6, %v985_v11, %v4657_v33 }
 0x119   :  { %3127 = vmatprep.mubr.bf16.mxu0 %v4217_v53  ;;  %3144 = vmatpush3.bf16.msra.mxu0 %v3420_v27  ;;  %v2193_v53 = vrot.slane %v3786_v50, 3 }
 0x11a   :  { %3145 = vmatprep.subr.bf16.mxu0 %v3421_v56 }
 0x11b   :  { %3186 = vmatpush3.bf16.msra.mxu1 %v3421_v56 }
 0x11c   :  { %3179 = vmatprep.subr.bf16.mxu1 %v3422_v25 }
 0x11d   :  { %3146 = vmatpush3.bf16.msra.mxu0 %v3421_v56  ;;  %2984 = vmatmul.mubr.bf16.gmra.mrb[8].mxu1 %v987_v46  ;;  %v2423_v56 = vld [vmem:[%s4629_s5] sm:$0xff] }
 0x11e   :  { %3147 = vmatprep.subr.bf16.mxu0 %v3422_v25  ;;  %2987 = vmatprep.mubr.bf16.mxu1 %v4205_v24  ;;  %v4658_v24 = vld [vmem:[#allocation3_spill] sm:$0xff] }
 0x11f   :  { %3187 = vmatpush3.bf16.msra.mxu1 %v3422_v25 }
 0x120   :  { %3128 = vmatmul.mubr.bf16.gmra.mrb[8].mxu0 %v4224_v61  ;;  %3180 = vmatprep.subr.bf16.mxu1 %v3423_v9  ;;  %v4659_v61 = vld [vmem:[#allocation4_spill] sm:$0xff] }
 0x121   :  { %3131 = vmatprep.mubr.bf16.mxu0 %v4239_v47  ;;  %3148 = vmatpush3.bf16.msra.mxu0 %v3422_v25  ;;  %v2436_v25 = vld [vmem:[%s4629_s5 + $0x68] sm:$0xff] }
 0x122   :  { %3149 = vmatprep.subr.bf16.mxu0 %v3423_v9 }
 0x123   :  { %3188 = vmatpush3.bf16.msra.mxu1 %v3423_v9 }
 0x124   :  { %3181 = vmatprep.subr.bf16.mxu1 %v3424_v5 }
 0x125   :  { %3150 = vmatpush3.bf16.msra.mxu0 %v3423_v9  ;;  %2988 = vmatmul.mubr.bf16.gmra.mrb[12].mxu1 %v4227_v55  ;;  %v4660_v55 = vrot.slane %v3808_v14, 3 }
 0x126   :  { %3151 = vmatprep.subr.bf16.mxu0 %v3424_v5  ;;  %2991 = vmatprep.mubr.bf16.mxu1 %v4234_v29 }
 0x127   :  { %3189 = vmatpush3.bf16.msra.mxu1 %v3424_v5  ;;  %v2195_v29 = vsel %vm2192_vm7, %v2193_v53, %v4660_v55  ;;  %v2424_v55 = vld [vmem:[%s4629_s5 + $0x8] sm:$0xff] }
 0x128   :  { %3132 = vmatmul.mubr.bf16.gmra.mrb[12].mxu0 %v4252_v20  ;;  %3182 = vmatprep.subr.bf16.mxu1 %v3425_v59 }
 0x129   :  { %3135 = vmatprep.mubr.bf16.mxu0 %v4264_v48  ;;  %3152 = vmatpush3.bf16.msra.mxu0 %v3424_v5  ;;  %v2426_v5 = vld [vmem:[%s4629_s5 + $0x18] sm:$0xff] }
 0x12a   :  { %3153 = vmatprep.subr.bf16.mxu0 %v3425_v59 }
 0x12b   :  { %3190 = vmatpush3.bf16.msra.mxu1 %v3425_v59 }
 0x12d   :  { %3154 = vmatpush3.bf16.msra.mxu0 %v3425_v59  ;;  %2992 = vmatmul.mubr.bf16.gmra.mrb[16].mxu1 %v4658_v24 }
 0x12e   :  { %3167 = vmatprep.mubr.bf16.mxu1 %v4659_v61 }
 0x130   :  { %3136 = vmatmul.mubr.bf16.gmra.mrb[16].mxu0 %v4307_v43 }
 0x131   :  { %3155 = vmatprep.mubr.bf16.mxu0 %v2195_v29 }
 0x135   :  { %3168 = vmatmul.mubr.bf16.vlgmr.msra.gmra.mrb[20].mxu1 %v4285_v39 }
 0x136   :  { %3171 = vmatprep.mubr.bf16.mxu1 %v4288_v36 }
 0x138   :  { %3156 = vmatmul.mubr.bf16.vlgmr.msra.gmra.mrb[0].mxu0 %v4294_v42 }
 0x139   :  { %3159 = vmatprep.mubr.bf16.mxu0 %v4297_v45 }
 0x13d   :  { %3172 = vmatmul.mubr.bf16.gmra.mrb[24].mxu1 %v4300_v2 }
 0x140   :  { %3160 = vmatmul.mubr.bf16.gmra.mrb[4].mxu0 %v4310_v35 }
 0x141   :  { %3163 = vmatprep.mubr.bf16.mxu0 %v4313_v22 }
 0x148   :  { %3164 = vmatmul.mubr.bf16.gmra.mrb[8].mxu0 %v4317_v54 }
 0x1e0   :  { %v2977_v50 = vpop.f32.mrb[0].mxu1 }
 0x1e1   :  { %v1105_v14 = vpop.f32.mrb[1].mxu1 }
 0x1e2   :  { %v2978_v47 = vpop.f32.mrb[2].mxu1 }
 0x1e3   :  { %v4477_v20 = vpop.f32.mrb[3].mxu1 }
 0x1e8   :  { %v4479_v48 = vpop.f32.mrb[4].mxu1 }
 0x1e9   :  { %v4481_v39 = vpop.f32.mrb[5].mxu1 }
 0x1ea   :  { %v4483_v36 = vpop.f32.mrb[6].mxu1 }
 0x1eb   :  { %v4485_v42 = vpop.f32.mrb[7].mxu1 }
 0x1f0   :  { %v4487_v45 = vpop.f32.mrb[8].mxu1 }
 0x1f1   :  { %v4489_v2 = vpop.f32.mrb[9].mxu1 }
 0x1f2   :  { %v4491_v43 = vpop.f32.mrb[10].mxu1 }
 0x1f3   :  { %v4493_v35 = vpop.f32.mrb[11].mxu1 }
 0x1f8   :  { %v2989_v22 = vpop.f32.mrb[12].mxu1 }
 0x1f9   :  { %v1153_v54 = vpop.f32.mrb[13].mxu1 }
 0x1fa   :  { %v2990_v23 = vpop.f32.mrb[14].mxu1 }
 0x1fb   :  { %v3133_v62 = vpop.f32.mrb[12].mxu0  ;;  %v1156_v58 = vpop.f32.mrb[15].mxu1 }
 0x1fc   :  { %v3203_v6 = vadd.f32 %v3133_v62, %v2989_v22  ;;  %v2141_v44 = vpop.f32.mrb[13].mxu0 }
 0x1fd   :  { %v3205_v38 = vadd.f32 %v2141_v44, %v1153_v54  ;;  %v3134_v31 = vpop.f32.mrb[14].mxu0 }
 0x1fe   :  { %v3207_v57 = vadd.f32 %v3134_v31, %v2990_v23  ;;  %v2144_v18 = vpop.f32.mrb[15].mxu0 }
 0x1ff   :  { %v3209_v15 = vadd.f32 %v2144_v18, %v1156_v58 }
 0x200   :  { %v2993_v19 = vpop.f32.mrb[16].mxu1 }
 0x201   :  { %v1169_v63 = vpop.f32.mrb[17].mxu1 }
 0x202   :  { %v2994_v1 = vpop.f32.mrb[18].mxu1 }
 0x203   :  { %v3137_v28 = vpop.f32.mrb[16].mxu0  ;;  %v1172_v10 = vpop.f32.mrb[19].mxu1 }
 0x204   :  { %v3211_v0 = vadd.f32 %v3137_v28, %v2993_v19  ;;  %v2157_v49 = vpop.f32.mrb[17].mxu0 }
 0x205   :  { %v3213_v8 = vadd.f32 %v2157_v49, %v1169_v63  ;;  %v3138_v17 = vpop.f32.mrb[18].mxu0 }
 0x206   :  { %v3215_v4 = vadd.f32 %v3138_v17, %v2994_v1  ;;  %v2160_v41 = vpop.f32.mrb[19].mxu0  ;;  %v2427_v1 = vld [vmem:[%s4629_s5 + $0x20] sm:$0xff] }
 0x207   :  { %v3217_v21 = vadd.f32 %v2160_v41, %v1172_v10 }
 0x208   :  { %v3169_v51 = vpop.f32.mrb[20].mxu1 }
 0x209   :  { %v3204_v40 = vadd.f32 %v3203_v6, %v3169_v51  ;;  %v2372_v26 = vpop.f32.mrb[21].mxu1  ;;  %v2439_v6 = vld [vmem:[%s4629_s5 + $0x80] sm:$0xff] }
 0x20a   :  { %v3206_v12 = vadd.f32 %v3205_v38, %v2372_v26  ;;  %v3170_v30 = vpop.f32.mrb[22].mxu1  ;;  %v2429_v38 = vld [vmem:[%s4629_s5 + $0x30] sm:$0xff] }
 0x20b   :  { %v3157_v7 = vpop.f32.mrb[0].mxu0  ;;  %v2457_v52 = vadd.f32 %v3204_v40, %v2437_v34  ;;  %v3208_v16 = vadd.f32 %v3207_v57, %v3170_v30  ;;  %v2375_v32 = vpop.f32.mrb[23].mxu1  ;;  %v2442_v57 = vld [vmem:[%s4629_s5 + $0x98] sm:$0xff]  ;;  %v2428_v40 = vld [vmem:[%s4629_s5 + $0x28] sm:$0xff]  ;;  %v2431_v30 = vld [vmem:[%s4629_s5 + $0x40] sm:$0xff] }
 0x20c   :  { %v3191_v60 = vadd.f32 %v3157_v7, %v2977_v50  ;;  %v2324_v27 = vpop.f32.mrb[1].mxu0  ;;  %v2455_v11 = vadd.f32 %v3206_v12, %v2435_v3  ;;  %v3210_v33 = vadd.f32 %v3209_v15, %v2375_v32  ;;  %v2433_v12 = vld [vmem:[%s4629_s5 + $0x50] sm:$0xff] }
 0x20d   :  { %v3192_v9 = vadd.f32 %v2324_v27, %v1105_v14  ;;  %v3158_v46 = vpop.f32.mrb[2].mxu0  ;;  %2477 = vst [vmem:[%s4630_s6 + $0x70] sm:$0xff] %v2457_v52  ;;  %v2458_v24 = vadd.f32 %v3208_v16, %v2438_v13 }
 0x20e   :  { %v2445_v59 = vadd.f32 %v3191_v60, %v2425_v37  ;;  %v3193_v53 = vadd.f32 %v3158_v46, %v2978_v47  ;;  %v2327_v61 = vpop.f32.mrb[3].mxu0  ;;  %2475 = vst [vmem:[%s4630_s6 + $0x60] sm:$0xff] %v2455_v11  ;;  %v2456_v50 = vadd.f32 %v3210_v33, %v2436_v25  ;;  %v2434_v60 = vld [vmem:[%s4629_s5 + $0x58] sm:$0xff] }
 0x20f   :  { %v2443_v29 = vadd.f32 %v3192_v9, %v2423_v56  ;;  %v3194_v14 = vadd.f32 %v2327_v61, %v4477_v20  ;;  %2478 = vst [vmem:[%s4630_s6 + $0x78] sm:$0xff] %v2458_v24  ;;  %v2441_v20 = vld [vmem:[%s4629_s5 + $0x90] sm:$0xff] }
 0x210   :  { %2465 = vst [vmem:[%s4630_s6 + $0x10] sm:$0xff] %v2445_v59  ;;  %v2446_v47 = vadd.f32 %v3193_v53, %v2426_v5  ;;  %2476 = vst [vmem:[%s4630_s6 + $0x68] sm:$0xff] %v2456_v50  ;;  %v3173_v54 = vpop.f32.mrb[24].mxu1 }
 0x211   :  { %2463 = vst [vmem:[%s4630_s6] sm:$0xff] %v2443_v29  ;;  %v2444_v22 = vadd.f32 %v3194_v14, %v2424_v55  ;;  %v3212_v23 = vadd.f32 %v3211_v0, %v3173_v54  ;;  %v2388_v62 = vpop.f32.mrb[25].mxu1  ;;  %v2440_v0 = vld [vmem:[%s4629_s5 + $0x88] sm:$0xff] }
 0x212   :  { %2466 = vst [vmem:[%s4630_s6 + $0x18] sm:$0xff] %v2446_v47  ;;  %v3214_v58 = vadd.f32 %v3213_v8, %v2388_v62  ;;  %v3174_v31 = vpop.f32.mrb[26].mxu1 }
 0x213   :  { %2464 = vst [vmem:[%s4630_s6 + $0x8] sm:$0xff] %v2444_v22  ;;  %v3161_v44 = vpop.f32.mrb[4].mxu0  ;;  %v2461_v18 = vadd.f32 %v3212_v23, %v2441_v20  ;;  %v3216_v19 = vadd.f32 %v3215_v4, %v3174_v31  ;;  %v2391_v28 = vpop.f32.mrb[27].mxu1 }
 0x214   :  { %v3195_v15 = vadd.f32 %v3161_v44, %v4479_v48  ;;  %v2340_v63 = vpop.f32.mrb[5].mxu0  ;;  %v2459_v10 = vadd.f32 %v3214_v58, %v2439_v6  ;;  %v3218_v8 = vadd.f32 %v3217_v21, %v2391_v28  ;;  %v2430_v48 = vld [vmem:[%s4629_s5 + $0x38] sm:$0xff] }
 0x215   :  { %v3196_v49 = vadd.f32 %v2340_v63, %v4481_v39  ;;  %v3162_v17 = vpop.f32.mrb[6].mxu0  ;;  %2481 = vst [vmem:[%s4630_s6 + $0x90] sm:$0xff] %v2461_v18  ;;  %v2462_v41 = vadd.f32 %v3216_v19, %v2442_v57 }
 0x216   :  { %v2449_v4 = vadd.f32 %v3195_v15, %v2429_v38  ;;  %v3197_v51 = vadd.f32 %v3162_v17, %v4483_v36  ;;  %v2343_v34 = vpop.f32.mrb[7].mxu0  ;;  %2479 = vst [vmem:[%s4630_s6 + $0x80] sm:$0xff] %v2459_v10  ;;  %v2460_v21 = vadd.f32 %v3218_v8, %v2440_v0 }
 0x217   :  { %v2447_v39 = vadd.f32 %v3196_v49, %v2427_v1  ;;  %v3198_v26 = vadd.f32 %v2343_v34, %v4485_v42  ;;  %2482 = vst [vmem:[%s4630_s6 + $0x98] sm:$0xff] %v2462_v41 }
 0x218   :  { %2469 = vst [vmem:[%s4630_s6 + $0x30] sm:$0xff] %v2449_v4  ;;  %v2450_v36 = vadd.f32 %v3197_v51, %v2430_v48  ;;  %2480 = vst [vmem:[%s4630_s6 + $0x88] sm:$0xff] %v2460_v21 }
 0x219   :  { %2467 = vst [vmem:[%s4630_s6 + $0x20] sm:$0xff] %v2447_v39  ;;  %v2448_v3 = vadd.f32 %v3198_v26, %v2428_v40 }
 0x21a   :  { %2470 = vst [vmem:[%s4630_s6 + $0x38] sm:$0xff] %v2450_v36 }
 0x21b   :  { %2468 = vst [vmem:[%s4630_s6 + $0x28] sm:$0xff] %v2448_v3  ;;  %v3165_v42 = vpop.f32.mrb[8].mxu0 }
 0x21c   :  { %v3199_v7 = vadd.f32 %v3165_v42, %v4487_v45  ;;  %v2356_v37 = vpop.f32.mrb[9].mxu0  ;;  %v2432_v45 = vld [vmem:[%s4629_s5 + $0x48] sm:$0xff] }
 0x21d   :  { %v3200_v13 = vadd.f32 %v2356_v37, %v4489_v2  ;;  %v3166_v52 = vpop.f32.mrb[10].mxu0 }
 0x21e   :  { %v2453_v16 = vadd.f32 %v3199_v7, %v2433_v12  ;;  %v3201_v27 = vadd.f32 %v3166_v52, %v4491_v43  ;;  %v2359_v56 = vpop.f32.mrb[11].mxu0 }
 0x21f   :  { %v2451_v32 = vadd.f32 %v3200_v13, %v2431_v30  ;;  %v3202_v25 = vadd.f32 %v2359_v56, %v4493_v35 }
 0x220   :  { %2473 = vst [vmem:[%s4630_s6 + $0x50] sm:$0xff] %v2453_v16  ;;  %v2454_v2 = vadd.f32 %v3201_v27, %v2434_v60 }
 0x221   :  { %2471 = vst [vmem:[%s4630_s6 + $0x40] sm:$0xff] %v2451_v32  ;;  %v2452_v11 = vadd.f32 %v3202_v25, %v2432_v45 }
 0x222   :  { %2474 = vst [vmem:[%s4630_s6 + $0x58] sm:$0xff] %v2454_v2 }
 0x223   :  { %2472 = vst [vmem:[%s4630_s6 + $0x48] sm:$0xff] %v2452_v11 }

// kernel: _lambda_.4
= control target key start
LH: loop header
LB: loop body
LE: loop exit
PB: predicated region body
PF: predicated region fallthrough
CT: control target
= control target key end

     0   :  { %v5507_v0 = vmov 0   ;;  %v8836_v5 = vmov 0.0   ;;  %vm5509_vm0 = vmmov 0   ;;  %vm2142_vm1 = vcmask 1040384   ;;  %s8828_s1 = inlined_call_operand.vmem [shape: f32[360,1], index: 1, kind: input, shape index: {}]   ;;  %s8829_s4 = inlined_call_operand.vmem [shape: bf16[9,128,128], index: 4, kind: input, shape index: {}]   ;;  %s8830_s2 = inlined_call_operand.vmem [shape: f32[1,128], index: 2, kind: input, shape index: {}]   ;;  %s8831_s0 = inlined_call_operand.vmem [shape: f32[2,360,128], index: 0, kind: input, shape index: {}]   ;;  %s8832_s3 = inlined_call_operand.vmem [shape: f32[1,128], index: 3, kind: input, shape index: {}]   ;;  %s8833_s5 = inlined_call_operand.vmem [shape: bf16[128,128], index: 5, kind: input, shape index: {}]   ;;  %s8834_s7 = inlined_call_operand.vmem [shape: f32[2,72,128], index: 7, kind: output, shape index: {1}]   ;;  %s8835_s6 = inlined_call_operand.vmem [shape: f32[2,72,128], index: 6, kind: output, shape index: {0}]  }
   0x1   :  { %5424 = vset.pattern.permute.xlu1 %v5507_v0  ;;  %5423 = vset.pattern.permute.xlu0 %v5507_v0  ;;  %v426_v1 = vld [vmem:[%s8828_s1 + $0x110] sm:$0xff]  ;;  %v425_v2 = vld [vmem:[%s8828_s1 + $0x108] sm:$0xff]  ;;  %v427_v3 = vld [vmem:[%s8828_s1 + $0x118] sm:$0xff]  ;;  %vm2143_vm2 = vcmask 1044484   ;;  %vm884_vm4 = vcmask 1042432   ;;  %vm885_vm5 = vcmask 1046532  }
   0x2   :  { %608 = vperm.xlu0 %5423, %v426_v1   ;;  %603 = vperm.xlu1 %5424, %v425_v2   ;;  %v404_v4 = vld [vmem:[%s8828_s1 + $0x60] sm:$0xff]  ;;  %v405_v6 = vld [vmem:[%s8828_s1 + $0x68] sm:$0xff]  ;;  %v403_v7 = vld [vmem:[%s8828_s1 + $0x58] sm:$0xff]  ;;  %vm1807_vm7 = vcmask 1041408   ;;  %vm1808_vm8 = vcmask 1045508  }
   0x3   :  { %4838 = vmatprep.subr.bf16.mxu0 %v8836_v5  ;;  %4630 = vmatprep.subr.bf16.mxu1 %v8836_v5  ;;  %v406_v8 = vld [vmem:[%s8828_s1 + $0x70] sm:$0xff]  ;;  %v428_v9 = vld [vmem:[%s8828_s1 + $0x120] sm:$0xff]  ;;  %v407_v10 = vld [vmem:[%s8828_s1 + $0x78] sm:$0xff]  ;;  %vm2425_vm10 = vsmask.f32 1280 }
   0x4   :  { %v429_v11 = vld [vmem:[%s8828_s1 + $0x128] sm:$0xff]  ;;  %v5425_v12 = vld [vmem:[%s8829_s4 + $0x100] sm:$0xff]   ;;  %v430_v16 = vld [vmem:[%s8828_s1 + $0x130] sm:$0xff]  ;;  %4854 = vmatprep.mubr.msk.bf16.mxu0 %vm5509_vm0, %v8836_v5  ;;  %4646 = vmatprep.mubr.msk.bf16.mxu1 %vm5509_vm0, %v8836_v5  ;;  %vm2426_vm11 = vsmask.f32 5392 }
   0x5   :  { %v5426_v13 = vld [vmem:[%s8829_s4 + $0x40] sm:$0xff]   ;;  %4839 = vmatpush3.bf16.msra.mxu0 %v5425_v12  ;;  %v5427_v15 = vld [vmem:[%s8829_s4 + $0x108] sm:$0xff]   ;;  %v5429_v19 = vld [vmem:[%s8829_s4 + $0x110] sm:$0xff]   ;;  %vm1342_vm13 = vsmask.f32 3328 }
   0x6   :  { %613 = vperm.xlu1 %5424, %v427_v3   ;;  %498 = vperm.xlu0 %5423, %v404_v4   ;;  %v408_v14 = vld [vmem:[%s8828_s1 + $0x80] sm:$0xff]  ;;  %v5428_v17 = vld [vmem:[%s8829_s4 + $0x48] sm:$0xff]   ;;  %v431_v20 = vld [vmem:[%s8828_s1 + $0x138] sm:$0xff]  ;;  %vm1343_vm14 = vsmask.f32 7440 }
   0x7   :  { %4840 = vmatprep.subr.bf16.mxu0 %v8836_v5  ;;  %4631 = vmatpush3.bf16.msra.mxu1 %v5426_v13  ;;  %v409_v18 = vld [vmem:[%s8828_s1 + $0x88] sm:$0xff]  ;;  %v5430_v21 = vld [vmem:[%s8829_s4 + $0x50] sm:$0xff]   ;;  %v5431_v23 = vld [vmem:[%s8829_s4 + $0x118] sm:$0xff]   ;;  %vm3084_vm15 = vsmask.f32 2304 }
   0x8   :  { %4632 = vmatprep.subr.bf16.mxu1 %v8836_v5  ;;  %v410_v22 = vld [vmem:[%s8828_s1 + $0x90] sm:$0xff]  ;;  %v432_v24 = vld [vmem:[%s8828_s1 + $0x140] sm:$0xff]  ;;  %v5432_v25 = vld [vmem:[%s8829_s4 + $0x58] sm:$0xff]  }
   0x9   :  { %4841 = vmatpush3.bf16.msra.mxu0 %v5427_v15  ;;  %v5433_v26 = vld [vmem:[%s8829_s4 + $0x120] sm:$0xff]   ;;  %v411_v27 = vld [vmem:[%s8828_s1 + $0x98] sm:$0xff]  ;;  %v433_v28 = vld [vmem:[%s8828_s1 + $0x148] sm:$0xff] }
   0xa   :  { %503 = vperm.xlu1 %5424, %v405_v6   ;;  %493 = vperm.xlu0 %5423, %v403_v7   ;;  %v5434_v29 = vld [vmem:[%s8829_s4 + $0x60] sm:$0xff]   ;;  %v5435_v30 = vld [vmem:[%s8829_s4 + $0x128] sm:$0xff]   ;;  %v434_v32 = vld [vmem:[%s8828_s1 + $0x150] sm:$0xff] }
   0xb   :  { %4842 = vmatprep.subr.bf16.mxu0 %v8836_v5  ;;  %4633 = vmatpush3.bf16.msra.mxu1 %v5428_v17  ;;  %v412_v31 = vld [vmem:[%s8828_s1 + $0xa0] sm:$0xff]  ;;  %v5436_v33 = vld [vmem:[%s8829_s4 + $0x68] sm:$0xff]   ;;  %v5437_v34 = vld [vmem:[%s8829_s4 + $0x130] sm:$0xff]  }
   0xc   :  { %4634 = vmatprep.subr.bf16.mxu1 %v8836_v5  ;;  %v415_v35 = vld [vmem:[%s8828_s1 + $0xb8] sm:$0xff]  ;;  %v414_v36 = vld [vmem:[%s8828_s1 + $0xb0] sm:$0xff]  ;;  %v417_v39 = vld [vmem:[%s8828_s1 + $0xc8] sm:$0xff] }
   0xd   :  { %4843 = vmatpush3.bf16.msra.mxu0 %v5429_v19  ;;  %v5438_v37 = vld [vmem:[%s8829_s4 + $0x70] sm:$0xff]   ;;  %v5439_v38 = vld [vmem:[%s8829_s4 + $0x138] sm:$0xff]   ;;  %v416_v40 = vld [vmem:[%s8828_s1 + $0xc0] sm:$0xff] }
   0xe   :  { %508 = vperm.xlu1 %5424, %v406_v8   ;;  %618 = vperm.xlu0 %5423, %v428_v9   ;;  %v5440_v41 = vld [vmem:[%s8829_s4 + $0x78] sm:$0xff]   ;;  %v418_v42 = vld [vmem:[%s8828_s1 + $0xd0] sm:$0xff]  ;;  %v392_v43 = vld [vmem:[%s8828_s1] sm:$0xff] }
   0xf   :  { %4844 = vmatprep.subr.bf16.mxu0 %v8836_v5  ;;  %4635 = vmatpush3.bf16.msra.mxu1 %v5430_v21  ;;  %v393_v44 = vld [vmem:[%s8828_s1 + $0x8] sm:$0xff]  ;;  %v419_v45 = vld [vmem:[%s8828_s1 + $0xd8] sm:$0xff]  ;;  %v420_v46 = vld [vmem:[%s8828_s1 + $0xe0] sm:$0xff] }
  0x10   :  { %4636 = vmatprep.subr.bf16.mxu1 %v8836_v5  ;;  %v394_v47 = vld [vmem:[%s8828_s1 + $0x10] sm:$0xff]  ;;  %v395_v48 = vld [vmem:[%s8828_s1 + $0x18] sm:$0xff]  ;;  %v421_v49 = vld [vmem:[%s8828_s1 + $0xe8] sm:$0xff] }
  0x11   :  { %4845 = vmatpush3.bf16.msra.mxu0 %v5431_v23  ;;  %v422_v50 = vld [vmem:[%s8828_s1 + $0xf0] sm:$0xff]  ;;  %v396_v51 = vld [vmem:[%s8828_s1 + $0x20] sm:$0xff]  ;;  %v397_v52 = vld [vmem:[%s8828_s1 + $0x28] sm:$0xff] }
  0x12   :  { %513 = vperm.xlu1 %5424, %v407_v10   ;;  %623 = vperm.xlu0 %5423, %v429_v11   ;;  %v423_v53 = vld [vmem:[%s8828_s1 + $0xf8] sm:$0xff]  ;;  %v398_v54 = vld [vmem:[%s8828_s1 + $0x30] sm:$0xff]  ;;  %v400_v56 = vld [vmem:[%s8828_s1 + $0x40] sm:$0xff] }
  0x13   :  { %4846 = vmatprep.subr.bf16.mxu0 %v8836_v5  ;;  %4637 = vmatpush3.bf16.msra.mxu1 %v5432_v25  ;;  %v399_v55 = vld [vmem:[%s8828_s1 + $0x38] sm:$0xff]  ;;  %v401_v57 = vld [vmem:[%s8828_s1 + $0x48] sm:$0xff]  ;;  %v402_v58 = vld [vmem:[%s8828_s1 + $0x50] sm:$0xff] }
  0x14   :  { %4638 = vmatprep.subr.bf16.mxu1 %v8836_v5  ;;  %v413_v59 = vld [vmem:[%s8828_s1 + $0xa8] sm:$0xff]  ;;  %v5749_v60 = vld [vmem:[%s8830_s2] ss:$0 sm:$0xff]  ;;  %v60_v61 = vld [vmem:[%s8831_s0 + $0x110] sm:$0xff] }
  0x15   :  { %4847 = vmatpush3.bf16.msra.mxu0 %v5433_v26  ;;  %v104_v62 = vld [vmem:[%s8831_s0 + $0x278] sm:$0xff]  ;;  %v59_v63 = vld [vmem:[%s8831_s0 + $0x108] sm:$0xff]  ;;  %v103_v0 = vld [vmem:[%s8831_s0 + $0x270] sm:$0xff]  ;;  %v155_v1 = vmul.f32 %v5749_v60, %v60_v61 }
  0x16   :  { %518 = vperm.xlu1 %5424, %v408_v14   ;;  %628 = vperm.xlu0 %5423, %v430_v16   ;;  %v199_v2 = vmul.f32 %v5749_v60, %v104_v62  ;;  %v154_v3 = vmul.f32 %v5749_v60, %v59_v63  ;;  %v61_v4 = vld [vmem:[%s8831_s0 + $0x118] sm:$0xff]  ;;  %v5772_v6 = vld [vmem:[%s8832_s3] ss:$0 sm:$0xff]  ;;  %v198_v7 = vmul.f32 %v5749_v60, %v103_v0  ;;  %v82_v14 = vld [vmem:[%s8831_s0 + $0x1c8] sm:$0xff] }
  0x17   :  { %4848 = vmatprep.subr.bf16.mxu0 %v8836_v5  ;;  %4639 = vmatpush3.bf16.msra.mxu1 %v5434_v29  ;;  %v105_v8 = vld [vmem:[%s8831_s0 + $0x280] sm:$0xff]  ;;  %v156_v10 = vmul.f32 %v5749_v60, %v61_v4  ;;  %v5783_v11 = vadd.f32 %v5772_v6, %v155_v1  ;;  %v83_v19 = vld [vmem:[%s8831_s0 + $0x1d0] sm:$0xff]  ;;  %v84_v25 = vld [vmem:[%s8831_s0 + $0x1d8] sm:$0xff] }
  0x18   :  { %4640 = vmatprep.subr.bf16.mxu1 %v8836_v5  ;;  %v38_v9 = vld [vmem:[%s8831_s0 + $0x60] sm:$0xff]  ;;  %v5786_v12 = vadd.f32 %v5772_v6, %v199_v2  ;;  %v5789_v13 = vadd.f32 %v5772_v6, %v154_v3  ;;  %v5795_v15 = vadd.f32 %v5772_v6, %v198_v7  ;;  %v200_v16 = vmul.f32 %v5749_v60, %v105_v8  ;;  %v86_v62 = vld [vmem:[%s8831_s0 + $0x1e8] sm:$0xff]  ;;  %v64_v63 = vld [vmem:[%s8831_s0 + $0x130] sm:$0xff] }
  0x19   :  { %4849 = vmatpush3.bf16.msra.mxu0 %v5435_v30  ;;  %v133_v17 = vmul.f32 %v5749_v60, %v38_v9  ;;  %v5809_v21 = vadd.f32 %v5772_v6, %v156_v10  ;;  %v81_v23 = vld [vmem:[%s8831_s0 + $0x1c0] sm:$0xff]  ;;  %v338_v26 = vmax.f32 %v5783_v11, 0.0  ;;  %v108_v10 = vld [vmem:[%s8831_s0 + $0x298] sm:$0xff]  ;;  %vm5994_vm3 = vmor %vm2142_vm1, %vm2143_vm2  ;;  %vm3085_vm1 = vsmask.f32 6416 }
  0x1a   :  { %523 = vperm.xlu1 %5424, %v409_v18   ;;  %633 = vperm.xlu0 %5423, %v431_v20   ;;  %v39_v18 = vld [vmem:[%s8831_s0 + $0x68] sm:$0xff]  ;;  %v37_v20 = vld [vmem:[%s8831_s0 + $0x58] sm:$0xff]  ;;  %v62_v30 = vld [vmem:[%s8831_s0 + $0x120] sm:$0xff] }
  0x1b   :  { %4850 = vmatprep.subr.bf16.mxu0 %v8836_v5  ;;  %4641 = vmatpush3.bf16.msra.mxu1 %v5436_v33  ;;  %v134_v29 = vmul.f32 %v5749_v60, %v39_v18  ;;  %v5833_v33 = vadd.f32 %v5772_v6, %v200_v16  ;;  %v159_v18 = vmul.f32 %v5749_v60, %v64_v63  ;;  %vm6233_vm6 = vmor %vm884_vm4, %vm885_vm5 }
  0x1c   :  { %4642 = vmatprep.subr.bf16.mxu1 %v8836_v5  ;;  %vm6673_vm9 = vmor %vm1807_vm7, %vm1808_vm8 }
  0x1d   :  { %4851 = vmatpush3.bf16.msra.mxu0 %v5437_v34  ;;  %v5836_v34 = vadd.f32 %v5772_v6, %v133_v17  ;;  %v181_v17 = vmul.f32 %v5749_v60, %v86_v62  ;;  %vm7500_vm12 = vmor %vm2425_vm10, %vm2426_vm11 }
  0x1e   :  { %528 = vperm.xlu1 %5424, %v410_v22   ;;  %638 = vperm.xlu0 %5423, %v432_v24   ;;  %v177_v22 = vmul.f32 %v5749_v60, %v82_v14  ;;  %v40_v24 = vld [vmem:[%s8831_s0 + $0x70] sm:$0xff]  ;;  %vm7760_vm2 = vmor %vm1342_vm13, %vm1343_vm14 }
  0x1f   :  { %4852 = vmatprep.subr.bf16.mxu0 %v8836_v5  ;;  %4643 = vmatpush3.bf16.msra.mxu1 %v5438_v37  ;;  %v85_v37 = vld [vmem:[%s8831_s0 + $0x1e0] sm:$0xff] }
  0x20   :  { %4644 = vmatprep.subr.bf16.mxu1 %v8836_v5 }
  0x21   :  { %4853 = vmatpush3.bf16.msra.mxu0 %v5439_v38  ;;  %v63_v38 = vld [vmem:[%s8831_s0 + $0x128] sm:$0xff] }
  0x22   :  { %533 = vperm.xlu1 %5424, %v411_v27   ;;  %643 = vperm.xlu0 %5423, %v433_v28   ;;  %v382_v27 = vmax.f32 %v5786_v12, 0.0  ;;  %v337_v28 = vmax.f32 %v5789_v13, 0.0 }
  0x23   :  { %4645 = vmatpush3.bf16.msra.mxu1 %v5440_v41  ;;  %4890 = vmatprep.subr.bf16.mxu0 %v8836_v5  ;;  %v135_v41 = vmul.f32 %v5749_v60, %v40_v24  ;;  %v90_v24 = vld [vmem:[%s8831_s0 + $0x208] sm:$0xff] }
  0x24   :  { %4682 = vmatprep.subr.bf16.mxu1 %v8836_v5 }
  0x26   :  { %538 = vperm.xlu1 %5424, %v412_v31   ;;  %648 = vperm.xlu0 %5423, %v434_v32   ;;  %v106_v31 = vld [vmem:[%s8831_s0 + $0x288] sm:$0xff]  ;;  %v381_v32 = vmax.f32 %v5795_v15, 0.0 }
  0x2a   :  { %553 = vperm.xlu1 %5424, %v415_v35   ;;  %548 = vperm.xlu0 %5423, %v414_v36   ;;  %v178_v35 = vmul.f32 %v5749_v60, %v83_v19  ;;  %v41_v36 = vld [vmem:[%s8831_s0 + $0x78] sm:$0xff]  ;;  %v43_v19 = vld [vmem:[%s8831_s0 + $0x88] sm:$0xff] }
  0x2e   :  { %563 = vperm.xlu1 %5424, %v417_v39   ;;  %558 = vperm.xlu0 %5423, %v416_v40   ;;  %v132_v39 = vmul.f32 %v5749_v60, %v37_v20  ;;  %v176_v40 = vmul.f32 %v5749_v60, %v81_v23 }
  0x32   :  { %568 = vperm.xlu0 %5423, %v418_v42   ;;  %438 = vperm.xlu1 %5424, %v392_v43   ;;  %v179_v42 = vmul.f32 %v5749_v60, %v84_v25  ;;  %v107_v43 = vld [vmem:[%s8831_s0 + $0x290] sm:$0xff] }
  0x33   :  { %v87_v25 = vld [vmem:[%s8831_s0 + $0x1f0] sm:$0xff] }
  0x34   :  { %v5886_v61 = vadd.f32 %v5772_v6, %v179_v42  ;;  %v44_v42 = vld [vmem:[%s8831_s0 + $0x90] sm:$0xff] }
  0x35   :  { %v139_v12 = vmul.f32 %v5749_v60, %v44_v42 }
  0x36   :  { %443 = vperm.xlu0 %5423, %v393_v44   ;;  %573 = vperm.xlu1 %5424, %v419_v45   ;;  %v339_v44 = vmax.f32 %v5809_v21, 0.0  ;;  %v5857_v45 = vadd.f32 %v5772_v6, %v177_v22 }
  0x3a   :  { %578 = vperm.xlu0 %5423, %v420_v46   ;;  %448 = vperm.xlu1 %5424, %v394_v47   ;;  %v157_v46 = vmul.f32 %v5749_v60, %v62_v30  ;;  %v201_v47 = vmul.f32 %v5749_v60, %v106_v31 }
  0x3c   :  { %v5896_v1 = vadd.f32 %v5772_v6, %v157_v46  ;;  %v5899_v2 = vadd.f32 %v5772_v6, %v201_v47 }
  0x3e   :  { %453 = vperm.xlu0 %5423, %v395_v48   ;;  %583 = vperm.xlu1 %5424, %v421_v49   ;;  %v5862_v48 = vadd.f32 %v5772_v6, %v134_v29  ;;  %v136_v49 = vmul.f32 %v5749_v60, %v41_v36  ;;  %v65_v36 = vld [vmem:[%s8831_s0 + $0x138] sm:$0xff] }
  0x40   :  { %v317_v4 = vmax.f32 %v5862_v48, 0.0  ;;  %v5904_v7 = vadd.f32 %v5772_v6, %v136_v49  ;;  %v96_v48 = vld [vmem:[%s8831_s0 + $0x238] sm:$0xff] }
  0x42   :  { %588 = vperm.xlu0 %5423, %v422_v50   ;;  %458 = vperm.xlu1 %5424, %v396_v51   ;;  %v180_v50 = vmul.f32 %v5749_v60, %v85_v37  ;;  %v158_v51 = vmul.f32 %v5749_v60, %v63_v38  ;;  %v109_v37 = vld [vmem:[%s8831_s0 + $0x2a0] sm:$0xff] }
  0x44   :  { %v5907_v8 = vadd.f32 %v5772_v6, %v180_v50  ;;  %v5910_v9 = vadd.f32 %v5772_v6, %v158_v51  ;;  %v5957_v50 = vadd.f32 %v5772_v6, %v181_v17  ;;  %v5960_v51 = vadd.f32 %v5772_v6, %v159_v18  ;;  %v110_v17 = vld [vmem:[%s8831_s0 + $0x2a8] sm:$0xff] }
  0x46   :  { %463 = vperm.xlu0 %5423, %v397_v52   ;;  %593 = vperm.xlu1 %5424, %v423_v53   ;;  %v42_v52 = vld [vmem:[%s8831_s0 + $0x80] sm:$0xff]  ;;  %9004 = vst [vmem:[#allocation2_spill] sm:$0xff] %v5957_v50 }
  0x47   :  { %v137_v3 = vmul.f32 %v5749_v60, %v42_v52  ;;  %v182_v52 = vmul.f32 %v5749_v60, %v87_v25 }
  0x49   :  { %v5934_v31 = vadd.f32 %v5772_v6, %v137_v3  ;;  %v160_v3 = vmul.f32 %v5749_v60, %v65_v36 }
  0x4a   :  { %468 = vperm.xlu0 %5423, %v398_v54   ;;  %473 = vperm.xlu1 %5424, %v399_v55   ;;  %v316_v54 = vmax.f32 %v5836_v34, 0.0  ;;  %v5873_v55 = vadd.f32 %v5772_v6, %v178_v35  ;;  %v203_v35 = vmul.f32 %v5749_v60, %v108_v10  ;;  %v204_v10 = vmul.f32 %v5749_v60, %v109_v37  ;;  %v45_v37 = vld [vmem:[%s8831_s0 + $0x98] sm:$0xff]  ;;  %v51_v34 = vld [vmem:[%s8831_s0 + $0xc8] sm:$0xff] }
  0x4c   :  { %v6012_v30 = vadd.f32 %v5772_v6, %v204_v10  ;;  %v140_v10 = vmul.f32 %v5749_v60, %v45_v37 }
  0x4e   :  { %478 = vperm.xlu0 %5423, %v400_v56   ;;  %483 = vperm.xlu1 %5424, %v401_v57   ;;  %v202_v56 = vmul.f32 %v5749_v60, %v107_v43  ;;  %v5877_v57 = vadd.f32 %v5772_v6, %v132_v39  ;;  %v88_v43 = vld [vmem:[%s8831_s0 + $0x1f8] sm:$0xff]  ;;  %v6009_v39 = vadd.f32 %v5772_v6, %v160_v3 }
  0x4f   :  { %9010 = vst [vmem:[#allocation6_spill] sm:$0xff] %v6012_v30  ;;  %v9032_v30 = vmov 0.0  }
  0x50   :  { %v5917_v16 = vadd.f32 %v5772_v6, %v202_v56  ;;  %v315_v20 = vmax.f32 %v5877_v57, 0.0  ;;  %v66_v56 = vld [vmem:[%s8831_s0 + $0x140] sm:$0xff] }
  0x51   :  { %v161_v36 = vmul.f32 %v5749_v60, %v66_v56  ;;  %v6001_v56 = vadd.f32 %v5772_v6, %v182_v52  ;;  %v111_v52 = vld [vmem:[%s8831_s0 + $0x2b0] sm:$0xff] }
  0x52   :  { %488 = vperm.xlu0 %5423, %v402_v58   ;;  %543 = vperm.xlu1 %5424, %v413_v59   ;;  %v5880_v58 = vadd.f32 %v5772_v6, %v176_v40  ;;  %v5883_v59 = vadd.f32 %v5772_v6, %v135_v41  ;;  %v138_v41 = vmul.f32 %v5749_v60, %v43_v19 }
  0x53   :  { %v5978_v19 = vadd.f32 %v5772_v6, %v203_v35  ;;  %v89_v35 = vld [vmem:[%s8831_s0 + $0x200] sm:$0xff]  ;;  %9008 = vst [vmem:[#allocation4_spill] sm:$0xff] %v6001_v56  ;;  %v206_v14 = vmul.f32 %v5749_v60, %v111_v52  ;;  %v185_v52 = vmul.f32 %v5749_v60, %v90_v24  ;;  %v6066_v40 = vadd.f32 %v5772_v6, %v140_v10 }
  0x54   :  { %v93_v10 = vld [vmem:[%s8831_s0 + $0x220] sm:$0xff] }
  0x55   :  { %9005 = vst [vmem:[#allocation3_spill] sm:$0xff] %v5978_v19  ;;  %v6090_v11 = vadd.f32 %v5772_v6, %v206_v14  ;;  %v6107_v14 = vadd.f32 %v5772_v6, %v185_v52  ;;  %v188_v23 = vmul.f32 %v5749_v60, %v93_v10 }
  0x57   :  { %9014 = vst [vmem:[#allocation10_spill] sm:$0xff] %v6090_v11  ;;  %9016 = vst [vmem:[#allocation12_spill] sm:$0xff] %v6107_v14  ;;  %v70_v11 = vld [vmem:[%s8831_s0 + $0x168] sm:$0xff] }
  0x81   :  { %v609_v46 = vpop.permute.xlu0 %608  ;;  %v5953_v47 = vpop.permute.xlu1 %603 }
  0x82   :  { %v734_v62 = vmul.f32 %v609_v46, %v382_v27  ;;  %v733_v63 = vmul.f32 %v5953_v47, %v381_v32  ;;  %v183_v27 = vmul.f32 %v5749_v60, %v88_v43  ;;  %v5983_v32 = vadd.f32 %v5772_v6, %v138_v41  ;;  %v67_v43 = vld [vmem:[%s8831_s0 + $0x148] sm:$0xff]  ;;  %v68_v41 = vld [vmem:[%s8831_s0 + $0x150] sm:$0xff] }
  0x83   :  { %v163_v24 = vmul.f32 %v5749_v60, %v68_v41  ;;  %v689_v41 = vmul.f32 %v5953_v47, %v337_v28 }
  0x84   :  { %v4447_v15 = vpack.c.bf16 %v734_v62, %v734_v62  ;;  %v4446_v25 = vpack.c.bf16 %v733_v63, %v733_v63  ;;  %v205_v62 = vmul.f32 %v5749_v60, %v110_v17  ;;  %v46_v17 = vld [vmem:[%s8831_s0 + $0xa0] sm:$0xff]  ;;  %v6027_v3 = vadd.f32 %v5772_v6, %v183_v27  ;;  %v49_v27 = vld [vmem:[%s8831_s0 + $0xb8] sm:$0xff] }
  0x85   :  { %v6034_v22 = vpop.permute.xlu1 %613  ;;  %v141_v53 = vmul.f32 %v5749_v60, %v46_v17  ;;  %v6057_v18 = vpop.permute.xlu0 %498  ;;  %v6117_v21 = vadd.f32 %v5772_v6, %v163_v24 }
  0x86   :  { %v6004_v63 = vrot.slane %v4447_v15, 7  ;;  %v6006_v49 = vrot.slane %v4446_v25, 11  ;;  %v6024_v15 = vadd.f32 %v5772_v6, %v139_v12  ;;  %9011 = vst [vmem:[#allocation7_spill] sm:$0xff] %v6027_v3  ;;  %v184_v25 = vmul.f32 %v5749_v60, %v89_v35 }
  0x87   :  { %v6039_v12 = vadd.f32 %v5772_v6, %v161_v36  ;;  %v6046_v37 = vadd.f32 %v5772_v6, %v205_v62  ;;  %v162_v35 = vmul.f32 %v5749_v60, %v67_v43  ;;  %v112_v36 = vld [vmem:[%s8831_s0 + $0x2b8] sm:$0xff]  ;;  %v690_v62 = vmul.f32 %v609_v46, %v338_v26  ;;  %9017 = vst [vmem:[#allocation13_spill] sm:$0xff] %v6117_v21 }
  0x88   :  { %9009 = vst [vmem:[#allocation5_spill] sm:$0xff] %v6006_v49  ;;  %v6069_v38 = vadd.f32 %v5772_v6, %v184_v25  ;;  %v207_v17 = vmul.f32 %v5749_v60, %v112_v36  ;;  %v48_v25 = vld [vmem:[%s8831_s0 + $0xb0] sm:$0xff]  ;;  %v6093_v26 = vadd.f32 %v5772_v6, %v141_v53  ;;  %v92_v46 = vld [vmem:[%s8831_s0 + $0x218] sm:$0xff]  ;;  %v691_v36 = vmul.f32 %v6034_v22, %v339_v44 }
  0x89   :  { %9012 = vst [vmem:[#allocation8_spill] sm:$0xff] %v6046_v37  ;;  %v6087_v29 = vadd.f32 %v5772_v6, %v162_v35  ;;  %v6104_v35 = vpop.permute.xlu1 %503  ;;  %v144_v53 = vmul.f32 %v5749_v60, %v49_v27  ;;  %v143_v13 = vmul.f32 %v5749_v60, %v48_v25  ;;  %v4437_v28 = vpack.c.bf16 %v690_v62, %v690_v62  ;;  %v6114_v47 = vpop.permute.xlu0 %493  ;;  %v94_v62 = vld [vmem:[%s8831_s0 + $0x228] sm:$0xff] }
  0x8a   :  { %9013 = vst [vmem:[#allocation9_spill] sm:$0xff] %v6069_v38  ;;  %9015 = vst [vmem:[#allocation11_spill] sm:$0xff] %v6093_v26  ;;  %v6120_v44 = vadd.f32 %v5772_v6, %v207_v17  ;;  %v187_v52 = vmul.f32 %v5749_v60, %v92_v46  ;;  %v668_v27 = vmul.f32 %v6057_v18, %v316_v54  ;;  %v95_v54 = vld [vmem:[%s8831_s0 + $0x230] sm:$0xff]  ;;  %v50_v46 = vld [vmem:[%s8831_s0 + $0xc0] sm:$0xff] }
  0x8b   :  { %v4436_v43 = vpack.c.bf16 %v689_v41, %v689_v41  ;;  %v4438_v24 = vpack.c.bf16 %v691_v36, %v691_v36  ;;  %v6131_v17 = vadd.f32 %v5772_v6, %v144_v53  ;;  %v669_v41 = vmul.f32 %v6104_v35, %v317_v4  ;;  %v53_v26 = vld [vmem:[%s8831_s0 + $0xd8] sm:$0xff] }
  0x8c   :  { %9018 = vst [vmem:[#allocation14_spill] sm:$0xff] %v6120_v44  ;;  %v667_v36 = vmul.f32 %v6114_v47, %v315_v20  ;;  %v6149_v53 = vadd.f32 %v5772_v6, %v188_v23  ;;  %v6152_v0 = vadd.f32 %v5772_v6, %v143_v13  ;;  %v2147_v25 = vrot.slane %v4437_v28, 7  ;;  %v52_v28 = vld [vmem:[%s8831_s0 + $0xd0] sm:$0xff] }
  0x8d   :  { %v6157_v10 = vpop.permute.xlu1 %508  ;;  %v6162_v57 = vadd.f32 %v5772_v6, %v187_v52  ;;  %v6164_v20 = vpack.c.bf16 %v668_v27, %v668_v27  ;;  %v146_v23 = vmul.f32 %v5749_v60, %v51_v34  ;;  %v190_v13 = vmul.f32 %v5749_v60, %v95_v54  ;;  %v26_v52 = vld [vmem:[%s8831_s0] sm:$0xff]  ;;  %v6189_v37 = vpop.permute.xlu0 %618  ;;  %v27_v34 = vld [vmem:[%s8831_s0 + $0x8] sm:$0xff] }
  0x8e   :  { %9019 = vst [vmem:[#allocation15_spill] sm:$0xff] %v6149_v53  ;;  %v145_v5 = vmul.f32 %v5749_v60, %v50_v46  ;;  %v4194_v27 = vrot.slane %v4436_v43, 11  ;;  %v6178_v4 = vrot.slane %v4438_v24, 7  ;;  %v189_v54 = vmul.f32 %v5749_v60, %v94_v62  ;;  %v71_v53 = vld [vmem:[%s8831_s0 + $0x170] sm:$0xff] }
  0x8f   :  { %9020 = vst [vmem:[#allocation16_spill] sm:$0xff] %v6162_v57  ;;  %v6182_v46 = vpack.c.bf16 %v669_v41, %v669_v41  ;;  %v4375_v44 = vpack.c.bf16 %v667_v36, %v667_v36  ;;  %v2149_v38 = vrot.slane %v2147_v25, 4  ;;  %v147_v43 = vmul.f32 %v5749_v60, %v52_v28 }
  0x90   :  { %v191_v24 = vmul.f32 %v5749_v60, %v96_v48  ;;  %v121_v62 = vmul.f32 %v5749_v60, %v26_v52  ;;  %v889_v41 = vrot.slane %v6164_v20, 5  ;;  %v6196_v36 = vadd.f32 %v5772_v6, %v146_v23  ;;  %v5441_v23 = vld [vmem:[%s8829_s4 + $0x140] sm:$0xff]  }
  0x91   :  { %v6199_v49 = vadd.f32 %v5772_v6, %v190_v13  ;;  %v6202_v14 = vadd.f32 %v5772_v6, %v145_v5  ;;  %v2148_v48 = vsel %vm5994_vm3, %v4194_v27, %v2147_v25  ;;  %v2151_v28 = vsel %vm5994_vm3, %v2149_v38, %v6178_v4  ;;  %v6212_v52 = vpop.permute.xlu1 %513  ;;  %v54_v38 = vld [vmem:[%s8831_s0 + $0xe0] sm:$0xff]  ;;  %v6260_v3 = vpop.permute.xlu0 %623 }
  0x92   :  { %9021 = vst [vmem:[#allocation17_spill] sm:$0xff] %v6196_v36  ;;  %v6218_v5 = vadd.f32 %v5772_v6, %v189_v54  ;;  %v165_v13 = vmul.f32 %v5749_v60, %v70_v11  ;;  %v4022_v27 = vrot.slane %v4375_v44, 9  ;;  %v6225_v21 = vcombine.low %v2148_v48, %v2151_v28  ;;  %v97_v28 = vld [vmem:[%s8831_s0 + $0x240] sm:$0xff] }
  0x93   :  { %9022 = vst [vmem:[#allocation18_spill] sm:$0xff] %v6199_v49  ;;  %9023 = vst [vmem:[#allocation19_spill] sm:$0xff] %v6202_v14  ;;  %v9026_v54 = vmov 0  ;;  %v6238_v11 = vadd.f32 %v5772_v6, %v147_v43  ;;  %v6241_v25 = vadd.f32 %v5772_v6, %v191_v24  ;;  %v6244_v44 = vadd.f32 %v5772_v6, %v121_v62  ;;  %v5443_v43 = vld [vmem:[%s8829_s4 + $0x148] sm:$0xff]  }
  0x94   :  { %9024 = vst [vmem:[#allocation20_spill] sm:$0xff] %v6218_v5  ;;  %9025 = vst [vmem:[#allocation21_spill] sm:$0xff] %v6225_v21  ;;  %v9027_v54 = vsel %vm6233_vm6, 4294967295, %v9026_v54  ;;  %v122_v48 = vmul.f32 %v5749_v60, %v27_v34  ;;  %v891_v57 = vrot.slane %v889_v41, 4  ;;  %4855 = vmatmul.mubr.bf16.vlgmr.msra.gmra.mrb[0].mxu0 %v6225_v21  ;;  %v166_v34 = vmul.f32 %v5749_v60, %v71_v53  ;;  %v98_v62 = vld [vmem:[%s8831_s0 + $0x248] sm:$0xff]  ;;  %v28_v53 = vld [vmem:[%s8831_s0 + $0x10] sm:$0xff] }
  0x95   :  { %9028 = vst [vmem:[#allocation22_spill] sm:$0xff] %v9027_v54  ;;  %9029 = vst [vmem:[#allocation23_spill] sm:$0xff] %v6238_v11  ;;  %4891 = vmatpush3.bf16.msra.mxu0 %v5441_v23  ;;  %4858 = vmatprep.mubr.msk.bf16.mxu0 %vm5509_vm0, %v9032_v30  ;;  %v6267_v19 = vadd.f32 %v5772_v6, %v165_v13  ;;  %v148_v50 = vmul.f32 %v5749_v60, %v53_v26  ;;  %v72_v23 = vld [vmem:[%s8831_s0 + $0x178] sm:$0xff]  ;;  %v9034_v13 = vrot.slane %v6182_v46, 5  ;;  %v6291_v49 = vpop.permute.xlu1 %518 }
  0x96   :  { %9030 = vst [vmem:[#allocation24_spill] sm:$0xff] %v6241_v25  ;;  %9031 = vst [vmem:[#allocation25_spill] sm:$0xff] %v6244_v44  ;;  %v890_v21 = vsel %vm6233_vm6, %v4022_v27, %v889_v41  ;;  %4892 = vmatprep.subr.bf16.mxu0 %v9032_v30  ;;  %v192_v24 = vmul.f32 %v5749_v60, %v97_v28  ;;  %v149_v56 = vmul.f32 %v5749_v60, %v54_v38  ;;  %v29_v5 = vld [vmem:[%s8831_s0 + $0x18] sm:$0xff]  ;;  %v73_v28 = vld [vmem:[%s8831_s0 + $0x180] sm:$0xff] }
  0x97   :  { %9033 = vst [vmem:[#allocation26_spill] sm:$0xff] %v6267_v19  ;;  %v893_v26 = vsel %vm6233_vm6, %v891_v57, %v9034_v13  ;;  %v6297_v57 = vadd.f32 %v5772_v6, %v122_v48  ;;  %v5442_v38 = vld [vmem:[%s8829_s4] sm:$0xff]   ;;  %v6306_v13 = vadd.f32 %v5772_v6, %v166_v34  ;;  %v193_v36 = vmul.f32 %v5749_v60, %v98_v62  ;;  %v55_v48 = vld [vmem:[%s8831_s0 + $0xe8] sm:$0xff] }
  0x98   :  { %v123_v41 = vmul.f32 %v5749_v60, %v28_v53  ;;  %v167_v27 = vmul.f32 %v5749_v60, %v72_v23  ;;  %v9036_v44 = vmax.f32 %v5883_v59, 0.0  ;;  %v9037_v11 = vmax.f32 %v5896_v1, 0.0  ;;  %v5445_v53 = vld [vmem:[%s8829_s4 + $0x150] sm:$0xff]  }
  0x99   :  { %9035 = vst [vmem:[#allocation27_spill] sm:$0xff] %v6306_v13  ;;  %v4040_v34 = vcombine.low %v890_v21, %v893_v26  ;;  %4893 = vmatpush3.bf16.msra.mxu0 %v5443_v43  ;;  %v124_v62 = vmul.f32 %v5749_v60, %v29_v5  ;;  %v6326_v23 = vadd.f32 %v5772_v6, %v148_v50  ;;  %v6341_v26 = vpop.permute.xlu0 %628  ;;  %v9046_v50 = vmax.f32 %v5857_v45, 0.0 }
  0x9a   :  { %v670_v25 = vmul.f32 %v6157_v10, %v9036_v44  ;;  %v692_v14 = vmul.f32 %v6189_v37, %v9037_v11  ;;  %4894 = vmatprep.subr.bf16.mxu0 %v9032_v30  ;;  %v6329_v59 = vadd.f32 %v5772_v6, %v192_v24  ;;  %v6332_v1 = vadd.f32 %v5772_v6, %v149_v56  ;;  %v5444_v56 = vld [vmem:[%s8829_s4 + $0x8] sm:$0xff]  }
  0x9b   :  { %v168_v21 = vmul.f32 %v5749_v60, %v73_v28  ;;  %v9040_v11 = vmax.f32 %v5904_v7, 0.0  ;;  %v9041_v44 = vmax.f32 %v5910_v9, 0.0  ;;  %4647 = vmatmul.mubr.bf16.vlgmr.msra.gmra.mrb[0].mxu1 %v4040_v34  ;;  %v150_v24 = vmul.f32 %v5749_v60, %v55_v48  ;;  %v99_v48 = vld [vmem:[%s8831_s0 + $0x250] sm:$0xff] }
  0x9c   :  { %9038 = vst [vmem:[#allocation28_spill] sm:$0xff] %v6329_v59  ;;  %9039 = vst [vmem:[#allocation29_spill] sm:$0xff] %v6332_v1  ;;  %4683 = vmatpush3.bf16.msra.mxu1 %v5442_v38  ;;  %v6350_v28 = vadd.f32 %v5772_v6, %v193_v36  ;;  %v6353_v9 = vadd.f32 %v5772_v6, %v123_v41  ;;  %v6356_v34 = vadd.f32 %v5772_v6, %v167_v27  ;;  %v56_v27 = vld [vmem:[%s8831_s0 + $0xf0] sm:$0xff] }
  0x9d   :  { %v671_v5 = vmul.f32 %v6212_v52, %v9040_v11  ;;  %v693_v43 = vmul.f32 %v6260_v3, %v9041_v44  ;;  %v6361_v38 = vpack.c.bf16 %v670_v25, %v670_v25  ;;  %v4439_v11 = vpack.c.bf16 %v692_v14, %v692_v14  ;;  %v6363_v44 = vpop.permute.xlu1 %523  ;;  %4650 = vmatprep.mubr.msk.bf16.mxu1 %vm5509_vm0, %v9032_v30  ;;  %v5447_v14 = vld [vmem:[%s8829_s4 + $0x158] sm:$0xff]   ;;  %v6404_v59 = vpop.permute.xlu0 %633 }
  0x9e   :  { %9042 = vst [vmem:[#allocation30_spill] sm:$0xff] %v6350_v28  ;;  %9043 = vst [vmem:[#allocation31_spill] sm:$0xff] %v6356_v34  ;;  %4684 = vmatprep.subr.bf16.mxu1 %v9032_v30  ;;  %v6370_v41 = vadd.f32 %v5772_v6, %v124_v62  ;;  %4895 = vmatpush3.bf16.msra.mxu0 %v5445_v53  ;;  %v6382_v36 = vadd.f32 %v5772_v6, %v168_v21  ;;  %v100_v25 = vld [vmem:[%s8831_s0 + $0x258] sm:$0xff]  ;;  %v5446_v21 = vld [vmem:[%s8829_s4 + $0x10] sm:$0xff]  }
  0x9f   :  { %v6384_v62 = vpack.c.bf16 %v671_v5, %v671_v5  ;;  %v4440_v13 = vpack.c.bf16 %v693_v43, %v693_v43  ;;  %4896 = vmatprep.subr.bf16.mxu0 %v9032_v30  ;;  %v194_v53 = vmul.f32 %v5749_v60, %v99_v48  ;;  %v6389_v19 = vadd.f32 %v5772_v6, %v150_v24 }
  0xa0   :  { %9044 = vst [vmem:[#allocation32_spill] sm:$0xff] %v6382_v36  ;;  %v712_v7 = vmul.f32 %v6057_v18, %v9046_v50  ;;  %4685 = vmatpush3.bf16.msra.mxu1 %v5444_v56  ;;  %v151_v24 = vmul.f32 %v5749_v60, %v56_v27  ;;  %v895_v48 = vrot.slane %v6361_v38, 5  ;;  %v2153_v1 = vrot.slane %v4439_v11, 7  ;;  %v5449_v11 = vld [vmem:[%s8829_s4 + $0x160] sm:$0xff]  }
  0xa1   :  { %9045 = vst [vmem:[#allocation33_spill] sm:$0xff] %v6389_v19  ;;  %4686 = vmatprep.subr.bf16.mxu1 %v9032_v30  ;;  %v9047_v50 = vmax.f32 %v5833_v33, 0.0  ;;  %v9048_v5 = vmax.f32 %v5873_v55, 0.0  ;;  %v195_v28 = vmul.f32 %v5749_v60, %v100_v25  ;;  %v6421_v18 = vrot.slane %v4440_v13, 7  ;;  %v6423_v33 = vpop.permute.xlu1 %528  ;;  %v5448_v60 = vld [vmem:[%s8829_s4 + $0x18] sm:$0xff]  }
  0xa2   :  { %4897 = vmatpush3.bf16.msra.mxu0 %v5447_v14  ;;  %v6427_v55 = vadd.f32 %v5772_v6, %v194_v53  ;;  %v3088_v14 = vshrl.u32 %v6164_v20, 16  ;;  %v6438_v13 = vadd.f32 %v5772_v6, %v151_v24  ;;  %v2152_v25 = vrot.slane %v6178_v4, 4 }
  0xa3   :  { %v735_v56 = vmul.f32 %v6034_v22, %v9047_v50  ;;  %v713_v43 = vmul.f32 %v6104_v35, %v9048_v5  ;;  %4898 = vmatprep.subr.bf16.mxu0 %v9032_v30  ;;  %v6430_v35 = vpack.c.bf16 %v712_v7, %v712_v7  ;;  %v3091_v5 = vshll.u32 %v6164_v20, 16 }
  0xa4   :  { %9049 = vst [vmem:[#allocation34_spill] sm:$0xff] %v6427_v55  ;;  %4687 = vmatpush3.bf16.msra.mxu1 %v5446_v21  ;;  %v9050_v53 = vrot.slane %v6182_v46, 5  ;;  %v897_v22 = vrot.slane %v895_v48, 4  ;;  %v2155_v7 = vrot.slane %v2153_v1, 4  ;;  %v9051_v20 = vmax.f32 %v5934_v31, 0.0 }
  0xa5   :  { %4688 = vmatprep.subr.bf16.mxu1 %v9032_v30  ;;  %v4448_v27 = vpack.c.bf16 %v735_v56, %v735_v56  ;;  %v6444_v45 = vpack.c.bf16 %v713_v43, %v713_v43  ;;  %v6450_v24 = vadd.f32 %v5772_v6, %v195_v28  ;;  %v2154_v43 = vsel %vm5994_vm3, %v2152_v25, %v2153_v1  ;;  %v6463_v56 = vpop.permute.xlu0 %638  ;;  %v5450_v1 = vld [vmem:[%s8829_s4 + $0x20] sm:$0xff]  }
  0xa6   :  { %v894_v50 = vrot.slane %v9050_v53, 4  ;;  %v672_v21 = vmul.f32 %v6291_v49, %v9051_v20  ;;  %4899 = vmatpush3.bf16.msra.mxu0 %v5449_v11  ;;  %v9053_v53 = vrot.slane %v6384_v62, 5  ;;  %v2157_v31 = vsel %vm5994_vm3, %v2155_v7, %v6421_v18 }
  0xa7   :  { %9052 = vst [vmem:[#allocation35_spill] sm:$0xff] %v6450_v24  ;;  %4900 = vmatprep.subr.bf16.mxu0 %v9032_v30  ;;  %v9054_v6 = vmax.f32 %v5960_v51, 0.0  ;;  %v3090_v25 = vrot.slane %v3088_v14, 5  ;;  %v3093_v7 = vrot.slane %v3091_v5, 6  ;;  %v3186_v20 = vshrl.u32 %v6430_v35, 16 }
  0xa8   :  { %v896_v4 = vsel %vm6233_vm6, %v894_v50, %v895_v48  ;;  %v899_v19 = vsel %vm6233_vm6, %v897_v22, %v9053_v53  ;;  %v9055_v48 = vmax.f32 %v5983_v32, 0.0  ;;  %v6472_v50 = vcombine.low %v2154_v43, %v2157_v31  ;;  %4689 = vmatpush3.bf16.msra.mxu1 %v5448_v60  ;;  %v6479_v53 = vpop.permute.xlu1 %533 }
  0xa9   :  { %v694_v28 = vmul.f32 %v6341_v26, %v9054_v6  ;;  %v4041_v22 = vcombine.low %v896_v4, %v899_v19  ;;  %v3189_v51 = vshll.u32 %v6430_v35, 16  ;;  %4690 = vmatprep.subr.bf16.mxu1 %v9032_v30  ;;  %v5451_v19 = vld [vmem:[%s8829_s4 + $0x168] sm:$0xff]   ;;  %v9057_v32 = vmax.f32 %v5880_v58, 0.0 }
  0xaa   :  { %v673_v11 = vmul.f32 %v6363_v44, %v9055_v48  ;;  %9056 = vst [vmem:[#allocation36_spill] sm:$0xff] %v6472_v50  ;;  %v6490_v4 = vpack.c.bf16 %v672_v21, %v672_v21  ;;  %v9058_v14 = vmax.f32 %v6009_v39, 0.0  ;;  %4859 = vmatmul.mubr.bf16.gmra.mrb[4].mxu0 %v6472_v50  ;;  %v3097_v31 = vshrl.u32 %v6182_v46, 16 }
  0xab   :  { %v6488_v60 = vmul.f32 %v6114_v47, %v9057_v32  ;;  %4651 = vmatmul.mubr.bf16.gmra.mrb[4].mxu1 %v4041_v22  ;;  %v3100_v6 = vshll.u32 %v6182_v46, 16  ;;  %v3195_v58 = vshrl.u32 %v6444_v45, 16  ;;  %v3198_v47 = vshll.u32 %v6444_v45, 16  ;;  %4862 = vmatprep.mubr.msk.bf16.mxu0 %vm5509_vm0, %v9032_v30  ;;  %v5452_v46 = vld [vmem:[%s8829_s4 + $0x28] sm:$0xff]  }
  0xac   :  { %v695_v5 = vmul.f32 %v6404_v59, %v9058_v14  ;;  %4654 = vmatprep.mubr.msk.bf16.mxu1 %vm5509_vm0, %v9032_v30  ;;  %v6503_v21 = vrot.slane %v4448_v27, 7  ;;  %v4441_v48 = vpack.c.bf16 %v694_v28, %v694_v28  ;;  %v6506_v22 = vpack.c.bf16 %v673_v11, %v673_v11  ;;  %4691 = vmatpush3.bf16.msra.mxu1 %v5450_v1  ;;  %v6520_v28 = vpop.permute.xlu0 %643  ;;  %v5453_v11 = vld [vmem:[%s8829_s4 + $0x170] sm:$0xff]  }
  0xad   :  { %v3094_v32 = vor.u32 %v3093_v7, %v3090_v25  ;;  %v6513_v14 = vrot.slane %v3186_v20, 5  ;;  %v6515_v43 = vrot.slane %v3189_v51, 6  ;;  %v9061_v27 = vmax.f32 %v5886_v61, 0.0  ;;  %4901 = vmatpush3.bf16.msra.mxu0 %v5451_v19  ;;  %4692 = vmatprep.subr.bf16.mxu1 %v9032_v30  ;;  %v6530_v19 = vpop.permute.xlu1 %538 }
  0xae   :  { %v901_v7 = vrot.slane %v6490_v4, 5  ;;  %v4442_v20 = vpack.c.bf16 %v695_v5, %v695_v5  ;;  %4902 = vmatprep.subr.bf16.mxu0 %v9032_v30  ;;  %v3099_v61 = vrot.slane %v3097_v31, 5  ;;  %v3197_v51 = vrot.slane %v3195_v58, 5  ;;  %v5454_v5 = vld [vmem:[%s8829_s4 + $0x30] sm:$0xff]  }
  0xaf   :  { %9059 = vst [vmem:[#allocation37_spill] sm:$0xff] %v6513_v14  ;;  %9060 = vst [vmem:[#allocation38_spill] sm:$0xff] %v6515_v43  ;;  %v714_v39 = vmul.f32 %v6157_v10, %v9061_v27  ;;  %v3102_v10 = vrot.slane %v3100_v6, 6  ;;  %v3200_v27 = vrot.slane %v3198_v47, 6  ;;  %v9062_v55 = vrot.slane %v6430_v35, 5 }
  0xb0   :  { %v2159_v1 = vrot.slane %v4441_v48, 7  ;;  %4693 = vmatpush3.bf16.msra.mxu1 %v5452_v46  ;;  %v6541_v31 = vrot.slane %v3094_v32, 4  ;;  %v4385_v58 = vpack.c.bf16 %v6488_v60, %v6488_v60  ;;  %v9065_v46 = vrot.slane %v6384_v62, 5  ;;  %v6569_v43 = vpop.permute.xlu0 %648 }
  0xb1   :  { %v6535_v36 = vrot.slane %v9062_v55, 4  ;;  %v6547_v47 = vpack.c.bf16 %v714_v39, %v714_v39  ;;  %4903 = vmatpush3.bf16.msra.mxu0 %v5453_v11  ;;  %4694 = vmatprep.subr.bf16.mxu1 %v9032_v30  ;;  %v9064_v55 = vrot.slane %v6444_v45, 5  ;;  %v903_v32 = vrot.slane %v901_v7, 4 }
  0xb2   :  { %9063 = vst [vmem:[#allocation39_spill] sm:$0xff] %v6541_v31  ;;  %v900_v50 = vrot.slane %v9065_v46, 4  ;;  %v6556_v25 = vrot.slane %v4442_v20, 7  ;;  %4904 = vmatprep.subr.bf16.mxu0 %v9032_v30  ;;  %v6559_v6 = vor.u32 %v3102_v10, %v3099_v61  ;;  %v6561_v60 = vor.u32 %v3200_v27, %v3197_v51 }
  0xb3   :  { %v6552_v48 = vrot.slane %v9064_v55, 4  ;;  %v9068_v39 = vmax.f32 %v5899_v2, 0.0  ;;  %v9069_v14 = vmax.f32 %v5907_v8, 0.0  ;;  %v2158_v46 = vrot.slane %v6421_v18, 4  ;;  %v5455_v2 = vld [vmem:[%s8829_s4 + $0x178] sm:$0xff]  }
  0xb4   :  { %9066 = vst [vmem:[#allocation40_spill] sm:$0xff] %v6559_v6  ;;  %9067 = vst [vmem:[#allocation41_spill] sm:$0xff] %v6561_v60  ;;  %v2161_v20 = vrot.slane %v2159_v1, 4  ;;  %v902_v31 = vsel %vm6233_vm6, %v900_v50, %v901_v7  ;;  %v9070_v61 = vrot.slane %v6506_v22, 5  ;;  %4695 = vmatpush3.bf16.msra.mxu1 %v5454_v5  ;;  %v5456_v8 = vld [vmem:[%s8829_s4 + $0x38] sm:$0xff]   ;;  %v3110_v18 = vshll.u32 %v6361_v38, 16 }
  0xb5   :  { %v736_v11 = vmul.f32 %v6189_v37, %v9068_v39  ;;  %v715_v55 = vmul.f32 %v6212_v52, %v9069_v14  ;;  %v8872_v37 = vrot.slane %v6547_v47, 5  ;;  %v3107_v52 = vshrl.u32 %v6361_v38, 16  ;;  %v6587_v14 = vpop.permute.xlu1 %553  ;;  %4696 = vmatprep.subr.bf16.mxu1 %v9032_v30  ;;  %4905 = vmatpush3.bf16.msra.mxu0 %v5455_v2 }
  0xb6   :  { %v905_v10 = vsel %vm6233_vm6, %v903_v32, %v9070_v61  ;;  %v3205_v7 = vshrl.u32 %v6547_v47, 16  ;;  %v3208_v51 = vshll.u32 %v6547_v47, 16  ;;  %v2160_v27 = vsel %vm5994_vm3, %v2158_v46, %v2159_v1  ;;  %4942 = vmatprep.subr.bf16.mxu0 %v9032_v30 }
  0xb7   :  { %v4042_v50 = vcombine.low %v902_v31, %v905_v10  ;;  %v2163_v5 = vsel %vm5994_vm3, %v2161_v20, %v6556_v25  ;;  %v6597_v38 = vrot.slane %v4385_v58, 9  ;;  %v4449_v31 = vpack.c.bf16 %v736_v11, %v736_v11 }
  0xb8   :  { %v9071_v32 = vmax.f32 %v6024_v15, 0.0  ;;  %v6602_v61 = vcombine.low %v2160_v27, %v2163_v5  ;;  %v6606_v46 = vpack.c.bf16 %v715_v55, %v715_v55  ;;  %v9073_v20 = vmax.f32 %v6039_v12, 0.0  ;;  %4697 = vmatpush3.bf16.msra.mxu1 %v5456_v8  ;;  %v6624_v27 = vpop.permute.xlu0 %548 }
  0xb9   :  { %4655 = vmatmul.mubr.bf16.gmra.mrb[8].mxu1 %v4042_v50  ;;  %v9074_v58 = vmax.f32 %v6131_v17, 0.0  ;;  %v6618_v15 = vrot.slane %v8872_v37, 4  ;;  %v3109_v2 = vrot.slane %v3107_v52, 5  ;;  %v3112_v50 = vrot.slane %v3110_v18, 6  ;;  %4734 = vmatprep.subr.bf16.mxu1 %v9032_v30  ;;  %v9081_v37 = vld [vmem:[#allocation2_spill] sm:$0xff] }
  0xba   :  { %v674_v39 = vmul.f32 %v6423_v33, %v9071_v32  ;;  %9072 = vst [vmem:[#allocation42_spill] sm:$0xff] %v6602_v61  ;;  %v696_v10 = vmul.f32 %v6463_v56, %v9073_v20  ;;  %4658 = vmatprep.mubr.msk.bf16.mxu1 %vm5509_vm0, %v9032_v30  ;;  %v9075_v55 = vmax.f32 %v6066_v40, 0.0  ;;  %4863 = vmatmul.mubr.bf16.gmra.mrb[8].mxu0 %v6602_v61  ;;  %v3207_v17 = vrot.slane %v3205_v7, 5 }
  0xbb   :  { %v679_v11 = vmul.f32 %v6587_v14, %v9074_v58  ;;  %v3210_v5 = vrot.slane %v3208_v51, 6  ;;  %v9076_v32 = vmax.f32 %v5917_v16, 0.0  ;;  %v9077_v20 = vmax.f32 %v6087_v29, 0.0  ;;  %4866 = vmatprep.mubr.msk.bf16.mxu0 %vm5509_vm0, %v9032_v30 }
  0xbc   :  { %v675_v12 = vmul.f32 %v6479_v53, %v9075_v55  ;;  %v6635_v40 = vrot.slane %v4449_v31, 7  ;;  %v3117_v52 = vshrl.u32 %v6384_v62, 16  ;;  %v3120_v18 = vshll.u32 %v6384_v62, 16 }
  0xbd   :  { %v737_v8 = vmul.f32 %v6260_v3, %v9076_v32  ;;  %v697_v58 = vmul.f32 %v6520_v28, %v9077_v20  ;;  %v6639_v7 = vpack.c.bf16 %v674_v39, %v674_v39  ;;  %v4443_v3 = vpack.c.bf16 %v696_v10, %v696_v10 }
  0xbe   :  { %v6642_v51 = vpack.c.bf16 %v679_v11, %v679_v11  ;;  %v9078_v29 = vmax.f32 %v6152_v0, 0.0  ;;  %v6647_v32 = vor.u32 %v3112_v50, %v3109_v2  ;;  %v3215_v31 = vshrl.u32 %v6606_v46, 16 }
  0xbf   :  { %v3218_v20 = vshll.u32 %v6606_v46, 16  ;;  %v6651_v1 = vpack.c.bf16 %v675_v12, %v675_v12  ;;  %v6653_v62 = vor.u32 %v3210_v5, %v3207_v17  ;;  %v4450_v39 = vpack.c.bf16 %v737_v8, %v737_v8 }
  0xc0   :  { %v678_v55 = vmul.f32 %v6624_v27, %v9078_v29  ;;  %9079 = vst [vmem:[#allocation43_spill] sm:$0xff] %v6647_v32  ;;  %v9082_v16 = vmax.f32 %v9081_v37, 0.0  ;;  %v4444_v11 = vpack.c.bf16 %v697_v58, %v697_v58  ;;  %v3119_v61 = vrot.slane %v3117_v52, 5 }
  0xc1   :  { %9080 = vst [vmem:[#allocation44_spill] sm:$0xff] %v6653_v62  ;;  %v3122_v29 = vrot.slane %v3120_v18, 6  ;;  %v907_v2 = vrot.slane %v6639_v7, 5  ;;  %v9083_v50 = vrot.slane %v6606_v46, 5  ;;  %v2165_v12 = vrot.slane %v4443_v3, 7  ;;  %v9084_v62 = vld [vmem:[#allocation3_spill] sm:$0xff] }
  0xc2   :  { %v716_v10 = vmul.f32 %v6291_v49, %v9082_v16  ;;  %v1812_v17 = vrot.slane %v6642_v51, 6  ;;  %v6665_v5 = vpack.c.bf16 %v678_v55, %v678_v55  ;;  %v3217_v8 = vrot.slane %v3215_v31, 5 }
  0xc3   :  { %v6662_v60 = vrot.slane %v9083_v50, 4  ;;  %v3220_v37 = vrot.slane %v3218_v20, 6  ;;  %v9085_v49 = vmax.f32 %v9084_v62, 0.0  ;;  %v9086_v18 = vmov 0  ;;  %v9090_v62 = vld [vmem:[#allocation4_spill] sm:$0xff] }
  0xc4   :  { %v9087_v18 = vsel %vm6673_vm9, 4294967295, %v9086_v18  ;;  %v6677_v16 = vrot.slane %v4450_v39, 7  ;;  %v6679_v3 = vpack.c.bf16 %v716_v10, %v716_v10  ;;  %v6681_v55 = vrot.slane %v4444_v11, 7 }
  0xc5   :  { %v738_v58 = vmul.f32 %v6341_v26, %v9085_v49  ;;  %9088 = vst [vmem:[#allocation2_spill] sm:$0xff] %v9087_v18  ;;  %v4139_v31 = vrot.slane %v6665_v5, 10  ;;  %v6684_v20 = vor.u32 %v3122_v29, %v3119_v61  ;;  %v9091_v26 = vmax.f32 %v9090_v62, 0.0 }
  0xc6   :  { %v9092_v49 = vrot.slane %v6506_v22, 5  ;;  %v909_v52 = vrot.slane %v907_v2, 4  ;;  %v3127_v6 = vshrl.u32 %v6490_v4, 16  ;;  %v2164_v39 = vrot.slane %v6556_v25, 4  ;;  %v9109_v25 = vld [vmem:[#allocation8_spill] sm:$0xff] }
  0xc7   :  { %9089 = vst [vmem:[#allocation3_spill] sm:$0xff] %v6684_v20  ;;  %v717_v50 = vmul.f32 %v6363_v44, %v9091_v26  ;;  %v2167_v10 = vrot.slane %v2165_v12, 4  ;;  %v6695_v11 = vsel %vm6673_vm9, %v4139_v31, %v1812_v17  ;;  %v3130_v61 = vshll.u32 %v6490_v4, 16 }
  0xc8   :  { %v906_v0 = vrot.slane %v9092_v49, 4  ;;  %9093 = vst [vmem:[#allocation4_spill] sm:$0xff] %v6695_v11  ;;  %v4451_v29 = vpack.c.bf16 %v738_v58, %v738_v58  ;;  %v9094_v44 = vrot.slane %v6651_v1, 5  ;;  %v6704_v49 = vpop.permute.xlu0 %558  ;;  %v2166_v31 = vsel %vm5994_vm3, %v2164_v39, %v2165_v12  ;;  %v9099_v12 = vld [vmem:[#allocation19_spill] sm:$0xff] }
  0xc9   :  { %v2169_v4 = vsel %vm5994_vm3, %v2167_v10, %v6681_v55  ;;  %v6712_v58 = vor.u32 %v3220_v37, %v3217_v8  ;;  %v9100_v39 = vmax.f32 %v9099_v12, 0.0  ;;  %v3129_v37 = vrot.slane %v3127_v6, 5  ;;  %v9107_v12 = vld [vmem:[#allocation13_spill] sm:$0xff] }
  0xca   :  { %v908_v62 = vsel %vm6233_vm6, %v906_v0, %v907_v2  ;;  %v911_v26 = vsel %vm6233_vm6, %v909_v52, %v9094_v44  ;;  %v3225_v0 = vshrl.u32 %v6679_v3, 16  ;;  %v9096_v2 = vld [vmem:[#allocation6_spill] sm:$0xff]  ;;  %v6718_v44 = vcombine.low %v2166_v31, %v2169_v4 }
  0xcb   :  { %v4043_v20 = vcombine.low %v908_v62, %v911_v26  ;;  %9095 = vst [vmem:[#allocation45_spill] sm:$0xff] %v6712_v58  ;;  %v9097_v11 = vmax.f32 %v9096_v2, 0.0  ;;  %v3228_v62 = vshll.u32 %v6679_v3, 16  ;;  %v6722_v26 = vpack.c.bf16 %v717_v50, %v717_v50  ;;  %v9101_v58 = vld [vmem:[#allocation7_spill] sm:$0xff] }
  0xcc   :  { %9098 = vst [vmem:[#allocation6_spill] sm:$0xff] %v6718_v44  ;;  %v680_v8 = vmul.f32 %v6704_v49, %v9100_v39  ;;  %v3132_v10 = vrot.slane %v3130_v61, 6  ;;  %v9102_v32 = vmax.f32 %v9101_v58, 0.0  ;;  %4867 = vmatmul.mubr.bf16.gmra.mrb[12].mxu0 %v6718_v44  ;;  %v9105_v50 = vrot.slane %v6679_v3, 5 }
  0xcd   :  { %v739_v52 = vmul.f32 %v6404_v59, %v9097_v11  ;;  %4659 = vmatmul.mubr.bf16.gmra.mrb[12].mxu1 %v4043_v20  ;;  %v9103_v59 = vld [vmem:[#allocation11_spill] sm:$0xff]  ;;  %v6738_v20 = vrot.slane %v4451_v29, 7  ;;  %v9108_v39 = vmax.f32 %v9107_v12, 0.0  ;;  %v3140_v58 = vshll.u32 %v6506_v22, 16  ;;  %4870 = vmatprep.mubr.msk.bf16.mxu0 %vm5509_vm0, %v9032_v30 }
  0xce   :  { %v718_v2 = vmul.f32 %v6423_v33, %v9102_v32  ;;  %v9104_v11 = vmax.f32 %v9103_v59, 0.0  ;;  %v6736_v4 = vrot.slane %v9105_v50, 4  ;;  %v6743_v61 = vpack.c.bf16 %v680_v8, %v680_v8  ;;  %4662 = vmatprep.mubr.msk.bf16.mxu1 %vm5509_vm0, %v9032_v30 }
  0xcf   :  { %v698_v6 = vmul.f32 %v6569_v43, %v9108_v39  ;;  %v3227_v33 = vrot.slane %v3225_v0, 5  ;;  %v3137_v32 = vshrl.u32 %v6506_v22, 16  ;;  %v4452_v59 = vpack.c.bf16 %v739_v52, %v739_v52  ;;  %v9111_v52 = vld [vmem:[#allocation9_spill] sm:$0xff] }
  0xd0   :  { %v676_v31 = vmul.f32 %v6530_v19, %v9104_v11  ;;  %9106 = vst [vmem:[#allocation19_spill] sm:$0xff] %v6736_v4  ;;  %v3230_v29 = vrot.slane %v3228_v62, 6  ;;  %v1814_v50 = vrot.slane %v1812_v17, 4  ;;  %v8886_v12 = vrot.slane %v6743_v61, 6  ;;  %v6765_v17 = vpop.permute.xlu1 %563 }
  0xd1   :  { %v3235_v8 = vshrl.u32 %v6722_v26, 16  ;;  %v6754_v39 = vpack.c.bf16 %v718_v2, %v718_v2  ;;  %v9110_v0 = vmax.f32 %v9109_v25, 0.0  ;;  %v3238_v22 = vshll.u32 %v6722_v26, 16 }
  0xd2   :  { %v6759_v4 = vpack.c.bf16 %v676_v31, %v676_v31  ;;  %v9112_v34 = vmax.f32 %v9111_v52, 0.0  ;;  %v4445_v11 = vpack.c.bf16 %v698_v6, %v698_v6  ;;  %v6771_v2 = vsel %vm6673_vm9, %v1814_v50, %v8886_v12 }
  0xd3   :  { %v740_v44 = vmul.f32 %v6463_v56, %v9110_v0  ;;  %9113 = vst [vmem:[#allocation7_spill] sm:$0xff] %v6771_v2  ;;  %v6773_v25 = vor.u32 %v3132_v10, %v3129_v37  ;;  %v3139_v56 = vrot.slane %v3137_v32, 5  ;;  %v3142_v31 = vrot.slane %v3140_v58, 6 }
  0xd4   :  { %v719_v62 = vmul.f32 %v6479_v53, %v9112_v34  ;;  %v6775_v0 = vrot.slane %v4452_v59, 7  ;;  %v6777_v24 = vor.u32 %v3230_v29, %v3227_v33  ;;  %v9117_v34 = vrot.slane %v6722_v26, 5 }
  0xd5   :  { %9114 = vst [vmem:[#allocation11_spill] sm:$0xff] %v6773_v25  ;;  %v3147_v6 = vshrl.u32 %v6639_v7, 16  ;;  %v3150_v18 = vshll.u32 %v6639_v7, 16  ;;  %v3245_v50 = vshrl.u32 %v6754_v39, 16  ;;  %v4453_v37 = vpack.c.bf16 %v740_v44, %v740_v44  ;;  %v9123_v44 = vld [vmem:[#allocation12_spill] sm:$0xff] }
  0xd6   :  { %9115 = vst [vmem:[#allocation13_spill] sm:$0xff] %v6775_v0  ;;  %9116 = vst [vmem:[#allocation8_spill] sm:$0xff] %v6777_v24  ;;  %v6782_v53 = vrot.slane %v9117_v34, 4  ;;  %v913_v10 = vrot.slane %v6759_v4, 5  ;;  %v3237_v32 = vrot.slane %v3235_v8, 5  ;;  %v3240_v58 = vrot.slane %v3238_v22, 6 }
  0xd7   :  { %v6788_v59 = vpack.c.bf16 %v719_v62, %v719_v62  ;;  %v2171_v33 = vrot.slane %v4445_v11, 7  ;;  %v6790_v29 = vor.u32 %v3142_v31, %v3139_v56  ;;  %v9120_v34 = vrot.slane %v6651_v1, 5  ;;  %v9121_v24 = vld [vmem:[#allocation10_spill] sm:$0xff]  ;;  %v6801_v62 = vpop.permute.xlu1 %438 }
  0xd8   :  { %9118 = vst [vmem:[#allocation9_spill] sm:$0xff] %v6782_v53  ;;  %v9122_v2 = vmax.f32 %v9121_v24, 0.0  ;;  %v3149_v25 = vrot.slane %v3147_v6, 5  ;;  %v3248_v8 = vshll.u32 %v6754_v39, 16  ;;  %v2170_v22 = vrot.slane %v6681_v55, 4  ;;  %v6824_v53 = vpop.permute.xlu0 %568 }
  0xd9   :  { %9119 = vst [vmem:[#allocation46_spill] sm:$0xff] %v6790_v29  ;;  %v912_v12 = vrot.slane %v9120_v34, 4  ;;  %v3152_v11 = vrot.slane %v3150_v18, 6  ;;  %v3247_v56 = vrot.slane %v3245_v50, 5  ;;  %v6803_v31 = vrot.slane %v4453_v37, 7 }
  0xda   :  { %v741_v7 = vmul.f32 %v6520_v28, %v9122_v2  ;;  %v3157_v24 = vshrl.u32 %v6651_v1, 16  ;;  %v3160_v28 = vshll.u32 %v6651_v1, 16  ;;  %v3255_v2 = vshrl.u32 %v6788_v59, 16  ;;  %v9126_v1 = vld [vmem:[#allocation15_spill] sm:$0xff] }
  0xdb   :  { %v914_v34 = vsel %vm6233_vm6, %v912_v12, %v913_v10  ;;  %v2172_v6 = vsel %vm5994_vm3, %v2170_v22, %v2171_v33  ;;  %v3258_v55 = vshll.u32 %v6788_v59, 16  ;;  %v9124_v18 = vmax.f32 %v9123_v44, 0.0 }
  0xdc   :  { %v4454_v52 = vpack.c.bf16 %v741_v7, %v741_v7  ;;  %v9125_v37 = vrot.slane %v6430_v35, 5  ;;  %v3250_v10 = vrot.slane %v3248_v8, 6  ;;  %v9127_v29 = vmax.f32 %v9126_v1, 0.0  ;;  %v9128_v7 = vld [vmem:[#allocation5_spill] sm:$0xff] }
  0xdd   :  { %v720_v50 = vmul.f32 %v6530_v19, %v9124_v18  ;;  %v9129_v44 = vsel %vm5994_vm3, %v9128_v7, %v6004_v63  ;;  %v6833_v35 = vor.u32 %v3240_v58, %v3237_v32  ;;  %v8893_v22 = vrot.slane %v6788_v59, 5  ;;  %v6847_v32 = vpop.permute.xlu1 %573 }
  0xde   :  { %v918_v12 = vsel %vm6233_vm6, %v6597_v38, %v9125_v37  ;;  %v723_v0 = vmul.f32 %v6587_v14, %v9127_v29  ;;  %v6831_v19 = vcombine.low %v2172_v6, %v9129_v44  ;;  %v9132_v38 = vld [vmem:[#allocation16_spill] sm:$0xff]  ;;  %v9134_v29 = vrot.slane %v6754_v39, 5 }
  0xdf   :  { %v4044_v33 = vcombine.low %v914_v34, %v918_v12  ;;  %9131 = vst [vmem:[#allocation12_spill] sm:$0xff] %v6833_v35  ;;  %v9133_v8 = vmax.f32 %v9132_v38, 0.0  ;;  %v6844_v37 = vor.u32 %v3152_v11, %v3149_v25  ;;  %v3159_v12 = vrot.slane %v3157_v24, 5  ;;  %v9138_v11 = vld [vmem:[#allocation14_spill] sm:$0xff]  ;;  %v6878_v38 = vpop.permute.xlu0 %443 }
  0xe0   :  { %9130 = vst [vmem:[#allocation10_spill] sm:$0xff] %v6831_v19  ;;  %v6842_v34 = vrot.slane %v9134_v29, 4  ;;  %v3162_v1 = vrot.slane %v3160_v28, 6  ;;  %4871 = vmatmul.mubr.bf16.gmra.mrb[16].mxu0 %v6831_v19  ;;  %v3257_v58 = vrot.slane %v3255_v2, 5  ;;  %v3260_v6 = vrot.slane %v3258_v55, 6 }
  0xe1   :  { %v722_v18 = vmul.f32 %v6624_v27, %v9133_v8  ;;  %9135 = vst [vmem:[#allocation15_spill] sm:$0xff] %v6844_v37  ;;  %4663 = vmatmul.mubr.bf16.gmra.mrb[16].mxu1 %v4044_v33  ;;  %v6849_v7 = vrot.slane %v4454_v52, 7  ;;  %v6851_v27 = vpack.c.bf16 %v720_v50, %v720_v50  ;;  %v6855_v44 = vor.u32 %v3250_v10, %v3247_v56  ;;  %v6888_v25 = vpop.permute.xlu1 %448 }
  0xe2   :  { %4666 = vmatprep.mubr.msk.bf16.mxu1 %vm5509_vm0, %v9032_v30  ;;  %v9139_v24 = vmax.f32 %v9138_v11, 0.0  ;;  %v6861_v33 = vpack.c.bf16 %v723_v0, %v723_v0  ;;  %4874 = vmatprep.mubr.msk.bf16.mxu0 %vm5509_vm0, %v9032_v30  ;;  %v6867_v52 = vrot.slane %v8893_v22, 4  ;;  %v2438_v2 = vshrl.u32 %v6642_v51, 16 }
  0xe3   :  { %9136 = vst [vmem:[#allocation5_spill] sm:$0xff] %v6849_v7  ;;  %9137 = vst [vmem:[#allocation16_spill] sm:$0xff] %v6855_v44  ;;  %v2441_v56 = vshll.u32 %v6642_v51, 16  ;;  %v6871_v55 = vpack.c.bf16 %v722_v18, %v722_v18  ;;  %v6873_v50 = vor.u32 %v3162_v1, %v3159_v12  ;;  %v3167_v10 = vshrl.u32 %v6759_v4, 16  ;;  %v6907_v37 = vpop.permute.xlu0 %578 }
  0xe4   :  { %v742_v28 = vmul.f32 %v6569_v43, %v9139_v24  ;;  %9140 = vst [vmem:[#allocation14_spill] sm:$0xff] %v6861_v33  ;;  %9141 = vst [vmem:[#allocation47_spill] sm:$0xff] %v6867_v52  ;;  %v2429_v43 = vshrl.u32 %v6665_v5, 16  ;;  %v2432_v0 = vshll.u32 %v6665_v5, 16  ;;  %v6880_v8 = vor.u32 %v3260_v6, %v3257_v58 }
  0xe5   :  { %9142 = vst [vmem:[#allocation48_spill] sm:$0xff] %v6871_v55  ;;  %9143 = vst [vmem:[#allocation49_spill] sm:$0xff] %v6873_v50  ;;  %v3170_v11 = vshll.u32 %v6759_v4, 16  ;;  %v3265_v51 = vshrl.u32 %v6851_v27, 16  ;;  %v3268_v12 = vshll.u32 %v6851_v27, 16  ;;  %v2536_v24 = vshrl.u32 %v6861_v33, 16 }
  0xe6   :  { %9144 = vst [vmem:[#allocation50_spill] sm:$0xff] %v6880_v8  ;;  %v4455_v1 = vpack.c.bf16 %v742_v28, %v742_v28  ;;  %v2440_v5 = vrot.slane %v2438_v2, 6  ;;  %v2443_v22 = vrot.slane %v2441_v56, 7  ;;  %v2539_v58 = vshll.u32 %v6861_v33, 16 }
  0xe7   :  { %v2527_v6 = vshrl.u32 %v6871_v55, 16  ;;  %v3169_v29 = vrot.slane %v3167_v10, 5  ;;  %v2431_v14 = vrot.slane %v2429_v43, 6  ;;  %v2434_v4 = vrot.slane %v2432_v0, 7  ;;  %v9147_v10 = vld [vmem:[#allocation17_spill] sm:$0xff] }
  0xe8   :  { %v2530_v19 = vshll.u32 %v6871_v55, 16  ;;  %v3172_v8 = vrot.slane %v3170_v11, 6  ;;  %v3267_v18 = vrot.slane %v3265_v51, 5  ;;  %v9145_v44 = vmax.f32 %v6297_v57, 0.0 }
  0xe9   :  { %v9146_v35 = vmax.f32 %v6353_v9, 0.0  ;;  %v3270_v56 = vrot.slane %v3268_v12, 6  ;;  %v9148_v43 = vmax.f32 %v9147_v10, 0.0  ;;  %v9149_v11 = vrot.slane %v6444_v45, 5  ;;  %v9153_v10 = vld [vmem:[#allocation18_spill] sm:$0xff] }
  0xea   :  { %v6896_v28 = vmul.f32 %v6878_v38, %v9145_v44  ;;  %v6914_v44 = vor.u32 %v2443_v22, %v2440_v5  ;;  %v2538_v9 = vrot.slane %v2536_v24, 6  ;;  %v6916_v51 = vrot.slane %v2527_v6, 6  ;;  %v9156_v22 = vld [vmem:[#allocation20_spill] sm:$0xff] }
  0xeb   :  { %v6901_v2 = vmul.f32 %v6888_v25, %v9146_v35  ;;  %v681_v0 = vmul.f32 %v6765_v17, %v9148_v43  ;;  %v921_v57 = vsel %vm6233_vm6, %v6535_v36, %v9149_v11  ;;  %v2541_v35 = vrot.slane %v2539_v58, 7 }
  0xec   :  { %9150 = vst [vmem:[#allocation17_spill] sm:$0xff] %v6914_v44  ;;  %9151 = vst [vmem:[#allocation51_spill] sm:$0xff] %v6916_v51  ;;  %v2435_v12 = vor.u32 %v2434_v4, %v2431_v14  ;;  %v6918_v50 = vrot.slane %v2530_v19, 7  ;;  %v9154_v7 = vmax.f32 %v9153_v10, 0.0  ;;  %v9155_v52 = vrot.slane %v6547_v47, 5 }
  0xed   :  { %v6928_v36 = vrot.slane %v4455_v1, 7  ;;  %v9157_v24 = vmax.f32 %v9156_v22, 0.0  ;;  %v6935_v19 = vpack.c.bf16 %v6896_v28, %v6896_v28  ;;  %v6939_v14 = vpack.c.bf16 %v6901_v2, %v6901_v2  ;;  %v6967_v22 = vpop.permute.xlu0 %453 }
  0xee   :  { %9152 = vst [vmem:[#allocation52_spill] sm:$0xff] %v6918_v50  ;;  %v725_v43 = vmul.f32 %v6765_v17, %v9154_v7  ;;  %v924_v45 = vsel %vm6233_vm6, %v6552_v48, %v9155_v52  ;;  %v6941_v17 = vor.u32 %v3172_v8, %v3169_v29  ;;  %v6943_v47 = vor.u32 %v3270_v56, %v3267_v18  ;;  %v9163_v48 = vld [vmem:[#allocation23_spill] sm:$0xff]  ;;  %v9170_v56 = vld [vmem:[#allocation24_spill] sm:$0xff] }
  0xef   :  { %v724_v5 = vmul.f32 %v6704_v49, %v9157_v24  ;;  %9158 = vst [vmem:[#allocation18_spill] sm:$0xff] %v6935_v19  ;;  %9159 = vst [vmem:[#allocation20_spill] sm:$0xff] %v6939_v14  ;;  %v6945_v7 = vpack.c.bf16 %v681_v0, %v681_v0  ;;  %v9164_v52 = vmax.f32 %v9163_v48, 0.0  ;;  %v9165_v49 = vrot.slane %v6861_v33, 6  ;;  %v9173_v48 = vld [vmem:[#allocation25_spill] sm:$0xff] }
  0xf0   :  { %9160 = vst [vmem:[#allocation53_spill] sm:$0xff] %v6941_v17  ;;  %9161 = vst [vmem:[#allocation54_spill] sm:$0xff] %v6943_v47  ;;  %v6955_v4 = vor.u32 %v2541_v35, %v2538_v9  ;;  %v6958_v8 = vrot.slane %v2435_v12, 4  ;;  %v6962_v18 = vpack.c.bf16 %v725_v43, %v725_v43  ;;  %v9171_v0 = vmax.f32 %v9170_v56, 0.0 }
  0xf1   :  { %9162 = vst [vmem:[#allocation55_spill] sm:$0xff] %v6945_v7  ;;  %v682_v1 = vmul.f32 %v6824_v53, %v9164_v52  ;;  %v6952_v58 = vrot.slane %v9165_v49, 4  ;;  %v6969_v24 = vpack.c.bf16 %v724_v5, %v724_v5  ;;  %v9174_v9 = vmax.f32 %v9173_v48, 0.0 }
  0xf2   :  { %9167 = vst [vmem:[#allocation56_spill] sm:$0xff] %v6955_v4  ;;  %9168 = vst [vmem:[#allocation57_spill] sm:$0xff] %v6958_v8  ;;  %v726_v10 = vmul.f32 %v6824_v53, %v9171_v0  ;;  %v4332_v12 = vrot.slane %v6935_v19, 9  ;;  %v3509_v52 = vrot.slane %v6939_v14, 5  ;;  %v8902_v43 = vrot.slane %v6945_v7, 6  ;;  %v9177_v0 = vld [vmem:[#allocation26_spill] sm:$0xff] }
  0xf3   :  { %9166 = vst [vmem:[#allocation23_spill] sm:$0xff] %v6952_v58  ;;  %9169 = vst [vmem:[#allocation58_spill] sm:$0xff] %v6962_v18  ;;  %v6974_v35 = vmul.f32 %v6801_v62, %v9174_v9  ;;  %v6979_v49 = vpack.c.bf16 %v682_v1, %v682_v1  ;;  %v4045_v56 = vcombine.low %v921_v57, %v924_v45  ;;  %v9176_v53 = vrot.slane %v6004_v63, 4  ;;  %v9190_v8 = vld [vmem:[#allocation28_spill] sm:$0xff] }
  0xf4   :  { %9172 = vst [vmem:[#allocation24_spill] sm:$0xff] %v6969_v24  ;;  %v9178_v48 = vmax.f32 %v9177_v0, 0.0  ;;  %v6993_v11 = vsel %vm6233_vm6, %v4332_v12, %v3509_v52  ;;  %v9180_v1 = vrot.slane %v6503_v21, 4  ;;  %v9181_v63 = vmax.f32 %v6370_v41, 0.0 }
  0xf5   :  { %9175 = vst [vmem:[#allocation25_spill] sm:$0xff] %v6979_v49  ;;  %v2179_v5 = vsel %vm5994_vm3, %v9176_v53, %v6503_v21  ;;  %9179 = vst [vmem:[#allocation26_spill] sm:$0xff] %v6993_v11  ;;  %v2461_v0 = vshll.u32 %v6945_v7, 16  ;;  %4667 = vmatmul.mubr.bf16.gmra.mrb[20].mxu1 %v4045_v56  ;;  %v2559_v21 = vshll.u32 %v6962_v18, 16  ;;  %v7012_v29 = vpack.c.bf16 %v726_v10, %v726_v10 }
  0xf6   :  { %v6989_v9 = vmul.f32 %v6801_v62, %v9178_v48  ;;  %v2182_v57 = vsel %vm5994_vm3, %v9180_v1, %v6635_v40  ;;  %v7003_v45 = vmul.f32 %v6967_v22, %v9181_v63  ;;  %v2458_v62 = vshrl.u32 %v6945_v7, 16  ;;  %4670 = vmatprep.mubr.msk.bf16.mxu1 %vm5509_vm0, %v9032_v30 }
  0xf7   :  { %v7008_v12 = vcombine.low %v2179_v5, %v2182_v57  ;;  %v2556_v48 = vshrl.u32 %v6962_v18, 16  ;;  %9183 = vst [vmem:[#allocation60_spill] sm:$0xff] %v7012_v29  ;;  %v7022_v1 = vrot.slane %v8902_v43, 4  ;;  %v2448_v5 = vshrl.u32 %v6743_v61, 16 }
  0xf8   :  { %v7016_v41 = vpack.c.bf16 %v7003_v45, %v7003_v45  ;;  %v2451_v57 = vshll.u32 %v6743_v61, 16  ;;  %v2546_v10 = vshrl.u32 %v6969_v24, 16  ;;  %v2549_v63 = vshll.u32 %v6969_v24, 16 }
  0xf9   :  { %9182 = vst [vmem:[#allocation59_spill] sm:$0xff] %v7008_v12  ;;  %9185 = vst [vmem:[#allocation62_spill] sm:$0xff] %v7022_v1  ;;  %4875 = vmatmul.mubr.bf16.gmra.mrb[20].mxu0 %v7008_v12  ;;  %v3511_v6 = vrot.slane %v3509_v52, 4  ;;  %v9186_v43 = vrot.slane %v6962_v18, 6  ;;  %v2460_v56 = vrot.slane %v2458_v62, 6  ;;  %v2468_v47 = vshrl.u32 %v6979_v49, 16 }
  0xfa   :  { %9184 = vst [vmem:[#allocation61_spill] sm:$0xff] %v7016_v41  ;;  %v8918_v53 = vrot.slane %v7016_v41, 5  ;;  %4878 = vmatprep.mubr.msk.bf16.mxu0 %vm5509_vm0, %v9032_v30  ;;  %v2471_v58 = vshll.u32 %v6979_v49, 16  ;;  %v2463_v12 = vrot.slane %v2461_v0, 7  ;;  %v2566_v55 = vshrl.u32 %v7012_v29, 16 }
  0xfb   :  { %v7035_v11 = vrot.slane %v9186_v43, 4  ;;  %v2569_v33 = vshll.u32 %v7012_v29, 16  ;;  %v2558_v1 = vrot.slane %v2556_v48, 6  ;;  %v2561_v18 = vrot.slane %v2559_v21, 7 }
  0xfc   :  { %v7045_v52 = vsel %vm6233_vm6, %v3511_v6, %v8918_v53  ;;  %v2450_v43 = vrot.slane %v2448_v5, 6  ;;  %v2548_v62 = vrot.slane %v2546_v10, 6  ;;  %v2551_v7 = vrot.slane %v2549_v63, 7 }
  0xfd   :  { %9187 = vst [vmem:[#allocation63_spill] sm:$0xff] %v7035_v11  ;;  %9188 = vst [vmem:[#allocation64_spill] sm:$0xff] %v7045_v52  ;;  %v2453_v11 = vrot.slane %v2451_v57, 7  ;;  %v8920_v17 = vrot.slane %v6979_v49, 6  ;;  %v9189_v0 = vmax.f32 %v6326_v23, 0.0  ;;  %v8919_v51 = vrot.slane %v7012_v29, 6 }
  0xfe   :  { %v2470_v50 = vrot.slane %v2468_v47, 6  ;;  %v2473_v41 = vrot.slane %v2471_v58, 7  ;;  %v9191_v44 = vmax.f32 %v9190_v8, 0.0  ;;  %v9192_v48 = vrot.slane %v6743_v61, 6  ;;  %v9197_v8 = vld [vmem:[#allocation29_spill] sm:$0xff] }
  0xff   :  { %v683_v4 = vmul.f32 %v6847_v32, %v9189_v0  ;;  %v2568_v5 = vrot.slane %v2566_v55, 6  ;;  %v2571_v57 = vrot.slane %v2569_v33, 7  ;;  %v7061_v10 = vpack.c.bf16 %v6974_v35, %v6974_v35 }
 0x100   :  { %v727_v6 = vmul.f32 %v6847_v32, %v9191_v44  ;;  %v7057_v21 = vrot.slane %v9192_v48, 4  ;;  %v7063_v23 = vor.u32 %v2463_v12, %v2460_v56  ;;  %v7065_v63 = vor.u32 %v2561_v18, %v2558_v1  ;;  %v9201_v12 = vld [vmem:[#allocation30_spill] sm:$0xff] }
 0x101   :  { %9194 = vst [vmem:[#allocation65_spill] sm:$0xff] %v7061_v10  ;;  %v9195_v47 = vrot.slane %v6969_v24, 6  ;;  %v9198_v32 = vmax.f32 %v9197_v8, 0.0  ;;  %v7074_v44 = vor.u32 %v2453_v11, %v2450_v43  ;;  %v7078_v33 = vrot.slane %v8920_v17, 4  ;;  %v9218_v17 = vld [vmem:[#allocation32_spill] sm:$0xff] }
 0x102   :  { %9193 = vst [vmem:[#allocation28_spill] sm:$0xff] %v7057_v21  ;;  %v7080_v55 = vpack.c.bf16 %v683_v4, %v683_v4  ;;  %v9202_v56 = vmax.f32 %v9201_v12, 0.0  ;;  %v7085_v1 = vor.u32 %v2551_v7, %v2548_v62  ;;  %v7089_v0 = vrot.slane %v8919_v51, 4  ;;  %v9205_v4 = vld [vmem:[#allocation27_spill] sm:$0xff]  ;;  %v9223_v51 = vld [vmem:[#allocation34_spill] sm:$0xff] }
 0x103   :  { %v7069_v58 = vrot.slane %v9195_v47, 4  ;;  %v684_v61 = vmul.f32 %v6907_v37, %v9198_v32  ;;  %9199 = vst [vmem:[#allocation29_spill] sm:$0xff] %v7078_v33  ;;  %v7091_v48 = vor.u32 %v2473_v41, %v2470_v50  ;;  %v7093_v11 = vpack.c.bf16 %v727_v6, %v727_v6 }
 0x104   :  { %9200 = vst [vmem:[#allocation67_spill] sm:$0xff] %v7080_v55  ;;  %v728_v18 = vmul.f32 %v6907_v37, %v9202_v56  ;;  %9203 = vst [vmem:[#allocation30_spill] sm:$0xff] %v7089_v0  ;;  %v7095_v43 = vor.u32 %v2571_v57, %v2568_v5  ;;  %v9206_v8 = vmax.f32 %v9205_v4, 0.0  ;;  %v9208_v62 = vrot.slane %v6606_v46, 5  ;;  %v9212_v46 = vld [vmem:[#allocation35_spill] sm:$0xff] }
 0x105   :  { %9196 = vst [vmem:[#allocation66_spill] sm:$0xff] %v7069_v58  ;;  %9204 = vst [vmem:[#allocation68_spill] sm:$0xff] %v7093_v11  ;;  %v7103_v7 = vpack.c.bf16 %v684_v61, %v684_v61  ;;  %v9209_v41 = vrot.slane %v6679_v3, 5  ;;  %v2478_v57 = vshrl.u32 %v7080_v55, 16  ;;  %v378_v12 = vmax.f32 %v9212_v46, 0.0  ;;  %v9216_v46 = vld [vmem:[#allocation31_spill] sm:$0xff] }
 0x106   :  { %v701_v32 = vmul.f32 %v6878_v38, %v9206_v8  ;;  %v927_v50 = vsel %vm6233_vm6, %v6618_v15, %v9208_v62  ;;  %v9210_v38 = vrot.slane %v6635_v40, 4  ;;  %v7121_v61 = vpack.c.bf16 %v728_v18, %v728_v18 }
 0x107   :  { %9207 = vst [vmem:[#allocation27_spill] sm:$0xff] %v7103_v7  ;;  %v930_v6 = vsel %vm6233_vm6, %v6662_v60, %v9209_v41  ;;  %v2481_v15 = vshll.u32 %v7080_v55, 16  ;;  %v2576_v3 = vshrl.u32 %v7093_v11, 16  ;;  %v2579_v4 = vshll.u32 %v7093_v11, 16 }
 0x108   :  { %v2185_v5 = vsel %vm5994_vm3, %v9210_v38, %v6677_v16  ;;  %9211 = vst [vmem:[#allocation69_spill] sm:$0xff] %v7121_v61  ;;  %v4046_v56 = vcombine.low %v927_v50, %v930_v6  ;;  %v9213_v60 = vrot.slane %v6677_v16, 4  ;;  %v766_v8 = vpack.c.bf16 %v701_v32, %v6989_v9 }
 0x109   :  { %v7133_v62 = vpack.c.bf16 %v701_v32, %v701_v32  ;;  %v2488_v38 = vshrl.u32 %v7103_v7, 16  ;;  %v9217_v16 = vmax.f32 %v9216_v46, 0.0  ;;  %v2480_v41 = vrot.slane %v2478_v57, 6 }
 0x10a   :  { %v2188_v40 = vsel %vm5994_vm3, %v9213_v60, %v6738_v20  ;;  %4671 = vmatmul.mubr.bf16.gmra.mrb[24].mxu1 %v4046_v56  ;;  %v2491_v60 = vshll.u32 %v7103_v7, 16  ;;  %v2589_v56 = vshll.u32 %v7121_v61, 16  ;;  %v2483_v18 = vrot.slane %v2481_v15, 7  ;;  %v9221_v15 = vld [vmem:[#allocation33_spill] sm:$0xff] }
 0x10b   :  { %9214 = vst [vmem:[#allocation35_spill] sm:$0xff] %v7133_v62  ;;  %v7136_v50 = vcombine.low %v2185_v5, %v2188_v40  ;;  %v702_v47 = vmul.f32 %v6888_v25, %v9217_v16  ;;  %4674 = vmatprep.mubr.msk.bf16.mxu1 %vm5509_vm0, %v9032_v30  ;;  %v2586_v5 = vshrl.u32 %v7121_v61, 16  ;;  %v584_v40 = vpop.permute.xlu1 %583  ;;  %v2578_v53 = vrot.slane %v2576_v3, 6 }
 0x10c   :  { %v2581_v46 = vrot.slane %v2579_v4, 7  ;;  %v7153_v25 = vunpack.c.h.b16 %v766_v8  ;;  %v9219_v37 = vmax.f32 %v9218_v17, 0.0  ;;  %v9222_v3 = vmax.f32 %v9221_v15, 0.0  ;;  %v74_v8 = vld [vmem:[%s8831_s0 + $0x188] sm:$0xff] }
 0x10d   :  { %9215 = vst [vmem:[#allocation70_spill] sm:$0xff] %v7136_v50  ;;  %4879 = vmatmul.mubr.bf16.gmra.mrb[24].mxu0 %v7136_v50  ;;  %v2490_v50 = vrot.slane %v2488_v38, 6  ;;  %v7161_v57 = vpack.c.bf16 %v702_v47, %v702_v47  ;;  %v2493_v19 = vrot.slane %v2491_v60, 7  ;;  %v2588_v16 = vrot.slane %v2586_v5, 6 }
 0x10e   :  { %4882 = vmatprep.mubr.msk.bf16.mxu0 %vm5509_vm0, %v9032_v30  ;;  %v703_v32 = vmul.f32 %v6967_v22, %v9219_v37  ;;  %v685_v4 = vmul.f32 %v584_v40, %v9222_v3  ;;  %v2591_v10 = vrot.slane %v2589_v56, 7  ;;  %v9224_v62 = vmax.f32 %v9223_v51, 0.0  ;;  %v30_v56 = vld [vmem:[%s8831_s0 + $0x20] sm:$0xff] }
 0x10f   :  { %9220 = vst [vmem:[#allocation31_spill] sm:$0xff] %v7161_v57  ;;  %v9225_v22 = vrot.slane %v7080_v55, 6  ;;  %v9227_v38 = vrot.slane %v7093_v11, 6  ;;  %v7178_v15 = vor.u32 %v2483_v18, %v2480_v41  ;;  %v7180_v3 = vor.u32 %v2581_v46, %v2578_v53  ;;  %v7196_v18 = vld [vmem:[%s8830_s2] ss:$0 sm:$0xff] }
 0x110   :  { %v729_v17 = vmul.f32 %v584_v40, %v9224_v62  ;;  %v9229_v52 = vrot.slane %v7103_v7, 6  ;;  %v7186_v5 = vpack.c.bf16 %v703_v32, %v702_v47  ;;  %v7188_v51 = vpack.c.bf16 %v703_v32, %v703_v32  ;;  %v589_v62 = vpop.permute.xlu0 %588 }
 0x111   :  { %v7172_v37 = vrot.slane %v9225_v22, 4  ;;  %v7176_v6 = vrot.slane %v9227_v38, 4  ;;  %v169_v53 = vmul.f32 %v7196_v18, %v74_v8  ;;  %v9232_v41 = vrot.slane %v7121_v61, 6  ;;  %v57_v8 = vld [vmem:[%s8831_s0 + $0xf8] sm:$0xff]  ;;  %v7231_v38 = vld [vmem:[%s8832_s3] ss:$0 sm:$0xff] }
 0x112   :  { %v7184_v60 = vrot.slane %v9229_v52, 4  ;;  %9231 = vst [vmem:[#allocation71_spill] sm:$0xff] %v7188_v51  ;;  %v7205_v40 = vpack.c.bf16 %v685_v4, %v685_v4  ;;  %v7207_v46 = vor.u32 %v2493_v19, %v2490_v50  ;;  %v7209_v22 = vor.u32 %v2591_v10, %v2588_v16  ;;  %v75_v10 = vld [vmem:[%s8831_s0 + $0x190] sm:$0xff]  ;;  %v101_v16 = vld [vmem:[%s8831_s0 + $0x260] sm:$0xff] }
 0x113   :  { %9226 = vst [vmem:[#allocation32_spill] sm:$0xff] %v7172_v37  ;;  %9228 = vst [vmem:[#allocation33_spill] sm:$0xff] %v7176_v6  ;;  %v7201_v52 = vrot.slane %v9232_v41, 4  ;;  %v7212_v6 = vpack.c.bf16 %v729_v17, %v729_v17  ;;  %v9236_v47 = vmax.f32 %v6438_v13, 0.0  ;;  %v730_v4 = vmul.f32 %v589_v62, %v378_v12  ;;  %v31_v12 = vld [vmem:[%s8831_s0 + $0x28] sm:$0xff] }
 0x114   :  { %9230 = vst [vmem:[#allocation34_spill] sm:$0xff] %v7184_v60  ;;  %9234 = vst [vmem:[#allocation73_spill] sm:$0xff] %v7205_v40  ;;  %v125_v19 = vmul.f32 %v7196_v18, %v30_v56  ;;  %v1469_v17 = vshll.u32 %v7188_v51, 16  ;;  %v264_v13 = vadd.f32 %v7231_v38, %v169_v53  ;;  %v152_v50 = vmul.f32 %v7196_v18, %v57_v8  ;;  %v459_v8 = vpop.permute.xlu1 %458 }
 0x115   :  { %9233 = vst [vmem:[#allocation72_spill] sm:$0xff] %v7201_v52  ;;  %9235 = vst [vmem:[#allocation74_spill] sm:$0xff] %v7212_v6  ;;  %v686_v32 = vmul.f32 %v589_v62, %v9236_v47  ;;  %v1473_v62 = vshrl.u32 %v7188_v51, 16  ;;  %v2498_v53 = vshrl.u32 %v7205_v40, 16  ;;  %v2501_v14 = vshll.u32 %v7205_v40, 16 }
 0x116   :  { %v170_v57 = vmul.f32 %v7196_v18, %v75_v10  ;;  %v2596_v52 = vshrl.u32 %v7212_v6, 16  ;;  %v2599_v56 = vshll.u32 %v7212_v6, 16  ;;  %v220_v47 = vadd.f32 %v7231_v38, %v125_v19 }
 0x117   :  { %v126_v51 = vmul.f32 %v7196_v18, %v31_v12  ;;  %v7252_v61 = vpack.c.bf16 %v686_v32, %v686_v32  ;;  %v7254_v0 = vpack.c.bf16 %v730_v4, %v730_v4  ;;  %v352_v41 = vmax.f32 %v264_v13, 0.0 }
 0x118   :  { %v196_v11 = vmul.f32 %v7196_v18, %v101_v16  ;;  %v7257_v29 = vrot.slane %v1469_v17, 5  ;;  %v7259_v58 = vrot.slane %v1473_v62, 4  ;;  %v9240_v10 = vrot.slane %v7205_v40, 6 }
 0x119   :  { %9237 = vst [vmem:[#allocation75_spill] sm:$0xff] %v7252_v61  ;;  %9238 = vst [vmem:[#allocation76_spill] sm:$0xff] %v7254_v0  ;;  %v247_v19 = vadd.f32 %v7231_v38, %v152_v50  ;;  %v9242_v12 = vrot.slane %v7212_v6, 6  ;;  %v2500_v4 = vrot.slane %v2498_v53, 6  ;;  %v2503_v60 = vrot.slane %v2501_v14, 7  ;;  %v76_v14 = vld [vmem:[%s8831_s0 + $0x198] sm:$0xff] }
 0x11a   :  { %9239 = vst [vmem:[#allocation77_spill] sm:$0xff] %v7257_v29  ;;  %v7263_v24 = vrot.slane %v9240_v10, 4  ;;  %v265_v13 = vadd.f32 %v7231_v38, %v170_v57  ;;  %v2598_v37 = vrot.slane %v2596_v52, 6  ;;  %v2601_v16 = vrot.slane %v2599_v56, 7  ;;  %v32_v10 = vld [vmem:[%s8831_s0 + $0x30] sm:$0xff]  ;;  %v9245_v52 = vld [vmem:[#allocation19_spill] sm:$0xff] }
 0x11b   :  { %v7268_v32 = vrot.slane %v9242_v12, 4  ;;  %v308_v17 = vmax.f32 %v220_v47, 0.0  ;;  %v221_v62 = vadd.f32 %v7231_v38, %v126_v51  ;;  %v704_v6 = vmul.f32 %v459_v8, %v352_v41  ;;  %v9247_v47 = vld [vmem:[#allocation9_spill] sm:$0xff] }
 0x11c   :  { %9241 = vst [vmem:[#allocation78_spill] sm:$0xff] %v7263_v24  ;;  %v291_v12 = vadd.f32 %v7231_v38, %v196_v11  ;;  %v335_v53 = vmax.f32 %v247_v19, 0.0  ;;  %v9244_v57 = vrot.slane %v6722_v26, 5  ;;  %v9246_v56 = vrot.slane %v6754_v39, 5  ;;  %v9248_v41 = vld [vmem:[#allocation13_spill] sm:$0xff]  ;;  %v594_v26 = vpop.permute.xlu1 %593 }
 0x11d   :  { %9243 = vst [vmem:[#allocation79_spill] sm:$0xff] %v7268_v32  ;;  %v9249_v11 = vrot.slane %v6738_v20, 4  ;;  %v2508_v24 = vshrl.u32 %v7252_v61, 16  ;;  %v353_v32 = vmax.f32 %v265_v13, 0.0  ;;  %v127_v40 = vmul.f32 %v7196_v18, %v32_v10 }
 0x11e   :  { %v933_v51 = vsel %vm6233_vm6, %v9245_v52, %v9244_v57  ;;  %v936_v50 = vsel %vm6233_vm6, %v9247_v47, %v9246_v56  ;;  %v2511_v57 = vshll.u32 %v7252_v61, 16  ;;  %v7299_v39 = vmul.f32 %v459_v8, %v308_v17  ;;  %v464_v52 = vpop.permute.xlu0 %463 }
 0x11f   :  { %v2191_v19 = vsel %vm5994_vm3, %v9249_v11, %v9248_v41  ;;  %v4047_v7 = vcombine.low %v933_v51, %v936_v50  ;;  %v309_v33 = vmax.f32 %v221_v62, 0.0  ;;  %v9250_v56 = vrot.slane %v9248_v41, 4 }
 0x120   :  { %v7306_v47 = vor.u32 %v2503_v60, %v2500_v4  ;;  %v2606_v13 = vshrl.u32 %v7254_v0, 16  ;;  %v379_v11 = vmax.f32 %v291_v12, 0.0  ;;  %v171_v10 = vmul.f32 %v7196_v18, %v76_v14 }
 0x121   :  { %v2194_v20 = vsel %vm5994_vm3, %v9250_v56, %v6803_v31  ;;  %4675 = vmatmul.mubr.bf16.gmra.mrb[28].mxu1 %v4047_v7  ;;  %v2609_v50 = vshll.u32 %v7254_v0, 16  ;;  %v7311_v8 = vpack.c.bf16 %v704_v6, %v704_v6  ;;  %v687_v17 = vmul.f32 %v594_v26, %v335_v53  ;;  %v77_v7 = vld [vmem:[%s8831_s0 + $0x1a0] sm:$0xff] }
 0x122   :  { %v7313_v62 = vcombine.low %v2191_v19, %v2194_v20  ;;  %4678 = vmatprep.mubr.msk.bf16.mxu1 %vm5509_vm0, %v9032_v30  ;;  %v7317_v51 = vor.u32 %v2601_v16, %v2598_v37  ;;  %v9254_v60 = vrot.slane %v7252_v61, 6  ;;  %v705_v12 = vmul.f32 %v464_v52, %v353_v32 }
 0x123   :  { %9251 = vst [vmem:[#allocation19_spill] sm:$0xff] %v7311_v8  ;;  %v222_v14 = vadd.f32 %v7231_v38, %v127_v40  ;;  %v2510_v41 = vrot.slane %v2508_v24, 6  ;;  %v2513_v53 = vrot.slane %v2511_v57, 7  ;;  %v7329_v19 = vpack.c.bf16 %v7299_v39, %v7299_v39 }
 0x124   :  { %9252 = vst [vmem:[#allocation9_spill] sm:$0xff] %v7313_v62  ;;  %9253 = vst [vmem:[#allocation13_spill] sm:$0xff] %v7317_v51  ;;  %v7321_v4 = vrot.slane %v9254_v60, 4  ;;  %v7331_v56 = vmul.f32 %v464_v52, %v309_v33  ;;  %4883 = vmatmul.mubr.bf16.gmra.mrb[28].mxu0 %v7313_v62  ;;  %v9257_v37 = vrot.slane %v7254_v0, 6  ;;  %v7338_v32 = vrot.slane %v2606_v13, 6  ;;  %v33_v52 = vld [vmem:[%s8831_s0 + $0x38] sm:$0xff]  ;;  %v474_v0 = vpop.permute.xlu1 %473 }
 0x125   :  { %9256 = vst [vmem:[#allocation81_spill] sm:$0xff] %v7329_v19  ;;  %v731_v40 = vmul.f32 %v594_v26, %v379_v11  ;;  %v266_v20 = vadd.f32 %v7231_v38, %v171_v10  ;;  %4886 = vmatprep.mubr.msk.bf16.mxu0 %vm5509_vm0, %v9032_v30  ;;  %v7343_v24 = vrot.slane %v2609_v50, 7  ;;  %v1479_v57 = vshll.u32 %v7311_v8, 16  ;;  %v78_v50 = vld [vmem:[%s8831_s0 + $0x1a8] sm:$0xff] }
 0x126   :  { %9255 = vst [vmem:[#allocation80_spill] sm:$0xff] %v7321_v4  ;;  %v7336_v16 = vrot.slane %v9257_v37, 4  ;;  %9259 = vst [vmem:[#allocation83_spill] sm:$0xff] %v7338_v32  ;;  %v7346_v33 = vpack.c.bf16 %v687_v17, %v687_v17  ;;  %v172_v60 = vmul.f32 %v7196_v18, %v77_v7  ;;  %v1483_v13 = vshrl.u32 %v7311_v8, 16  ;;  %v47_v8 = vld [vmem:[%s8831_s0 + $0xa8] sm:$0xff] }
 0x127   :  { %9260 = vst [vmem:[#allocation84_spill] sm:$0xff] %v7343_v24  ;;  %v7353_v26 = vpack.c.bf16 %v705_v12, %v704_v6  ;;  %v7355_v11 = vpack.c.bf16 %v705_v12, %v705_v12  ;;  %v310_v10 = vmax.f32 %v222_v14, 0.0  ;;  %v7357_v37 = vor.u32 %v2513_v53, %v2510_v41  ;;  %v469_v24 = vpop.permute.xlu0 %468 }
 0x128   :  { %9258 = vst [vmem:[#allocation82_spill] sm:$0xff] %v7336_v16  ;;  %9261 = vst [vmem:[#allocation85_spill] sm:$0xff] %v7346_v33  ;;  %v7363_v62 = vpack.c.bf16 %v7331_v56, %v7331_v56  ;;  %v7367_v32 = vpack.c.bf16 %v731_v40, %v731_v40  ;;  %v354_v6 = vmax.f32 %v266_v20, 0.0  ;;  %v128_v12 = vmul.f32 %v7196_v18, %v33_v52 }
 0x129   :  { %9262 = vst [vmem:[#allocation86_spill] sm:$0xff] %v7355_v11  ;;  %v7370_v14 = vrot.slane %v1479_v57, 5  ;;  %v2518_v41 = vshrl.u32 %v7346_v33, 16  ;;  %v2521_v53 = vshll.u32 %v7346_v33, 16  ;;  %v267_v17 = vadd.f32 %v7231_v38, %v172_v60  ;;  %v34_v57 = vld [vmem:[%s8831_s0 + $0x40] sm:$0xff] }
 0x12a   :  { %9263 = vst [vmem:[#allocation87_spill] sm:$0xff] %v7363_v62  ;;  %9264 = vst [vmem:[#allocation88_spill] sm:$0xff] %v7367_v32  ;;  %v7378_v51 = vrot.slane %v1483_v13, 4  ;;  %v1489_v20 = vshll.u32 %v7355_v11, 16  ;;  %v7382_v7 = vmul.f32 %v469_v24, %v310_v10  ;;  %v1493_v52 = vshrl.u32 %v7355_v11, 16  ;;  %v35_v13 = vld [vmem:[%s8831_s0 + $0x48] sm:$0xff] }
 0x12b   :  { %v79_v10 = vld [vmem:[%s8831_s0 + $0x1b0] sm:$0xff]  ;;  %v2616_v40 = vshrl.u32 %v7367_v32, 16  ;;  %v7398_v16 = vmul.f32 %v469_v24, %v354_v6  ;;  %v223_v4 = vadd.f32 %v7231_v38, %v128_v12  ;;  %v173_v60 = vmul.f32 %v7196_v18, %v78_v50 }
 0x12c   :  { %9265 = vst [vmem:[#allocation89_spill] sm:$0xff] %v7378_v51  ;;  %v7405_v19 = vrot.slane %v2518_v41, 6  ;;  %v7407_v11 = vrot.slane %v2521_v53, 7  ;;  %v2619_v62 = vshll.u32 %v7367_v32, 16  ;;  %v355_v33 = vmax.f32 %v267_v17, 0.0  ;;  %v91_v24 = vld [vmem:[%s8831_s0 + $0x210] sm:$0xff] }
 0x12d   :  { %v7413_v6 = vrot.slane %v1489_v20, 5  ;;  %v129_v12 = vmul.f32 %v7196_v18, %v34_v57  ;;  %v130_v50 = vmul.f32 %v7196_v18, %v35_v13  ;;  %v174_v61 = vmul.f32 %v7196_v18, %v79_v10 }
 0x12e   :  { %v7418_v55 = vrot.slane %v1493_v52, 4  ;;  %v7423_v53 = vpack.c.bf16 %v7382_v7, %v7382_v7  ;;  %v142_v17 = vmul.f32 %v7196_v18, %v47_v8  ;;  %v7428_v20 = vpack.c.bf16 %v7398_v16, %v7398_v16  ;;  %v484_v8 = vpop.permute.xlu1 %483 }
 0x12f   :  { %9266 = vst [vmem:[#allocation90_spill] sm:$0xff] %v7413_v6  ;;  %v311_v49 = vmax.f32 %v223_v4, 0.0  ;;  %v268_v57 = vadd.f32 %v7231_v38, %v173_v60  ;;  %v186_v13 = vmul.f32 %v7196_v18, %v91_v24  ;;  %v7434_v10 = vrot.slane %v2616_v40, 6  ;;  %v36_v4 = vld [vmem:[%s8831_s0 + $0x50] sm:$0xff]  ;;  %v80_v60 = vld [vmem:[%s8831_s0 + $0x1b8] sm:$0xff] }
 0x130   :  { %9267 = vst [vmem:[#allocation91_spill] sm:$0xff] %v7418_v55  ;;  %v7436_v41 = vrot.slane %v2619_v62, 7  ;;  %v707_v32 = vmul.f32 %v474_v0, %v355_v33  ;;  %v224_v21 = vadd.f32 %v7231_v38, %v129_v12  ;;  %v225_v55 = vadd.f32 %v7231_v38, %v130_v50  ;;  %v9272_v12 = vld [vmem:[#allocation47_spill] sm:$0xff]  ;;  %v9273_v50 = vld [vmem:[#allocation5_spill] sm:$0xff] }
 0x131   :  { %9268 = vst [vmem:[#allocation92_spill] sm:$0xff] %v7434_v10  ;;  %v269_v6 = vadd.f32 %v7231_v38, %v174_v61  ;;  %v9270_v40 = vrot.slane %v6788_v59, 5  ;;  %v237_v33 = vadd.f32 %v7231_v38, %v142_v17  ;;  %v9271_v24 = vrot.slane %v6851_v27, 5 }
 0x132   :  { %9269 = vst [vmem:[#allocation93_spill] sm:$0xff] %v7436_v41  ;;  %v9274_v52 = vrot.slane %v6803_v31, 4  ;;  %v9275_v59 = vrot.slane %v9273_v50, 4  ;;  %v1499_v17 = vshll.u32 %v7428_v20, 16  ;;  %v356_v27 = vmax.f32 %v268_v57, 0.0 }
 0x133   :  { %v939_v62 = vsel %vm6233_vm6, %v6842_v34, %v9270_v40  ;;  %v942_v61 = vsel %vm6233_vm6, %v9272_v12, %v9271_v24  ;;  %v7469_v40 = vmul.f32 %v474_v0, %v311_v49  ;;  %v281_v10 = vadd.f32 %v7231_v38, %v186_v13  ;;  %v544_v13 = vpop.permute.xlu1 %543 }
 0x134   :  { %v2197_v41 = vsel %vm5994_vm3, %v9274_v52, %v9273_v50  ;;  %v2200_v34 = vsel %vm5994_vm3, %v9275_v59, %v6928_v36  ;;  %v131_v24 = vmul.f32 %v7196_v18, %v36_v4  ;;  %v175_v31 = vmul.f32 %v7196_v18, %v80_v60  ;;  %v479_v52 = vpop.permute.xlu0 %478  ;;  %vm7806_vm3 = vmor %vm3084_vm15, %vm3085_vm1 }
 0x135   :  { %v4048_v12 = vcombine.low %v939_v62, %v942_v61  ;;  %v7474_v54 = vcombine.low %v2197_v41, %v2200_v34  ;;  %v313_v51 = vmax.f32 %v225_v55, 0.0  ;;  %v357_v50 = vmax.f32 %v269_v6, 0.0 }
 0x136   :  { %v1503_v42 = vshrl.u32 %v7428_v20, 16  ;;  %v7477_v36 = vpack.c.bf16 %v707_v32, %v707_v32  ;;  %v312_v49 = vmax.f32 %v224_v21, 0.0  ;;  %v325_v0 = vmax.f32 %v237_v33, 0.0 }
 0x137   :  { %9276 = vst [vmem:[#allocation47_spill] sm:$0xff] %v7474_v54  ;;  %4679 = vmatmul.mubr.bf16.gmra.mrb[32].mxu1 %v4048_v12  ;;  %4887 = vmatmul.mubr.bf16.gmra.mrb[32].mxu0 %v7474_v54  ;;  %v7480_v57 = vrot.slane %v1499_v17, 5  ;;  %v369_v55 = vmax.f32 %v281_v10, 0.0  ;;  %v7489_v21 = vpack.c.bf16 %v707_v32, %v7398_v16  ;;  %v7493_v6 = vpack.c.bf16 %v7469_v40, %v7469_v40  ;;  %v9282_v32 = vld [vmem:[#allocation17_spill] sm:$0xff] }
 0x138   :  { %4698 = vmatprep.mubr.msk.bf16.mxu1 %vm5509_vm0, %v9032_v30  ;;  %4906 = vmatprep.mubr.msk.bf16.mxu0 %vm5509_vm0, %v9032_v30  ;;  %v7495_v4 = vmul.f32 %v479_v52, %v356_v27  ;;  %v270_v60 = vadd.f32 %v7231_v38, %v175_v31  ;;  %v665_v62 = vmul.f32 %v484_v8, %v313_v51  ;;  %v9283_v61 = vrot.slane %v9282_v32, 4 }
 0x139   :  { %9277 = vst [vmem:[#allocation5_spill] sm:$0xff] %v7489_v21  ;;  %v7504_v33 = vmul.f32 %v484_v8, %v357_v50  ;;  %v226_v16 = vadd.f32 %v7231_v38, %v131_v24  ;;  %v7512_v34 = vrot.slane %v1503_v42, 4  ;;  %v1509_v17 = vshll.u32 %v7477_v36, 16  ;;  %v9284_v38 = vld [vmem:[#allocation57_spill] sm:$0xff]  ;;  %v5457_v50 = vld [vmem:[%s8829_s4 + $0x180] sm:$0xff]   ;;  %v5459_v42 = vld [vmem:[%s8829_s4 + $0x188] sm:$0xff]  }
 0x13a   :  { %9278 = vst [vmem:[#allocation94_spill] sm:$0xff] %v7495_v4  ;;  %v2455_v59 = vsel %vm7500_vm12, %v9283_v61, %v7074_v44  ;;  %v7515_v27 = vmul.f32 %v479_v52, %v312_v49  ;;  %v677_v31 = vmul.f32 %v544_v13, %v325_v0  ;;  %v1513_v8 = vshrl.u32 %v7477_v36, 16  ;;  %v5458_v52 = vld [vmem:[%s8829_s4 + $0x80] sm:$0xff]  }
 0x13b   :  { %9281 = vst [vmem:[#allocation95_spill] sm:$0xff] %v7504_v33  ;;  %v721_v12 = vmul.f32 %v544_v13, %v369_v55  ;;  %v2445_v24 = vsel %vm7500_vm12, %v9284_v38, %v9282_v32  ;;  %v7533_v49 = vpack.c.bf16 %v7495_v4, %v7495_v4  ;;  %v358_v0 = vmax.f32 %v270_v60, 0.0  ;;  %v489_v38 = vpop.permute.xlu0 %488 }
 0x13c   :  { %v4245_v13 = vcombine.low %v2445_v24, %v2455_v59  ;;  %v7536_v61 = vpack.c.bf16 %v665_v62, %v665_v62  ;;  %v7540_v32 = vpack.c.bf16 %v7504_v33, %v7504_v33  ;;  %v314_v41 = vmax.f32 %v226_v16, 0.0 }
 0x13d   :  { %v7542_v18 = vrot.slane %v1509_v17, 5  ;;  %v7547_v51 = vpack.c.bf16 %v7515_v27, %v7515_v27  ;;  %v4458_v60 = vpack.c.bf16 %v677_v31, %v677_v31  ;;  %v9285_v59 = vpack.c.bf16 %v6896_v28, %v6974_v35  ;;  %v5460_v31 = vld [vmem:[%s8829_s4 + $0x88] sm:$0xff]  }
 0x13e   :  { %v7552_v62 = vrot.slane %v1513_v8, 4  ;;  %v4459_v24 = vpack.c.bf16 %v721_v12, %v721_v12  ;;  %v2456_v16 = vrot.slane %v7074_v44, 4  ;;  %v2466_v17 = vrot.slane %v7063_v23, 4 }
 0x13f   :  { %4699 = vmatmul.mubr.bf16.vlgmr.msra.gmra.mrb[0].mxu1 %v9285_v59  ;;  %4907 = vmatmul.mubr.bf16.vlgmr.msra.gmra.mrb[0].mxu0 %v4245_v13  ;;  %v1519_v35 = vshll.u32 %v7533_v49, 16  ;;  %v1523_v8 = vshrl.u32 %v7533_v49, 16  ;;  %v710_v12 = vmul.f32 %v489_v38, %v358_v0  ;;  %v1529_v44 = vshll.u32 %v7540_v32, 16 }
 0x140   :  { %4943 = vmatpush3.bf16.msra.mxu0 %v5457_v50  ;;  %4735 = vmatpush3.bf16.msra.mxu1 %v5458_v52  ;;  %v666_v52 = vmul.f32 %v489_v38, %v314_v41  ;;  %v2475_v13 = vsel %vm7500_vm12, %v2466_v17, %v7091_v48  ;;  %v2862_v59 = vshrl.u32 %v7540_v32, 16  ;;  %v3177_v55 = vshrl.u32 %v4458_v60, 16 }
 0x141   :  { %4702 = vmatprep.mubr.msk.bf16.mxu1 %vm5509_vm0, %v9032_v30  ;;  %4910 = vmatprep.mubr.msk.bf16.mxu0 %vm5509_vm0, %v9032_v30  ;;  %v3180_v28 = vshll.u32 %v4458_v60, 16  ;;  %v3275_v21 = vshrl.u32 %v4459_v24, 16  ;;  %v3278_v33 = vshll.u32 %v4459_v24, 16  ;;  %v2465_v41 = vsel %vm7500_vm12, %v2456_v16, %v7063_v23  ;;  %v5461_v60 = vld [vmem:[%s8829_s4 + $0x190] sm:$0xff]  }
 0x142   :  { %4944 = vmatprep.subr.bf16.mxu0 %v9032_v30  ;;  %4736 = vmatprep.subr.bf16.mxu1 %v9032_v30  ;;  %v7583_v38 = vrot.slane %v1519_v35, 5  ;;  %v7585_v17 = vrot.slane %v1523_v8, 4  ;;  %v7587_v50 = vpack.c.bf16 %v710_v12, %v710_v12  ;;  %v4246_v0 = vcombine.low %v2465_v41, %v2475_v13  ;;  %v5462_v23 = vld [vmem:[%s8829_s4 + $0x90] sm:$0xff]  }
 0x143   :  { %v9286_v24 = vrot.slane %v7536_v61, 5  ;;  %v7604_v35 = vpack.c.bf16 %v666_v52, %v666_v52  ;;  %v7606_v8 = vrot.slane %v2862_v59, 4  ;;  %v7608_v12 = vrot.slane %v3177_v55, 5  ;;  %v9288_v52 = vld [vmem:[#allocation52_spill] sm:$0xff] }
 0x144   :  { %4945 = vmatpush3.bf16.msra.mxu0 %v5459_v42  ;;  %4737 = vmatpush3.bf16.msra.mxu1 %v5460_v31  ;;  %v7597_v42 = vrot.slane %v1529_v44, 5  ;;  %v7610_v13 = vrot.slane %v3180_v28, 6  ;;  %v9287_v41 = vpack.c.bf16 %v7003_v45, %v6901_v2  ;;  %v2476_v44 = vrot.slane %v7091_v48, 4  ;;  %v5463_v48 = vld [vmem:[%s8829_s4 + $0x198] sm:$0xff]  }
 0x145   :  { %4946 = vmatprep.subr.bf16.mxu0 %v9032_v30  ;;  %4738 = vmatprep.subr.bf16.mxu1 %v9032_v30  ;;  %v7601_v16 = vrot.slane %v9286_v24, 4  ;;  %v7616_v54 = vrot.slane %v3275_v21, 5  ;;  %v7618_v24 = vrot.slane %v3278_v33, 6  ;;  %v2486_v55 = vrot.slane %v7178_v15, 4  ;;  %v5464_v21 = vld [vmem:[%s8829_s4 + $0x98] sm:$0xff]  }
 0x146   :  { %v2554_v28 = vrot.slane %v7085_v1, 4  ;;  %v2868_v2 = vshll.u32 %v7587_v50, 16  ;;  %v2506_v45 = vrot.slane %v7306_v47, 4  ;;  %v2516_v33 = vrot.slane %v7357_v37, 4 }
 0x147   :  { %4703 = vmatmul.mubr.bf16.gmra.mrb[4].mxu1 %v9287_v41  ;;  %4911 = vmatmul.mubr.bf16.gmra.mrb[4].mxu0 %v4246_v0  ;;  %v9289_v0 = vld [vmem:[#allocation51_spill] sm:$0xff]  ;;  %v2495_v4 = vsel %vm7500_vm12, %v2486_v55, %v7207_v46 }
 0x148   :  { %4706 = vmatprep.mubr.msk.bf16.mxu1 %vm5509_vm0, %v9032_v30  ;;  %4914 = vmatprep.mubr.msk.bf16.mxu0 %vm5509_vm0, %v9032_v30  ;;  %v9290_v59 = vor.u32 %v9288_v52, %v9289_v0  ;;  %v2496_v0 = vrot.slane %v7207_v46, 4  ;;  %v9293_v46 = vld [vmem:[#allocation56_spill] sm:$0xff] }
 0x149   :  { %4947 = vmatpush3.bf16.msra.mxu0 %v5461_v60  ;;  %4739 = vmatpush3.bf16.msra.mxu1 %v5462_v23  ;;  %v2485_v23 = vsel %vm7500_vm12, %v2476_v44, %v7178_v15  ;;  %v9291_v15 = vor.u32 %v7407_v11, %v7405_v19  ;;  %v9292_v60 = vunpack.c.l.b16 %v7186_v5  ;;  %v2544_v52 = vrot.slane %v9293_v46, 4 }
 0x14a   :  { %v2534_v41 = vrot.slane %v9290_v59, 4  ;;  %4948 = vmatprep.subr.bf16.mxu0 %v9032_v30  ;;  %4740 = vmatprep.subr.bf16.mxu1 %v9032_v30  ;;  %v7654_v59 = vsel %vm7500_vm12, %v2506_v45, %v7357_v37  ;;  %v7672_v37 = vsel %vm7500_vm12, %v2554_v28, %v7065_v63  ;;  %v7674_v45 = vrot.slane %v2868_v2, 5  ;;  %v5466_v28 = vld [vmem:[%s8829_s4 + $0xa0] sm:$0xff]  }
 0x14b   :  { %v2525_v44 = vsel %vm7500_vm12, %v2516_v33, %v9291_v15  ;;  %v7666_v31 = vpack.c.b16 %v9292_v60, %v7153_v25  ;;  %v4247_v19 = vcombine.low %v2485_v23, %v2495_v4  ;;  %v7679_v11 = vsel %vm7500_vm12, %v2496_v0, %v7306_v47  ;;  %v5465_v33 = vld [vmem:[%s8829_s4 + $0x1a0] sm:$0xff]   ;;  %v5467_v60 = vld [vmem:[%s8829_s4 + $0x1a8] sm:$0xff]  }
 0x14c   :  { %v2543_v25 = vsel %vm7500_vm12, %v2534_v41, %v9293_v46  ;;  %v4248_v4 = vcombine.low %v7679_v11, %v7654_v59  ;;  %v7699_v47 = vsel %vm7500_vm12, %v2544_v52, %v7085_v1  ;;  %v9295_v23 = vunpack.c.h.b16 %v7186_v5  ;;  %v9322_v41 = vld [vmem:[#allocation39_spill] sm:$0xff] }
 0x14d   :  { %4949 = vmatpush3.bf16.msra.mxu0 %v5463_v48  ;;  %4741 = vmatpush3.bf16.msra.mxu1 %v5464_v21  ;;  %v7692_v2 = vcombine.low %v2525_v44, %v2543_v25  ;;  %v2564_v48 = vrot.slane %v7065_v63, 4  ;;  %v9294_v21 = vpack.c.bf16 %v7331_v56, %v7299_v39  ;;  %v9296_v0 = vunpack.c.l.b16 %v7353_v26  ;;  %v5468_v39 = vld [vmem:[%s8829_s4 + $0xa8] sm:$0xff]   ;;  %v9297_v44 = vld [vmem:[#allocation89_spill] sm:$0xff] }
 0x14e   :  { %4950 = vmatprep.subr.bf16.mxu0 %v9032_v30  ;;  %4742 = vmatprep.subr.bf16.mxu1 %v9032_v30  ;;  %v2574_v63 = vrot.slane %v7095_v43, 4  ;;  %v1476_v15 = vor.u32 %v7259_v58, %v7257_v29  ;;  %v1486_v46 = vor.u32 %v9297_v44, %v7370_v14  ;;  %v1506_v25 = vor.u32 %v7512_v34, %v7480_v57  ;;  %v5469_v58 = vld [vmem:[%s8829_s4 + $0x1b0] sm:$0xff]   ;;  %v9333_v29 = vld [vmem:[#allocation62_spill] sm:$0xff] }
 0x14f   :  { %4707 = vmatmul.mubr.bf16.gmra.mrb[8].mxu1 %v9294_v21  ;;  %4915 = vmatmul.mubr.bf16.gmra.mrb[8].mxu0 %v4247_v19  ;;  %v7714_v1 = vpack.c.b16 %v9296_v0, %v9295_v23  ;;  %v7728_v5 = vsel %vm7500_vm12, %v2564_v48, %v7095_v43  ;;  %v9298_v43 = vld [vmem:[#allocation90_spill] sm:$0xff]  ;;  %v9299_v19 = vld [vmem:[#allocation91_spill] sm:$0xff]  ;;  %v1526_v23 = vor.u32 %v7585_v17, %v7583_v38 }
 0x150   :  { %4710 = vmatprep.mubr.msk.bf16.mxu1 %vm5509_vm0, %v9032_v30  ;;  %4918 = vmatprep.mubr.msk.bf16.mxu0 %vm5509_vm0, %v9032_v30  ;;  %v7734_v59 = vsel %vm7500_vm12, %v2574_v63, %v7180_v3  ;;  %v1496_v11 = vor.u32 %v9299_v19, %v9298_v43  ;;  %v1477_v48 = vrot.slane %v1476_v15, 4  ;;  %v1487_v21 = vrot.slane %v1486_v46, 4  ;;  %v9302_v19 = vld [vmem:[#allocation43_spill] sm:$0xff] }
 0x151   :  { %4951 = vmatpush3.bf16.msra.mxu0 %v5465_v33  ;;  %4743 = vmatpush3.bf16.msra.mxu1 %v5466_v28  ;;  %v1516_v33 = vor.u32 %v7552_v62, %v7542_v18  ;;  %v5470_v28 = vld [vmem:[%s8829_s4 + $0xb0] sm:$0xff]   ;;  %v2865_v34 = vor.u32 %v7606_v8, %v7597_v42  ;;  %v1507_v63 = vrot.slane %v1506_v25, 4  ;;  %v3115_v52 = vrot.slane %v9302_v19, 4  ;;  %v9305_v46 = vld [vmem:[#allocation3_spill] sm:$0xff] }
 0x152   :  { %4952 = vmatprep.subr.bf16.mxu0 %v9032_v30  ;;  %4744 = vmatprep.subr.bf16.mxu1 %v9032_v30  ;;  %v1497_v0 = vrot.slane %v1496_v11, 4  ;;  %v7768_v17 = vsel %vm7760_vm2, %v1477_v48, %v7370_v14  ;;  %v7773_v8 = vsel %vm7760_vm2, %v1487_v21, %v9298_v43  ;;  %v1527_v15 = vrot.slane %v1526_v23, 4  ;;  %v9319_v11 = vld [vmem:[#allocation53_spill] sm:$0xff] }
 0x153   :  { %v1517_v44 = vrot.slane %v1516_v33, 4  ;;  %9303 = vst [vmem:[#allocation17_spill] sm:$0xff] %v7768_v17  ;;  %9304 = vst [vmem:[#allocation57_spill] sm:$0xff] %v7773_v8  ;;  %v3125_v56 = vrot.slane %v9305_v46, 4  ;;  %v2866_v14 = vrot.slane %v2865_v34, 4  ;;  %v9307_v43 = vpack.c.bf16 %v7469_v40, %v7382_v7  ;;  %v5471_v33 = vld [vmem:[%s8829_s4 + $0x1b8] sm:$0xff]  }
 0x154   :  { %v7792_v48 = vsel %vm7760_vm2, %v1497_v0, %v7480_v57  ;;  %v7797_v21 = vsel %vm7760_vm2, %v1507_v63, %v7542_v18  ;;  %v7820_v18 = vsel %vm7760_vm2, %v1527_v15, %v7597_v42  ;;  %v9316_v0 = vld [vmem:[#allocation49_spill] sm:$0xff]  ;;  %v3175_v55 = vrot.slane %v9319_v11, 4  ;;  %v9324_v15 = vld [vmem:[#allocation38_spill] sm:$0xff]  ;;  %v9327_v8 = vld [vmem:[#allocation55_spill] sm:$0xff] }
 0x155   :  { %4953 = vmatpush3.bf16.msra.mxu0 %v5467_v60  ;;  %4745 = vmatpush3.bf16.msra.mxu1 %v5468_v39  ;;  %v9306_v39 = vld [vmem:[#allocation11_spill] sm:$0xff]  ;;  %9308 = vst [vmem:[#allocation52_spill] sm:$0xff] %v7792_v48  ;;  %9309 = vst [vmem:[#allocation51_spill] sm:$0xff] %v7797_v21  ;;  %v7802_v7 = vsel %vm7760_vm2, %v1517_v44, %v7583_v38  ;;  %v3165_v63 = vrot.slane %v9316_v0, 4  ;;  %v5472_v44 = vld [vmem:[%s8829_s4 + $0xb8] sm:$0xff]   ;;  %v2871_v57 = vsel %vm7760_vm2, %v2866_v14, %v7674_v45 }
 0x156   :  { %4954 = vmatprep.subr.bf16.mxu0 %v9032_v30  ;;  %4746 = vmatprep.subr.bf16.mxu1 %v9032_v30  ;;  %v3135_v25 = vrot.slane %v9306_v39, 4  ;;  %9310 = vst [vmem:[#allocation56_spill] sm:$0xff] %v7802_v7  ;;  %9314 = vst [vmem:[#allocation89_spill] sm:$0xff] %v7820_v18  ;;  %v9315_v38 = vld [vmem:[#allocation15_spill] sm:$0xff]  ;;  %v9325_v60 = vld [vmem:[#allocation37_spill] sm:$0xff] }
 0x157   :  { %4711 = vmatmul.mubr.bf16.gmra.mrb[12].mxu1 %v9307_v43  ;;  %4919 = vmatmul.mubr.bf16.gmra.mrb[12].mxu0 %v4248_v4  ;;  %v9313_v4 = vld [vmem:[#allocation46_spill] sm:$0xff]  ;;  %v3155_v34 = vrot.slane %v9315_v38, 4  ;;  %v9326_v42 = vor.u32 %v9324_v15, %v9325_v60  ;;  %v7878_v60 = vsel %vm7806_vm3, %v3125_v56, %v9306_v39  ;;  %v9336_v15 = vld [vmem:[#allocation29_spill] sm:$0xff]  ;;  %v9359_v56 = vld [vmem:[#allocation8_spill] sm:$0xff] }
 0x158   :  { %v3145_v23 = vrot.slane %v9313_v4, 4  ;;  %4714 = vmatprep.mubr.msk.bf16.mxu1 %vm5509_vm0, %v9032_v30  ;;  %4922 = vmatprep.mubr.msk.bf16.mxu0 %vm5509_vm0, %v9032_v30  ;;  %v7901_v39 = vsel %vm7806_vm3, %v3135_v25, %v9313_v4  ;;  %v9344_v25 = vld [vmem:[#allocation75_spill] sm:$0xff] }
 0x159   :  { %4955 = vmatpush3.bf16.msra.mxu0 %v5469_v58  ;;  %4747 = vmatpush3.bf16.msra.mxu1 %v5470_v28  ;;  %v7838_v58 = vcombine.low %v7820_v18, %v2871_v57  ;;  %v9321_v28 = vld [vmem:[#allocation40_spill] sm:$0xff]  ;;  %v3193_v21 = vrot.slane %v9326_v42, 4  ;;  %v9328_v57 = vrot.slane %v9327_v8, 6  ;;  %v9345_v4 = vrot.slane %v9344_v25, 6 }
 0x15a   :  { %4956 = vmatprep.subr.bf16.mxu0 %v9032_v30  ;;  %4748 = vmatprep.subr.bf16.mxu1 %v9032_v30  ;;  %v3104_v43 = vsel %vm7806_vm3, %v9322_v41, %v9321_v28  ;;  %v9323_v45 = vrot.slane %v9321_v28, 4  ;;  %v9331_v41 = vld [vmem:[#allocation25_spill] sm:$0xff]  ;;  %v3233_v8 = vrot.slane %v9359_v56, 4 }
 0x15b   :  { %9320 = vst [vmem:[#allocation90_spill] sm:$0xff] %v7838_v58  ;;  %v9329_v58 = vld [vmem:[#allocation28_spill] sm:$0xff]  ;;  %v9332_v17 = vrot.slane %v9331_v41, 6 }
 0x15c   :  { %v3114_v14 = vsel %vm7806_vm3, %v9323_v45, %v9302_v19  ;;  %v7859_v48 = vsel %vm6673_vm9, %v9329_v58, %v9328_v57  ;;  %v7871_v19 = vsel %vm7806_vm3, %v3115_v52, %v9305_v46  ;;  %v9339_v45 = vld [vmem:[#allocation32_spill] sm:$0xff] }
 0x15d   :  { %v7852_v7 = vcombine.low %v3104_v43, %v3114_v14  ;;  %v7866_v28 = vsel %vm6673_vm9, %v9333_v29, %v9332_v17  ;;  %v9334_v43 = vld [vmem:[#allocation67_spill] sm:$0xff]  ;;  %4957 = vmatpush3.bf16.msra.mxu0 %v5471_v33  ;;  %4749 = vmatpush3.bf16.msra.mxu1 %v5472_v44  ;;  %v9340_v14 = vld [vmem:[#allocation41_spill] sm:$0xff]  ;;  %v7909_v33 = vsel %vm7806_vm3, %v3145_v23, %v9315_v38  ;;  %v9480_v62 = vld [vmem:[#allocation56_spill] sm:$0xff] }
 0x15e   :  { %v9335_v42 = vrot.slane %v9334_v43, 6  ;;  %v9337_v17 = vld [vmem:[#allocation27_spill] sm:$0xff]  ;;  %v3203_v57 = vrot.slane %v9340_v14, 4  ;;  %4994 = vmatprep.subr.bf16.mxu0 %v9032_v30  ;;  %4786 = vmatprep.subr.bf16.mxu1 %v9032_v30  ;;  %v9341_v44 = vld [vmem:[#allocation73_spill] sm:$0xff]  ;;  %v9343_v43 = vld [vmem:[#allocation34_spill] sm:$0xff]  ;;  %v9348_v23 = vpack.c.bf16 %v6989_v9, %v7515_v27  ;;  %v7947_v27 = vsel %vm7806_vm3, %v3165_v63, %v9319_v11 }
 0x15f   :  { %v9338_v58 = vrot.slane %v9337_v17, 6  ;;  %v9342_v41 = vrot.slane %v9341_v44, 6  ;;  %4923 = vmatmul.mubr.bf16.gmra.mrb[16].mxu0 %v7692_v2  ;;  %v9350_v2 = vld [vmem:[#allocation85_spill] sm:$0xff]  ;;  %v9356_v44 = vld [vmem:[#allocation48_spill] sm:$0xff]  ;;  %v9364_v63 = vld [vmem:[#allocation58_spill] sm:$0xff] }
 0x160   :  { %v7885_v29 = vsel %vm6673_vm9, %v9336_v15, %v9335_v42  ;;  %v9346_v15 = vld [vmem:[#allocation78_spill] sm:$0xff]  ;;  %4715 = vmatmul.mubr.bf16.gmra.mrb[16].mxu1 %v9348_v23  ;;  %4926 = vmatprep.mubr.msk.bf16.mxu0 %vm5509_vm0, %v9032_v30  ;;  %v9357_v38 = vrot.slane %v9356_v44, 10  ;;  %v3202_v44 = vsel %vm7806_vm3, %v3193_v21, %v9340_v14  ;;  %v9367_v14 = vld [vmem:[#allocation60_spill] sm:$0xff] }
 0x161   :  { %v7892_v52 = vsel %vm6673_vm9, %v9339_v45, %v9338_v58  ;;  %v7916_v42 = vsel %vm6673_vm9, %v9343_v43, %v9342_v41  ;;  %v7923_v17 = vsel %vm6673_vm9, %v9346_v15, %v9345_v4  ;;  %v9347_v58 = vld [vmem:[#allocation44_spill] sm:$0xff]  ;;  %v7937_v41 = vsel %vm7806_vm3, %v3155_v34, %v9316_v0  ;;  %v9349_v43 = vld [vmem:[#allocation45_spill] sm:$0xff]  ;;  %4718 = vmatprep.mubr.msk.bf16.mxu1 %vm5509_vm0, %v9032_v30  ;;  %v9354_v0 = vld [vmem:[#allocation14_spill] sm:$0xff] }
 0x162   :  { %v3213_v45 = vrot.slane %v9347_v58, 4  ;;  %v3223_v25 = vrot.slane %v9349_v43, 4  ;;  %v9351_v4 = vrot.slane %v9350_v2, 6  ;;  %v9352_v15 = vld [vmem:[#allocation80_spill] sm:$0xff]  ;;  %v9355_v23 = vrot.slane %v9354_v0, 6 }
 0x163   :  { %v9360_v2 = vor.u32 %v7610_v13, %v7608_v12  ;;  %v7996_v13 = vsel %vm7806_vm3, %v3203_v57, %v9347_v58 }
 0x164   :  { %v7954_v34 = vsel %vm6673_vm9, %v9352_v15, %v9351_v4  ;;  %v7962_v46 = vsel %vm6673_vm9, %v9357_v38, %v9355_v23  ;;  %v9361_v15 = vld [vmem:[#allocation24_spill] sm:$0xff]  ;;  %v9363_v23 = vld [vmem:[#allocation23_spill] sm:$0xff]  ;;  %v8003_v21 = vsel %vm7806_vm3, %v3213_v45, %v9349_v43  ;;  %v8026_v43 = vsel %vm7806_vm3, %v3223_v25, %v9359_v56 }
 0x165   :  { %9353 = vst [vmem:[#allocation91_spill] sm:$0xff] %v7954_v34  ;;  %9358 = vst [vmem:[#allocation43_spill] sm:$0xff] %v7962_v46  ;;  %v3184_v4 = vsel %vm7806_vm3, %v3175_v55, %v9360_v2  ;;  %v9362_v0 = vrot.slane %v9361_v15, 6  ;;  %v9365_v46 = vrot.slane %v9364_v63, 6  ;;  %v9366_v34 = vld [vmem:[#allocation66_spill] sm:$0xff]  ;;  %v9368_v63 = vrot.slane %v9367_v14, 6 }
 0x166   :  { %v7977_v38 = vcombine.low %v3184_v4, %v3202_v44  ;;  %v9369_v2 = vld [vmem:[#allocation63_spill] sm:$0xff]  ;;  %v9372_v44 = vld [vmem:[#allocation30_spill] sm:$0xff]  ;;  %9373 = vst [vmem:[#allocation3_spill] sm:$0xff] %v8026_v43  ;;  %v9374_v15 = vld [vmem:[#allocation12_spill] sm:$0xff] }
 0x167   :  { %v7984_v11 = vsel %vm6673_vm9, %v9363_v23, %v9362_v0  ;;  %v7991_v12 = vsel %vm6673_vm9, %v9366_v34, %v9365_v46  ;;  %v8010_v46 = vsel %vm6673_vm9, %v9369_v2, %v9368_v63  ;;  %v9370_v34 = vld [vmem:[#allocation68_spill] sm:$0xff]  ;;  %v8031_v0 = vsel %vm7806_vm3, %v3233_v8, %v9374_v15  ;;  %v9376_v14 = vld [vmem:[#allocation69_spill] sm:$0xff]  ;;  %v9390_v43 = vld [vmem:[#allocation82_spill] sm:$0xff] }
 0x168   :  { %v9371_v4 = vrot.slane %v9370_v34, 6  ;;  %9375 = vst [vmem:[#allocation11_spill] sm:$0xff] %v8031_v0  ;;  %v9377_v63 = vrot.slane %v9376_v14, 6  ;;  %v9378_v2 = vld [vmem:[#allocation33_spill] sm:$0xff]  ;;  %v9381_v45 = vld [vmem:[#allocation72_spill] sm:$0xff]  ;;  %v3243_v8 = vrot.slane %v9374_v15, 4  ;;  %4719 = vmatmul.mubr.bf16.gmra.mrb[20].mxu1 %v7666_v31  ;;  %v9392_v15 = vcombine.low %v7699_v47, %v7672_v37 }
 0x169   :  { %v9383_v23 = vld [vmem:[#allocation16_spill] sm:$0xff]  ;;  %v9386_v0 = vld [vmem:[#allocation79_spill] sm:$0xff]  ;;  %4722 = vmatprep.mubr.msk.bf16.mxu1 %vm5509_vm0, %v9032_v30 }
 0x16a   :  { %v8017_v57 = vsel %vm6673_vm9, %v9372_v44, %v9371_v4  ;;  %v8040_v34 = vsel %vm6673_vm9, %v9378_v2, %v9377_v63  ;;  %v9379_v4 = vld [vmem:[#allocation74_spill] sm:$0xff]  ;;  %v3253_v58 = vrot.slane %v9383_v23, 4  ;;  %v9384_v14 = vld [vmem:[#allocation76_spill] sm:$0xff]  ;;  %4927 = vmatmul.mubr.bf16.gmra.mrb[20].mxu0 %v9392_v15  ;;  %v9401_v15 = vld [vmem:[#allocation81_spill] sm:$0xff] }
 0x16b   :  { %v9380_v44 = vrot.slane %v9379_v4, 6  ;;  %v9385_v55 = vrot.slane %v9384_v14, 6  ;;  %v9388_v2 = vld [vmem:[#allocation88_spill] sm:$0xff]  ;;  %4930 = vmatprep.mubr.msk.bf16.mxu0 %vm5509_vm0, %v9032_v30 }
 0x16c   :  { %v9389_v4 = vrot.slane %v9388_v2, 6  ;;  %v9395_v2 = vld [vmem:[#allocation54_spill] sm:$0xff]  ;;  %v9465_v47 = vld [vmem:[#allocation84_spill] sm:$0xff] }
 0x16d   :  { %v8047_v56 = vsel %vm6673_vm9, %v9381_v45, %v9380_v44  ;;  %v8058_v63 = vsel %vm6673_vm9, %v9386_v0, %v9385_v55  ;;  %v8074_v44 = vsel %vm7806_vm3, %v3243_v8, %v9383_v23  ;;  %v9394_v0 = vld [vmem:[#allocation50_spill] sm:$0xff]  ;;  %v3273_v18 = vrot.slane %v9395_v2, 4  ;;  %v9399_v23 = vld [vmem:[#allocation61_spill] sm:$0xff] }
 0x16e   :  { %9382 = vst [vmem:[#allocation46_spill] sm:$0xff] %v8047_v56  ;;  %9387 = vst [vmem:[#allocation15_spill] sm:$0xff] %v8058_v63  ;;  %v8065_v45 = vsel %vm6673_vm9, %v9390_v43, %v9389_v4  ;;  %v3263_v14 = vrot.slane %v9394_v0, 4  ;;  %v8087_v31 = vsel %vm7806_vm3, %v3253_v58, %v9394_v0  ;;  %v9400_v8 = vrot.slane %v9399_v23, 5  ;;  %v9406_v43 = vld [vmem:[#allocation87_spill] sm:$0xff] }
 0x16f   :  { %9391 = vst [vmem:[#allocation49_spill] sm:$0xff] %v8065_v45  ;;  %9393 = vst [vmem:[#allocation53_spill] sm:$0xff] %v8074_v44  ;;  %v9402_v55 = vrot.slane %v9401_v15, 5  ;;  %v9404_v58 = vor.u32 %v7618_v24, %v7616_v54  ;;  %v9413_v24 = vrot.slane %v7423_v53, 5  ;;  %v1395_v10 = vshll.u32 %v9406_v43, 16 }
 0x170   :  { %9396 = vst [vmem:[#allocation40_spill] sm:$0xff] %v8087_v31  ;;  %v3514_v4 = vrot.slane %v9400_v8, 4  ;;  %v8100_v63 = vsel %vm7806_vm3, %v3263_v14, %v9395_v2  ;;  %v9407_v8 = vrot.slane %v9406_v43, 5  ;;  %4723 = vmatmul.mubr.bf16.gmra.mrb[24].mxu1 %v7714_v1  ;;  %v9443_v1 = vld [vmem:[#allocation13_spill] sm:$0xff] }
 0x171   :  { %v3517_v25 = vrot.slane %v9402_v55, 4  ;;  %9403 = vst [vmem:[#allocation39_spill] sm:$0xff] %v8100_v63  ;;  %v8107_v0 = vsel %vm7806_vm3, %v3273_v18, %v9404_v58  ;;  %v9408_v45 = vmov %v9402_v55  ;;  %v3523_v40 = vrot.slane %v9413_v24, 4  ;;  %4726 = vmatprep.mubr.msk.bf16.mxu1 %vm5509_vm0, %v9032_v30 }
 0x172   :  { %9405 = vst [vmem:[#allocation38_spill] sm:$0xff] %v8107_v0  ;;  %v3520_v37 = vrot.slane %v9407_v8, 4  ;;  %v8117_v31 = vsel %vm6233_vm6, %v3514_v4, %v9408_v45  ;;  %v9411_v14 = vmov %v9407_v8  ;;  %v9414_v18 = vmov %v9413_v24 }
 0x173   :  { %9410 = vst [vmem:[#allocation37_spill] sm:$0xff] %v8117_v31  ;;  %v8123_v54 = vsel %vm6233_vm6, %v3517_v25, %v9411_v14  ;;  %v9416_v45 = vrot.slane %v7493_v6, 5  ;;  %v9417_v8 = vrot.slane %v7547_v51, 5  ;;  %v9420_v24 = vrot.slane %v7604_v35, 5 }
 0x174   :  { %9412 = vst [vmem:[#allocation55_spill] sm:$0xff] %v8123_v54  ;;  %v8133_v58 = vsel %vm6233_vm6, %v3520_v37, %v9414_v18  ;;  %v9422_v37 = vld [vmem:[#allocation31_spill] sm:$0xff] }
 0x175   :  { %9415 = vst [vmem:[#allocation28_spill] sm:$0xff] %v8133_v58  ;;  %v3526_v4 = vrot.slane %v9416_v45, 4  ;;  %v3529_v55 = vrot.slane %v9417_v8, 4  ;;  %v9418_v25 = vmov %v9416_v45  ;;  %v8150_v2 = vsel %vm6233_vm6, %v7601_v16, %v9420_v24  ;;  %v9424_v54 = vld [vmem:[#allocation35_spill] sm:$0xff] }
 0x176   :  { %v8143_v14 = vsel %vm6233_vm6, %v3523_v40, %v9418_v25  ;;  %9421 = vst [vmem:[#allocation25_spill] sm:$0xff] %v8150_v2  ;;  %v9423_v18 = vrot.slane %v9422_v37, 5  ;;  %v9425_v45 = vrot.slane %v9424_v54, 9  ;;  %v9428_v25 = vrot.slane %v7547_v51, 5  ;;  %v9435_v58 = vld [vmem:[#allocation19_spill] sm:$0xff] }
 0x177   :  { %9419 = vst [vmem:[#allocation2_spill] sm:$0xff] %v8143_v14  ;;  %v9429_v24 = vrot.slane %v7536_v61, 5  ;;  %v9436_v44 = vrot.slane %v9435_v58, 5 }
 0x178   :  { %v8158_v8 = vsel %vm6233_vm6, %v9425_v45, %v9423_v18  ;;  %v9427_v31 = vmov %v9423_v18  ;;  %v8168_v16 = vsel %vm6233_vm6, %v3526_v4, %v9428_v25  ;;  %v9431_v45 = vld [vmem:[#allocation71_spill] sm:$0xff] }
 0x179   :  { %9426 = vst [vmem:[#allocation62_spill] sm:$0xff] %v8158_v8  ;;  %v3539_v0 = vrot.slane %v9427_v31, 4  ;;  %v8174_v63 = vsel %vm6233_vm6, %v3529_v55, %v9429_v24  ;;  %v9432_v40 = vrot.slane %v9431_v45, 5  ;;  %v3545_v56 = vrot.slane %v9436_v44, 4  ;;  %v9438_v24 = vld [vmem:[#allocation86_spill] sm:$0xff] }
 0x17a   :  { %9430 = vst [vmem:[#allocation67_spill] sm:$0xff] %v8174_v63  ;;  %v9437_v55 = vcombine.low %v7728_v5, %v7734_v59  ;;  %v9439_v18 = vrot.slane %v9438_v24, 5  ;;  %v9440_v8 = vrot.slane %v7428_v20, 5  ;;  %v9442_v45 = vrot.slane %v7533_v49, 5 }
 0x17b   :  { %v8184_v14 = vsel %vm6233_vm6, %v3539_v0, %v9432_v40  ;;  %v9434_v4 = vmov %v9432_v40  ;;  %v9441_v0 = vrot.slane %v7477_v36, 5  ;;  %v9444_v5 = vrot.slane %v7209_v22, 4 }
 0x17c   :  { %9433 = vst [vmem:[#allocation29_spill] sm:$0xff] %v8184_v14  ;;  %v3542_v25 = vrot.slane %v9434_v4, 4  ;;  %4931 = vmatmul.mubr.bf16.gmra.mrb[24].mxu0 %v9437_v55  ;;  %v3548_v31 = vrot.slane %v9439_v18, 4  ;;  %v3551_v2 = vrot.slane %v9440_v8, 4  ;;  %v3557_v4 = vrot.slane %v9442_v45, 4 }
 0x17d   :  { %v3554_v40 = vrot.slane %v9441_v0, 4  ;;  %4934 = vmatprep.mubr.msk.bf16.mxu0 %vm5509_vm0, %v9032_v30  ;;  %v2603_v59 = vsel %vm7500_vm12, %v9444_v5, %v9443_v1  ;;  %v8221_v55 = vsel %vm6233_vm6, %v3545_v56, %v9439_v18  ;;  %v9447_v0 = vrot.slane %v7540_v32, 5  ;;  %v9469_v32 = vld [vmem:[#allocation95_spill] sm:$0xff] }
 0x17e   :  { %v8215_v8 = vsel %vm6233_vm6, %v3542_v25, %v9436_v44  ;;  %9446 = vst [vmem:[#allocation32_spill] sm:$0xff] %v8221_v55  ;;  %v9448_v5 = vrot.slane %v7428_v20, 5  ;;  %v9450_v25 = vrot.slane %v7477_v36, 5  ;;  %v9452_v56 = vrot.slane %v7533_v49, 5 }
 0x17f   :  { %9445 = vst [vmem:[#allocation27_spill] sm:$0xff] %v8215_v8  ;;  %v3560_v45 = vrot.slane %v9447_v0, 4  ;;  %v812_v18 = vunpack.c.h.b16 %v7353_v26  ;;  %v9473_v8 = vld [vmem:[#allocation93_spill] sm:$0xff] }
 0x180   :  { %v8231_v58 = vsel %vm6233_vm6, %v3548_v31, %v9448_v5  ;;  %v8237_v24 = vsel %vm6233_vm6, %v3551_v2, %v9450_v25  ;;  %v8243_v44 = vsel %vm6233_vm6, %v3554_v40, %v9452_v56  ;;  %v9454_v31 = vmov %v9447_v0  ;;  %v9458_v40 = vld [vmem:[#allocation65_spill] sm:$0xff]  ;;  %v9459_v5 = vld [vmem:[#allocation18_spill] sm:$0xff] }
 0x181   :  { %9449 = vst [vmem:[#allocation41_spill] sm:$0xff] %v8231_v58  ;;  %9451 = vst [vmem:[#allocation73_spill] sm:$0xff] %v8237_v24  ;;  %v8253_v36 = vsel %vm6233_vm6, %v3557_v4, %v9454_v31  ;;  %v9456_v2 = vrot.slane %v7587_v50, 5  ;;  %v1349_v0 = vshll.u32 %v9458_v40, 16  ;;  %v9460_v25 = vshll.u32 %v9459_v5, 16  ;;  %v9462_v31 = vld [vmem:[#allocation20_spill] sm:$0xff] }
 0x182   :  { %9453 = vst [vmem:[#allocation34_spill] sm:$0xff] %v8243_v44  ;;  %9455 = vst [vmem:[#allocation75_spill] sm:$0xff] %v8253_v36  ;;  %v9461_v20 = vshrl.u32 %v9459_v5, 16  ;;  %v9463_v63 = vshll.u32 %v9462_v31, 16  ;;  %v9464_v44 = vld [vmem:[#allocation83_spill] sm:$0xff]  ;;  %v9467_v26 = vshrl.u32 %v9462_v31, 16 }
 0x183   :  { %v8259_v49 = vsel %vm6233_vm6, %v3560_v45, %v9456_v2  ;;  %v1357_v56 = vrot.slane %v9460_v25, 5  ;;  %v2612_v45 = vor.u32 %v9465_v47, %v9464_v44  ;;  %v9466_v2 = vrot.slane %v7180_v3, 4  ;;  %v9468_v58 = vld [vmem:[#allocation94_spill] sm:$0xff]  ;;  %v9470_v5 = vld [vmem:[#allocation5_spill] sm:$0xff] }
 0x184   :  { %9457 = vst [vmem:[#allocation78_spill] sm:$0xff] %v8259_v49  ;;  %v1361_v4 = vrot.slane %v9461_v20, 4  ;;  %v1367_v50 = vrot.slane %v9463_v63, 5  ;;  %v1371_v24 = vrot.slane %v9467_v26, 4  ;;  %v770_v49 = vpack.c.bf16 %v9469_v32, %v9468_v58  ;;  %v9472_v63 = vld [vmem:[#allocation92_spill] sm:$0xff] }
 0x185   :  { %v2593_v25 = vsel %vm7500_vm12, %v9466_v2, %v7209_v22  ;;  %v9471_v20 = vunpack.c.l.b16 %v9470_v5  ;;  %v2622_v14 = vor.u32 %v9473_v8, %v9472_v63  ;;  %v9474_v3 = vshrl.u32 %v9458_v40, 16 }
 0x186   :  { %v4252_v55 = vcombine.low %v2593_v25, %v2603_v59  ;;  %v1351_v47 = vrot.slane %v1349_v0, 5  ;;  %v1362_v22 = vor.u32 %v1361_v4, %v1357_v56  ;;  %v2614_v58 = vrot.slane %v2612_v45, 4 }
 0x187   :  { %v1156_v36 = vpack.c.b16 %v9471_v20, %v812_v18  ;;  %v1348_v44 = vrot.slane %v9474_v3, 4  ;;  %v1372_v32 = vor.u32 %v1371_v24, %v1367_v50  ;;  %v1375_v59 = vshll.u32 %v9399_v23, 16 }
 0x188   :  { %4935 = vmatmul.mubr.bf16.gmra.mrb[28].mxu0 %v4252_v55  ;;  %v1379_v18 = vshrl.u32 %v9399_v23, 16  ;;  %v815_v8 = vunpack.c.l.b16 %v770_v49  ;;  %v1385_v55 = vshll.u32 %v9401_v15, 16  ;;  %v2604_v40 = vrot.slane %v9443_v1, 4 }
 0x189   :  { %4727 = vmatmul.mubr.bf16.gmra.mrb[28].mxu1 %v1156_v36  ;;  %4938 = vmatprep.mubr.msk.bf16.mxu0 %vm5509_vm0, %v9032_v30  ;;  %v1389_v36 = vshrl.u32 %v9401_v15, 16  ;;  %v2623_v0 = vsel %vm7500_vm12, %v2614_v58, %v2622_v14  ;;  %v814_v4 = vunpack.c.h.b16 %v9470_v5  ;;  %v1352_v31 = vor.u32 %v1351_v47, %v1348_v44 }
 0x18a   :  { %4730 = vmatprep.mubr.msk.bf16.mxu1 %vm5509_vm0, %v9032_v30  ;;  %v2613_v24 = vsel %vm7500_vm12, %v2604_v40, %v2612_v45  ;;  %v1363_v2 = vrot.slane %v1362_v22, 4  ;;  %v1373_v25 = vrot.slane %v1372_v32, 4  ;;  %v1377_v49 = vrot.slane %v1375_v59, 5  ;;  %v5473_v32 = vld [vmem:[%s8829_s4 + $0x1c0] sm:$0xff]  }
 0x18b   :  { %v1157_v26 = vpack.c.b16 %v815_v8, %v814_v4  ;;  %v4253_v23 = vcombine.low %v2613_v24, %v2623_v0  ;;  %v1381_v20 = vrot.slane %v1379_v18, 4  ;;  %v1387_v63 = vrot.slane %v1385_v55, 5  ;;  %v5476_v0 = vld [vmem:[%s8829_s4 + $0xc8] sm:$0xff]  }
 0x18c   :  { %v1391_v3 = vrot.slane %v1389_v36, 4  ;;  %v1353_v15 = vrot.slane %v1352_v31, 4  ;;  %v1399_v14 = vshrl.u32 %v9406_v43, 16  ;;  %v1405_v1 = vshll.u32 %v7423_v53, 16  ;;  %v5474_v43 = vld [vmem:[%s8829_s4 + $0xc0] sm:$0xff]  }
 0x18d   :  { %v1409_v45 = vshrl.u32 %v7423_v53, 16  ;;  %v1368_v5 = vsel %vm7760_vm2, %v1363_v2, %v1367_v50  ;;  %v1378_v44 = vsel %vm7760_vm2, %v1373_v25, %v1377_v49  ;;  %v1382_v47 = vor.u32 %v1381_v20, %v1377_v49 }
 0x18e   :  { %v1392_v22 = vor.u32 %v1391_v3, %v1387_v63  ;;  %v1358_v58 = vsel %vm7760_vm2, %v1353_v15, %v1357_v56  ;;  %v1397_v53 = vrot.slane %v1395_v10, 5  ;;  %v1401_v59 = vrot.slane %v1399_v14, 4  ;;  %v5475_v56 = vld [vmem:[%s8829_s4 + $0x1c8] sm:$0xff]  }
 0x18f   :  { %v4102_v18 = vcombine.low %v1358_v58, %v1368_v5  ;;  %v4280_v50 = vcombine.low %v1368_v5, %v1378_v44  ;;  %v1407_v8 = vrot.slane %v1405_v1, 5  ;;  %v1411_v55 = vrot.slane %v1409_v45, 4  ;;  %v5480_v58 = vld [vmem:[%s8829_s4 + $0xd8] sm:$0xff]  }
 0x190   :  { %4939 = vmatmul.mubr.bf16.gmra.mrb[32].mxu0 %v4253_v23  ;;  %v1383_v36 = vrot.slane %v1382_v47, 4  ;;  %v1393_v40 = vrot.slane %v1392_v22, 4  ;;  %v1415_v4 = vshll.u32 %v7493_v6, 16  ;;  %v1419_v31 = vshrl.u32 %v7493_v6, 16  ;;  %v5479_v22 = vld [vmem:[%s8829_s4 + $0x1d8] sm:$0xff]  }
 0x191   :  { %4731 = vmatmul.mubr.bf16.gmra.mrb[32].mxu1 %v1157_v26  ;;  %4958 = vmatprep.mubr.msk.bf16.mxu0 %vm5509_vm0, %v9032_v30  ;;  %v1425_v24 = vshll.u32 %v7547_v51, 16  ;;  %v1402_v2 = vor.u32 %v1401_v59, %v1397_v53  ;;  %v1429_v25 = vshrl.u32 %v7547_v51, 16  ;;  %v1412_v6 = vor.u32 %v1411_v55, %v1407_v8  ;;  %v5477_v51 = vld [vmem:[%s8829_s4 + $0x1d0] sm:$0xff]  }
 0x192   :  { %4750 = vmatprep.mubr.msk.bf16.mxu1 %vm5509_vm0, %v9032_v30  ;;  %v1388_v26 = vsel %vm7760_vm2, %v1383_v36, %v1387_v63  ;;  %v1398_v23 = vsel %vm7760_vm2, %v1393_v40, %v1397_v53  ;;  %v1417_v49 = vrot.slane %v1415_v4, 5  ;;  %v1421_v20 = vrot.slane %v1419_v31, 4  ;;  %v5478_v63 = vld [vmem:[%s8829_s4 + $0xd0] sm:$0xff]  }
 0x193   :  { %v4103_v3 = vcombine.low %v1378_v44, %v1388_v26  ;;  %v4281_v15 = vcombine.low %v1388_v26, %v1398_v23  ;;  %v1427_v10 = vrot.slane %v1425_v24, 5  ;;  %v1431_v14 = vrot.slane %v1429_v25, 4 }
 0x194   :  { %v1403_v1 = vrot.slane %v1402_v2, 4  ;;  %v1413_v45 = vrot.slane %v1412_v6, 4  ;;  %v4406_v5 = vpack.c.bf16 %v6989_v9, %v6989_v9  ;;  %v1435_v44 = vshll.u32 %v7536_v61, 16  ;;  %v5483_v6 = vld [vmem:[%s8829_s4 + $0x1e8] sm:$0xff]  }
 0x195   :  { %v1422_v47 = vor.u32 %v1421_v20, %v1417_v49  ;;  %v2852_v9 = vshrl.u32 %v7536_v61, 16  ;;  %v1432_v53 = vor.u32 %v1431_v14, %v1427_v10  ;;  %v1453_v55 = vshrl.u32 %v9424_v54, 16  ;;  %v5481_v61 = vld [vmem:[%s8829_s4 + $0x1e0] sm:$0xff]  }
 0x196   :  { %v1440_v59 = vshrl.u32 %v4406_v5, 16  ;;  %v1459_v26 = vshll.u32 %v9422_v37, 16 }
 0x197   :  { %v1423_v4 = vrot.slane %v1422_v47, 4  ;;  %v1433_v31 = vrot.slane %v1432_v53, 4  ;;  %v1455_v25 = vrot.slane %v1453_v55, 4 }
 0x198   :  { %4959 = vmatmul.mubr.bf16.vlgmr.msra.gmra.mrb[0].mxu0 %v4280_v50  ;;  %v1449_v50 = vshll.u32 %v9424_v54, 16  ;;  %v1442_v54 = vrot.slane %v1440_v59, 4 }
 0x199   :  { %4751 = vmatmul.mubr.bf16.vlgmr.msra.gmra.mrb[0].mxu1 %v4102_v18  ;;  %4995 = vmatpush3.bf16.msra.mxu0 %v5473_v32  ;;  %v1408_v32 = vsel %vm7760_vm2, %v1403_v1, %v1407_v8  ;;  %v1443_v18 = vshll.u32 %v4406_v5, 16  ;;  %v5482_v8 = vld [vmem:[%s8829_s4 + $0xe0] sm:$0xff]  }
 0x19a   :  { %4787 = vmatpush3.bf16.msra.mxu1 %v5474_v43  ;;  %4754 = vmatprep.mubr.msk.bf16.mxu1 %vm5509_vm0, %v9032_v30  ;;  %v1418_v43 = vsel %vm7760_vm2, %v1413_v45, %v1417_v49  ;;  %v4104_v36 = vcombine.low %v1398_v23, %v1408_v32  ;;  %v1451_v2 = vrot.slane %v1449_v50, 5  ;;  %v1463_v23 = vshrl.u32 %v9422_v37, 16  ;;  %v5484_v49 = vld [vmem:[%s8829_s4 + $0xe8] sm:$0xff]  }
 0x19b   :  { %4962 = vmatprep.mubr.msk.bf16.mxu0 %vm5509_vm0, %v9032_v30  ;;  %4996 = vmatprep.subr.bf16.mxu0 %v9032_v30  ;;  %v4282_v40 = vcombine.low %v1408_v32, %v1418_v43  ;;  %v1445_v24 = vrot.slane %v1443_v18, 5  ;;  %v1461_v45 = vrot.slane %v1459_v26, 5  ;;  %v5488_v32 = vld [vmem:[%s8829_s4 + $0xf8] sm:$0xff]  }
 0x19c   :  { %4788 = vmatprep.subr.bf16.mxu1 %v9032_v30  ;;  %v1465_v5 = vrot.slane %v1463_v23, 4  ;;  %v9483_v23 = vld [vmem:[#allocation89_spill] sm:$0xff] }
 0x19d   :  { %4997 = vmatpush3.bf16.msra.mxu0 %v5475_v56  ;;  %v1437_v56 = vrot.slane %v1435_v44, 5  ;;  %v1446_v37 = vor.u32 %v1445_v24, %v1442_v54 }
 0x19e   :  { %4789 = vmatpush3.bf16.msra.mxu1 %v5476_v0  ;;  %4998 = vmatprep.subr.bf16.mxu0 %v9032_v30  ;;  %v2854_v0 = vrot.slane %v2852_v9, 4  ;;  %v5487_v9 = vld [vmem:[%s8829_s4 + $0x1f8] sm:$0xff]   ;;  %v1466_v53 = vor.u32 %v1465_v5, %v1461_v45  ;;  %v9492_v5 = vcombine.low %v7901_v39, %v7909_v33  ;;  %v5502_v39 = vld [vmem:[%s8833_s5 + $0x30] sm:$0xff]   ;;  %v9493_v33 = vcombine.low %v7916_v42, %v7923_v17  ;;  %v9495_v17 = vld [vmem:[#allocation91_spill] sm:$0xff] }
 0x19f   :  { %4790 = vmatprep.subr.bf16.mxu1 %v9032_v30  ;;  %v5504_v42 = vld [vmem:[%s8833_s5 + $0x38] sm:$0xff]  }
 0x1a0   :  { %4963 = vmatmul.mubr.bf16.gmra.mrb[4].mxu0 %v4281_v15  ;;  %v2855_v20 = vor.u32 %v2854_v0, %v1437_v56  ;;  %v1428_v15 = vsel %vm7760_vm2, %v1423_v4, %v1427_v10  ;;  %v5486_v10 = vld [vmem:[%s8829_s4 + $0xf0] sm:$0xff]  }
 0x1a1   :  { %4755 = vmatmul.mubr.bf16.gmra.mrb[4].mxu1 %v4103_v3  ;;  %4966 = vmatprep.mubr.msk.bf16.mxu0 %vm5509_vm0, %v9032_v30  ;;  %v2858_v3 = vshll.u32 %v7604_v35, 16  ;;  %v4105_v14 = vcombine.low %v1418_v43, %v1428_v15  ;;  %v5485_v35 = vld [vmem:[%s8829_s4 + $0x1f0] sm:$0xff]  }
 0x1a2   :  { %4758 = vmatprep.mubr.msk.bf16.mxu1 %vm5509_vm0, %v9032_v30  ;;  %4999 = vmatpush3.bf16.msra.mxu0 %v5477_v51  ;;  %v1438_v51 = vsel %vm7760_vm2, %v1433_v31, %v1437_v56  ;;  %v2856_v47 = vrot.slane %v2855_v20, 4  ;;  %v9476_v56 = vld [vmem:[#allocation17_spill] sm:$0xff]  ;;  %v9477_v4 = vld [vmem:[#allocation52_spill] sm:$0xff]  ;;  %v5489_v20 = vld [vmem:[%s8829_s4 + $0x200] sm:$0xff]  }
 0x1a3   :  { %4791 = vmatpush3.bf16.msra.mxu1 %v5478_v63  ;;  %5000 = vmatprep.subr.bf16.mxu0 %v9032_v30  ;;  %v1456_v63 = vor.u32 %v1455_v25, %v1451_v2  ;;  %v4283_v1 = vcombine.low %v1428_v15, %v1438_v51  ;;  %v2860_v44 = vrot.slane %v2858_v3, 5  ;;  %v9478_v31 = vld [vmem:[#allocation57_spill] sm:$0xff]  ;;  %v5490_v3 = vld [vmem:[%s8833_s5] sm:$0xff]   ;;  %v9486_v15 = vld [vmem:[#allocation4_spill] sm:$0xff] }
 0x1a4   :  { %4792 = vmatprep.subr.bf16.mxu1 %v9032_v30  ;;  %v4286_v54 = vcombine.low %v9478_v31, %v9477_v4  ;;  %v9479_v24 = vcombine.low %v9476_v56, %v9478_v31  ;;  %v9522_v31 = vld [vmem:[#allocation36_spill] sm:$0xff] }
 0x1a5   :  { %v2861_v43 = vsel %vm7760_vm2, %v2856_v47, %v2860_v44  ;;  %v5499_v44 = vld [vmem:[%s8829_s4 + $0x228] sm:$0xff]   ;;  %v9494_v47 = vcombine.low %v7937_v41, %v7947_v27 }
 0x1a6   :  { %5001 = vmatpush3.bf16.msra.mxu0 %v5479_v22  ;;  %v1447_v22 = vrot.slane %v1446_v37, 4  ;;  %v9496_v41 = vld [vmem:[#allocation43_spill] sm:$0xff] }
 0x1a7   :  { %4793 = vmatpush3.bf16.msra.mxu1 %v5480_v58  ;;  %5002 = vmatprep.subr.bf16.mxu0 %v9032_v30  ;;  %v1457_v58 = vrot.slane %v1456_v63, 4  ;;  %v5491_v63 = vld [vmem:[%s8829_s4 + $0x208] sm:$0xff]   ;;  %v9497_v27 = vcombine.low %v9495_v17, %v9496_v41 }
 0x1a8   :  { %4794 = vmatprep.subr.bf16.mxu1 %v9032_v30  ;;  %4967 = vmatmul.mubr.bf16.gmra.mrb[8].mxu0 %v4282_v40  ;;  %v1452_v59 = vsel %vm7760_vm2, %v1447_v22, %v1451_v2  ;;  %v9475_v40 = vld [vmem:[#allocation77_spill] sm:$0xff]  ;;  %v9481_v2 = vld [vmem:[#allocation51_spill] sm:$0xff] }
 0x1a9   :  { %4759 = vmatmul.mubr.bf16.gmra.mrb[8].mxu1 %v4104_v36  ;;  %4970 = vmatprep.mubr.msk.bf16.mxu0 %vm5509_vm0, %v9032_v30  ;;  %v1462_v18 = vsel %vm7760_vm2, %v1457_v58, %v1461_v45  ;;  %v4106_v50 = vcombine.low %v1438_v51, %v1452_v59  ;;  %v1467_v36 = vrot.slane %v1466_v53, 4  ;;  %v4287_v25 = vcombine.low %v9481_v2, %v9480_v62  ;;  %v9487_v51 = vld [vmem:[#allocation7_spill] sm:$0xff]  ;;  %v5495_v45 = vld [vmem:[%s8829_s4 + $0x218] sm:$0xff]  }
 0x1aa   :  { %4762 = vmatprep.mubr.msk.bf16.mxu1 %vm5509_vm0, %v9032_v30  ;;  %5003 = vmatpush3.bf16.msra.mxu0 %v5481_v61  ;;  %v4284_v55 = vcombine.low %v2861_v43, %v1462_v18  ;;  %v9482_v26 = vcombine.low %v9477_v4, %v9481_v2  ;;  %v9488_v37 = vcombine.low %v9486_v15, %v9487_v51  ;;  %v5503_v22 = vld [vmem:[%s8829_s4 + $0x238] sm:$0xff]   ;;  %v9502_v43 = vld [vmem:[#allocation11_spill] sm:$0xff]  ;;  %v9526_v2 = vld [vmem:[#allocation42_spill] sm:$0xff] }
 0x1ab   :  { %4795 = vmatpush3.bf16.msra.mxu1 %v5482_v8  ;;  %5004 = vmatprep.subr.bf16.mxu0 %v9032_v30  ;;  %v1472_v61 = vsel %vm7760_vm2, %v1467_v36, %v9475_v40  ;;  %v9498_v58 = vcombine.low %v7984_v11, %v7991_v12  ;;  %v9504_v11 = vld [vmem:[#allocation46_spill] sm:$0xff]  ;;  %v9516_v40 = vld [vmem:[#allocation64_spill] sm:$0xff]  ;;  %v9535_v15 = vld [vmem:[#allocation27_spill] sm:$0xff] }
 0x1ac   :  { %4796 = vmatprep.subr.bf16.mxu1 %v9032_v30  ;;  %v4107_v8 = vcombine.low %v1462_v18, %v1472_v61  ;;  %v4285_v0 = vcombine.low %v1472_v61, %v9476_v56  ;;  %v9505_v12 = vcombine.low %v8040_v34, %v9504_v11  ;;  %v9515_v34 = vld [vmem:[#allocation26_spill] sm:$0xff]  ;;  %v9519_v56 = vld [vmem:[#allocation37_spill] sm:$0xff] }
 0x1ad   :  { %v9517_v61 = vcombine.low %v9515_v34, %v9516_v40 }
 0x1ae   :  { %5005 = vmatpush3.bf16.msra.mxu0 %v5483_v6  ;;  %v9484_v6 = vcombine.low %v9480_v62, %v9483_v23  ;;  %v9529_v23 = vld [vmem:[#allocation6_spill] sm:$0xff] }
 0x1af   :  { %4797 = vmatpush3.bf16.msra.mxu1 %v5484_v49  ;;  %5006 = vmatprep.subr.bf16.mxu0 %v9032_v30  ;;  %v9485_v49 = vld [vmem:[#allocation90_spill] sm:$0xff] }
 0x1b0   :  { %4798 = vmatprep.subr.bf16.mxu1 %v9032_v30  ;;  %4971 = vmatmul.mubr.bf16.gmra.mrb[12].mxu0 %v4283_v1  ;;  %v5494_v1 = vld [vmem:[%s8833_s5 + $0x10] sm:$0xff]  }
 0x1b1   :  { %4763 = vmatmul.mubr.bf16.gmra.mrb[12].mxu1 %v4105_v14  ;;  %4974 = vmatprep.mubr.msk.bf16.mxu0 %vm5509_vm0, %v9032_v30  ;;  %v5492_v14 = vld [vmem:[%s8833_s5 + $0x8] sm:$0xff]  }
 0x1b2   :  { %4766 = vmatprep.mubr.msk.bf16.mxu1 %vm5509_vm0, %v9032_v30  ;;  %5007 = vmatpush3.bf16.msra.mxu0 %v5485_v35  ;;  %v9489_v35 = vcombine.low %v7859_v48, %v7866_v28  ;;  %v5496_v48 = vld [vmem:[%s8833_s5 + $0x18] sm:$0xff]   ;;  %v5497_v28 = vld [vmem:[%s8829_s4 + $0x220] sm:$0xff]  }
 0x1b3   :  { %4799 = vmatpush3.bf16.msra.mxu1 %v5486_v10  ;;  %5008 = vmatprep.subr.bf16.mxu0 %v9032_v30  ;;  %v9490_v10 = vcombine.low %v7871_v19, %v7878_v60  ;;  %v5498_v19 = vld [vmem:[%s8833_s5 + $0x20] sm:$0xff]   ;;  %v9491_v60 = vcombine.low %v7885_v29, %v7892_v52  ;;  %v5500_v29 = vld [vmem:[%s8833_s5 + $0x28] sm:$0xff]   ;;  %v5501_v52 = vld [vmem:[%s8829_s4 + $0x230] sm:$0xff]  }
 0x1b4   :  { %4800 = vmatprep.subr.bf16.mxu1 %v9032_v30 }
 0x1b6   :  { %5009 = vmatpush3.bf16.msra.mxu0 %v5487_v9  ;;  %v9499_v9 = vcombine.low %v7996_v13, %v8003_v21  ;;  %v9506_v13 = vld [vmem:[#allocation53_spill] sm:$0xff]  ;;  %v9507_v21 = vld [vmem:[#allocation40_spill] sm:$0xff] }
 0x1b7   :  { %4801 = vmatpush3.bf16.msra.mxu1 %v5488_v32  ;;  %5046 = vmatprep.subr.bf16.mxu0 %v9032_v30  ;;  %v9501_v32 = vld [vmem:[#allocation3_spill] sm:$0xff]  ;;  %v9508_v59 = vcombine.low %v9506_v13, %v9507_v21 }
 0x1b8   :  { %5098 = vmatprep.subr.bf16.mxu1 %v9032_v30  ;;  %4975 = vmatmul.mubr.bf16.gmra.mrb[16].mxu0 %v4284_v55  ;;  %v9503_v53 = vcombine.low %v9501_v32, %v9502_v43  ;;  %v9513_v55 = vld [vmem:[#allocation38_spill] sm:$0xff] }
 0x1b9   :  { %4767 = vmatmul.mubr.bf16.gmra.mrb[16].mxu1 %v4106_v50  ;;  %4978 = vmatprep.mubr.msk.bf16.mxu0 %vm5509_vm0, %v9032_v30  ;;  %v9512_v50 = vld [vmem:[#allocation39_spill] sm:$0xff] }
 0x1ba   :  { %4770 = vmatprep.mubr.msk.bf16.mxu1 %vm5509_vm0, %v9032_v30  ;;  %v9514_v36 = vcombine.low %v9512_v50, %v9513_v55 }
 0x1c0   :  { %4979 = vmatmul.mubr.bf16.gmra.mrb[20].mxu0 %v4285_v0  ;;  %v9520_v0 = vld [vmem:[#allocation55_spill] sm:$0xff] }
 0x1c1   :  { %4771 = vmatmul.mubr.bf16.gmra.mrb[20].mxu1 %v4107_v8  ;;  %4982 = vmatprep.mubr.msk.bf16.mxu0 %vm5509_vm0, %v9032_v30  ;;  %v9518_v8 = vld [vmem:[#allocation21_spill] sm:$0xff]  ;;  %v9521_v4 = vcombine.low %v9519_v56, %v9520_v0 }
 0x1c2   :  { %4774 = vmatprep.mubr.msk.bf16.mxu1 %vm5509_vm0, %v9032_v30 }
 0x1c8   :  { %4983 = vmatmul.mubr.bf16.gmra.mrb[24].mxu0 %v4286_v54  ;;  %v9523_v54 = vld [vmem:[#allocation28_spill] sm:$0xff] }
 0x1c9   :  { %4775 = vmatmul.mubr.bf16.gmra.mrb[24].mxu1 %v9479_v24  ;;  %4986 = vmatprep.mubr.msk.bf16.mxu0 %vm5509_vm0, %v9032_v30  ;;  %v9524_v24 = vld [vmem:[#allocation2_spill] sm:$0xff] }
 0x1ca   :  { %4778 = vmatprep.mubr.msk.bf16.mxu1 %vm5509_vm0, %v9032_v30  ;;  %v9525_v62 = vcombine.low %v9523_v54, %v9524_v24 }
 0x1d0   :  { %4987 = vmatmul.mubr.bf16.gmra.mrb[28].mxu0 %v4287_v25  ;;  %v9527_v25 = vld [vmem:[#allocation67_spill] sm:$0xff] }
 0x1d1   :  { %4779 = vmatmul.mubr.bf16.gmra.mrb[28].mxu1 %v9482_v26  ;;  %4990 = vmatprep.mubr.msk.bf16.mxu0 %vm5509_vm0, %v9032_v30  ;;  %v9528_v26 = vcombine.low %v8168_v16, %v9527_v25  ;;  %v9534_v16 = vld [vmem:[#allocation29_spill] sm:$0xff] }
 0x1d2   :  { %4782 = vmatprep.mubr.msk.bf16.mxu1 %vm5509_vm0, %v9032_v30  ;;  %v9536_v51 = vcombine.low %v9534_v16, %v9535_v15 }
 0x1d8   :  { %4991 = vmatmul.mubr.bf16.gmra.mrb[32].mxu0 %v9485_v49  ;;  %v9531_v49 = vld [vmem:[#allocation62_spill] sm:$0xff] }
 0x1d9   :  { %4783 = vmatmul.mubr.bf16.gmra.mrb[32].mxu1 %v9484_v6  ;;  %5010 = vmatprep.mubr.msk.bf16.mxu0 %vm5509_vm0, %v9032_v30  ;;  %v9530_v6 = vld [vmem:[#allocation25_spill] sm:$0xff] }
 0x1da   :  { %4802 = vmatprep.mubr.msk.bf16.mxu1 %vm5509_vm0, %v9032_v30 }
 0x1e0   :  { %5011 = vmatmul.mubr.bf16.vlgmr.msra.gmra.mrb[0].mxu0 %v7852_v7  ;;  %v5493_v7 = vld [vmem:[%s8829_s4 + $0x210] sm:$0xff]  }
 0x1e1   :  { %4803 = vmatmul.mubr.bf16.vlgmr.msra.gmra.mrb[0].mxu1 %v9488_v37  ;;  %5047 = vmatpush3.bf16.msra.mxu0 %v5489_v20  ;;  %v9532_v20 = vcombine.low %v9530_v6, %v9531_v49  ;;  %v9537_v37 = vld [vmem:[#allocation59_spill] sm:$0xff] }
 0x1e2   :  { %5099 = vmatpush3.bf16.msra.mxu1 %v5490_v3  ;;  %4806 = vmatprep.mubr.msk.bf16.mxu1 %vm5509_vm0, %v9032_v30  ;;  %v9533_v3 = vld [vmem:[#allocation10_spill] sm:$0xff] }
 0x1e3   :  { %5014 = vmatprep.mubr.msk.bf16.mxu0 %vm5509_vm0, %v9032_v30  ;;  %5048 = vmatprep.subr.bf16.mxu0 %v9032_v30 }
 0x1e4   :  { %5100 = vmatprep.subr.bf16.mxu1 %v9032_v30 }
 0x1e5   :  { %5049 = vmatpush3.bf16.msra.mxu0 %v5491_v63  ;;  %v9538_v63 = vld [vmem:[#allocation32_spill] sm:$0xff] }
 0x1e6   :  { %5101 = vmatpush3.bf16.msra.mxu1 %v5492_v14  ;;  %5050 = vmatprep.subr.bf16.mxu0 %v9032_v30  ;;  %v9539_v14 = vld [vmem:[#allocation41_spill] sm:$0xff] }
 0x1e7   :  { %5102 = vmatprep.subr.bf16.mxu1 %v9032_v30 }
 0x1e8   :  { %5015 = vmatmul.mubr.bf16.gmra.mrb[4].mxu0 %v9490_v10  ;;  %v9543_v10 = vld [vmem:[#allocation34_spill] sm:$0xff] }
 0x1e9   :  { %4807 = vmatmul.mubr.bf16.gmra.mrb[4].mxu1 %v9489_v35  ;;  %5018 = vmatprep.mubr.msk.bf16.mxu0 %vm5509_vm0, %v9032_v30  ;;  %v9542_v35 = vld [vmem:[#allocation73_spill] sm:$0xff] }
 0x1ea   :  { %4810 = vmatprep.mubr.msk.bf16.mxu1 %vm5509_vm0, %v9032_v30  ;;  %5051 = vmatpush3.bf16.msra.mxu0 %v5493_v7  ;;  %v9540_v7 = vcombine.low %v9538_v63, %v9539_v14 }
 0x1eb   :  { %5103 = vmatpush3.bf16.msra.mxu1 %v5494_v1  ;;  %5052 = vmatprep.subr.bf16.mxu0 %v9032_v30  ;;  %v9541_v1 = vld [vmem:[#allocation70_spill] sm:$0xff] }
 0x1ec   :  { %5104 = vmatprep.subr.bf16.mxu1 %v9032_v30 }
 0x1ee   :  { %5053 = vmatpush3.bf16.msra.mxu0 %v5495_v45  ;;  %v9544_v45 = vcombine.low %v9542_v35, %v9543_v10 }
 0x1ef   :  { %5105 = vmatpush3.bf16.msra.mxu1 %v5496_v48  ;;  %5054 = vmatprep.subr.bf16.mxu0 %v9032_v30  ;;  %v9545_v48 = vld [vmem:[#allocation9_spill] sm:$0xff] }
 0x1f0   :  { %5106 = vmatprep.subr.bf16.mxu1 %v9032_v30  ;;  %5019 = vmatmul.mubr.bf16.gmra.mrb[8].mxu0 %v9492_v5  ;;  %v9549_v5 = vld [vmem:[#allocation47_spill] sm:$0xff] }
 0x1f1   :  { %4811 = vmatmul.mubr.bf16.gmra.mrb[8].mxu1 %v9491_v60  ;;  %5022 = vmatprep.mubr.msk.bf16.mxu0 %vm5509_vm0, %v9032_v30 }
 0x1f2   :  { %4814 = vmatprep.mubr.msk.bf16.mxu1 %vm5509_vm0, %v9032_v30  ;;  %5055 = vmatpush3.bf16.msra.mxu0 %v5497_v28  ;;  %v9546_v28 = vld [vmem:[#allocation75_spill] sm:$0xff] }
 0x1f3   :  { %5107 = vmatpush3.bf16.msra.mxu1 %v5498_v19  ;;  %5056 = vmatprep.subr.bf16.mxu0 %v9032_v30  ;;  %v9547_v19 = vld [vmem:[#allocation78_spill] sm:$0xff] }
 0x1f4   :  { %5108 = vmatprep.subr.bf16.mxu1 %v9032_v30  ;;  %v9548_v60 = vcombine.low %v9546_v28, %v9547_v19 }
 0x1f6   :  { %5057 = vmatpush3.bf16.msra.mxu0 %v5499_v44 }
 0x1f7   :  { %5109 = vmatpush3.bf16.msra.mxu1 %v5500_v29  ;;  %5058 = vmatprep.subr.bf16.mxu0 %v9032_v30 }
 0x1f8   :  { %5110 = vmatprep.subr.bf16.mxu1 %v9032_v30  ;;  %5023 = vmatmul.mubr.bf16.gmra.mrb[12].mxu0 %v9494_v47 }
 0x1f9   :  { %4815 = vmatmul.mubr.bf16.gmra.mrb[12].mxu1 %v9493_v33  ;;  %5026 = vmatprep.mubr.msk.bf16.mxu0 %vm5509_vm0, %v9032_v30 }
 0x1fa   :  { %4818 = vmatprep.mubr.msk.bf16.mxu1 %vm5509_vm0, %v9032_v30  ;;  %5059 = vmatpush3.bf16.msra.mxu0 %v5501_v52 }
 0x1fb   :  { %5111 = vmatpush3.bf16.msra.mxu1 %v5502_v39  ;;  %5060 = vmatprep.subr.bf16.mxu0 %v9032_v30 }
 0x1fc   :  { %5112 = vmatprep.subr.bf16.mxu1 %v9032_v30 }
 0x1fe   :  { %5061 = vmatpush3.bf16.msra.mxu0 %v5503_v22 }
 0x1ff   :  { %5113 = vmatpush3.bf16.msra.mxu1 %v5504_v42 }
 0x200   :  { %5027 = vmatmul.mubr.bf16.gmra.mrb[16].mxu0 %v7977_v38  ;;  %v9500_v38 = vcombine.low %v8010_v46, %v8017_v57  ;;  %v9509_v46 = vld [vmem:[#allocation15_spill] sm:$0xff]  ;;  %v9510_v57 = vld [vmem:[#allocation49_spill] sm:$0xff] }
 0x201   :  { %4819 = vmatmul.mubr.bf16.gmra.mrb[16].mxu1 %v9497_v27  ;;  %5030 = vmatprep.mubr.msk.bf16.mxu0 %vm5509_vm0, %v9032_v30  ;;  %v9511_v18 = vcombine.low %v9509_v46, %v9510_v57 }
 0x202   :  { %4822 = vmatprep.mubr.msk.bf16.mxu1 %vm5509_vm0, %v9032_v30 }
 0x208   :  { %5031 = vmatmul.mubr.bf16.gmra.mrb[20].mxu0 %v9499_v9 }
 0x209   :  { %4823 = vmatmul.mubr.bf16.gmra.mrb[20].mxu1 %v9498_v58  ;;  %5034 = vmatprep.mubr.msk.bf16.mxu0 %vm5509_vm0, %v9032_v30 }
 0x20a   :  { %4826 = vmatprep.mubr.msk.bf16.mxu1 %vm5509_vm0, %v9032_v30 }
 0x210   :  { %5035 = vmatmul.mubr.bf16.gmra.mrb[24].mxu0 %v9503_v53 }
 0x211   :  { %4827 = vmatmul.mubr.bf16.gmra.mrb[24].mxu1 %v9500_v38  ;;  %5038 = vmatprep.mubr.msk.bf16.mxu0 %vm5509_vm0, %v9032_v30 }
 0x212   :  { %4830 = vmatprep.mubr.msk.bf16.mxu1 %vm5509_vm0, %v9032_v30 }
 0x218   :  { %5039 = vmatmul.mubr.bf16.gmra.mrb[28].mxu0 %v9508_v59 }
 0x219   :  { %4831 = vmatmul.mubr.bf16.gmra.mrb[28].mxu1 %v9505_v12  ;;  %5042 = vmatprep.mubr.msk.bf16.mxu0 %vm5509_vm0, %v9032_v30 }
 0x21a   :  { %4834 = vmatprep.mubr.msk.bf16.mxu1 %vm5509_vm0, %v9032_v30 }
 0x220   :  { %5043 = vmatmul.mubr.bf16.gmra.mrb[32].mxu0 %v9514_v36 }
 0x221   :  { %4835 = vmatmul.mubr.bf16.gmra.mrb[32].mxu1 %v9511_v18  ;;  %5062 = vmatprep.mubr.msk.bf16.mxu0 %vm5509_vm0, %v9032_v30 }
 0x222   :  { %5114 = vmatprep.mubr.msk.bf16.mxu1 %vm5509_vm0, %v9032_v30 }
 0x228   :  { %5063 = vmatmul.mubr.bf16.vlgmr.msra.gmra.mrb[0].mxu0 %v9517_v61 }
 0x229   :  { %5115 = vmatmul.mubr.bf16.vlgmr.msra.gmra.mrb[36].mxu1 %v9518_v8  ;;  %5066 = vmatprep.mubr.msk.bf16.mxu0 %vm5509_vm0, %v9032_v30 }
 0x22a   :  { %5118 = vmatprep.mubr.msk.bf16.mxu1 %vm5509_vm0, %v9032_v30 }
 0x230   :  { %5067 = vmatmul.mubr.bf16.gmra.mrb[4].mxu0 %v9521_v4 }
 0x231   :  { %5119 = vmatmul.mubr.bf16.gmra.mrb[40].mxu1 %v9522_v31  ;;  %5070 = vmatprep.mubr.msk.bf16.mxu0 %vm5509_vm0, %v9032_v30 }
 0x232   :  { %5122 = vmatprep.mubr.msk.bf16.mxu1 %vm5509_vm0, %v9032_v30 }
 0x238   :  { %5071 = vmatmul.mubr.bf16.gmra.mrb[8].mxu0 %v9525_v62 }
 0x239   :  { %5123 = vmatmul.mubr.bf16.gmra.mrb[44].mxu1 %v9526_v2  ;;  %5074 = vmatprep.mubr.msk.bf16.mxu0 %vm5509_vm0, %v9032_v30 }
 0x23a   :  { %5126 = vmatprep.mubr.msk.bf16.mxu1 %vm5509_vm0, %v9032_v30 }
 0x240   :  { %5075 = vmatmul.mubr.bf16.gmra.mrb[12].mxu0 %v9528_v26 }
 0x241   :  { %5127 = vmatmul.mubr.bf16.gmra.mrb[48].mxu1 %v9529_v23  ;;  %5078 = vmatprep.mubr.msk.bf16.mxu0 %vm5509_vm0, %v9032_v30 }
 0x242   :  { %5130 = vmatprep.mubr.msk.bf16.mxu1 %vm5509_vm0, %v9032_v30 }
 0x248   :  { %5079 = vmatmul.mubr.bf16.gmra.mrb[16].mxu0 %v9532_v20 }
 0x249   :  { %5131 = vmatmul.mubr.bf16.gmra.mrb[52].mxu1 %v9533_v3  ;;  %5082 = vmatprep.mubr.msk.bf16.mxu0 %vm5509_vm0, %v9032_v30 }
 0x24a   :  { %5134 = vmatprep.mubr.msk.bf16.mxu1 %vm5509_vm0, %v9032_v30 }
 0x250   :  { %5083 = vmatmul.mubr.bf16.gmra.mrb[20].mxu0 %v9536_v51 }
 0x251   :  { %5135 = vmatmul.mubr.bf16.gmra.mrb[56].mxu1 %v9537_v37  ;;  %5086 = vmatprep.mubr.msk.bf16.mxu0 %vm5509_vm0, %v9032_v30 }
 0x252   :  { %5138 = vmatprep.mubr.msk.bf16.mxu1 %vm5509_vm0, %v9032_v30 }
 0x258   :  { %5087 = vmatmul.mubr.bf16.gmra.mrb[24].mxu0 %v9540_v7 }
 0x259   :  { %5139 = vmatmul.mubr.bf16.gmra.mrb[60].mxu1 %v9541_v1  ;;  %5090 = vmatprep.mubr.msk.bf16.mxu0 %vm5509_vm0, %v9032_v30 }
 0x25a   :  { %5142 = vmatprep.mubr.msk.bf16.mxu1 %vm5509_vm0, %v9032_v30 }
 0x260   :  { %5091 = vmatmul.mubr.bf16.gmra.mrb[28].mxu0 %v9544_v45 }
 0x261   :  { %5143 = vmatmul.mubr.bf16.gmra.mrb[64].mxu1 %v9545_v48  ;;  %5094 = vmatprep.mubr.msk.bf16.mxu0 %vm5509_vm0, %v9032_v30 }
 0x262   :  { %5146 = vmatprep.mubr.msk.bf16.mxu1 %vm5509_vm0, %v9032_v30 }
 0x268   :  { %5095 = vmatmul.mubr.bf16.gmra.mrb[32].mxu0 %v9548_v60 }
 0x269   :  { %5147 = vmatmul.mubr.bf16.gmra.mrb[68].mxu1 %v9549_v5 }
 0x2b4   :  { %v2001_v44 = vpop.f32.mrb[0].mxu1 }
 0x2b5   :  { %v4804_v29 = vpop.f32.mrb[1].mxu1 }
 0x2b6   :  { %v2004_v52 = vpop.f32.mrb[2].mxu1 }
 0x2b7   :  { %v4805_v39 = vpop.f32.mrb[3].mxu1 }
 0x2bc   :  { %v2009_v33 = vpop.f32.mrb[4].mxu1 }
 0x2bd   :  { %v4808_v47 = vpop.f32.mrb[5].mxu1 }
 0x2be   :  { %v2012_v22 = vpop.f32.mrb[6].mxu1 }
 0x2bf   :  { %v4809_v42 = vpop.f32.mrb[7].mxu1 }
 0x2c4   :  { %v2017_v17 = vpop.f32.mrb[8].mxu1 }
 0x2c5   :  { %v4812_v41 = vpop.f32.mrb[9].mxu1 }
 0x2c6   :  { %v8681_v27 = vpop.f32.mrb[10].mxu1 }
 0x2c7   :  { %v4813_v58 = vpop.f32.mrb[11].mxu1 }
 0x2cc   :  { %v8683_v30 = vpop.f32.mrb[12].mxu1 }
 0x2cd   :  { %v4816_v9 = vpop.f32.mrb[13].mxu1 }
 0x2ce   :  { %v8685_v38 = vpop.f32.mrb[14].mxu1 }
 0x2cf   :  { %v4817_v32 = vpop.f32.mrb[15].mxu1 }
 0x2d4   :  { %v8687_v43 = vpop.f32.mrb[16].mxu1 }
 0x2d5   :  { %v4820_v53 = vpop.f32.mrb[17].mxu1 }
 0x2d6   :  { %v8689_v11 = vpop.f32.mrb[18].mxu1 }
 0x2d7   :  { %v4821_v12 = vpop.f32.mrb[19].mxu1 }
 0x2dc   :  { %v8691_v13 = vpop.f32.mrb[20].mxu1 }
 0x2dd   :  { %v4824_v21 = vpop.f32.mrb[21].mxu1 }
 0x2de   :  { %v8693_v59 = vpop.f32.mrb[22].mxu1 }
 0x2df   :  { %v4825_v46 = vpop.f32.mrb[23].mxu1 }
 0x2e4   :  { %v8695_v57 = vpop.f32.mrb[24].mxu1 }
 0x2e5   :  { %v4828_v18 = vpop.f32.mrb[25].mxu1 }
 0x2e6   :  { %v8697_v50 = vpop.f32.mrb[26].mxu1 }
 0x2e7   :  { %v4829_v55 = vpop.f32.mrb[27].mxu1 }
 0x2ec   :  { %v8699_v36 = vpop.f32.mrb[28].mxu1 }
 0x2ed   :  { %v4832_v34 = vpop.f32.mrb[29].mxu1 }
 0x2ee   :  { %v8701_v40 = vpop.f32.mrb[30].mxu1 }
 0x2ef   :  { %v4833_v61 = vpop.f32.mrb[31].mxu1 }
 0x2f4   :  { %v8703_v8 = vpop.f32.mrb[32].mxu1 }
 0x2f5   :  { %v4836_v56 = vpop.f32.mrb[33].mxu1 }
 0x2f6   :  { %v8705_v0 = vpop.f32.mrb[34].mxu1 }
 0x2f7   :  { %v4837_v4 = vpop.f32.mrb[35].mxu1 }
 0x2fb   :  { %v3698_v31 = vpop.f32.mrb[0].mxu0 }
 0x2fc   :  { %v3903_v54 = vpop.f32.mrb[36].mxu1  ;;  %v5150_v24 = vadd.f32 %v3698_v31, %v2001_v44  ;;  %v5064_v62 = vpop.f32.mrb[1].mxu0 }
 0x2fd   :  { %3974 = vst [vmem:[%s8834_s7] sm:$0xff] %v3903_v54  ;;  %v5116_v2 = vpop.f32.mrb[37].mxu1  ;;  %v3701_v25 = vpop.f32.mrb[2].mxu0 }
 0x2fe   :  { %v3906_v26 = vpop.f32.mrb[38].mxu1  ;;  %3787 = vst [vmem:[%s8835_s6] sm:$0xff] %v5150_v24  ;;  %v5151_v23 = vadd.f32 %v3701_v25, %v2004_v52  ;;  %v5065_v6 = vpop.f32.mrb[3].mxu0 }
 0x2ff   :  { %3975 = vst [vmem:[%s8834_s7 + $0x8] sm:$0xff] %v3906_v26  ;;  %v5117_v49 = vpop.f32.mrb[39].mxu1 }
 0x300   :  { %3788 = vst [vmem:[%s8835_s6 + $0x8] sm:$0xff] %v5151_v23 }
 0x303   :  { %v3706_v20 = vpop.f32.mrb[4].mxu0 }
 0x304   :  { %v3911_v3 = vpop.f32.mrb[40].mxu1  ;;  %v5152_v16 = vadd.f32 %v3706_v20, %v2009_v33  ;;  %v5068_v15 = vpop.f32.mrb[5].mxu0 }
 0x305   :  { %3976 = vst [vmem:[%s8834_s7 + $0x10] sm:$0xff] %v3911_v3  ;;  %v5120_v51 = vpop.f32.mrb[41].mxu1  ;;  %v3709_v37 = vpop.f32.mrb[6].mxu0 }
 0x306   :  { %v3914_v63 = vpop.f32.mrb[42].mxu1  ;;  %3789 = vst [vmem:[%s8835_s6 + $0x10] sm:$0xff] %v5152_v16  ;;  %v5153_v14 = vadd.f32 %v3709_v37, %v2012_v22  ;;  %v5069_v7 = vpop.f32.mrb[7].mxu0 }
 0x307   :  { %3977 = vst [vmem:[%s8834_s7 + $0x18] sm:$0xff] %v3914_v63  ;;  %v5121_v1 = vpop.f32.mrb[43].mxu1 }
 0x308   :  { %3790 = vst [vmem:[%s8835_s6 + $0x18] sm:$0xff] %v5153_v14 }
 0x30b   :  { %v3714_v35 = vpop.f32.mrb[8].mxu0 }
 0x30c   :  { %v3919_v10 = vpop.f32.mrb[44].mxu1  ;;  %v5154_v45 = vadd.f32 %v3714_v35, %v2017_v17  ;;  %v5072_v48 = vpop.f32.mrb[9].mxu0 }
 0x30d   :  { %3978 = vst [vmem:[%s8834_s7 + $0x20] sm:$0xff] %v3919_v10  ;;  %v5124_v28 = vpop.f32.mrb[45].mxu1  ;;  %v3717_v19 = vpop.f32.mrb[10].mxu0 }
 0x30e   :  { %v3922_v60 = vpop.f32.mrb[46].mxu1  ;;  %3791 = vst [vmem:[%s8835_s6 + $0x20] sm:$0xff] %v5154_v45  ;;  %v5155_v5 = vadd.f32 %v3717_v19, %v8681_v27  ;;  %v5073_v44 = vpop.f32.mrb[11].mxu0 }
 0x30f   :  { %3979 = vst [vmem:[%s8834_s7 + $0x28] sm:$0xff] %v3922_v60  ;;  %v5125_v29 = vpop.f32.mrb[47].mxu1 }
 0x310   :  { %3792 = vst [vmem:[%s8835_s6 + $0x28] sm:$0xff] %v5155_v5 }
 0x313   :  { %v3722_v52 = vpop.f32.mrb[12].mxu0 }
 0x314   :  { %v3927_v39 = vpop.f32.mrb[48].mxu1  ;;  %v5156_v33 = vadd.f32 %v3722_v52, %v8683_v30  ;;  %v5076_v47 = vpop.f32.mrb[13].mxu0 }
 0x315   :  { %3980 = vst [vmem:[%s8834_s7 + $0x30] sm:$0xff] %v3927_v39  ;;  %v5128_v22 = vpop.f32.mrb[49].mxu1  ;;  %v3725_v42 = vpop.f32.mrb[14].mxu0 }
 0x316   :  { %v3930_v17 = vpop.f32.mrb[50].mxu1  ;;  %3793 = vst [vmem:[%s8835_s6 + $0x30] sm:$0xff] %v5156_v33  ;;  %v5157_v41 = vadd.f32 %v3725_v42, %v8685_v38  ;;  %v5077_v27 = vpop.f32.mrb[15].mxu0 }
 0x317   :  { %3981 = vst [vmem:[%s8834_s7 + $0x38] sm:$0xff] %v3930_v17  ;;  %v5129_v58 = vpop.f32.mrb[51].mxu1 }
 0x318   :  { %3794 = vst [vmem:[%s8835_s6 + $0x38] sm:$0xff] %v5157_v41 }
 0x31b   :  { %v3730_v30 = vpop.f32.mrb[16].mxu0 }
 0x31c   :  { %v3935_v9 = vpop.f32.mrb[52].mxu1  ;;  %v5158_v32 = vadd.f32 %v3730_v30, %v8687_v43  ;;  %v5080_v53 = vpop.f32.mrb[17].mxu0 }
 0x31d   :  { %3982 = vst [vmem:[%s8834_s7 + $0x40] sm:$0xff] %v3935_v9  ;;  %v5132_v38 = vpop.f32.mrb[53].mxu1  ;;  %v3733_v12 = vpop.f32.mrb[18].mxu0 }
 0x31e   :  { %v3938_v21 = vpop.f32.mrb[54].mxu1  ;;  %3795 = vst [vmem:[%s8835_s6 + $0x40] sm:$0xff] %v5158_v32  ;;  %v5159_v46 = vadd.f32 %v3733_v12, %v8689_v11  ;;  %v5081_v18 = vpop.f32.mrb[19].mxu0 }
 0x31f   :  { %3983 = vst [vmem:[%s8834_s7 + $0x48] sm:$0xff] %v3938_v21  ;;  %v5133_v43 = vpop.f32.mrb[55].mxu1 }
 0x320   :  { %3796 = vst [vmem:[%s8835_s6 + $0x48] sm:$0xff] %v5159_v46 }
 0x323   :  { %v3738_v55 = vpop.f32.mrb[20].mxu0 }
 0x324   :  { %v3943_v34 = vpop.f32.mrb[56].mxu1  ;;  %v5160_v61 = vadd.f32 %v3738_v55, %v8691_v13  ;;  %v5084_v56 = vpop.f32.mrb[21].mxu0 }
 0x325   :  { %3984 = vst [vmem:[%s8834_s7 + $0x50] sm:$0xff] %v3943_v34  ;;  %v5136_v11 = vpop.f32.mrb[57].mxu1  ;;  %v3741_v4 = vpop.f32.mrb[22].mxu0 }
 0x326   :  { %v3946_v31 = vpop.f32.mrb[58].mxu1  ;;  %3797 = vst [vmem:[%s8835_s6 + $0x50] sm:$0xff] %v5160_v61  ;;  %v5161_v54 = vadd.f32 %v3741_v4, %v8693_v59  ;;  %v5085_v24 = vpop.f32.mrb[23].mxu0 }
 0x327   :  { %3985 = vst [vmem:[%s8834_s7 + $0x58] sm:$0xff] %v3946_v31  ;;  %v5137_v13 = vpop.f32.mrb[59].mxu1 }
 0x328   :  { %3798 = vst [vmem:[%s8835_s6 + $0x58] sm:$0xff] %v5161_v54 }
 0x32b   :  { %v3746_v62 = vpop.f32.mrb[24].mxu0 }
 0x32c   :  { %v3951_v2 = vpop.f32.mrb[60].mxu1  ;;  %v5162_v25 = vadd.f32 %v3746_v62, %v8695_v57  ;;  %v5088_v26 = vpop.f32.mrb[25].mxu0 }
 0x32d   :  { %3986 = vst [vmem:[%s8834_s7 + $0x60] sm:$0xff] %v3951_v2  ;;  %v5140_v59 = vpop.f32.mrb[61].mxu1  ;;  %v3749_v23 = vpop.f32.mrb[26].mxu0 }
 0x32e   :  { %v3954_v6 = vpop.f32.mrb[62].mxu1  ;;  %3799 = vst [vmem:[%s8835_s6 + $0x60] sm:$0xff] %v5162_v25  ;;  %v5163_v49 = vadd.f32 %v3749_v23, %v8697_v50  ;;  %v5089_v20 = vpop.f32.mrb[27].mxu0 }
 0x32f   :  { %3987 = vst [vmem:[%s8834_s7 + $0x68] sm:$0xff] %v3954_v6  ;;  %v5141_v57 = vpop.f32.mrb[63].mxu1 }
 0x330   :  { %3800 = vst [vmem:[%s8835_s6 + $0x68] sm:$0xff] %v5163_v49 }
 0x333   :  { %v3754_v3 = vpop.f32.mrb[28].mxu0 }
 0x334   :  { %v3959_v16 = vpop.f32.mrb[64].mxu1  ;;  %v5164_v15 = vadd.f32 %v3754_v3, %v8699_v36  ;;  %v5092_v51 = vpop.f32.mrb[29].mxu0 }
 0x335   :  { %3988 = vst [vmem:[%s8834_s7 + $0x70] sm:$0xff] %v3959_v16  ;;  %v5144_v50 = vpop.f32.mrb[65].mxu1  ;;  %v3757_v37 = vpop.f32.mrb[30].mxu0 }
 0x336   :  { %v3962_v63 = vpop.f32.mrb[66].mxu1  ;;  %3801 = vst [vmem:[%s8835_s6 + $0x70] sm:$0xff] %v5164_v15  ;;  %v5165_v14 = vadd.f32 %v3757_v37, %v8701_v40  ;;  %v5093_v7 = vpop.f32.mrb[31].mxu0 }
 0x337   :  { %3989 = vst [vmem:[%s8834_s7 + $0x78] sm:$0xff] %v3962_v63  ;;  %v5145_v36 = vpop.f32.mrb[67].mxu1 }
 0x338   :  { %3802 = vst [vmem:[%s8835_s6 + $0x78] sm:$0xff] %v5165_v14 }
 0x33b   :  { %v3762_v1 = vpop.f32.mrb[32].mxu0 }
 0x33c   :  { %v3967_v35 = vpop.f32.mrb[68].mxu1  ;;  %v5166_v10 = vadd.f32 %v3762_v1, %v8703_v8  ;;  %v5096_v45 = vpop.f32.mrb[33].mxu0 }
 0x33d   :  { %3990 = vst [vmem:[%s8834_s7 + $0x80] sm:$0xff] %v3967_v35  ;;  %v5148_v40 = vpop.f32.mrb[69].mxu1  ;;  %v3765_v48 = vpop.f32.mrb[34].mxu0 }
 0x33e   :  { %v3970_v28 = vpop.f32.mrb[70].mxu1  ;;  %3803 = vst [vmem:[%s8835_s6 + $0x80] sm:$0xff] %v5166_v10  ;;  %v5167_v19 = vadd.f32 %v3765_v48, %v8705_v0  ;;  %v5097_v60 = vpop.f32.mrb[35].mxu0 }
 0x33f   :  { %3991 = vst [vmem:[%s8834_s7 + $0x88] sm:$0xff] %v3970_v28  ;;  %v5149_v8 = vpop.f32.mrb[71].mxu1 }
 0x340   :  { %3804 = vst [vmem:[%s8835_s6 + $0x88] sm:$0xff] %v5167_v19 }

// kernel: _lambda_.6
= control target key start
LH: loop header
LB: loop body
LE: loop exit
PB: predicated region body
PF: predicated region fallthrough
CT: control target
= control target key end

     0   :  { %v3383_v0 = vmov 0   ;;  %vm289_vm0 = vsmask.f32 7424  ;;  %vm1201_vm1 = vsmask.f32 2304  ;;  %vm1460_vm2 = vcmask 1041408   ;;  %s4513_s1 = inlined_call_operand.vmem [shape: f32[110,1], index: 1, kind: input, shape index: {}]   ;;  %s4514_s4 = inlined_call_operand.vmem [shape: bf16[9,128,128], index: 4, kind: input, shape index: {}]   ;;  %s4515_s2 = inlined_call_operand.vmem [shape: f32[1,128], index: 2, kind: input, shape index: {}]   ;;  %s4516_s0 = inlined_call_operand.vmem [shape: f32[2,110,128], index: 0, kind: input, shape index: {}]   ;;  %s4517_s3 = inlined_call_operand.vmem [shape: f32[1,128], index: 3, kind: input, shape index: {}]   ;;  %s4518_s5 = inlined_call_operand.vmem [shape: f32[2,80,128], index: 5, kind: output, shape index: {}]  }
   0x1   :  { %3310 = vset.pattern.permute.xlu1 %v3383_v0  ;;  %3309 = vset.pattern.permute.xlu0 %v3383_v0  ;;  %v149_v1 = vld [vmem:[%s4513_s1 + $0x10] sm:$0xff]  ;;  %v147_v2 = vld [vmem:[%s4513_s1] sm:$0xff]  ;;  %v150_v3 = vld [vmem:[%s4513_s1 + $0x18] sm:$0xff]  ;;  %vm739_vm3 = vcmask 1046528   ;;  %vm1693_vm4 = vcmask 1045504   ;;  %vm970_vm6 = vcmask 1042432  }
   0x2   :  { %173 = vperm.xlu1 %3310, %v149_v1   ;;  %163 = vperm.xlu0 %3309, %v147_v2   ;;  %v148_v4 = vld [vmem:[%s4513_s1 + $0x8] sm:$0xff]  ;;  %v151_v6 = vld [vmem:[%s4513_s1 + $0x20] sm:$0xff]  ;;  %v154_v10 = vld [vmem:[%s4513_s1 + $0x38] sm:$0xff]  ;;  %vm1924_vm5 = vsmask.f32 5376  ;;  %vm2189_vm7 = vcmask 1044480  }
   0x3   :  { %v152_v5 = vld [vmem:[%s4513_s1 + $0x28] sm:$0xff]  ;;  %v3311_v7 = vld [vmem:[%s4514_s4 + $0x40] sm:$0xff]   ;;  %v153_v12 = vld [vmem:[%s4513_s1 + $0x30] sm:$0xff] }
   0x4   :  { %v3312_v8 = vld [vmem:[%s4514_s4 + $0x100] sm:$0xff]   ;;  %2808 = vmatprep.subr.bf16.mxu1 %v3311_v7  ;;  %v3313_v9 = vld [vmem:[%s4514_s4 + $0x48] sm:$0xff]   ;;  %v3315_v13 = vld [vmem:[%s4514_s4 + $0x50] sm:$0xff]  }
   0x5   :  { %2809 = vmatpush3.bf16.msra.mxu1 %v3311_v7  ;;  %2952 = vmatprep.subr.bf16.mxu0 %v3312_v8  ;;  %v3314_v11 = vld [vmem:[%s4514_s4 + $0x108] sm:$0xff]   ;;  %v3316_v14 = vld [vmem:[%s4514_s4 + $0x110] sm:$0xff]   ;;  %v155_v16 = vld [vmem:[%s4513_s1 + $0x40] sm:$0xff] }
   0x6   :  { %178 = vperm.xlu1 %3310, %v150_v3   ;;  %168 = vperm.xlu0 %3309, %v148_v4   ;;  %v156_v15 = vld [vmem:[%s4513_s1 + $0x48] sm:$0xff]  ;;  %v3317_v17 = vld [vmem:[%s4514_s4 + $0x58] sm:$0xff]   ;;  %v157_v20 = vld [vmem:[%s4513_s1 + $0x50] sm:$0xff] }
   0x7   :  { %2953 = vmatpush3.bf16.msra.mxu0 %v3312_v8  ;;  %2810 = vmatprep.subr.bf16.mxu1 %v3313_v9  ;;  %v3318_v18 = vld [vmem:[%s4514_s4 + $0x118] sm:$0xff]   ;;  %v3319_v21 = vld [vmem:[%s4514_s4 + $0x60] sm:$0xff]   ;;  %v160_v23 = vld [vmem:[%s4513_s1 + $0x68] sm:$0x3f] }
   0x8   :  { %2954 = vmatprep.subr.bf16.mxu0 %v3314_v11  ;;  %v158_v19 = vld [vmem:[%s4513_s1 + $0x58] sm:$0xff]  ;;  %v3320_v22 = vld [vmem:[%s4514_s4 + $0x120] sm:$0xff]   ;;  %v3321_v25 = vld [vmem:[%s4514_s4 + $0x68] sm:$0xff]  }
   0x9   :  { %2811 = vmatpush3.bf16.msra.mxu1 %v3313_v9  ;;  %v159_v24 = vld [vmem:[%s4513_s1 + $0x60] sm:$0xff]  ;;  %v3322_v26 = vld [vmem:[%s4514_s4 + $0x128] sm:$0xff]   ;;  %v3323_v27 = vld [vmem:[%s4514_s4 + $0x70] sm:$0xff]  }
   0xa   :  { %188 = vperm.xlu1 %3310, %v152_v5   ;;  %183 = vperm.xlu0 %3309, %v151_v6   ;;  %v3324_v28 = vld [vmem:[%s4514_s4 + $0x130] sm:$0xff]   ;;  %v3325_v29 = vld [vmem:[%s4514_s4 + $0x78] sm:$0xff]   ;;  %v34_v31 = vld [vmem:[%s4516_s0 + $0x68] sm:$0x3f] }
   0xb   :  { %2955 = vmatpush3.bf16.msra.mxu0 %v3314_v11  ;;  %2812 = vmatprep.subr.bf16.mxu1 %v3315_v13  ;;  %v3326_v30 = vld [vmem:[%s4514_s4 + $0x138] sm:$0xff]   ;;  %v33_v33 = vld [vmem:[%s4516_s0 + $0x60] sm:$0xff]  ;;  %v47_v34 = vld [vmem:[%s4516_s0 + $0xd0] sm:$0xff] }
   0xc   :  { %2956 = vmatprep.subr.bf16.mxu0 %v3316_v14  ;;  %v48_v32 = vld [vmem:[%s4516_s0 + $0xd8] sm:$0x3f]  ;;  %v3519_v35 = vld [vmem:[%s4515_s2] ss:$0 sm:$0xff]  ;;  %v23_v47 = vld [vmem:[%s4516_s0 + $0x10] sm:$0xff] }
   0xd   :  { %2813 = vmatpush3.bf16.msra.mxu1 %v3315_v13  ;;  %v69_v36 = vmul.f32 %v3519_v35, %v34_v31  ;;  %v83_v37 = vmul.f32 %v3519_v35, %v48_v32  ;;  %v3526_v38 = vld [vmem:[%s4514_s4] sm:$0xff]   ;;  %v68_v41 = vmul.f32 %v3519_v35, %v33_v33  ;;  %v82_v42 = vmul.f32 %v3519_v35, %v47_v34  ;;  %v35_v50 = vld [vmem:[%s4516_s0 + $0x70] sm:$0xff]  ;;  %v24_v51 = vld [vmem:[%s4516_s0 + $0x18] sm:$0xff] }
   0xe   :  { %198 = vperm.xlu1 %3310, %v154_v10   ;;  %193 = vperm.xlu0 %3309, %v153_v12   ;;  %v3531_v39 = vld [vmem:[%s4517_s3] ss:$0 sm:$0xff]  ;;  %v58_v52 = vmul.f32 %v3519_v35, %v23_v47  ;;  %v38_v53 = vld [vmem:[%s4516_s0 + $0x88] sm:$0xff]  ;;  %v36_v55 = vld [vmem:[%s4516_s0 + $0x78] sm:$0xff]  ;;  %v70_v58 = vmul.f32 %v3519_v35, %v35_v50  ;;  %v59_v59 = vmul.f32 %v3519_v35, %v24_v51 }
   0xf   :  { %2957 = vmatpush3.bf16.msra.mxu0 %v3316_v14  ;;  %2814 = vmatprep.subr.bf16.mxu1 %v3317_v17  ;;  %v3536_v40 = vld [vmem:[%s4514_s4 + $0x140] sm:$0xff]   ;;  %v3541_v43 = vadd.f32 %v3531_v39, %v69_v36  ;;  %v3544_v44 = vadd.f32 %v3531_v39, %v83_v37  ;;  %v3547_v45 = vadd.f32 %v3531_v39, %v68_v41  ;;  %v22_v54 = vld [vmem:[%s4516_s0 + $0x8] sm:$0xff]  ;;  %v40_v8 = vld [vmem:[%s4516_s0 + $0x98] sm:$0xff] }
  0x10   :  { %2958 = vmatprep.subr.bf16.mxu0 %v3318_v18  ;;  %v3550_v46 = vadd.f32 %v3531_v39, %v82_v42  ;;  %v37_v48 = vld [vmem:[%s4516_s0 + $0x80] sm:$0xff]  ;;  %v73_v60 = vmul.f32 %v3519_v35, %v38_v53  ;;  %v57_v61 = vmul.f32 %v3519_v35, %v22_v54  ;;  %v71_v62 = vmul.f32 %v3519_v35, %v36_v55  ;;  %v26_v3 = vld [vmem:[%s4516_s0 + $0x28] sm:$0xff]  ;;  %v39_v10 = vld [vmem:[%s4516_s0 + $0x90] sm:$0xff] }
  0x11   :  { %2815 = vmatpush3.bf16.msra.mxu1 %v3317_v17  ;;  %v21_v49 = vld [vmem:[%s4516_s0] sm:$0xff]  ;;  %v72_v56 = vmul.f32 %v3519_v35, %v37_v48  ;;  %v3587_v63 = vadd.f32 %v3531_v39, %v58_v52  ;;  %v3596_v2 = vadd.f32 %v3531_v39, %v70_v58  ;;  %v3602_v4 = vadd.f32 %v3531_v39, %v59_v59  ;;  %v28_v12 = vld [vmem:[%s4516_s0 + $0x38] sm:$0xff]  ;;  %v42_v13 = vld [vmem:[%s4516_s0 + $0xa8] sm:$0xff] }
  0x12   :  { %208 = vperm.xlu1 %3310, %v156_v15   ;;  %203 = vperm.xlu0 %3309, %v155_v16   ;;  %v56_v57 = vmul.f32 %v3519_v35, %v21_v49  ;;  %v3605_v5 = vadd.f32 %v3531_v39, %v73_v60  ;;  %v3608_v6 = vadd.f32 %v3531_v39, %v57_v61  ;;  %v25_v9 = vld [vmem:[%s4516_s0 + $0x20] sm:$0xff]  ;;  %v27_v17 = vld [vmem:[%s4516_s0 + $0x30] sm:$0xff]  ;;  %v32_v31 = vld [vmem:[%s4516_s0 + $0x58] sm:$0xff] }
  0x13   :  { %2959 = vmatpush3.bf16.msra.mxu0 %v3318_v18  ;;  %2816 = vmatprep.subr.bf16.mxu1 %v3319_v21  ;;  %v3590_v0 = vadd.f32 %v3531_v39, %v72_v56  ;;  %v3611_v7 = vadd.f32 %v3531_v39, %v71_v62  ;;  %v121_v11 = vmax.f32 %v3587_v63, 0.0  ;;  %v133_v16 = vmax.f32 %v3596_v2, 0.0  ;;  %v41_v18 = vld [vmem:[%s4516_s0 + $0xa0] sm:$0xff]  ;;  %v46_v37 = vld [vmem:[%s4516_s0 + $0xc8] sm:$0xff]  ;;  %v31_v41 = vld [vmem:[%s4516_s0 + $0x50] sm:$0xff] }
  0x14   :  { %2960 = vmatprep.subr.bf16.mxu0 %v3320_v22  ;;  %v3593_v1 = vadd.f32 %v3531_v39, %v56_v57  ;;  %v63_v32 = vmul.f32 %v3519_v35, %v28_v12  ;;  %v77_v33 = vmul.f32 %v3519_v35, %v42_v13  ;;  %v62_v34 = vmul.f32 %v3519_v35, %v27_v17  ;;  %v45_v42 = vld [vmem:[%s4516_s0 + $0xc0] sm:$0xff] }
  0x15   :  { %2817 = vmatpush3.bf16.msra.mxu1 %v3319_v21  ;;  %v135_v14 = vmax.f32 %v3590_v0, 0.0  ;;  %v75_v21 = vmul.f32 %v3519_v35, %v40_v8  ;;  %v76_v36 = vmul.f32 %v3519_v35, %v41_v18  ;;  %v67_v55 = vmul.f32 %v3519_v35, %v32_v31 }
  0x16   :  { %218 = vperm.xlu1 %3310, %v158_v19   ;;  %213 = vperm.xlu0 %3309, %v157_v20   ;;  %v119_v15 = vmax.f32 %v3593_v1, 0.0  ;;  %v30_v19 = vld [vmem:[%s4516_s0 + $0x48] sm:$0xff]  ;;  %v61_v20 = vmul.f32 %v3519_v35, %v26_v3  ;;  %v81_v56 = vmul.f32 %v3519_v35, %v46_v37  ;;  %v66_v57 = vmul.f32 %v3519_v35, %v31_v41 }
  0x17   :  { %2961 = vmatpush3.bf16.msra.mxu0 %v3320_v22  ;;  %2818 = vmatprep.subr.bf16.mxu1 %v3321_v25  ;;  %v60_v22 = vmul.f32 %v3519_v35, %v25_v9  ;;  %v65_v47 = vmul.f32 %v3519_v35, %v30_v19  ;;  %v110_v52 = vadd.f32 %v3531_v39, %v75_v21  ;;  %v132_v63 = vmax.f32 %v3541_v43, 0.0 }
  0x18   :  { %2962 = vmatprep.subr.bf16.mxu0 %v3322_v26  ;;  %v96_v51 = vadd.f32 %v3531_v39, %v61_v20  ;;  %v80_v58 = vmul.f32 %v3519_v35, %v45_v42  ;;  %v3687_v59 = vadd.f32 %v3531_v39, %v63_v32  ;;  %v3690_v60 = vadd.f32 %v3531_v39, %v77_v33 }
  0x19   :  { %2819 = vmatpush3.bf16.msra.mxu1 %v3321_v25  ;;  %v29_v25 = vld [vmem:[%s4516_s0 + $0x40] sm:$0xff]  ;;  %v95_v53 = vadd.f32 %v3531_v39, %v60_v22  ;;  %v3693_v61 = vadd.f32 %v3531_v39, %v62_v34  ;;  %v3696_v62 = vadd.f32 %v3531_v39, %v76_v36  ;;  %v3711_v17 = vadd.f32 %v3531_v39, %v67_v55 }
  0x1a   :  { %228 = vperm.xlu1 %3310, %v160_v23   ;;  %223 = vperm.xlu0 %3309, %v159_v24   ;;  %v74_v23 = vmul.f32 %v3519_v35, %v39_v10  ;;  %v44_v24 = vld [vmem:[%s4516_s0 + $0xb8] sm:$0xff]  ;;  %v64_v49 = vmul.f32 %v3519_v35, %v29_v25  ;;  %v124_v9 = vmax.f32 %v96_v51, 0.0  ;;  %v138_v10 = vmax.f32 %v110_v52, 0.0 }
  0x1b   :  { %2820 = vmatprep.subr.bf16.mxu1 %v3323_v27  ;;  %2963 = vmatpush3.bf16.msra.mxu0 %v3322_v26  ;;  %v43_v26 = vld [vmem:[%s4516_s0 + $0xb0] sm:$0xff]  ;;  %v79_v48 = vmul.f32 %v3519_v35, %v44_v24  ;;  %v123_v12 = vmax.f32 %v95_v53, 0.0  ;;  %v3714_v18 = vadd.f32 %v3531_v39, %v81_v56  ;;  %v3717_v19 = vadd.f32 %v3531_v39, %v66_v57 }
  0x1c   :  { %2964 = vmatprep.subr.bf16.mxu0 %v3324_v28  ;;  %v78_v50 = vmul.f32 %v3519_v35, %v43_v26  ;;  %v109_v54 = vadd.f32 %v3531_v39, %v74_v23  ;;  %v3705_v35 = vadd.f32 %v3531_v39, %v64_v49  ;;  %v3720_v20 = vadd.f32 %v3531_v39, %v80_v58 }
  0x1d   :  { %2821 = vmatpush3.bf16.msra.mxu1 %v3323_v27  ;;  %v122_v27 = vmax.f32 %v3602_v4, 0.0  ;;  %v126_v21 = vmax.f32 %v3687_v59, 0.0  ;;  %v140_v22 = vmax.f32 %v3690_v60, 0.0  ;;  %v125_v23 = vmax.f32 %v3693_v61, 0.0 }
  0x1e   :  { %2822 = vmatprep.subr.bf16.mxu1 %v3325_v29  ;;  %v3708_v8 = vadd.f32 %v3531_v39, %v78_v50  ;;  %v137_v13 = vmax.f32 %v109_v54, 0.0  ;;  %v139_v24 = vmax.f32 %v3696_v62, 0.0  ;;  %v127_v33 = vmax.f32 %v3705_v35, 0.0 }
  0x1f   :  { %2965 = vmatpush3.bf16.msra.mxu0 %v3324_v28  ;;  %v136_v28 = vmax.f32 %v3605_v5, 0.0  ;;  %v130_v42 = vmax.f32 %v3711_v17, 0.0  ;;  %v143_v49 = vmax.f32 %v3720_v20, 0.0  ;;  %v146_v53 = vmax.f32 %v3544_v44, 0.0  ;;  %v3328_v17 = vld [vmem:[%s4514_s4 + $0x148] sm:$0xff]   ;;  %v3336_v20 = vld [vmem:[%s4514_s4 + $0x20] sm:$0xff]  }
  0x20   :  { %2966 = vmatprep.subr.bf16.mxu0 %v3326_v30  ;;  %v141_v34 = vmax.f32 %v3708_v8, 0.0 }
  0x21   :  { %2823 = vmatpush3.bf16.msra.mxu1 %v3325_v29  ;;  %v120_v29 = vmax.f32 %v3608_v6, 0.0  ;;  %v3699_v6 = vadd.f32 %v3531_v39, %v65_v47  ;;  %v144_v47 = vmax.f32 %v3714_v18, 0.0  ;;  %v3333_v18 = vld [vmem:[%s4514_s4 + $0x158] sm:$0xff]  }
  0x22   :  { %2844 = vmatprep.subr.bf16.mxu1 %v3526_v38 }
  0x23   :  { %2967 = vmatpush3.bf16.msra.mxu0 %v3326_v30  ;;  %v134_v30 = vmax.f32 %v3611_v7, 0.0  ;;  %v3702_v7 = vadd.f32 %v3531_v39, %v79_v48  ;;  %v128_v31 = vmax.f32 %v3699_v6, 0.0  ;;  %v129_v48 = vmax.f32 %v3717_v19, 0.0 }
  0x24   :  { %2988 = vmatprep.subr.bf16.mxu0 %v3536_v40 }
  0x25   :  { %v142_v32 = vmax.f32 %v3702_v7, 0.0 }
  0x81   :  { %v174_v3 = vpop.permute.xlu1 %173  ;;  %v164_v4 = vpop.permute.xlu0 %163 }
  0x82   :  { %v233_v39 = vmul.f32 %v174_v3, %v121_v11  ;;  %v231_v36 = vmul.f32 %v164_v4, %v119_v15  ;;  %v247_v1 = vmul.f32 %v174_v3, %v135_v14  ;;  %v245_v11 = vmul.f32 %v164_v4, %v133_v16 }
  0x83   :  { %v131_v16 = vmax.f32 %v3547_v45, 0.0 }
  0x85   :  { %v179_v25 = vpop.permute.xlu1 %178  ;;  %v169_v26 = vpop.permute.xlu0 %168 }
  0x86   :  { %v234_v37 = vmul.f32 %v179_v25, %v122_v27  ;;  %v232_v41 = vmul.f32 %v169_v26, %v120_v29  ;;  %v246_v51 = vmul.f32 %v169_v26, %v134_v30  ;;  %v248_v15 = vmul.f32 %v179_v25, %v136_v28 }
  0x87   :  { %v145_v28 = vmax.f32 %v3550_v46, 0.0 }
  0x88   :  { %v3738_v50 = vpack.c.bf16 %v234_v37, %v233_v39  ;;  %v3740_v52 = vpack.c.bf16 %v232_v41, %v231_v36  ;;  %v3758_v5 = vpack.c.bf16 %v246_v51, %v245_v11  ;;  %v3764_v59 = vpack.c.bf16 %v248_v15, %v247_v1 }
  0x89   :  { %v189_v27 = vpop.permute.xlu1 %188  ;;  %v184_v29 = vpop.permute.xlu0 %183 }
  0x8a   :  { %v236_v54 = vmul.f32 %v189_v27, %v124_v9  ;;  %v250_v30 = vmul.f32 %v189_v27, %v138_v10  ;;  %v235_v55 = vmul.f32 %v184_v29, %v123_v12  ;;  %v249_v56 = vmul.f32 %v184_v29, %v137_v13 }
  0x8b   :  { %v291_v57 = vshrl.u32 %v3740_v52, 16  ;;  %v293_v58 = vshll.u32 %v3740_v52, 16  ;;  %v3753_v0 = vshll.u32 %v3738_v50, 16  ;;  %v3756_v2 = vshrl.u32 %v3738_v50, 16 }
  0x8c   :  { %v3760_v14 = vpack.c.bf16 %v236_v54, %v235_v55  ;;  %v3766_v6 = vpack.c.bf16 %v250_v30, %v249_v56  ;;  %v337_v37 = vshll.u32 %v3758_v5, 16 }
  0x8d   :  { %v199_v60 = vpop.permute.xlu1 %198  ;;  %v194_v61 = vpop.permute.xlu0 %193  ;;  %v295_v62 = vrot.slane %v293_v58, 1  ;;  %v1202_v3 = vrot.slane %v291_v57, 5  ;;  %v1203_v4 = vrot.slane %v293_v58, 6  ;;  %v300_v9 = vrot.slane %v3753_v0, 1 }
  0x8e   :  { %v238_v7 = vmul.f32 %v199_v60, %v126_v21  ;;  %v237_v35 = vmul.f32 %v194_v61, %v125_v23  ;;  %v1205_v13 = vrot.slane %v3756_v2, 5  ;;  %v1206_v25 = vrot.slane %v3753_v0, 6 }
  0x8f   :  { %v296_v10 = vor.u32 %v295_v62, %v291_v57  ;;  %v1204_v12 = vor.u32 %v1203_v4, %v1202_v3  ;;  %v252_v26 = vmul.f32 %v199_v60, %v140_v22  ;;  %v3774_v36 = vshll.u32 %v3760_v14, 16 }
  0x90   :  { %v3771_v39 = vpack.c.bf16 %v238_v7, %v237_v35  ;;  %v251_v41 = vmul.f32 %v194_v61, %v139_v24  ;;  %v1207_v1 = vor.u32 %v1206_v25, %v1205_v13  ;;  %v3779_v11 = vshrl.u32 %v3760_v14, 16 }
  0x91   :  { %v209_v51 = vpop.permute.xlu1 %208  ;;  %v204_v21 = vpop.permute.xlu0 %203  ;;  %v301_v23 = vsel %vm289_vm0, %v296_v10, %v300_v9  ;;  %v304_v22 = vor.u32 %v3756_v2, %v300_v9  ;;  %v308_v30 = vrot.slane %v3774_v36, 1  ;;  %v1210_v55 = vrot.slane %v3774_v36, 6 }
  0x92   :  { %v240_v15 = vmul.f32 %v209_v51, %v128_v31  ;;  %v254_v27 = vmul.f32 %v209_v51, %v142_v32  ;;  %v239_v29 = vmul.f32 %v204_v21, %v127_v33  ;;  %2824 = vmatprep.mubr.bf16.mxu1 %v301_v23  ;;  %v1208_v54 = vsel %vm1201_vm1, %v1204_v12, %v1207_v1  ;;  %v3331_v33 = vld [vmem:[%s4514_s4 + $0x8] sm:$0xff]  }
  0x93   :  { %v1209_v24 = vrot.slane %v3779_v11, 5  ;;  %v253_v56 = vmul.f32 %v204_v21, %v141_v34  ;;  %2968 = vmatprep.mubr.bf16.mxu0 %v1208_v54  ;;  %v3791_v31 = vshll.u32 %v3771_v39, 16  ;;  %v3794_v32 = vshrl.u32 %v3771_v39, 16 }
  0x94   :  { %v3788_v57 = vpack.c.bf16 %v240_v15, %v239_v29  ;;  %v3799_v58 = vpack.c.bf16 %v252_v26, %v251_v41  ;;  %v309_v60 = vsel %vm289_vm0, %v304_v22, %v308_v30  ;;  %v335_v62 = vshrl.u32 %v3758_v5, 16  ;;  %v3332_v26 = vld [vmem:[%s4514_s4 + $0x10] sm:$0xff]  }
  0x95   :  { %v219_v61 = vpop.permute.xlu1 %218  ;;  %v214_v8 = vpop.permute.xlu0 %213  ;;  %v1211_v34 = vor.u32 %v1210_v55, %v1209_v24  ;;  %2825 = vmatmul.mubr.bf16.vlgmr.msra.gmra.mrb[0].mxu1 %v309_v60  ;;  %v312_v7 = vor.u32 %v3779_v11, %v308_v30  ;;  %v3810_v35 = vrot.slane %v337_v37, 1  ;;  %v316_v10 = vrot.slane %v3791_v31, 1  ;;  %v3330_v22 = vld [vmem:[%s4514_s4 + $0x150] sm:$0xff]  }
  0x96   :  { %v242_v3 = vmul.f32 %v219_v61, %v130_v42  ;;  %v241_v4 = vmul.f32 %v214_v8, %v129_v48  ;;  %v1213_v12 = vrot.slane %v3794_v32, 5  ;;  %v1214_v13 = vrot.slane %v3791_v31, 6  ;;  %2845 = vmatpush3.bf16.msra.mxu1 %v3526_v38 }
  0x97   :  { %v1212_v9 = vsel %vm1201_vm1, %v1207_v1, %v1211_v34  ;;  %v3820_v19 = vpack.c.bf16 %v254_v27, %v253_v56  ;;  %v3825_v48 = vshll.u32 %v3788_v57, 16  ;;  %v3828_v25 = vshrl.u32 %v3788_v57, 16  ;;  %2846 = vmatprep.subr.bf16.mxu1 %v3331_v33 }
  0x98   :  { %v3822_v42 = vpack.c.bf16 %v242_v3, %v241_v4  ;;  %2969 = vmatmul.mubr.bf16.vlgmr.msra.gmra.mrb[0].mxu0 %v1212_v9  ;;  %v317_v38 = vsel %vm289_vm0, %v312_v7, %v316_v10  ;;  %v1215_v21 = vor.u32 %v1214_v13, %v1213_v12  ;;  %v320_v23 = vor.u32 %v3794_v32, %v316_v10 }
  0x99   :  { %2989 = vmatpush3.bf16.msra.mxu0 %v3536_v40  ;;  %v229_v41 = vpop.permute.xlu1 %228  ;;  %v224_v51 = vpop.permute.xlu0 %223  ;;  %v3837_v1 = vshll.u32 %v3764_v59, 16  ;;  %2828 = vmatprep.mubr.bf16.mxu1 %v317_v38  ;;  %v324_v30 = vrot.slane %v3825_v48, 1  ;;  %v1217_v43 = vrot.slane %v3828_v25, 5  ;;  %v1218_v44 = vrot.slane %v3825_v48, 6 }
  0x9a   :  { %v244_v15 = vmul.f32 %v229_v41, %v132_v63  ;;  %v258_v27 = vmul.f32 %v229_v41, %v146_v53  ;;  %v243_v40 = vmul.f32 %v224_v51, %v131_v16  ;;  %v257_v29 = vmul.f32 %v224_v51, %v145_v28  ;;  %2990 = vmatprep.subr.bf16.mxu0 %v3328_v17  ;;  %v3334_v16 = vld [vmem:[%s4514_s4 + $0x18] sm:$0xff]   ;;  %v3335_v51 = vld [vmem:[%s4514_s4 + $0x160] sm:$0xff]  }
  0x9b   :  { %v1216_v54 = vsel %vm1201_vm1, %v1211_v34, %v1215_v21  ;;  %2847 = vmatpush3.bf16.msra.mxu1 %v3331_v33  ;;  %v3859_v46 = vshll.u32 %v3822_v42, 16  ;;  %v4524_v53 = vshrl.u32 %v3822_v42, 16  ;;  %v256_v28 = vmul.f32 %v219_v61, %v144_v47 }
  0x9c   :  { %v3854_v63 = vpack.c.bf16 %v244_v15, %v243_v40  ;;  %v3856_v45 = vpack.c.bf16 %v258_v27, %v257_v29  ;;  %2972 = vmatprep.mubr.bf16.mxu0 %v1216_v54  ;;  %2848 = vmatprep.subr.bf16.mxu1 %v3332_v26  ;;  %v325_v24 = vsel %vm289_vm0, %v320_v23, %v324_v30  ;;  %v3877_v47 = vshrl.u32 %v3764_v59, 16 }
  0x9d   :  { %2991 = vmatpush3.bf16.msra.mxu0 %v3328_v17  ;;  %v1219_v55 = vor.u32 %v1218_v44, %v1217_v43  ;;  %v328_v56 = vor.u32 %v3828_v25, %v324_v30  ;;  %2829 = vmatmul.mubr.bf16.gmra.mrb[4].mxu1 %v325_v24  ;;  %v332_v33 = vrot.slane %v3859_v46, 1  ;;  %v1223_v60 = vrot.slane %v4524_v53, 5 }
  0x9e   :  { %2992 = vmatprep.subr.bf16.mxu0 %v3330_v22  ;;  %v1224_v34 = vrot.slane %v3859_v46, 6  ;;  %v255_v61 = vmul.f32 %v214_v8, %v143_v49  ;;  %v3883_v4 = vshll.u32 %v3766_v6, 16  ;;  %v1227_v7 = vrot.slane %v335_v62, 5 }
  0x9f   :  { %v1220_v3 = vsel %vm1201_vm1, %v1215_v21, %v1219_v55  ;;  %2849 = vmatpush3.bf16.msra.mxu1 %v3332_v26  ;;  %v333_v9 = vsel %vm289_vm0, %v328_v56, %v332_v33  ;;  %v344_v12 = vrot.slane %v3837_v1, 1  ;;  %v1228_v13 = vrot.slane %v337_v37, 6 }
  0xa0   :  { %2973 = vmatmul.mubr.bf16.gmra.mrb[4].mxu0 %v1220_v3  ;;  %v1225_v10 = vor.u32 %v1224_v34, %v1223_v60  ;;  %2850 = vmatprep.subr.bf16.mxu1 %v3334_v16  ;;  %v340_v49 = vor.u32 %v3810_v35, %v335_v62  ;;  %v1230_v8 = vrot.slane %v3877_v47, 5  ;;  %v1231_v17 = vrot.slane %v3837_v1, 6 }
  0xa1   :  { %2832 = vmatprep.mubr.bf16.mxu1 %v333_v9  ;;  %2993 = vmatpush3.bf16.msra.mxu0 %v3330_v22  ;;  %v3900_v26 = vshrl.u32 %v3766_v6, 16  ;;  %v352_v38 = vrot.slane %v3883_v4, 1  ;;  %v1235_v41 = vrot.slane %v3883_v4, 6  ;;  %v1229_v62 = vor.u32 %v1228_v13, %v1227_v7  ;;  %v3338_v22 = vld [vmem:[%s4514_s4 + $0x28] sm:$0xff]   ;;  %v3339_v7 = vld [vmem:[%s4514_s4 + $0x170] sm:$0xff]  }
  0xa2   :  { %v1226_v37 = vsel %vm1201_vm1, %v1219_v55, %v1225_v10  ;;  %2994 = vmatprep.subr.bf16.mxu0 %v3333_v18  ;;  %v1232_v35 = vor.u32 %v1231_v17, %v1230_v8  ;;  %v3910_v23 = vshll.u32 %v3799_v58, 16  ;;  %v3912_v15 = vpack.c.bf16 %v256_v28, %v255_v61  ;;  %v3340_v61 = vld [vmem:[%s4514_s4 + $0x30] sm:$0xff]  }
  0xa3   :  { %2976 = vmatprep.mubr.bf16.mxu0 %v1226_v37  ;;  %v1234_v21 = vrot.slane %v3900_v26, 5  ;;  %2851 = vmatpush3.bf16.msra.mxu1 %v3334_v16  ;;  %v348_v27 = vor.u32 %v3877_v47, %v344_v12  ;;  %v3916_v40 = vshrl.u32 %v3799_v58, 16  ;;  %v3919_v29 = vshll.u32 %v3820_v19, 16  ;;  %v3337_v16 = vld [vmem:[%s4514_s4 + $0x168] sm:$0xff]   ;;  %v3341_v37 = vld [vmem:[%s4514_s4 + $0x38] sm:$0xff]  }
  0xa4   :  { %2852 = vmatprep.subr.bf16.mxu1 %v3336_v20  ;;  %v345_v54 = vsel %vm289_vm0, %v340_v49, %v344_v12  ;;  %v3926_v43 = vshrl.u32 %v3820_v19, 16  ;;  %v1233_v28 = vsel %vm1201_vm1, %v1229_v62, %v1232_v35  ;;  %v360_v24 = vrot.slane %v3910_v23, 1  ;;  %v3342_v62 = vld [vmem:[%s4514_s4 + $0x178] sm:$0xff]  }
  0xa5   :  { %2995 = vmatpush3.bf16.msra.mxu0 %v3333_v18  ;;  %v1236_v30 = vor.u32 %v1235_v41, %v1234_v21  ;;  %2833 = vmatmul.mubr.bf16.gmra.mrb[8].mxu1 %v345_v54  ;;  %v353_v44 = vsel %vm289_vm0, %v348_v27, %v352_v38  ;;  %v1238_v55 = vrot.slane %v3916_v40, 5  ;;  %v1239_v56 = vrot.slane %v3910_v23, 6 }
  0xa6   :  { %2996 = vmatprep.subr.bf16.mxu0 %v3335_v51  ;;  %2836 = vmatprep.mubr.bf16.mxu1 %v353_v44  ;;  %v1242_v60 = vrot.slane %v3926_v43, 5  ;;  %v1243_v34 = vrot.slane %v3919_v29, 6  ;;  %v3940_v18 = vshll.u32 %v3912_v15, 16  ;;  %v368_v3 = vrot.slane %v3919_v29, 1 }
  0xa7   :  { %2853 = vmatpush3.bf16.msra.mxu1 %v3336_v20  ;;  %v1237_v33 = vsel %vm1201_vm1, %v1232_v35, %v1236_v30  ;;  %v356_v9 = vor.u32 %v3900_v26, %v352_v38  ;;  %v364_v10 = vor.u32 %v3916_v40, %v360_v24  ;;  %v1240_v12 = vor.u32 %v1239_v56, %v1238_v55 }
  0xa8   :  { %2977 = vmatmul.mubr.bf16.gmra.mrb[8].mxu0 %v1233_v28  ;;  %2854 = vmatprep.subr.bf16.mxu1 %v3338_v22  ;;  %v4522_v13 = vshrl.u32 %v3912_v15, 16  ;;  %v3952_v20 = vor.u32 %v1243_v34, %v1242_v60  ;;  %v376_v49 = vrot.slane %v3940_v18, 1  ;;  %v1461_v8 = vrot.slane %v3740_v52, 6 }
  0xa9   :  { %2980 = vmatprep.mubr.bf16.mxu0 %v1237_v33  ;;  %2997 = vmatpush3.bf16.msra.mxu0 %v3335_v51  ;;  %v1462_v17 = vrot.slane %v3738_v50, 6  ;;  %v361_v38 = vsel %vm289_vm0, %v356_v9, %v360_v24  ;;  %v369_v41 = vsel %vm289_vm0, %v364_v10, %v368_v3  ;;  %v372_v51 = vor.u32 %v3926_v43, %v368_v3  ;;  %v3987_v33 = vld [vmem:[%s4514_s4 + $0x180] sm:$0xff]  }
  0xaa   :  { %2998 = vmatprep.subr.bf16.mxu0 %v3337_v16  ;;  %v1241_v35 = vsel %vm1201_vm1, %v1236_v30, %v1240_v12  ;;  %v1248_v21 = vrot.slane %v4522_v13, 5  ;;  %v1249_v27 = vrot.slane %v3940_v18, 6  ;;  %v1245_v54 = vsel %vm1201_vm1, %v1240_v12, %v3952_v20  ;;  %v3978_v30 = vld [vmem:[%s4514_s4 + $0x80] sm:$0xff]  }
  0xab   :  { %2855 = vmatpush3.bf16.msra.mxu1 %v3338_v22  ;;  %v1464_v22 = vrot.slane %v3760_v14, 6  ;;  %v377_v44 = vsel %vm289_vm0, %v372_v51, %v376_v49  ;;  %v1466_v28 = vrot.slane %v3771_v39, 6  ;;  %v4523_v24 = vrot.slane %v3788_v57, 6 }
  0xac   :  { %2856 = vmatprep.subr.bf16.mxu1 %v3340_v61  ;;  %v4519_v55 = vrot.slane %v3760_v14, 1  ;;  %v745_v56 = vrot.slane %v3771_v39, 1  ;;  %v4521_v60 = vrot.slane %v3760_v14, 2  ;;  %v1697_v34 = vrot.slane %v3771_v39, 2 }
  0xad   :  { %2999 = vmatpush3.bf16.msra.mxu0 %v3337_v16  ;;  %2837 = vmatmul.mubr.bf16.gmra.mrb[12].mxu1 %v361_v38  ;;  %v1463_v16 = vsel %vm1460_vm2, %v1461_v8, %v1462_v17  ;;  %v747_v3 = vrot.slane %v3788_v57, 1  ;;  %v3994_v9 = vsel %vm1460_vm2, %v1462_v17, %v1464_v22  ;;  %v749_v12 = vrot.slane %v3822_v42, 1 }
  0xae   :  { %3000 = vmatprep.subr.bf16.mxu0 %v3339_v7  ;;  %2840 = vmatprep.mubr.bf16.mxu1 %v369_v41  ;;  %v3999_v10 = vsel %vm739_vm3, %v4519_v55, %v745_v56  ;;  %v4006_v49 = vsel %vm1693_vm4, %v4521_v60, %v1697_v34  ;;  %v1703_v51 = vrot.slane %v3854_v63, 2  ;;  %v758_v55 = vrot.slane %v3820_v19, 1 }
  0xaf   :  { %2857 = vmatpush3.bf16.msra.mxu1 %v3340_v61  ;;  %v1699_v61 = vrot.slane %v3788_v57, 2  ;;  %v4012_v17 = vsel %vm739_vm3, %v745_v56, %v747_v3  ;;  %v4017_v41 = vsel %vm739_vm3, %v747_v3, %v749_v12  ;;  %v1925_v38 = vrot.slane %v3756_v2, 2 }
  0xb0   :  { %2981 = vmatmul.mubr.bf16.gmra.mrb[12].mxu0 %v1241_v35  ;;  %2858 = vmatprep.subr.bf16.mxu1 %v3341_v37  ;;  %v4520_v35 = vrot.slane %v3764_v59, 1  ;;  %v4525_v2 = vrot.slane %v3760_v14, 5 }
  0xb1   :  { %2984 = vmatprep.mubr.bf16.mxu0 %v1245_v54  ;;  %3001 = vmatpush3.bf16.msra.mxu0 %v3339_v7  ;;  %v1250_v7 = vor.u32 %v1249_v27, %v1248_v21  ;;  %v4009_v8 = vsel %vm1693_vm4, %v1697_v34, %v1699_v61  ;;  %v754_v27 = vrot.slane %v3766_v6, 1  ;;  %v1706_v54 = vrot.slane %v3766_v6, 2 }
  0xb2   :  { %3002 = vmatprep.subr.bf16.mxu0 %v3342_v62 }
  0xb3   :  { %2859 = vmatpush3.bf16.msra.mxu1 %v3341_v37  ;;  %v1701_v37 = vrot.slane %v3822_v42, 2  ;;  %v1251_v56 = vsel %vm1201_vm1, %v3952_v20, %v1250_v7  ;;  %v4039_v3 = vsel %vm739_vm3, %v4520_v35, %v754_v27  ;;  %v1710_v20 = vrot.slane %v3820_v19, 2 }
  0xb4   :  { %2880 = vmatprep.subr.bf16.mxu1 %v3978_v30  ;;  %v1467_v35 = vsel %vm1460_vm2, %v1464_v22, %v1466_v28  ;;  %v4073_v22 = vsel %vm1460_vm2, %v1466_v28, %v4523_v24  ;;  %v1932_v28 = vrot.slane %v3794_v32, 2  ;;  %v3344_v24 = vld [vmem:[%s4514_s4 + $0x188] sm:$0xff]  }
  0xb5   :  { %3003 = vmatpush3.bf16.msra.mxu0 %v3342_v62  ;;  %2841 = vmatmul.mubr.bf16.gmra.mrb[16].mxu1 %v377_v44  ;;  %v4023_v21 = vsel %vm1693_vm4, %v1699_v61, %v1701_v37  ;;  %v1705_v62 = vrot.slane %v3764_v59, 2  ;;  %v4032_v34 = vsel %vm1693_vm4, %v1701_v37, %v1703_v51  ;;  %v1708_v44 = vrot.slane %v3799_v58, 2 }
  0xb6   :  { %3024 = vmatprep.subr.bf16.mxu0 %v3987_v33  ;;  %2860 = vmatprep.mubr.bf16.mxu1 %v3740_v52  ;;  %v756_v61 = vrot.slane %v3799_v58, 1  ;;  %v1712_v51 = vrot.slane %v3912_v15, 2 }
  0xb7   :  { %v4042_v12 = vsel %vm1693_vm4, %v1705_v62, %v1706_v54  ;;  %v4047_v7 = vsel %vm1693_vm4, %v1706_v54, %v1708_v44  ;;  %v4060_v13 = vsel %vm1693_vm4, %v1708_v44, %v1710_v20  ;;  %v1714_v54 = vrot.slane %v3856_v45, 2  ;;  %v3347_v44 = vld [vmem:[%s4514_s4 + $0x88] sm:$0xff]  }
  0xb8   :  { %2985 = vmatmul.mubr.bf16.gmra.mrb[16].mxu0 %v1251_v56  ;;  %v4050_v37 = vsel %vm739_vm3, %v754_v27, %v756_v61  ;;  %v760_v56 = vrot.slane %v3912_v15, 1  ;;  %v4057_v60 = vsel %vm739_vm3, %v756_v61, %v758_v55  ;;  %v1926_v61 = vrot.slane %v3753_v0, 3 }
  0xb9   :  { %3004 = vmatprep.mubr.bf16.mxu0 %v1463_v16  ;;  %v4063_v16 = vsel %vm1693_vm4, %v1710_v20, %v1712_v51  ;;  %v1928_v20 = vrot.slane %v3779_v11, 2  ;;  %v976_v62 = vrot.slane %v3771_v39, 5  ;;  %v1933_v11 = vrot.slane %v3791_v31, 3  ;;  %v3348_v31 = vld [vmem:[%s4514_s4 + $0x90] sm:$0xff]  }
  0xba   :  { %v4066_v27 = vsel %vm739_vm3, %v758_v55, %v760_v56  ;;  %v1929_v55 = vrot.slane %v3774_v36, 3  ;;  %v4082_v56 = vsel %vm1693_vm4, %v1712_v51, %v1714_v54  ;;  %v1927_v0 = vor.u32 %v1926_v61, %v1925_v38 }
  0xbb   :  { %v1936_v36 = vrot.slane %v3828_v25, 2  ;;  %v4099_v32 = vsel %vm970_vm6, %v4525_v2, %v976_v62  ;;  %v1937_v54 = vrot.slane %v3825_v48, 3  ;;  %v978_v38 = vrot.slane %v3788_v57, 5 }
  0xbc   :  { %v1930_v53 = vor.u32 %v1929_v55, %v1928_v20  ;;  %v980_v61 = vrot.slane %v3822_v42, 5  ;;  %v4527_v20 = vshrl.u32 %v3822_v42, 16  ;;  %v1941_v2 = vrot.slane %v3859_v46, 3 }
  0xbd   :  { %2861 = vmatmul.mubr.bf16.vlgmr.msra.gmra.mrb[0].mxu1 %v3738_v50  ;;  %v1938_v48 = vor.u32 %v1937_v54, %v1936_v36  ;;  %v1945_v51 = vshrl.u32 %v3854_v63, 16  ;;  %v4526_v54 = vrot.slane %v3764_v59, 5 }
  0xbe   :  { %2864 = vmatprep.mubr.bf16.mxu1 %v3760_v14  ;;  %2881 = vmatpush3.bf16.msra.mxu1 %v3978_v30  ;;  %v4108_v25 = vsel %vm1924_vm5, %v1927_v0, %v1930_v53  ;;  %v1934_v30 = vor.u32 %v1933_v11, %v1932_v28  ;;  %v1940_v55 = vrot.slane %v4527_v20, 2  ;;  %v3346_v28 = vld [vmem:[%s4514_s4 + $0x190] sm:$0xff]   ;;  %v3350_v20 = vld [vmem:[%s4514_s4 + $0x98] sm:$0xff]   ;;  %v985_v0 = vrot.slane %v3766_v6, 5 }
  0xbf   :  { %2882 = vmatprep.subr.bf16.mxu1 %v3347_v44  ;;  %v1947_v36 = vrot.slane %v1945_v51, 2 }
  0xc0   :  { %3005 = vmatmul.mubr.bf16.vlgmr.msra.gmra.mrb[0].mxu0 %v3994_v9  ;;  %v4115_v9 = vsel %vm970_vm6, %v976_v62, %v978_v38  ;;  %v4124_v11 = vsel %vm1924_vm5, %v1930_v53, %v1934_v30  ;;  %v4131_v46 = vsel %vm1924_vm5, %v1934_v30, %v1938_v48  ;;  %v1942_v62 = vor.u32 %v1941_v2, %v1940_v55 }
  0xc1   :  { %3025 = vmatpush3.bf16.msra.mxu0 %v3987_v33  ;;  %3008 = vmatprep.mubr.bf16.mxu0 %v1467_v35  ;;  %v4127_v33 = vsel %vm970_vm6, %v978_v38, %v980_v61  ;;  %v1948_v35 = vshll.u32 %v3854_v63, 16  ;;  %v1953_v38 = vrot.slane %v3877_v47, 2  ;;  %v1954_v61 = vrot.slane %v3837_v1, 3  ;;  %v3349_v1 = vld [vmem:[%s4514_s4 + $0x198] sm:$0xff]  }
  0xc2   :  { %3026 = vmatprep.subr.bf16.mxu0 %v3344_v24  ;;  %2883 = vmatpush3.bf16.msra.mxu1 %v3347_v44  ;;  %v4528_v44 = vrot.slane %v3822_v42, 6  ;;  %v4529_v2 = vrot.slane %v3788_v57, 6  ;;  %v4146_v30 = vsel %vm1924_vm5, %v1938_v48, %v1942_v62  ;;  %v1956_v55 = vrot.slane %v3900_v26, 2 }
  0xc3   :  { %2884 = vmatprep.subr.bf16.mxu1 %v3348_v31  ;;  %v1950_v53 = vrot.slane %v1948_v35, 3  ;;  %4530 = vst [vmem:[#allocation2_spill] sm:$0xff] %v4146_v30  ;;  %v1957_v35 = vrot.slane %v3883_v4, 3  ;;  %v1960_v48 = vrot.slane %v3916_v40, 2  ;;  %v1961_v26 = vrot.slane %v3910_v23, 3 }
  0xc4   :  { %v1471_v51 = vsel %vm1460_vm2, %v4529_v2, %v4528_v44  ;;  %v1955_v44 = vor.u32 %v1954_v61, %v1953_v38  ;;  %v987_v2 = vrot.slane %v3799_v58, 5  ;;  %v989_v30 = vrot.slane %v3820_v19, 5 }
  0xc5   :  { %3027 = vmatpush3.bf16.msra.mxu0 %v3344_v24  ;;  %2865 = vmatmul.mubr.bf16.gmra.mrb[4].mxu1 %v3771_v39  ;;  %v1951_v47 = vor.u32 %v1950_v53, %v1947_v36  ;;  %v4157_v24 = vsel %vm970_vm6, %v4526_v54, %v985_v0  ;;  %v1958_v4 = vor.u32 %v1957_v35, %v1956_v55  ;;  %v3352_v36 = vld [vmem:[%s4514_s4 + $0xa0] sm:$0xff]   ;;  %v1964_v40 = vrot.slane %v3926_v43, 2 }
  0xc6   :  { %3028 = vmatprep.subr.bf16.mxu0 %v3346_v28  ;;  %2868 = vmatprep.mubr.bf16.mxu1 %v3788_v57  ;;  %v4531_v23 = vshrl.u32 %v3912_v15, 16  ;;  %v4179_v55 = vsel %vm970_vm6, %v985_v0, %v987_v2  ;;  %v1969_v35 = vrot.slane %v3940_v18, 3  ;;  %v3351_v43 = vld [vmem:[%s4514_s4 + $0x1a0] sm:$0xff]   ;;  %v2204_v18 = vrot.slane %v3799_v58, 3 }
  0xc7   :  { %2885 = vmatpush3.bf16.msra.mxu1 %v3348_v31  ;;  %v4169_v53 = vsel %vm1924_vm5, %v1942_v62, %v1951_v47  ;;  %v1965_v31 = vrot.slane %v3919_v29, 3  ;;  %v4176_v61 = vsel %vm1924_vm5, %v1955_v44, %v1958_v4  ;;  %v4186_v29 = vsel %vm970_vm6, %v987_v2, %v989_v30 }
  0xc8   :  { %3009 = vmatmul.mubr.bf16.gmra.mrb[4].mxu0 %v4073_v22  ;;  %2886 = vmatprep.subr.bf16.mxu1 %v3350_v20  ;;  %v1968_v38 = vrot.slane %v4531_v23, 2  ;;  %v1962_v22 = vor.u32 %v1961_v26, %v1960_v48  ;;  %v1973_v44 = vshrl.u32 %v3856_v45, 16  ;;  %v4532_v48 = vrot.slane %v3764_v59, 6 }
  0xc9   :  { %3012 = vmatprep.mubr.bf16.mxu0 %v1471_v51  ;;  %3029 = vmatpush3.bf16.msra.mxu0 %v3346_v28  ;;  %v1966_v62 = vor.u32 %v1965_v31, %v1964_v40  ;;  %v991_v28 = vrot.slane %v3912_v15, 5  ;;  %v2202_v51 = vrot.slane %v3766_v6, 3  ;;  %v4533_v26 = vrot.slane %v3758_v5, 6  ;;  %v3354_v40 = vld [vmem:[%s4514_s4 + $0xa8] sm:$0xff]  }
  0xca   :  { %3030 = vmatprep.subr.bf16.mxu0 %v3349_v1  ;;  %v4191_v47 = vsel %vm1924_vm5, %v1958_v4, %v1962_v22  ;;  %v1970_v0 = vor.u32 %v1969_v35, %v1968_v38  ;;  %v1976_v31 = vshll.u32 %v3856_v45, 16  ;;  %v4535_v23 = vrot.slane %v3766_v6, 6 }
  0xcb   :  { %2887 = vmatpush3.bf16.msra.mxu1 %v3350_v20  ;;  %v1474_v2 = vsel %vm1460_vm2, %v4533_v26, %v4532_v48  ;;  %v4204_v20 = vsel %vm1924_vm5, %v1962_v22, %v1966_v62  ;;  %v4207_v4 = vsel %vm970_vm6, %v989_v30, %v991_v28  ;;  %v4536_v38 = vmov %v4532_v48  ;;  %v3353_v30 = vld [vmem:[%s4514_s4 + $0x1a8] sm:$0xff]  }
  0xcc   :  { %2888 = vmatprep.subr.bf16.mxu1 %v3352_v36  ;;  %4534 = vst [vmem:[#allocation3_spill] sm:$0xff] %v4207_v4  ;;  %v1476_v35 = vsel %vm1460_vm2, %v4536_v38, %v4535_v23  ;;  %v4216_v48 = vsel %vm1924_vm5, %v1966_v62, %v1970_v0  ;;  %v4219_v26 = vsel %vm2189_vm7, %v2202_v51, %v2204_v18  ;;  %v1975_v22 = vrot.slane %v1973_v44, 2 }
  0xcd   :  { %3031 = vmatpush3.bf16.msra.mxu0 %v3349_v1  ;;  %4537 = vst [vmem:[#allocation4_spill] sm:$0xff] %v4219_v26  ;;  %2869 = vmatmul.mubr.bf16.gmra.mrb[8].mxu1 %v3758_v5  ;;  %v1978_v1 = vrot.slane %v1976_v31, 3  ;;  %v2206_v28 = vrot.slane %v3820_v19, 3  ;;  %v2208_v54 = vrot.slane %v3912_v15, 3  ;;  %v2193_v23 = vrot.slane %v3771_v39, 3  ;;  %v3356_v31 = vld [vmem:[%s4514_s4 + $0xb0] sm:$0xff]  }
  0xce   :  { %3032 = vmatprep.subr.bf16.mxu0 %v3351_v43  ;;  %2872 = vmatprep.mubr.bf16.mxu1 %v3764_v59  ;;  %v2195_v44 = vrot.slane %v3788_v57, 3  ;;  %v2210_v38 = vrot.slane %v3856_v45, 3  ;;  %v2197_v26 = vrot.slane %v3822_v42, 3  ;;  %v2199_v62 = vrot.slane %v3854_v63, 3  ;;  %v3355_v63 = vld [vmem:[%s4514_s4 + $0x1b0] sm:$0xff]  }
  0xcf   :  { %2889 = vmatpush3.bf16.msra.mxu1 %v3352_v36  ;;  %v1979_v4 = vor.u32 %v1978_v1, %v1975_v22  ;;  %v4237_v39 = vsel %vm2189_vm7, %v2204_v18, %v2206_v28  ;;  %v4240_v36 = vsel %vm2189_vm7, %v2206_v28, %v2208_v54  ;;  %v4538_v57 = vrot.slane %v3760_v14, 3 }
  0xd0   :  { %3013 = vmatmul.mubr.bf16.gmra.mrb[8].mxu0 %v1474_v2  ;;  %2890 = vmatprep.subr.bf16.mxu1 %v3354_v40  ;;  %v4249_v45 = vsel %vm2189_vm7, %v2193_v23, %v2195_v44  ;;  %v4252_v2 = vsel %vm2189_vm7, %v2208_v54, %v2210_v38  ;;  %v2201_v18 = vrot.slane %v3764_v59, 3  ;;  %v4265_v22 = vsel %vm2189_vm7, %v2197_v26, %v2199_v62 }
  0xd1   :  { %3016 = vmatprep.mubr.bf16.mxu0 %v1476_v35  ;;  %3033 = vmatpush3.bf16.msra.mxu0 %v3351_v43  ;;  %v4246_v42 = vsel %vm2189_vm7, %v4538_v57, %v2193_v23  ;;  %v4259_v43 = vsel %vm1924_vm5, %v1970_v0, %v1979_v4  ;;  %v4262_v35 = vsel %vm2189_vm7, %v2195_v44, %v2197_v26  ;;  %v1477_v1 = vrot.slane %v3799_v58, 6  ;;  %v3357_v0 = vld [vmem:[%s4514_s4 + $0xb8] sm:$0xff]  }
  0xd2   :  { %3034 = vmatprep.subr.bf16.mxu0 %v3353_v30  ;;  %v4269_v54 = vsel %vm2189_vm7, %v2201_v18, %v2202_v51  ;;  %v1479_v28 = vrot.slane %v3820_v19, 6  ;;  %v3358_v4 = vld [vmem:[%s4514_s4 + $0x1b8] sm:$0xff]   ;;  %v4539_v51 = vrot.slane %v3766_v6, 6  ;;  %v740_v23 = vrot.slane %v3740_v52, 1 }
  0xd3   :  { %2891 = vmatpush3.bf16.msra.mxu1 %v3354_v40  ;;  %v741_v62 = vrot.slane %v3738_v50, 1  ;;  %v1694_v38 = vrot.slane %v3738_v50, 2  ;;  %v4540_v57 = vrot.slane %v3760_v14, 2 }
  0xd4   :  { %2892 = vmatprep.subr.bf16.mxu1 %v3356_v31  ;;  %v1478_v40 = vsel %vm1460_vm2, %v4539_v51, %v1477_v1  ;;  %v1480_v26 = vsel %vm1460_vm2, %v1477_v1, %v1479_v28  ;;  %v3360_v1 = vld [vmem:[%s4514_s4 + $0x1c8] sm:$0xff]  }
  0xd5   :  { %3035 = vmatpush3.bf16.msra.mxu0 %v3353_v30  ;;  %2873 = vmatmul.mubr.bf16.gmra.mrb[12].mxu1 %v3766_v6  ;;  %v3361_v30 = vld [vmem:[%s4514_s4 + $0xc0] sm:$0xff]   ;;  %v742_v44 = vsel %vm739_vm3, %v740_v23, %v741_v62  ;;  %v1696_v18 = vsel %vm1693_vm4, %v1694_v38, %v4540_v57 }
  0xd6   :  { %3036 = vmatprep.subr.bf16.mxu0 %v3355_v63  ;;  %2876 = vmatprep.mubr.bf16.mxu1 %v3799_v58  ;;  %v3359_v6 = vld [vmem:[%s4514_s4 + $0x1c0] sm:$0xff]   ;;  %v1481_v58 = vrot.slane %v3912_v15, 6  ;;  %v3363_v15 = vld [vmem:[%s4514_s4 + $0xc8] sm:$0xff]  }
  0xd7   :  { %2893 = vmatpush3.bf16.msra.mxu1 %v3356_v31 }
  0xd8   :  { %3017 = vmatmul.mubr.bf16.gmra.mrb[12].mxu0 %v1478_v40  ;;  %2894 = vmatprep.subr.bf16.mxu1 %v3357_v0  ;;  %v1482_v31 = vsel %vm1460_vm2, %v1479_v28, %v1481_v58  ;;  %v3364_v28 = vld [vmem:[%s4514_s4 + $0xd0] sm:$0xff]  }
  0xd9   :  { %3020 = vmatprep.mubr.bf16.mxu0 %v1480_v26  ;;  %3037 = vmatpush3.bf16.msra.mxu0 %v3355_v63  ;;  %v3372_v40 = vld [vmem:[%s4514_s4 + $0xf0] sm:$0xff]  }
  0xda   :  { %3038 = vmatprep.subr.bf16.mxu0 %v3358_v4  ;;  %v3371_v26 = vld [vmem:[%s4514_s4 + $0x1f0] sm:$0xff]  }
  0xdb   :  { %2895 = vmatpush3.bf16.msra.mxu1 %v3357_v0  ;;  %v3362_v0 = vld [vmem:[%s4514_s4 + $0x1d0] sm:$0xff]  }
  0xdc   :  { %2916 = vmatprep.subr.bf16.mxu1 %v3361_v30 }
  0xdd   :  { %3039 = vmatpush3.bf16.msra.mxu0 %v3358_v4  ;;  %2877 = vmatmul.mubr.bf16.gmra.mrb[16].mxu1 %v3820_v19  ;;  %v4541_v19 = vrot.slane %v3760_v14, 1  ;;  %v3367_v4 = vld [vmem:[%s4514_s4 + $0x1e0] sm:$0xff]  }
  0xde   :  { %3060 = vmatprep.subr.bf16.mxu0 %v3359_v6  ;;  %2896 = vmatprep.mubr.bf16.mxu1 %v742_v44 }
  0xdf   :  { %v744_v63 = vsel %vm739_vm3, %v741_v62, %v4541_v19 }
  0xe0   :  { %3021 = vmatmul.mubr.bf16.gmra.mrb[16].mxu0 %v1482_v31 }
  0xe1   :  { %3040 = vmatprep.mubr.bf16.mxu0 %v1696_v18 }
  0xe5   :  { %2897 = vmatmul.mubr.bf16.vlgmr.msra.gmra.mrb[0].mxu1 %v744_v63 }
  0xe6   :  { %2900 = vmatprep.mubr.bf16.mxu1 %v3999_v10  ;;  %2917 = vmatpush3.bf16.msra.mxu1 %v3361_v30  ;;  %v3366_v10 = vld [vmem:[%s4514_s4 + $0xd8] sm:$0xff]   ;;  %v972_v30 = vrot.slane %v3738_v50, 5 }
  0xe7   :  { %2918 = vmatprep.subr.bf16.mxu1 %v3363_v15 }
  0xe8   :  { %3041 = vmatmul.mubr.bf16.vlgmr.msra.gmra.mrb[0].mxu0 %v4006_v49  ;;  %v3365_v49 = vld [vmem:[%s4514_s4 + $0x1d8] sm:$0xff]  }
  0xe9   :  { %3061 = vmatpush3.bf16.msra.mxu0 %v3359_v6  ;;  %3044 = vmatprep.mubr.bf16.mxu0 %v4009_v8  ;;  %v3368_v8 = vld [vmem:[%s4514_s4 + $0xe0] sm:$0xff]  }
  0xea   :  { %3062 = vmatprep.subr.bf16.mxu0 %v3360_v1  ;;  %2919 = vmatpush3.bf16.msra.mxu1 %v3363_v15 }
  0xeb   :  { %2920 = vmatprep.subr.bf16.mxu1 %v3364_v28 }
  0xed   :  { %3063 = vmatpush3.bf16.msra.mxu0 %v3360_v1  ;;  %2901 = vmatmul.mubr.bf16.gmra.mrb[4].mxu1 %v4012_v17  ;;  %v751_v17 = vrot.slane %v3758_v5, 1 }
  0xee   :  { %3064 = vmatprep.subr.bf16.mxu0 %v3362_v0  ;;  %2904 = vmatprep.mubr.bf16.mxu1 %v4017_v41  ;;  %v3370_v41 = vld [vmem:[%s4514_s4 + $0xe8] sm:$0xff]  }
  0xef   :  { %2921 = vmatpush3.bf16.msra.mxu1 %v3364_v28 }
  0xf0   :  { %3045 = vmatmul.mubr.bf16.gmra.mrb[4].mxu0 %v4023_v21  ;;  %2922 = vmatprep.subr.bf16.mxu1 %v3366_v10  ;;  %v4542_v21 = vrot.slane %v3764_v59, 1 }
  0xf1   :  { %3048 = vmatprep.mubr.bf16.mxu0 %v4032_v34  ;;  %3065 = vmatpush3.bf16.msra.mxu0 %v3362_v0  ;;  %v3369_v34 = vld [vmem:[%s4514_s4 + $0x1e8] sm:$0xff]  }
  0xf2   :  { %3066 = vmatprep.subr.bf16.mxu0 %v3365_v49  ;;  %v753_v51 = vsel %vm739_vm3, %v751_v17, %v4542_v21 }
  0xf3   :  { %2923 = vmatpush3.bf16.msra.mxu1 %v3366_v10 }
  0xf4   :  { %2924 = vmatprep.subr.bf16.mxu1 %v3368_v8 }
  0xf5   :  { %3067 = vmatpush3.bf16.msra.mxu0 %v3365_v49  ;;  %2905 = vmatmul.mubr.bf16.gmra.mrb[8].mxu1 %v753_v51 }
  0xf6   :  { %3068 = vmatprep.subr.bf16.mxu0 %v3367_v4  ;;  %2908 = vmatprep.mubr.bf16.mxu1 %v4039_v3  ;;  %v3373_v3 = vld [vmem:[%s4514_s4 + $0xf8] sm:$0xff]  }
  0xf7   :  { %2925 = vmatpush3.bf16.msra.mxu1 %v3368_v8 }
  0xf8   :  { %3049 = vmatmul.mubr.bf16.gmra.mrb[8].mxu0 %v4042_v12  ;;  %2926 = vmatprep.subr.bf16.mxu1 %v3370_v41  ;;  %v3374_v12 = vld [vmem:[%s4514_s4 + $0x1f8] sm:$0xff]  }
  0xf9   :  { %3052 = vmatprep.mubr.bf16.mxu0 %v4047_v7  ;;  %3069 = vmatpush3.bf16.msra.mxu0 %v3367_v4  ;;  %v3375_v7 = vld [vmem:[%s4514_s4 + $0x200] sm:$0xff]  }
  0xfa   :  { %3070 = vmatprep.subr.bf16.mxu0 %v3369_v34 }
  0xfb   :  { %2927 = vmatpush3.bf16.msra.mxu1 %v3370_v41 }
  0xfc   :  { %2928 = vmatprep.subr.bf16.mxu1 %v3372_v40 }
  0xfd   :  { %3071 = vmatpush3.bf16.msra.mxu0 %v3369_v34  ;;  %2909 = vmatmul.mubr.bf16.gmra.mrb[12].mxu1 %v4050_v37  ;;  %v971_v37 = vrot.slane %v3740_v52, 5  ;;  %v3376_v52 = vld [vmem:[%s4514_s4 + $0x208] sm:$0xff]  }
  0xfe   :  { %3072 = vmatprep.subr.bf16.mxu0 %v3371_v26  ;;  %2912 = vmatprep.mubr.bf16.mxu1 %v4057_v60  ;;  %v4543_v60 = vrot.slane %v3760_v14, 5 }
  0xff   :  { %2929 = vmatpush3.bf16.msra.mxu1 %v3372_v40 }
 0x100   :  { %3053 = vmatmul.mubr.bf16.gmra.mrb[12].mxu0 %v4060_v13  ;;  %2930 = vmatprep.subr.bf16.mxu1 %v3373_v3  ;;  %v973_v13 = vsel %vm970_vm6, %v971_v37, %v972_v30 }
 0x101   :  { %3056 = vmatprep.mubr.bf16.mxu0 %v4063_v16  ;;  %3073 = vmatpush3.bf16.msra.mxu0 %v3371_v26  ;;  %v975_v16 = vsel %vm970_vm6, %v972_v30, %v4543_v60 }
 0x102   :  { %3074 = vmatprep.subr.bf16.mxu0 %v3374_v12 }
 0x103   :  { %2931 = vmatpush3.bf16.msra.mxu1 %v3373_v3 }
 0x104   :  { %3132 = vmatprep.subr.bf16.mxu1 %v3375_v7 }
 0x105   :  { %3075 = vmatpush3.bf16.msra.mxu0 %v3374_v12  ;;  %2913 = vmatmul.mubr.bf16.gmra.mrb[16].mxu1 %v4066_v27  ;;  %v3377_v27 = vld [vmem:[%s4514_s4 + $0x210] sm:$0xff]  }
 0x106   :  { %3096 = vmatprep.subr.bf16.mxu0 %v3375_v7  ;;  %2932 = vmatprep.mubr.bf16.mxu1 %v973_v13 }
 0x108   :  { %3057 = vmatmul.mubr.bf16.gmra.mrb[16].mxu0 %v4082_v56  ;;  %v3378_v56 = vld [vmem:[%s4514_s4 + $0x218] sm:$0xff]  }
 0x109   :  { %3076 = vmatprep.mubr.bf16.mxu0 %v4108_v25  ;;  %v3379_v25 = vld [vmem:[%s4514_s4 + $0x220] sm:$0xff]  }
 0x10d   :  { %2933 = vmatmul.mubr.bf16.vlgmr.msra.gmra.mrb[0].mxu1 %v975_v16 }
 0x10e   :  { %2936 = vmatprep.mubr.bf16.mxu1 %v4099_v32  ;;  %3140 = vmatpush3.bf16.msra.mxu1 %v3375_v7  ;;  %v4544_v32 = vld [vmem:[#allocation2_spill] sm:$0xff] }
 0x10f   :  { %3133 = vmatprep.subr.bf16.mxu1 %v3376_v52 }
 0x110   :  { %3077 = vmatmul.mubr.bf16.vlgmr.msra.gmra.mrb[0].mxu0 %v4124_v11  ;;  %v982_v11 = vrot.slane %v3758_v5, 5  ;;  %v3381_v5 = vld [vmem:[%s4514_s4 + $0x230] sm:$0xff]  }
 0x111   :  { %3097 = vmatpush3.bf16.msra.mxu0 %v3375_v7  ;;  %3080 = vmatprep.mubr.bf16.mxu0 %v4131_v46 }
 0x112   :  { %3098 = vmatprep.subr.bf16.mxu0 %v3376_v52  ;;  %3141 = vmatpush3.bf16.msra.mxu1 %v3376_v52 }
 0x113   :  { %3134 = vmatprep.subr.bf16.mxu1 %v3377_v27 }
 0x115   :  { %3099 = vmatpush3.bf16.msra.mxu0 %v3376_v52  ;;  %2937 = vmatmul.mubr.bf16.gmra.mrb[4].mxu1 %v4115_v9  ;;  %v3380_v9 = vld [vmem:[%s4514_s4 + $0x228] sm:$0xff]  }
 0x116   :  { %3100 = vmatprep.subr.bf16.mxu0 %v3377_v27  ;;  %2940 = vmatprep.mubr.bf16.mxu1 %v4127_v33  ;;  %v4545_v33 = vrot.slane %v3764_v59, 5  ;;  %v3382_v59 = vld [vmem:[%s4514_s4 + $0x238] sm:$0xff]  }
 0x117   :  { %3142 = vmatpush3.bf16.msra.mxu1 %v3377_v27 }
 0x118   :  { %3081 = vmatmul.mubr.bf16.gmra.mrb[4].mxu0 %v4544_v32  ;;  %3135 = vmatprep.subr.bf16.mxu1 %v3378_v56  ;;  %v984_v46 = vsel %vm970_vm6, %v982_v11, %v4545_v33 }
 0x119   :  { %3084 = vmatprep.mubr.bf16.mxu0 %v4169_v53  ;;  %3101 = vmatpush3.bf16.msra.mxu0 %v3377_v27  ;;  %v2190_v53 = vrot.slane %v3738_v50, 3 }
 0x11a   :  { %3102 = vmatprep.subr.bf16.mxu0 %v3378_v56 }
 0x11b   :  { %3143 = vmatpush3.bf16.msra.mxu1 %v3378_v56 }
 0x11c   :  { %3136 = vmatprep.subr.bf16.mxu1 %v3379_v25 }
 0x11d   :  { %3103 = vmatpush3.bf16.msra.mxu0 %v3378_v56  ;;  %2941 = vmatmul.mubr.bf16.gmra.mrb[8].mxu1 %v984_v46 }
 0x11e   :  { %3104 = vmatprep.subr.bf16.mxu0 %v3379_v25  ;;  %2944 = vmatprep.mubr.bf16.mxu1 %v4157_v24  ;;  %v4546_v24 = vld [vmem:[#allocation3_spill] sm:$0xff] }
 0x11f   :  { %3144 = vmatpush3.bf16.msra.mxu1 %v3379_v25 }
 0x120   :  { %3085 = vmatmul.mubr.bf16.gmra.mrb[8].mxu0 %v4176_v61  ;;  %3137 = vmatprep.subr.bf16.mxu1 %v3380_v9  ;;  %v4547_v61 = vld [vmem:[#allocation4_spill] sm:$0xff] }
 0x121   :  { %3088 = vmatprep.mubr.bf16.mxu0 %v4191_v47  ;;  %3105 = vmatpush3.bf16.msra.mxu0 %v3379_v25 }
 0x122   :  { %3106 = vmatprep.subr.bf16.mxu0 %v3380_v9 }
 0x123   :  { %3145 = vmatpush3.bf16.msra.mxu1 %v3380_v9 }
 0x124   :  { %3138 = vmatprep.subr.bf16.mxu1 %v3381_v5 }
 0x125   :  { %3107 = vmatpush3.bf16.msra.mxu0 %v3380_v9  ;;  %2945 = vmatmul.mubr.bf16.gmra.mrb[12].mxu1 %v4179_v55  ;;  %v4548_v55 = vrot.slane %v3760_v14, 3 }
 0x126   :  { %3108 = vmatprep.subr.bf16.mxu0 %v3381_v5  ;;  %2948 = vmatprep.mubr.bf16.mxu1 %v4186_v29 }
 0x127   :  { %3146 = vmatpush3.bf16.msra.mxu1 %v3381_v5  ;;  %v2192_v29 = vsel %vm2189_vm7, %v2190_v53, %v4548_v55 }
 0x128   :  { %3089 = vmatmul.mubr.bf16.gmra.mrb[12].mxu0 %v4204_v20  ;;  %3139 = vmatprep.subr.bf16.mxu1 %v3382_v59 }
 0x129   :  { %3092 = vmatprep.mubr.bf16.mxu0 %v4216_v48  ;;  %3109 = vmatpush3.bf16.msra.mxu0 %v3381_v5 }
 0x12a   :  { %3110 = vmatprep.subr.bf16.mxu0 %v3382_v59 }
 0x12b   :  { %3147 = vmatpush3.bf16.msra.mxu1 %v3382_v59 }
 0x12d   :  { %3111 = vmatpush3.bf16.msra.mxu0 %v3382_v59  ;;  %2949 = vmatmul.mubr.bf16.gmra.mrb[16].mxu1 %v4546_v24 }
 0x12e   :  { %3124 = vmatprep.mubr.bf16.mxu1 %v4547_v61 }
 0x130   :  { %3093 = vmatmul.mubr.bf16.gmra.mrb[16].mxu0 %v4259_v43 }
 0x131   :  { %3112 = vmatprep.mubr.bf16.mxu0 %v2192_v29 }
 0x135   :  { %3125 = vmatmul.mubr.bf16.vlgmr.msra.gmra.mrb[20].mxu1 %v4237_v39 }
 0x136   :  { %3128 = vmatprep.mubr.bf16.mxu1 %v4240_v36 }
 0x138   :  { %3113 = vmatmul.mubr.bf16.vlgmr.msra.gmra.mrb[0].mxu0 %v4246_v42 }
 0x139   :  { %3116 = vmatprep.mubr.bf16.mxu0 %v4249_v45 }
 0x13d   :  { %3129 = vmatmul.mubr.bf16.gmra.mrb[24].mxu1 %v4252_v2 }
 0x140   :  { %3117 = vmatmul.mubr.bf16.gmra.mrb[4].mxu0 %v4262_v35 }
 0x141   :  { %3120 = vmatprep.mubr.bf16.mxu0 %v4265_v22 }
 0x148   :  { %3121 = vmatmul.mubr.bf16.gmra.mrb[8].mxu0 %v4269_v54 }
 0x1e0   :  { %v2934_v50 = vpop.f32.mrb[0].mxu1 }
 0x1e1   :  { %v1102_v14 = vpop.f32.mrb[1].mxu1 }
 0x1e2   :  { %v2935_v47 = vpop.f32.mrb[2].mxu1 }
 0x1e3   :  { %v1105_v20 = vpop.f32.mrb[3].mxu1 }
 0x1e8   :  { %v4429_v48 = vpop.f32.mrb[4].mxu1 }
 0x1e9   :  { %v4431_v39 = vpop.f32.mrb[5].mxu1 }
 0x1ea   :  { %v4433_v36 = vpop.f32.mrb[6].mxu1 }
 0x1eb   :  { %v4435_v42 = vpop.f32.mrb[7].mxu1 }
 0x1f0   :  { %v4437_v45 = vpop.f32.mrb[8].mxu1 }
 0x1f1   :  { %v4439_v2 = vpop.f32.mrb[9].mxu1 }
 0x1f2   :  { %v4441_v43 = vpop.f32.mrb[10].mxu1 }
 0x1f3   :  { %v4443_v35 = vpop.f32.mrb[11].mxu1 }
 0x1f8   :  { %v2946_v22 = vpop.f32.mrb[12].mxu1 }
 0x1f9   :  { %v1150_v54 = vpop.f32.mrb[13].mxu1 }
 0x1fa   :  { %v2947_v23 = vpop.f32.mrb[14].mxu1 }
 0x1fb   :  { %v3090_v62 = vpop.f32.mrb[12].mxu0  ;;  %v1153_v58 = vpop.f32.mrb[15].mxu1 }
 0x1fc   :  { %v3160_v6 = vadd.f32 %v3090_v62, %v2946_v22  ;;  %v2138_v44 = vpop.f32.mrb[13].mxu0 }
 0x1fd   :  { %v3162_v38 = vadd.f32 %v2138_v44, %v1150_v54  ;;  %v3091_v31 = vpop.f32.mrb[14].mxu0 }
 0x1fe   :  { %v3164_v57 = vadd.f32 %v3091_v31, %v2947_v23  ;;  %v2141_v18 = vpop.f32.mrb[15].mxu0 }
 0x1ff   :  { %v3166_v15 = vadd.f32 %v2141_v18, %v1153_v58 }
 0x200   :  { %v2950_v19 = vpop.f32.mrb[16].mxu1 }
 0x201   :  { %v1166_v63 = vpop.f32.mrb[17].mxu1 }
 0x202   :  { %v2951_v1 = vpop.f32.mrb[18].mxu1 }
 0x203   :  { %v3094_v28 = vpop.f32.mrb[16].mxu0  ;;  %v1169_v10 = vpop.f32.mrb[19].mxu1 }
 0x204   :  { %v3168_v0 = vadd.f32 %v3094_v28, %v2950_v19  ;;  %v2154_v49 = vpop.f32.mrb[17].mxu0 }
 0x205   :  { %v3170_v8 = vadd.f32 %v2154_v49, %v1166_v63  ;;  %v3095_v17 = vpop.f32.mrb[18].mxu0 }
 0x206   :  { %v3172_v4 = vadd.f32 %v3095_v17, %v2951_v1  ;;  %v2157_v41 = vpop.f32.mrb[19].mxu0 }
 0x207   :  { %v3174_v21 = vadd.f32 %v2157_v41, %v1169_v10 }
 0x208   :  { %v3126_v51 = vpop.f32.mrb[20].mxu1 }
 0x209   :  { %v3161_v34 = vadd.f32 %v3160_v6, %v3126_v51  ;;  %v2369_v40 = vpop.f32.mrb[21].mxu1 }
 0x20a   :  { %v3163_v26 = vadd.f32 %v3162_v38, %v2369_v40  ;;  %v3127_v12 = vpop.f32.mrb[22].mxu1 }
 0x20b   :  { %v3114_v3 = vpop.f32.mrb[0].mxu0  ;;  %2434 = vst [vmem:[%s4518_s5 + $0x70] sm:$0xff] %v3161_v34  ;;  %v3165_v37 = vadd.f32 %v3164_v57, %v3127_v12  ;;  %v2372_v13 = vpop.f32.mrb[23].mxu1 }
 0x20c   :  { %v3148_v7 = vadd.f32 %v3114_v3, %v2934_v50  ;;  %v2321_v30 = vpop.f32.mrb[1].mxu0  ;;  %2432 = vst [vmem:[%s4518_s5 + $0x60] sm:$0xff] %v3163_v26  ;;  %v3167_v60 = vadd.f32 %v3166_v15, %v2372_v13 }
 0x20d   :  { %v3149_v52 = vadd.f32 %v2321_v30, %v1102_v14  ;;  %v3115_v16 = vpop.f32.mrb[2].mxu0  ;;  %2435 = vst [vmem:[%s4518_s5 + $0x78] sm:$0xff] %v3165_v37 }
 0x20e   :  { %2422 = vst [vmem:[%s4518_s5 + $0x10] sm:$0xff] %v3148_v7  ;;  %v3150_v27 = vadd.f32 %v3115_v16, %v2935_v47  ;;  %v2324_v56 = vpop.f32.mrb[3].mxu0  ;;  %2433 = vst [vmem:[%s4518_s5 + $0x68] sm:$0xff] %v3167_v60 }
 0x20f   :  { %2420 = vst [vmem:[%s4518_s5] sm:$0xff] %v3149_v52  ;;  %v3151_v32 = vadd.f32 %v2324_v56, %v1105_v20 }
 0x210   :  { %2423 = vst [vmem:[%s4518_s5 + $0x18] sm:$0xff] %v3150_v27  ;;  %v3130_v25 = vpop.f32.mrb[24].mxu1 }
 0x211   :  { %2421 = vst [vmem:[%s4518_s5 + $0x8] sm:$0xff] %v3151_v32  ;;  %v3169_v11 = vadd.f32 %v3168_v0, %v3130_v25  ;;  %v2385_v9 = vpop.f32.mrb[25].mxu1 }
 0x212   :  { %v3171_v33 = vadd.f32 %v3170_v8, %v2385_v9  ;;  %v3131_v5 = vpop.f32.mrb[26].mxu1 }
 0x213   :  { %v3118_v46 = vpop.f32.mrb[4].mxu0  ;;  %2438 = vst [vmem:[%s4518_s5 + $0x90] sm:$0xff] %v3169_v11  ;;  %v3173_v24 = vadd.f32 %v3172_v4, %v3131_v5  ;;  %v2388_v61 = vpop.f32.mrb[27].mxu1 }
 0x214   :  { %v3152_v59 = vadd.f32 %v3118_v46, %v4429_v48  ;;  %v2337_v53 = vpop.f32.mrb[5].mxu0  ;;  %2436 = vst [vmem:[%s4518_s5 + $0x80] sm:$0xff] %v3171_v33  ;;  %v3175_v29 = vadd.f32 %v3174_v21, %v2388_v61 }
 0x215   :  { %v3153_v55 = vadd.f32 %v2337_v53, %v4431_v39  ;;  %v3119_v50 = vpop.f32.mrb[6].mxu0  ;;  %2439 = vst [vmem:[%s4518_s5 + $0x98] sm:$0xff] %v3173_v24 }
 0x216   :  { %2426 = vst [vmem:[%s4518_s5 + $0x30] sm:$0xff] %v3152_v59  ;;  %v3154_v14 = vadd.f32 %v3119_v50, %v4433_v36  ;;  %v2340_v47 = vpop.f32.mrb[7].mxu0  ;;  %2437 = vst [vmem:[%s4518_s5 + $0x88] sm:$0xff] %v3175_v29 }
 0x217   :  { %2424 = vst [vmem:[%s4518_s5 + $0x20] sm:$0xff] %v3153_v55  ;;  %v3155_v20 = vadd.f32 %v2340_v47, %v4435_v42 }
 0x218   :  { %2427 = vst [vmem:[%s4518_s5 + $0x38] sm:$0xff] %v3154_v14 }
 0x219   :  { %2425 = vst [vmem:[%s4518_s5 + $0x28] sm:$0xff] %v3155_v20 }
 0x21b   :  { %v3122_v48 = vpop.f32.mrb[8].mxu0 }
 0x21c   :  { %v3156_v39 = vadd.f32 %v3122_v48, %v4437_v45  ;;  %v2353_v36 = vpop.f32.mrb[9].mxu0 }
 0x21d   :  { %v3157_v22 = vadd.f32 %v2353_v36, %v4439_v2  ;;  %v3123_v54 = vpop.f32.mrb[10].mxu0 }
 0x21e   :  { %2430 = vst [vmem:[%s4518_s5 + $0x50] sm:$0xff] %v3156_v39  ;;  %v3158_v42 = vadd.f32 %v3123_v54, %v4441_v43  ;;  %v2356_v23 = vpop.f32.mrb[11].mxu0 }
 0x21f   :  { %2428 = vst [vmem:[%s4518_s5 + $0x40] sm:$0xff] %v3157_v22  ;;  %v3159_v62 = vadd.f32 %v2356_v23, %v4443_v35 }
 0x220   :  { %2431 = vst [vmem:[%s4518_s5 + $0x58] sm:$0xff] %v3158_v42 }
 0x221   :  { %2429 = vst [vmem:[%s4518_s5 + $0x48] sm:$0xff] %v3159_v62 }

</bundles_post_ra>
